<compile_context>
chip_gen: v6e
topology: v6e:2x2x1
jax: 0.10.0
libtpu: 0.0.40
codegen_flags: <defaults>
</compile_context>

<pallas_src>
import jax
import jax.numpy as jnp
import numpy as np
from jax.experimental import pallas as pl
from jax.experimental.pallas import tpu as pltpu

jax.config.update("jax_default_matmul_precision", "highest")  # for the pure-JAX reference

FLOAT_MIN = -1e38

MASK_LEN = 2
NODE_DIM = 300
MERGED_DIM = 2 * NODE_DIM        # 600
FC0_UNITS = 300
FC1_UNITS = 64
FC2_UNITS = 64
SP_COLS = 384                    # lane-padded width of the packed small-params buffer


def _distribution_kernel(x_ref, w0_ref, w1_ref, w2_ref, sp_ref, o_ref):
    """x_ref: (tm, L) raw observations; w0_ref: (2, 300, 300); sp_ref: packed small params."""
    L = x_ref.shape[-1]

    # Build merged halves and mask in-kernel (static unaligned lane slices are cheap).
    x1 = x_ref[:, 1:1 + NODE_DIM]              # input[1:301]        -> (tm, 300)
    x2 = x_ref[:, L - NODE_DIM:L]              # input[-300:]        -> (tm, 300)
    mask = x_ref[:, 0:MASK_LEN]                # input[:2]           -> (tm, 2)

    b0 = sp_ref[0:1, 0:FC0_UNITS]              # (1, 300)
    b1 = sp_ref[1:2, 0:FC1_UNITS]              # (1, 64)
    b2 = sp_ref[2:3, 0:FC2_UNITS]              # (1, 64)
    w3 = sp_ref[3:4, 0:FC2_UNITS]              # (1, 64)  fc3 weight as a row
    b3 = sp_ref[3:4, FC2_UNITS:FC2_UNITS + 1]  # (1, 1)

    # fc0: merged @ W0 == x1 @ W0[:300] + x2 @ W0[300:]  (no concat materialized)
    h = jnp.dot(x1, w0_ref[0], preferred_element_type=jnp.float32)
    h = h + jnp.dot(x2, w0_ref[1], preferred_element_type=jnp.float32) + b0
    h = jnp.maximum(h, 0.0)                                            # (tm, 300)
    h = jnp.maximum(
        jnp.dot(h, w1_ref[...], preferred_element_type=jnp.float32) + b1, 0.0)  # (tm, 64)
    h = jnp.maximum(
        jnp.dot(h, w2_ref[...], preferred_element_type=jnp.float32) + b2, 0.0)  # (tm, 64)

    # fc3: (tm,64).(64,1) as VPU multiply + lane reduction (skip the 1-col MXU matmul).
    logit = jnp.maximum(jnp.sum(h * w3, axis=-1, keepdims=True) + b3, 0.0)       # (tm, 1)

    # softmax over a length-1 axis is identically 1.0; `*0 + 1` propagates NaN/Inf
    # exactly like torch.nn.functional.softmax on a single element.
    sm = logit * 0.0 + 1.0                                                        # (tm, 1)

    inf_mask = jnp.maximum(jnp.log(mask), FLOAT_MIN)                              # (tm, 2)
    o_ref[...] = sm + inf_mask                                                    # (tm, 2)


def prepare_params(w0, b0, w1, b1, w2, b2, w3, b3):
    """One-time packing: split/stack w0, consolidate all small tensors into one buffer."""
    w0s = jnp.stack([w0[:NODE_DIM], w0[NODE_DIM:]])            # (2, 300, 300)
    sp = jnp.zeros((4, SP_COLS), jnp.float32)
    sp = sp.at[0, :FC0_UNITS].set(b0.reshape(FC0_UNITS))
    sp = sp.at[1, :FC1_UNITS].set(b1.reshape(FC1_UNITS))
    sp = sp.at[2, :FC2_UNITS].set(b2.reshape(FC2_UNITS))
    sp = sp.at[3, :FC2_UNITS].set(w3.reshape(FC2_UNITS))
    sp = sp.at[3, FC2_UNITS].set(jnp.asarray(b3, jnp.float32).reshape(()))
    return (w0s, w1, w2, sp)


def distribution_task_batched(flat_inputs, prep):
    """flat_inputs: f32[M, L] with L >= 601. Returns f32[M, 2]."""
    w0s, w1, w2, sp = prep
    M, L = flat_inputs.shape
    assert L >= MERGED_DIM + 1, "observation must be at least 601 long"

    tm = 128 if M >= 128 else 8
    M_pad = ((M + tm - 1) // tm) * tm
    if M_pad != M:
        # pad value 1.0 -> log(1)=0, keeps dead rows finite; they are sliced off below.
        flat_inputs = jnp.pad(flat_inputs, ((0, M_pad - M), (0, 0)), constant_values=1.0)

    flops = (2 * M_pad * (MERGED_DIM * FC0_UNITS + FC0_UNITS * FC1_UNITS
                          + FC1_UNITS * FC2_UNITS + FC2_UNITS)
             + 4 * M_pad * (FC0_UNITS + FC1_UNITS + FC2_UNITS + 1 + MASK_LEN))
    bytes_accessed = 4 * (w0s.size + w1.size + w2.size + sp.size
                          + M_pad * (L + MASK_LEN))

    grid_spec = pltpu.PrefetchScalarGridSpec(
        num_scalar_prefetch=0,
        grid=(M_pad // tm,),
        in_specs=[
            pl.BlockSpec((tm, L), lambda i: (i, 0)),
            # weights: constant block index -> stay resident in VMEM across the grid
            pl.BlockSpec((2, NODE_DIM, FC0_UNITS), lambda i: (0, 0, 0)),
            pl.BlockSpec((FC0_UNITS, FC1_UNITS), lambda i: (0, 0)),
            pl.BlockSpec((FC1_UNITS, FC2_UNITS), lambda i: (0, 0)),
            pl.BlockSpec((4, SP_COLS), lambda i: (0, 0)),
        ],
        out_specs=pl.BlockSpec((tm, MASK_LEN), lambda i: (i, 0)),
    )

    out = pl.pallas_call(
        _distribution_kernel,
        out_shape=jax.ShapeDtypeStruct((M_pad, MASK_LEN), jnp.float32),
        grid_spec=grid_spec,
        compiler_params=pltpu.CompilerParams(dimension_semantics=("parallel",)),
        cost_estimate=pl.CostEstimate(flops=flops,
                                      transcendentals=MASK_LEN * M_pad,
                                      bytes_accessed=bytes_accessed),
    )(flat_inputs, w0s, w1, w2, sp)
    return out[:M]


def distribution_task(flat_input, prep):
    """Single observation (the exact PyTorch forward): f32[L] -> f32[2]."""
    return distribution_task_batched(flat_input[None, :], prep)[0]


def init_params(key):
    """nn.Linear-style init; weights stored (in, out) so the kernel computes x @ W."""
    def linear(key, fan_in, fan_out):
        kw, kb = jax.random.split(key)
        bound = 1.0 / np.sqrt(fan_in)
        w = jax.random.uniform(kw, (fan_in, fan_out), jnp.float32, -bound, bound)
        b = jax.random.uniform(kb, (fan_out,), jnp.float32, -bound, bound)
        return w, b

    k0, k1, k2, k3 = jax.random.split(key, 4)
    w0, b0 = linear(k0, MERGED_DIM, FC0_UNITS)
    w1, b1 = linear(k1, FC0_UNITS, FC1_UNITS)
    w2, b2 = linear(k2, FC1_UNITS, FC2_UNITS)
    w3, b3 = linear(k3, FC2_UNITS, 1)
    return (w0, b0, w1, b1, w2, b2, w3.reshape(FC2_UNITS), b3.reshape(()))


def reference(flat_input, raw_params):
    """Pure-JAX mirror of DistributionTask.forward for one flat vector."""
    w0, b0, w1, b1, w2, b2, w3, b3 = raw_params
    merged = jnp.concatenate([flat_input[1:1 + NODE_DIM], flat_input[-NODE_DIM:]])
    h = jnp.maximum(merged @ w0 + b0, 0.0)
    h = jnp.maximum(h @ w1 + b1, 0.0)
    h = jnp.maximum(h @ w2 + b2, 0.0)
    logit = jnp.maximum(jnp.dot(h, w3) + b3, 0.0)          # scalar
    sm = jax.nn.softmax(logit[None])                        # (1,) == [1.0] for finite logit
    inf_mask = jnp.maximum(jnp.log(flat_input[:MASK_LEN]), FLOAT_MIN)
    return sm + inf_mask                                    # (2,)


if __name__ == "__main__":
    key = jax.random.PRNGKey(0)
    k_params, k_mask, k_body, k_batch = jax.random.split(key, 4)

    raw_params = init_params(k_params)
    prep = prepare_params(*raw_params)

    total_len = MASK_LEN + 2 * NODE_DIM        # 602-long flat observation

    # --- single-observation path (exact module semantics), incl. log(0) clamp ---
    mask = jax.random.uniform(k_mask, (MASK_LEN,), jnp.float32, 0.1, 1.0)
    mask = mask.at[0].set(0.0)                 # exercise log(0) -> clamp(-1e38)
    body = jax.random.normal(k_body, (total_len - MASK_LEN,), jnp.float32)
    flat_input = jnp.concatenate([mask, body])

    out = jax.block_until_ready(distribution_task(flat_input, prep))
    ref = jax.block_until_ready(reference(flat_input, raw_params))
    assert out.shape == (MASK_LEN,) and out.dtype == jnp.float32
    np.testing.assert_allclose(np.asarray(out), np.asarray(ref), rtol=5e-5, atol=5e-5)

    # --- batched path (amortizes weight DMA / dispatch across observations) ---
    M = 16
    batch_mask = jax.random.uniform(k_batch, (M, MASK_LEN), jnp.float32, 0.1, 1.0)
    batch_body = jax.random.normal(k_batch, (M, total_len - MASK_LEN), jnp.float32)
    batch = jnp.concatenate([batch_mask, batch_body], axis=-1)

    out_b = jax.block_until_ready(distribution_task_batched(batch, prep))
    ref_b = jax.block_until_ready(jax.vmap(reference, in_axes=(0, None))(batch, raw_params))
    assert out_b.shape == (M, MASK_LEN)
    np.testing.assert_allclose(np.asarray(out_b), np.asarray(ref_b), rtol=5e-5, atol=5e-5)

    print("KERNEL_OK")
</pallas_src>

<mosaic_0001>
module attributes {stable_mosaic.version = 11 : i64} {
  func.func @_distribution_kernel(%arg0: i32, %arg1: memref<8x602xf32, #tpu.memory_space<vmem>>, %arg2: memref<2x300x300xf32, #tpu.memory_space<vmem>>, %arg3: memref<300x64xf32, #tpu.memory_space<vmem>>, %arg4: memref<64x64xf32, #tpu.memory_space<vmem>>, %arg5: memref<4x384xf32, #tpu.memory_space<vmem>>, %arg6: memref<8x2xf32, #tpu.memory_space<vmem>>) attributes {dimension_semantics = [#tpu.dimension_semantics<parallel>], iteration_bounds = array<i64: 1>, scalar_prefetch = 0 : i64, scratch_operands = 0 : i64, tpu.core_type = #tpu.core_type<tc>, window_params = [{transform_indices = @transform_0, window_bounds = array<i64: 8, 602>}, {pipeline_mode = #tpu.pipeline_mode<synchronous>, transform_indices = @transform_1, window_bounds = array<i64: 2, 300, 300>}, {pipeline_mode = #tpu.pipeline_mode<synchronous>, transform_indices = @transform_2, window_bounds = array<i64: 300, 64>}, {pipeline_mode = #tpu.pipeline_mode<synchronous>, transform_indices = @transform_3, window_bounds = array<i64: 64, 64>}, {pipeline_mode = #tpu.pipeline_mode<synchronous>, transform_indices = @transform_4, window_bounds = array<i64: 4, 384>}, {transform_indices = @transform_5, window_bounds = array<i64: 8, 2>}]} {
    %c0 = arith.constant 0 : index
    %c1 = arith.constant 1 : index
    %0 = vector.load %arg1[%c0, %c1] : memref<8x602xf32, #tpu.memory_space<vmem>>, vector<8x300xf32>
    %c0_0 = arith.constant 0 : index
    %c302 = arith.constant 302 : index
    %1 = vector.load %arg1[%c0_0, %c302] : memref<8x602xf32, #tpu.memory_space<vmem>>, vector<8x300xf32>
    %c0_1 = arith.constant 0 : index
    %c0_2 = arith.constant 0 : index
    %2 = vector.load %arg1[%c0_1, %c0_2] : memref<8x602xf32, #tpu.memory_space<vmem>>, vector<8x2xf32>
    %c0_3 = arith.constant 0 : index
    %c0_4 = arith.constant 0 : index
    %3 = vector.load %arg5[%c0_3, %c0_4] : memref<4x384xf32, #tpu.memory_space<vmem>>, vector<1x300xf32>
    %c1_5 = arith.constant 1 : index
    %c0_6 = arith.constant 0 : index
    %4 = vector.load %arg5[%c1_5, %c0_6] : memref<4x384xf32, #tpu.memory_space<vmem>>, vector<1x64xf32>
    %c2 = arith.constant 2 : index
    %c0_7 = arith.constant 0 : index
    %5 = vector.load %arg5[%c2, %c0_7] : memref<4x384xf32, #tpu.memory_space<vmem>>, vector<1x64xf32>
    %c3 = arith.constant 3 : index
    %c0_8 = arith.constant 0 : index
    %6 = vector.load %arg5[%c3, %c0_8] : memref<4x384xf32, #tpu.memory_space<vmem>>, vector<1x64xf32>
    %c3_9 = arith.constant 3 : index
    %c64 = arith.constant 64 : index
    %7 = vector.load %arg5[%c3_9, %c64] : memref<4x384xf32, #tpu.memory_space<vmem>>, vector<1x1xf32>
    %c0_10 = arith.constant 0 : index
    %c0_11 = arith.constant 0 : index
    %c0_12 = arith.constant 0 : index
    %8 = vector.load %arg2[%c0_10, %c0_11, %c0_12] : memref<2x300x300xf32, #tpu.memory_space<vmem>>, vector<1x300x300xf32>
    %9 = vector.shape_cast %8 : vector<1x300x300xf32> to vector<300x300xf32>
    %cst = arith.constant dense<0.000000e+00> : vector<8x300xf32>
    %10 = tpu.matmul %0, %9, %cst {dimension_numbers = #tpu.dot_dimension_numbers<[1], [0], [0], [1], [0, 0, 1, 1], [], []>, precision = #tpu.contract_precision<fp32>} : vector<8x300xf32>, vector<300x300xf32>, vector<8x300xf32> -> vector<8x300xf32>
    %c1_13 = arith.constant 1 : index
    %c0_14 = arith.constant 0 : index
    %c0_15 = arith.constant 0 : index
    %11 = vector.load %arg2[%c1_13, %c0_14, %c0_15] : memref<2x300x300xf32, #tpu.memory_space<vmem>>, vector<1x300x300xf32>
    %12 = vector.shape_cast %11 : vector<1x300x300xf32> to vector<300x300xf32>
    %cst_16 = arith.constant dense<0.000000e+00> : vector<8x300xf32>
    %13 = tpu.matmul %1, %12, %cst_16 {dimension_numbers = #tpu.dot_dimension_numbers<[1], [0], [0], [1], [0, 0, 1, 1], [], []>, precision = #tpu.contract_precision<fp32>} : vector<8x300xf32>, vector<300x300xf32>, vector<8x300xf32> -> vector<8x300xf32>
    %14 = arith.addf %10, %13 : vector<8x300xf32>
    %15 = vector.broadcast %3 : vector<1x300xf32> to vector<8x300xf32>
    %16 = arith.addf %14, %15 : vector<8x300xf32>
    %cst_17 = arith.constant 0.000000e+00 : f32
    %17 = vector.broadcast %cst_17 : f32 to vector<8x300xf32>
    %18 = arith.maximumf %16, %17 : vector<8x300xf32>
    %c0_18 = arith.constant 0 : index
    %c0_19 = arith.constant 0 : index
    %19 = vector.load %arg3[%c0_18, %c0_19] : memref<300x64xf32, #tpu.memory_space<vmem>>, vector<300x64xf32>
    %cst_20 = arith.constant dense<0.000000e+00> : vector<8x64xf32>
    %20 = tpu.matmul %18, %19, %cst_20 {dimension_numbers = #tpu.dot_dimension_numbers<[1], [0], [0], [1], [0, 0, 1, 1], [], []>, precision = #tpu.contract_precision<fp32>} : vector<8x300xf32>, vector<300x64xf32>, vector<8x64xf32> -> vector<8x64xf32>
    %21 = vector.broadcast %4 : vector<1x64xf32> to vector<8x64xf32>
    %22 = arith.addf %20, %21 : vector<8x64xf32>
    %cst_21 = arith.constant 0.000000e+00 : f32
    %23 = vector.broadcast %cst_21 : f32 to vector<8x64xf32>
    %24 = arith.maximumf %22, %23 : vector<8x64xf32>
    %c0_22 = arith.constant 0 : index
    %c0_23 = arith.constant 0 : index
    %25 = vector.load %arg4[%c0_22, %c0_23] : memref<64x64xf32, #tpu.memory_space<vmem>>, vector<64x64xf32>
    %cst_24 = arith.constant dense<0.000000e+00> : vector<8x64xf32>
    %26 = tpu.matmul %24, %25, %cst_24 {dimension_numbers = #tpu.dot_dimension_numbers<[1], [0], [0], [1], [0, 0, 1, 1], [], []>, precision = #tpu.contract_precision<fp32>} : vector<8x64xf32>, vector<64x64xf32>, vector<8x64xf32> -> vector<8x64xf32>
    %27 = vector.broadcast %5 : vector<1x64xf32> to vector<8x64xf32>
    %28 = arith.addf %26, %27 : vector<8x64xf32>
    %cst_25 = arith.constant 0.000000e+00 : f32
    %29 = vector.broadcast %cst_25 : f32 to vector<8x64xf32>
    %30 = arith.maximumf %28, %29 : vector<8x64xf32>
    %31 = vector.broadcast %6 : vector<1x64xf32> to vector<8x64xf32>
    %32 = arith.mulf %30, %31 : vector<8x64xf32>
    %cst_26 = arith.constant dense<0.000000e+00> : vector<8xf32>
    %33 = vector.multi_reduction <add>, %32, %cst_26 [1] : vector<8x64xf32> to vector<8xf32>
    %34 = vector.shape_cast %33 : vector<8xf32> to vector<8x1xf32>
    %35 = vector.broadcast %7 : vector<1x1xf32> to vector<8x1xf32>
    %36 = arith.addf %34, %35 : vector<8x1xf32>
    %cst_27 = arith.constant 0.000000e+00 : f32
    %37 = vector.broadcast %cst_27 : f32 to vector<8x1xf32>
    %38 = arith.maximumf %36, %37 : vector<8x1xf32>
    %cst_28 = arith.constant 0.000000e+00 : f32
    %39 = vector.broadcast %cst_28 : f32 to vector<8x1xf32>
    %40 = arith.mulf %38, %39 : vector<8x1xf32>
    %cst_29 = arith.constant 1.000000e+00 : f32
    %41 = vector.broadcast %cst_29 : f32 to vector<8x1xf32>
    %42 = arith.addf %40, %41 : vector<8x1xf32>
    %43 = math.log %2 : vector<8x2xf32>
    %cst_30 = arith.constant -9.99999968E+37 : f32
    %44 = vector.broadcast %cst_30 : f32 to vector<8x2xf32>
    %45 = arith.maximumf %43, %44 : vector<8x2xf32>
    %46 = vector.broadcast %42 : vector<8x1xf32> to vector<8x2xf32>
    %47 = arith.addf %46, %45 : vector<8x2xf32>
    %c0_31 = arith.constant 0 : index
    %c0_32 = arith.constant 0 : index
    %48 = vector.load %arg6[%c0_31, %c0_32] : memref<8x2xf32, #tpu.memory_space<vmem>>, vector<8x2xf32>
    tpu.vector_store %arg6[%c0_31, %c0_32], %47 {strides = array<i32>} : memref<8x2xf32, #tpu.memory_space<vmem>>, vector<8x2xf32>,
    return
  }
  func.func @transform_0(%arg0: i32) -> (i32, i32) {
    %c0_i32 = arith.constant 0 : i32
    %c0_i32_0 = arith.constant 0 : i32
    return %arg0, %c0_i32 : i32, i32
  }
  func.func @transform_1(%arg0: i32) -> (i32, i32, i32) {
    %c0_i32 = arith.constant 0 : i32
    %c0_i32_0 = arith.constant 0 : i32
    %c0_i32_1 = arith.constant 0 : i32
    %c0_i32_2 = arith.constant 0 : i32
    return %c0_i32, %c0_i32_0, %c0_i32_1 : i32, i32, i32
  }
  func.func @transform_2(%arg0: i32) -> (i32, i32) {
    %c0_i32 = arith.constant 0 : i32
    %c0_i32_0 = arith.constant 0 : i32
    %c0_i32_1 = arith.constant 0 : i32
    return %c0_i32, %c0_i32_0 : i32, i32
  }
  func.func @transform_3(%arg0: i32) -> (i32, i32) {
    %c0_i32 = arith.constant 0 : i32
    %c0_i32_0 = arith.constant 0 : i32
    %c0_i32_1 = arith.constant 0 : i32
    return %c0_i32, %c0_i32_0 : i32, i32
  }
  func.func @transform_4(%arg0: i32) -> (i32, i32) {
    %c0_i32 = arith.constant 0 : i32
    %c0_i32_0 = arith.constant 0 : i32
    %c0_i32_1 = arith.constant 0 : i32
    return %c0_i32, %c0_i32_0 : i32, i32
  }
  func.func @transform_5(%arg0: i32) -> (i32, i32) {
    %c0_i32 = arith.constant 0 : i32
    %c0_i32_0 = arith.constant 0 : i32
    return %arg0, %c0_i32 : i32, i32
  }
}

</mosaic_0001>

<bundles_post_ra>
// kernel: tpu_custom_call.1
= control target key start
LH: loop header
LB: loop body
LE: loop exit
PB: predicated region body
PF: predicated region fallthrough
CT: control target
= control target key end

     0   :  { %s10160_s24 = smov 82   ;;  %vm267_vm0 = vcmask 670720   ;;  %vm275_vm1 = vcmask 1043456   ;;  %vm272_vm2 = vcmask 359424   ;;  %s10162_s18 = smov 127   ;;  %vm10163_vm3 = vmmov 0   ;;  %s16009_s0 = inlined_call_operand.vmem [shape: f32[8,602], index: 0, kind: input, shape index: {}]   ;;  %s16010_s1 = inlined_call_operand.vmem [shape: f32[2,300,300], index: 1, kind: input, shape index: {}]   ;;  %s16011_s2 = inlined_call_operand.vmem [shape: f32[300,64], index: 2, kind: input, shape index: {}]   ;;  %s16012_s4 = inlined_call_operand.vmem [shape: f32[4,384], index: 4, kind: input, shape index: {}]   ;;  %s16013_s3 = inlined_call_operand.vmem [shape: f32[64,64], index: 3, kind: input, shape index: {}]   ;;  %s16014_s5 = inlined_call_operand.vmem [shape: f32[8,2], index: 5, kind: output, shape index: {}]  }
   0x1   :  { %v23_v0 = vld [vmem:[%s16009_s0 + $0x18] sm:$0xff]  ;;  %v22_v1 = vld [vmem:[%s16009_s0 + $0x10] sm:$0xff]  ;;  %v24_v2 = vld [vmem:[%s16009_s0 + $0x20] sm:$0xff]  ;;  %vm3545_vm4 = vcmask 1039360   ;;  %vm8269_vm5 = vcmask 523264   ;;  %vm8832_vm6 = vcmask 15360  }
   0x2   :  { %263 = vrot.lane.b32.xlu0 %v23_v0, %s10160_s24  ;;  %261 = vrot.lane.b32.xlu1 %v22_v1, %s10160_s24  ;;  %v8884_v3 = vld [vmem:[%s16010_s1 + $0x500] sm:$0xff]  ;;  %v8883_v4 = vld [vmem:[%s16010_s1 + $0x4f8] sm:$0xff] }
   0x3   :  { %v10210_v5 = vand.u32 4294901760, %v8884_v3  ;;  %v10212_v6 = vand.u32 4294901760, %v8883_v4  ;;  %v8881_v7 = vld [vmem:[%s16010_s1 + $0x4e8] sm:$0xff]  ;;  %v8880_v8 = vld [vmem:[%s16010_s1 + $0x4e0] sm:$0xff]  ;;  %v8878_v9 = vld [vmem:[%s16010_s1 + $0x4d0] sm:$0xff] }
   0x4   :  { %v10223_v10 = vand.u32 4294901760, %v8881_v7  ;;  %v10225_v11 = vand.u32 4294901760, %v8880_v8  ;;  %v10227_v12 = vand.u32 4294901760, %v8878_v9  ;;  %v8877_v13 = vld [vmem:[%s16010_s1 + $0x4c8] sm:$0xff]  ;;  %v8875_v14 = vld [vmem:[%s16010_s1 + $0x4b8] sm:$0xff]  ;;  %v8874_v15 = vld [vmem:[%s16010_s1 + $0x4b0] sm:$0xff] }
   0x5   :  { %v10239_v16 = vsub.f32 %v8884_v3, %v10210_v5  ;;  %v10242_v17 = vsub.f32 %v8883_v4, %v10212_v6  ;;  %v10244_v18 = vand.u32 4294901760, %v8877_v13  ;;  %v10246_v19 = vand.u32 4294901760, %v8875_v14  ;;  %286 = vmatprep.subr.mxu0 %v10210_v5  ;;  %v8872_v40 = vld [vmem:[%s16010_s1 + $0x4a0] sm:$0xff]  ;;  %v8871_v41 = vld [vmem:[%s16010_s1 + $0x498] sm:$0xff]  ;;  %v8869_v46 = vld [vmem:[%s16010_s1 + $0x488] sm:$0xff] }
   0x6   :  { %265 = vrot.lane.b32.xlu0 %v24_v2, %s10160_s24  ;;  %v10250_v20 = vsub.f32 %v8881_v7, %v10223_v10  ;;  %v10253_v21 = vsub.f32 %v8880_v8, %v10225_v11  ;;  %v10256_v22 = vsub.f32 %v8878_v9, %v10227_v12  ;;  %v10258_v23 = vand.u32 4294901760, %v8874_v15  ;;  %288 = vmatpush1.msra.mxu0 %v10212_v6  ;;  %v8868_v47 = vld [vmem:[%s16010_s1 + $0x480] sm:$0xff]  ;;  %v8866_v48 = vld [vmem:[%s16010_s1 + $0x470] sm:$0xff]  ;;  %v8865_v53 = vld [vmem:[%s16010_s1 + $0x468] sm:$0xff] }
   0x7   :  { %v16035_v24 = vand.u32 4294901760, %v10239_v16  ;;  %v16034_v25 = vand.u32 4294901760, %v10242_v17  ;;  %v10264_v26 = vsub.f32 %v8877_v13, %v10244_v18  ;;  %v10267_v27 = vsub.f32 %v8875_v14, %v10246_v19  ;;  %290 = vmatprep.subr.mxu0 %v10223_v10  ;;  %v8863_v54 = vld [vmem:[%s16010_s1 + $0x458] sm:$0xff]  ;;  %v8862_v59 = vld [vmem:[%s16010_s1 + $0x450] sm:$0xff] }
   0x8   :  { %v16031_v28 = vand.u32 4294901760, %v10250_v20  ;;  %v16029_v29 = vand.u32 4294901760, %v10253_v21  ;;  %v16026_v30 = vand.u32 4294901760, %v10256_v22  ;;  %v10274_v31 = vsub.f32 %v8874_v15, %v10258_v23  ;;  %292 = vmatpush1.msra.mxu0 %v10225_v11 }
   0x9   :  { %v433_v32 = vsub.f32 %v10239_v16, %v16035_v24  ;;  %v439_v33 = vsub.f32 %v10242_v17, %v16034_v25  ;;  %v16025_v34 = vand.u32 4294901760, %v10264_v26  ;;  %v16024_v35 = vand.u32 4294901760, %v10267_v27  ;;  %294 = vmatprep.subr.mxu0 %v10227_v12  ;;  %v8845_v25 = vld [vmem:[%s16010_s1 + $0x3c8] sm:$0xff]  ;;  %v8844_v24 = vld [vmem:[%s16010_s1 + $0x3c0] sm:$0xff] }
   0xa   :  { %v445_v36 = vsub.f32 %v10250_v20, %v16031_v28  ;;  %v451_v37 = vsub.f32 %v10253_v21, %v16029_v29  ;;  %v457_v38 = vsub.f32 %v10256_v22, %v16026_v30  ;;  %v16023_v39 = vand.u32 4294901760, %v10274_v31  ;;  %296 = vmatpush1.msra.mxu0 %v10244_v18  ;;  %v8848_v29 = vld [vmem:[%s16010_s1 + $0x3e0] sm:$0xff] }
   0xb   :  { %v434_v42 = vand.u32 4294901760, %v433_v32  ;;  %v440_v43 = vand.u32 4294901760, %v439_v33  ;;  %v463_v44 = vsub.f32 %v10264_v26, %v16025_v34  ;;  %v469_v45 = vsub.f32 %v10267_v27, %v16024_v35  ;;  %298 = vmatprep.subr.mxu0 %v10246_v19 }
   0xc   :  { %v446_v49 = vand.u32 4294901760, %v445_v36  ;;  %v452_v50 = vand.u32 4294901760, %v451_v37  ;;  %v458_v51 = vand.u32 4294901760, %v457_v38  ;;  %v475_v52 = vsub.f32 %v10274_v31, %v16023_v39  ;;  %300 = vmatpush1.msra.mxu0 %v10258_v23 }
   0xd   :  { %435 = vmatprep.subr.mxu1 %v434_v42  ;;  %v464_v55 = vand.u32 4294901760, %v463_v44  ;;  %v470_v56 = vand.u32 4294901760, %v469_v45  ;;  %v10329_v57 = vand.u32 4294901760, %v8872_v40  ;;  %v10331_v58 = vand.u32 4294901760, %v8871_v41 }
   0xe   :  { %441 = vmatpush1.msra.mxu1 %v440_v43  ;;  %v476_v60 = vand.u32 4294901760, %v475_v52  ;;  %v10336_v61 = vand.u32 4294901760, %v8869_v46  ;;  %v10338_v62 = vand.u32 4294901760, %v8868_v47  ;;  %v10340_v63 = vand.u32 4294901760, %v8866_v48 }
   0xf   :  { %447 = vmatprep.subr.mxu1 %v446_v49  ;;  %v10343_v0 = vsub.f32 %v8872_v40, %v10329_v57  ;;  %v10346_v1 = vsub.f32 %v8871_v41, %v10331_v58  ;;  %v10348_v2 = vand.u32 4294901760, %v8865_v53  ;;  %v10350_v3 = vand.u32 4294901760, %v8863_v54  ;;  %302 = vmatprep.subr.mxu0 %v10329_v57  ;;  %v8859_v49 = vld [vmem:[%s16010_s1 + $0x438] sm:$0xff] }
  0x10   :  { %453 = vmatpush1.msra.mxu1 %v452_v50  ;;  %v10354_v4 = vsub.f32 %v8869_v46, %v10336_v61  ;;  %v10357_v7 = vsub.f32 %v8868_v47, %v10338_v62  ;;  %v10360_v8 = vsub.f32 %v8866_v48, %v10340_v63  ;;  %v10362_v9 = vand.u32 4294901760, %v8862_v59  ;;  %304 = vmatpush1.msra.mxu0 %v10331_v58  ;;  %v8860_v48 = vld [vmem:[%s16010_s1 + $0x440] sm:$0xff] }
  0x11   :  { %459 = vmatprep.subr.mxu1 %v458_v51  ;;  %v16022_v13 = vand.u32 4294901760, %v10343_v0  ;;  %v16021_v14 = vand.u32 4294901760, %v10346_v1  ;;  %v10368_v15 = vsub.f32 %v8865_v53, %v10348_v2  ;;  %v10371_v32 = vsub.f32 %v8863_v54, %v10350_v3  ;;  %306 = vmatprep.subr.mxu0 %v10336_v61  ;;  %v8857_v54 = vld [vmem:[%s16010_s1 + $0x428] sm:$0xff] }
  0x12   :  { %465 = vmatpush1.msra.mxu1 %v464_v55  ;;  %v16020_v33 = vand.u32 4294901760, %v10354_v4  ;;  %v16018_v36 = vand.u32 4294901760, %v10357_v7  ;;  %v16017_v37 = vand.u32 4294901760, %v10360_v8  ;;  %v10378_v38 = vsub.f32 %v8862_v59, %v10362_v9  ;;  %308 = vmatpush1.msra.mxu0 %v10338_v62  ;;  %v8856_v55 = vld [vmem:[%s16010_s1 + $0x420] sm:$0xff] }
  0x13   :  { %471 = vmatprep.subr.mxu1 %v470_v56  ;;  %v481_v40 = vsub.f32 %v10343_v0, %v16022_v13  ;;  %v487_v41 = vsub.f32 %v10346_v1, %v16021_v14  ;;  %v16016_v42 = vand.u32 4294901760, %v10368_v15  ;;  %v16015_v43 = vand.u32 4294901760, %v10371_v32  ;;  %310 = vmatprep.subr.mxu0 %v10340_v63  ;;  %v8854_v56 = vld [vmem:[%s16010_s1 + $0x410] sm:$0xff] }
  0x14   :  { %16640 = vst [vmem:[#allocation2_spill] sm:$0xff] %v10378_v38  ;;  %477 = vmatpush1.msra.mxu1 %v476_v60  ;;  %v493_v44 = vsub.f32 %v10354_v4, %v16020_v33  ;;  %v499_v45 = vsub.f32 %v10357_v7, %v16018_v36  ;;  %v505_v46 = vsub.f32 %v10360_v8, %v16017_v37  ;;  %v16019_v47 = vand.u32 4294901760, %v10378_v38 }
  0x15   :  { %312 = vmatpush1.msra.mxu0 %v10348_v2  ;;  %v482_v50 = vand.u32 4294901760, %v481_v40  ;;  %v488_v51 = vand.u32 4294901760, %v487_v41  ;;  %v511_v52 = vsub.f32 %v10368_v15, %v16016_v42  ;;  %v517_v53 = vsub.f32 %v10371_v32, %v16015_v43  ;;  %v8853_v43 = vld [vmem:[%s16010_s1 + $0x408] sm:$0xff]  ;;  %v8851_v42 = vld [vmem:[%s16010_s1 + $0x3f8] sm:$0xff] }
  0x16   :  { %314 = vmatprep.subr.mxu0 %v10350_v3  ;;  %v494_v59 = vand.u32 4294901760, %v493_v44  ;;  %v500_v60 = vand.u32 4294901760, %v499_v45  ;;  %v506_v40 = vand.u32 4294901760, %v505_v46  ;;  %v523_v41 = vsub.f32 %v10378_v38, %v16019_v47  ;;  %v8850_v46 = vld [vmem:[%s16010_s1 + $0x3f0] sm:$0xff] }
  0x17   :  { %316 = vmatpush1.msra.mxu0 %v10362_v9  ;;  %483 = vmatprep.subr.mxu1 %v482_v50  ;;  %v512_v37 = vand.u32 4294901760, %v511_v52  ;;  %v518_v36 = vand.u32 4294901760, %v517_v53  ;;  %v10433_v44 = vand.u32 4294901760, %v8860_v48  ;;  %v10435_v45 = vand.u32 4294901760, %v8859_v49 }
  0x18   :  { %489 = vmatpush1.msra.mxu1 %v488_v51  ;;  %v524_v47 = vand.u32 4294901760, %v523_v41  ;;  %v10440_v33 = vand.u32 4294901760, %v8857_v54  ;;  %v10442_v14 = vand.u32 4294901760, %v8856_v55  ;;  %v10444_v13 = vand.u32 4294901760, %v8854_v56 }
  0x19   :  { %495 = vmatprep.subr.mxu1 %v494_v59  ;;  %v10447_v50 = vsub.f32 %v8860_v48, %v10433_v44  ;;  %v10450_v52 = vsub.f32 %v8859_v49, %v10435_v45  ;;  %v10452_v53 = vand.u32 4294901760, %v8853_v43  ;;  %v10454_v39 = vand.u32 4294901760, %v8851_v42  ;;  %318 = vmatprep.subr.mxu0 %v10433_v44 }
  0x1a   :  { %501 = vmatpush1.msra.mxu1 %v500_v60  ;;  %v10458_v51 = vsub.f32 %v8857_v54, %v10440_v33  ;;  %v10461_v41 = vsub.f32 %v8856_v55, %v10442_v14  ;;  %v10464_v59 = vsub.f32 %v8854_v56, %v10444_v13  ;;  %v10466_v48 = vand.u32 4294901760, %v8850_v46  ;;  %320 = vmatpush1.msra.mxu0 %v10435_v45 }
  0x1b   :  { %16641 = vst [vmem:[#allocation3_spill] sm:$0xff] %v10447_v50  ;;  %16642 = vst [vmem:[#allocation4_spill] sm:$0xff] %v10450_v52  ;;  %507 = vmatprep.subr.mxu1 %v506_v40  ;;  %v16027_v49 = vand.u32 4294901760, %v10447_v50  ;;  %v16028_v35 = vand.u32 4294901760, %v10450_v52  ;;  %v10472_v60 = vsub.f32 %v8853_v43, %v10452_v53  ;;  %v10475_v54 = vsub.f32 %v8851_v42, %v10454_v39 }
  0x1c   :  { %16643 = vst [vmem:[#allocation5_spill] sm:$0xff] %v10458_v51  ;;  %16644 = vst [vmem:[#allocation6_spill] sm:$0xff] %v10461_v41  ;;  %322 = vmatprep.subr.mxu0 %v10440_v33  ;;  %513 = vmatpush1.msra.mxu1 %v512_v37  ;;  %v16030_v55 = vand.u32 4294901760, %v10458_v51  ;;  %v16032_v56 = vand.u32 4294901760, %v10461_v41  ;;  %v16033_v34 = vand.u32 4294901760, %v10464_v59  ;;  %v10482_v40 = vsub.f32 %v8850_v46, %v10466_v48 }
  0x1d   :  { %16645 = vst [vmem:[#allocation7_spill] sm:$0xff] %v10464_v59  ;;  %16646 = vst [vmem:[#allocation8_spill] sm:$0xff] %v10466_v48  ;;  %324 = vmatpush1.msra.mxu0 %v10442_v14  ;;  %519 = vmatprep.subr.mxu1 %v518_v36  ;;  %v529_v42 = vsub.f32 %v10447_v50, %v16027_v49  ;;  %v535_v37 = vsub.f32 %v10450_v52, %v16028_v35  ;;  %v16036_v43 = vand.u32 4294901760, %v10472_v60 }
  0x1e   :  { %16647 = vst [vmem:[#allocation9_spill] sm:$0xff] %v10472_v60  ;;  %16648 = vst [vmem:[#allocation10_spill] sm:$0xff] %v10475_v54  ;;  %v16039_v30 = vand.u32 4294901760, %v10475_v54  ;;  %326 = vmatprep.subr.mxu0 %v10444_v13  ;;  %525 = vmatpush1.msra.mxu1 %v524_v47  ;;  %v541_v46 = vsub.f32 %v10458_v51, %v16030_v55  ;;  %v547_v36 = vsub.f32 %v10461_v41, %v16032_v56  ;;  %v8847_v47 = vld [vmem:[%s16010_s1 + $0x3d8] sm:$0xff] }
  0x1f   :  { %16649 = vst [vmem:[#allocation11_spill] sm:$0xff] %v10482_v40  ;;  %v553_v49 = vsub.f32 %v10464_v59, %v16033_v34  ;;  %328 = vmatpush1.msra.mxu0 %v10452_v53  ;;  %v530_v55 = vand.u32 4294901760, %v529_v42  ;;  %v536_v28 = vand.u32 4294901760, %v535_v37  ;;  %v559_v56 = vsub.f32 %v10472_v60, %v16036_v43  ;;  %v8842_v42 = vld [vmem:[%s16010_s1 + $0x3b0] sm:$0xff]  ;;  %v8839_v59 = vld [vmem:[%s16010_s1 + $0x398] sm:$0xff] }
  0x20   :  { %v565_v34 = vsub.f32 %v10475_v54, %v16039_v30  ;;  %330 = vmatprep.subr.mxu0 %v10454_v39  ;;  %v542_v37 = vand.u32 4294901760, %v541_v46  ;;  %v548_v43 = vand.u32 4294901760, %v547_v36  ;;  %v16650_v60 = vand.u32 4294901760, %v10482_v40  ;;  %v8841_v54 = vld [vmem:[%s16010_s1 + $0x3a8] sm:$0xff] }
  0x21   :  { %v554_v35 = vand.u32 4294901760, %v553_v49  ;;  %332 = vmatpush1.msra.mxu0 %v10466_v48  ;;  %531 = vmatprep.subr.mxu1 %v530_v55  ;;  %v560_v41 = vand.u32 4294901760, %v559_v56  ;;  %v10537_v46 = vand.u32 4294901760, %v8848_v29  ;;  %v10539_v49 = vand.u32 4294901760, %v8847_v47 }
  0x22   :  { %v571_v30 = vsub.f32 %v10482_v40, %v16650_v60  ;;  %v566_v51 = vand.u32 4294901760, %v565_v34  ;;  %v8838_v60 = vld [vmem:[%s16010_s1 + $0x390] sm:$0xff]  ;;  %537 = vmatpush1.msra.mxu1 %v536_v28  ;;  %v10544_v40 = vand.u32 4294901760, %v8845_v25  ;;  %v10546_v52 = vand.u32 4294901760, %v8844_v24 }
  0x23   :  { %16651 = vst [vmem:[#allocation12_spill] sm:$0xff] %v10537_v46  ;;  %16652 = vst [vmem:[#allocation13_spill] sm:$0xff] %v10539_v49  ;;  %v10548_v50 = vand.u32 4294901760, %v8842_v42  ;;  %543 = vmatprep.subr.mxu1 %v542_v37  ;;  %v10551_v55 = vsub.f32 %v8848_v29, %v10537_v46  ;;  %v10554_v34 = vsub.f32 %v8847_v47, %v10539_v49  ;;  %v10556_v56 = vand.u32 4294901760, %v8841_v54 }
  0x24   :  { %v572_v36 = vand.u32 4294901760, %v571_v30  ;;  %16653 = vst [vmem:[#allocation14_spill] sm:$0xff] %v10544_v40  ;;  %16654 = vst [vmem:[#allocation15_spill] sm:$0xff] %v10546_v52  ;;  %v10558_v48 = vand.u32 4294901760, %v8839_v59  ;;  %334 = vmatprep.subr.mxu0 %v10537_v46  ;;  %549 = vmatpush1.msra.mxu1 %v548_v43  ;;  %v10562_v28 = vsub.f32 %v8845_v25, %v10544_v40  ;;  %v10570_v29 = vand.u32 4294901760, %v8838_v60 }
  0x25   :  { %16655 = vst [vmem:[#allocation16_spill] sm:$0xff] %v10548_v50  ;;  %16656 = vst [vmem:[#allocation17_spill] sm:$0xff] %v10551_v55  ;;  %v10565_v30 = vsub.f32 %v8844_v24, %v10546_v52  ;;  %v10568_v37 = vsub.f32 %v8842_v42, %v10548_v50  ;;  %336 = vmatpush1.msra.mxu0 %v10539_v49  ;;  %555 = vmatprep.subr.mxu1 %v554_v35  ;;  %v16060_v47 = vand.u32 4294901760, %v10551_v55  ;;  %v8932_v42 = vld [vmem:[%s16010_s1 + $0x680] sm:$0xff] }
  0x26   :  { %16657 = vst [vmem:[#allocation18_spill] sm:$0xff] %v10554_v34  ;;  %16658 = vst [vmem:[#allocation19_spill] sm:$0xff] %v10556_v56  ;;  %v16063_v38 = vand.u32 4294901760, %v10554_v34  ;;  %v10576_v43 = vsub.f32 %v8841_v54, %v10556_v56  ;;  %v10579_v25 = vsub.f32 %v8839_v59, %v10558_v48  ;;  %338 = vmatprep.subr.mxu0 %v10544_v40  ;;  %561 = vmatpush1.msra.mxu1 %v560_v41 }
  0x27   :  { %16659 = vst [vmem:[#allocation20_spill] sm:$0xff] %v10558_v48  ;;  %16660 = vst [vmem:[#allocation21_spill] sm:$0xff] %v10562_v28  ;;  %v16064_v24 = vand.u32 4294901760, %v10562_v28  ;;  %v10586_v35 = vsub.f32 %v8838_v60, %v10570_v29  ;;  %340 = vmatpush1.msra.mxu0 %v10546_v52  ;;  %567 = vmatprep.subr.mxu1 %v566_v51  ;;  %v577_v59 = vsub.f32 %v10551_v55, %v16060_v47 }
  0x28   :  { %16661 = vst [vmem:[#allocation22_spill] sm:$0xff] %v10565_v30  ;;  %16662 = vst [vmem:[#allocation23_spill] sm:$0xff] %v10568_v37  ;;  %v583_v41 = vsub.f32 %v10554_v34, %v16063_v38  ;;  %342 = vmatprep.subr.mxu0 %v10548_v50  ;;  %573 = vmatpush1.msra.mxu1 %v572_v36  ;;  %v16667_v51 = vand.u32 4294901760, %v10565_v30  ;;  %v16668_v47 = vand.u32 4294901760, %v10568_v37  ;;  %v8931_v36 = vld [vmem:[%s16010_s1 + $0x678] sm:$0xff] }
  0x29   :  { %16663 = vst [vmem:[#allocation24_spill] sm:$0xff] %v10570_v29  ;;  %16664 = vst [vmem:[#allocation25_spill] sm:$0xff] %v10576_v43  ;;  %v589_v60 = vsub.f32 %v10562_v28, %v16064_v24  ;;  %344 = vmatpush1.msra.mxu0 %v10556_v56  ;;  %v578_v24 = vand.u32 4294901760, %v577_v59  ;;  %v8928_v28 = vld [vmem:[%s16010_s1 + $0x660] sm:$0xff]  ;;  %v8926_v59 = vld [vmem:[%s16010_s1 + $0x650] sm:$0xff]  ;;  %v16671_v34 = vand.u32 4294901760, %v10586_v35 }
  0x2a   :  { %16665 = vst [vmem:[#allocation26_spill] sm:$0xff] %v10579_v25  ;;  %16666 = vst [vmem:[#allocation27_spill] sm:$0xff] %v10586_v35  ;;  %v595_v49 = vsub.f32 %v10565_v30, %v16667_v51  ;;  %v601_v55 = vsub.f32 %v10568_v37, %v16668_v47  ;;  %v584_v54 = vand.u32 4294901760, %v583_v41  ;;  %v16669_v51 = vand.u32 4294901760, %v10576_v43  ;;  %v8929_v37 = vld [vmem:[%s16010_s1 + $0x668] sm:$0xff]  ;;  %346 = vmatprep.subr.mxu0 %v10558_v48  ;;  %v8923_v56 = vld [vmem:[%s16010_s1 + $0x638] sm:$0xff] }
  0x2b   :  { %v16670_v47 = vand.u32 4294901760, %v10579_v25  ;;  %v590_v41 = vand.u32 4294901760, %v589_v60  ;;  %348 = vmatpush1.msra.mxu0 %v10570_v29  ;;  %579 = vmatprep.subr.mxu1 %v578_v24  ;;  %v10641_v60 = vand.u32 4294901760, %v8932_v42  ;;  %v10650_v52 = vand.u32 4294901760, %v8928_v28 }
  0x2c   :  { %v607_v30 = vsub.f32 %v10576_v43, %v16669_v51  ;;  %v596_v51 = vand.u32 4294901760, %v595_v49  ;;  %v602_v43 = vand.u32 4294901760, %v601_v55  ;;  %v10643_v49 = vand.u32 4294901760, %v8931_v36  ;;  %v8922_v55 = vld [vmem:[%s16010_s1 + $0x630] sm:$0xff]  ;;  %585 = vmatpush1.msra.mxu1 %v584_v54 }
  0x2d   :  { %v613_v38 = vsub.f32 %v10579_v25, %v16670_v47  ;;  %v619_v47 = vsub.f32 %v10586_v35, %v16671_v34  ;;  %v8925_v25 = vld [vmem:[%s16010_s1 + $0x648] sm:$0xff]  ;;  %16672 = vst [vmem:[#allocation28_spill] sm:$0xff] %v10641_v60  ;;  %v10648_v35 = vand.u32 4294901760, %v8929_v37  ;;  %16675 = vst [vmem:[#allocation31_spill] sm:$0xff] %v10650_v52  ;;  %v10652_v40 = vand.u32 4294901760, %v8926_v59  ;;  %591 = vmatprep.subr.mxu1 %v590_v41 }
  0x2e   :  { %v608_v50 = vand.u32 4294901760, %v607_v30  ;;  %16673 = vst [vmem:[#allocation29_spill] sm:$0xff] %v10643_v49  ;;  %v10655_v30 = vsub.f32 %v8932_v42, %v10641_v60  ;;  %v10660_v24 = vand.u32 4294901760, %v8925_v25  ;;  %v10662_v29 = vand.u32 4294901760, %v8923_v56  ;;  %350 = vmatprep.subr.mxu0 %v10641_v60  ;;  %597 = vmatpush1.msra.mxu1 %v596_v51 }
  0x2f   :  { %v614_v48 = vand.u32 4294901760, %v613_v38  ;;  %v620_v34 = vand.u32 4294901760, %v619_v47  ;;  %16674 = vst [vmem:[#allocation30_spill] sm:$0xff] %v10648_v35  ;;  %16676 = vst [vmem:[#allocation32_spill] sm:$0xff] %v10652_v40  ;;  %v10658_v38 = vsub.f32 %v8931_v36, %v10643_v49  ;;  %v10666_v54 = vsub.f32 %v8929_v37, %v10648_v35  ;;  %352 = vmatpush2.msra.mxu0 %v10643_v49 }
  0x30   :  { %16677 = vst [vmem:[#allocation33_spill] sm:$0xff] %v10655_v30  ;;  %16679 = vst [vmem:[#allocation35_spill] sm:$0xff] %v10660_v24  ;;  %v10669_v47 = vsub.f32 %v8928_v28, %v10650_v52  ;;  %v10672_v41 = vsub.f32 %v8926_v59, %v10652_v40  ;;  %v10674_v42 = vand.u32 4294901760, %v8922_v55  ;;  %603 = vmatprep.subr.mxu1 %v602_v43  ;;  %v16095_v36 = vand.u32 4294901760, %v10655_v30  ;;  %v8920_v59 = vld [vmem:[%s16010_s1 + $0x620] sm:$0xff] }
  0x31   :  { %16678 = vst [vmem:[#allocation34_spill] sm:$0xff] %v10658_v38  ;;  %16680 = vst [vmem:[#allocation36_spill] sm:$0xff] %v10662_v29  ;;  %v16098_v46 = vand.u32 4294901760, %v10658_v38  ;;  %v10680_v51 = vsub.f32 %v8925_v25, %v10660_v24  ;;  %v10683_v37 = vsub.f32 %v8923_v56, %v10662_v29  ;;  %354 = vmatprep.subr.mxu0 %v10648_v35  ;;  %609 = vmatpush1.msra.mxu1 %v608_v50 }
  0x32   :  { %16681 = vst [vmem:[#allocation37_spill] sm:$0xff] %v10666_v54  ;;  %16682 = vst [vmem:[#allocation38_spill] sm:$0xff] %v10669_v47  ;;  %v16099_v28 = vand.u32 4294901760, %v10666_v54  ;;  %v10690_v43 = vsub.f32 %v8922_v55, %v10674_v42  ;;  %356 = vmatpush2.msra.mxu0 %v10650_v52  ;;  %615 = vmatprep.subr.mxu1 %v614_v48  ;;  %v625_v56 = vsub.f32 %v10655_v30, %v16095_v36 }
  0x33   :  { %16683 = vst [vmem:[#allocation39_spill] sm:$0xff] %v10672_v41  ;;  %16684 = vst [vmem:[#allocation40_spill] sm:$0xff] %v10674_v42  ;;  %v631_v50 = vsub.f32 %v10658_v38, %v16098_v46  ;;  %358 = vmatprep.subr.mxu0 %v10652_v40  ;;  %621 = vmatpush1.msra.mxu1 %v620_v34  ;;  %v16688_v48 = vand.u32 4294901760, %v10669_v47  ;;  %v16689_v36 = vand.u32 4294901760, %v10672_v41  ;;  %v8919_v34 = vld [vmem:[%s16010_s1 + $0x618] sm:$0xff] }
  0x34   :  { %16685 = vst [vmem:[#allocation41_spill] sm:$0xff] %v10680_v51  ;;  %16686 = vst [vmem:[#allocation42_spill] sm:$0xff] %v10683_v37  ;;  %v637_v55 = vsub.f32 %v10666_v54, %v16099_v28  ;;  %360 = vmatpush2.msra.mxu0 %v10660_v24  ;;  %v626_v28 = vand.u32 4294901760, %v625_v56  ;;  %v8916_v54 = vld [vmem:[%s16010_s1 + $0x600] sm:$0xff]  ;;  %v8914_v56 = vld [vmem:[%s16010_s1 + $0x5f0] sm:$0xff]  ;;  %v16692_v38 = vand.u32 4294901760, %v10690_v43 }
  0x35   :  { %16687 = vst [vmem:[#allocation43_spill] sm:$0xff] %v10690_v43  ;;  %v643_v49 = vsub.f32 %v10669_v47, %v16688_v48  ;;  %v649_v30 = vsub.f32 %v10672_v41, %v16689_v36  ;;  %v632_v25 = vand.u32 4294901760, %v631_v50  ;;  %v16690_v48 = vand.u32 4294901760, %v10680_v51  ;;  %v8917_v41 = vld [vmem:[%s16010_s1 + $0x608] sm:$0xff]  ;;  %362 = vmatprep.subr.mxu0 %v10662_v29  ;;  %v8911_v24 = vld [vmem:[%s16010_s1 + $0x5d8] sm:$0xff] }
  0x36   :  { %v16691_v36 = vand.u32 4294901760, %v10683_v37  ;;  %v638_v50 = vand.u32 4294901760, %v637_v55  ;;  %364 = vmatpush2.msra.mxu0 %v10674_v42  ;;  %627 = vmatprep.subr.mxu1 %v626_v28  ;;  %v10745_v55 = vand.u32 4294901760, %v8920_v59  ;;  %v10754_v52 = vand.u32 4294901760, %v8916_v54 }
  0x37   :  { %v655_v47 = vsub.f32 %v10680_v51, %v16690_v48  ;;  %v644_v48 = vand.u32 4294901760, %v643_v49  ;;  %v650_v51 = vand.u32 4294901760, %v649_v30  ;;  %v10747_v49 = vand.u32 4294901760, %v8919_v34  ;;  %v8910_v30 = vld [vmem:[%s16010_s1 + $0x5d0] sm:$0xff]  ;;  %633 = vmatpush2.msra.mxu1 %v632_v25 }
  0x38   :  { %v661_v46 = vsub.f32 %v10683_v37, %v16691_v36  ;;  %v667_v36 = vsub.f32 %v10690_v43, %v16692_v38  ;;  %v8913_v37 = vld [vmem:[%s16010_s1 + $0x5e8] sm:$0xff]  ;;  %16693 = vst [vmem:[#allocation44_spill] sm:$0xff] %v10745_v55  ;;  %v10752_v43 = vand.u32 4294901760, %v8917_v41  ;;  %16696 = vst [vmem:[#allocation47_spill] sm:$0xff] %v10754_v52  ;;  %v10756_v35 = vand.u32 4294901760, %v8914_v56  ;;  %639 = vmatprep.subr.mxu1 %v638_v50 }
  0x39   :  { %v656_v40 = vand.u32 4294901760, %v655_v47  ;;  %16694 = vst [vmem:[#allocation45_spill] sm:$0xff] %v10747_v49  ;;  %v10759_v47 = vsub.f32 %v8920_v59, %v10745_v55  ;;  %v10764_v28 = vand.u32 4294901760, %v8913_v37  ;;  %v10766_v42 = vand.u32 4294901760, %v8911_v24  ;;  %366 = vmatprep.subr.mxu0 %v10745_v55  ;;  %645 = vmatpush2.msra.mxu1 %v644_v48 }
  0x3a   :  { %v662_v29 = vand.u32 4294901760, %v661_v46  ;;  %v668_v38 = vand.u32 4294901760, %v667_v36  ;;  %16695 = vst [vmem:[#allocation46_spill] sm:$0xff] %v10752_v43  ;;  %16697 = vst [vmem:[#allocation48_spill] sm:$0xff] %v10756_v35  ;;  %v10762_v46 = vsub.f32 %v8919_v34, %v10747_v49  ;;  %v10770_v25 = vsub.f32 %v8917_v41, %v10752_v43  ;;  %368 = vmatpush2.msra.mxu0 %v10747_v49 }
  0x3b   :  { %16698 = vst [vmem:[#allocation49_spill] sm:$0xff] %v10759_v47  ;;  %16700 = vst [vmem:[#allocation51_spill] sm:$0xff] %v10764_v28  ;;  %v10773_v36 = vsub.f32 %v8916_v54, %v10754_v52  ;;  %v10776_v50 = vsub.f32 %v8914_v56, %v10756_v35  ;;  %v10778_v59 = vand.u32 4294901760, %v8910_v30  ;;  %651 = vmatprep.subr.mxu1 %v650_v51  ;;  %v16130_v34 = vand.u32 4294901760, %v10759_v47  ;;  %v8908_v56 = vld [vmem:[%s16010_s1 + $0x5c0] sm:$0xff] }
  0x3c   :  { %16699 = vst [vmem:[#allocation50_spill] sm:$0xff] %v10762_v46  ;;  %16701 = vst [vmem:[#allocation52_spill] sm:$0xff] %v10766_v42  ;;  %v16133_v60 = vand.u32 4294901760, %v10762_v46  ;;  %v10784_v48 = vsub.f32 %v8913_v37, %v10764_v28  ;;  %v10787_v41 = vsub.f32 %v8911_v24, %v10766_v42  ;;  %370 = vmatprep.subr.mxu0 %v10752_v43  ;;  %657 = vmatpush2.msra.mxu1 %v656_v40 }
  0x3d   :  { %16702 = vst [vmem:[#allocation53_spill] sm:$0xff] %v10770_v25  ;;  %16703 = vst [vmem:[#allocation54_spill] sm:$0xff] %v10773_v36  ;;  %v16134_v54 = vand.u32 4294901760, %v10770_v25  ;;  %v10794_v51 = vsub.f32 %v8910_v30, %v10778_v59  ;;  %372 = vmatpush2.msra.mxu0 %v10754_v52  ;;  %663 = vmatprep.subr.mxu1 %v662_v29  ;;  %v673_v24 = vsub.f32 %v10759_v47, %v16130_v34 }
  0x3e   :  { %16704 = vst [vmem:[#allocation55_spill] sm:$0xff] %v10776_v50  ;;  %16705 = vst [vmem:[#allocation56_spill] sm:$0xff] %v10778_v59  ;;  %v679_v40 = vsub.f32 %v10762_v46, %v16133_v60  ;;  %374 = vmatprep.subr.mxu0 %v10756_v35  ;;  %669 = vmatpush2.msra.mxu1 %v668_v38  ;;  %v16709_v29 = vand.u32 4294901760, %v10773_v36  ;;  %v16710_v34 = vand.u32 4294901760, %v10776_v50  ;;  %v8907_v38 = vld [vmem:[%s16010_s1 + $0x5b8] sm:$0xff] }
  0x3f   :  { %16706 = vst [vmem:[#allocation57_spill] sm:$0xff] %v10784_v48  ;;  %16707 = vst [vmem:[#allocation58_spill] sm:$0xff] %v10787_v41  ;;  %v685_v30 = vsub.f32 %v10770_v25, %v16134_v54  ;;  %376 = vmatpush2.msra.mxu0 %v10764_v28  ;;  %v674_v54 = vand.u32 4294901760, %v673_v24  ;;  %v8904_v25 = vld [vmem:[%s16010_s1 + $0x5a0] sm:$0xff]  ;;  %v8902_v24 = vld [vmem:[%s16010_s1 + $0x590] sm:$0xff]  ;;  %v16713_v46 = vand.u32 4294901760, %v10794_v51 }
  0x40   :  { %16708 = vst [vmem:[#allocation59_spill] sm:$0xff] %v10794_v51  ;;  %v691_v49 = vsub.f32 %v10773_v36, %v16709_v29  ;;  %v697_v47 = vsub.f32 %v10776_v50, %v16710_v34  ;;  %v680_v37 = vand.u32 4294901760, %v679_v40  ;;  %v16711_v29 = vand.u32 4294901760, %v10784_v48  ;;  %v8905_v50 = vld [vmem:[%s16010_s1 + $0x5a8] sm:$0xff]  ;;  %378 = vmatprep.subr.mxu0 %v10766_v42  ;;  %v8899_v28 = vld [vmem:[%s16010_s1 + $0x578] sm:$0xff] }
  0x41   :  { %v16712_v34 = vand.u32 4294901760, %v10787_v41  ;;  %v686_v40 = vand.u32 4294901760, %v685_v30  ;;  %380 = vmatpush2.msra.mxu0 %v10778_v59  ;;  %675 = vmatprep.subr.mxu1 %v674_v54  ;;  %v10849_v30 = vand.u32 4294901760, %v8908_v56  ;;  %v10858_v52 = vand.u32 4294901760, %v8904_v25 }
  0x42   :  { %v703_v36 = vsub.f32 %v10784_v48, %v16711_v29  ;;  %v692_v29 = vand.u32 4294901760, %v691_v49  ;;  %v698_v48 = vand.u32 4294901760, %v697_v47  ;;  %v10851_v49 = vand.u32 4294901760, %v8907_v38  ;;  %v8898_v47 = vld [vmem:[%s16010_s1 + $0x570] sm:$0xff]  ;;  %681 = vmatpush2.msra.mxu1 %v680_v37 }
  0x43   :  { %v709_v60 = vsub.f32 %v10787_v41, %v16712_v34  ;;  %v715_v34 = vsub.f32 %v10794_v51, %v16713_v46  ;;  %v8901_v41 = vld [vmem:[%s16010_s1 + $0x588] sm:$0xff]  ;;  %16714 = vst [vmem:[#allocation60_spill] sm:$0xff] %v10849_v30  ;;  %v10856_v51 = vand.u32 4294901760, %v8905_v50  ;;  %16717 = vst [vmem:[#allocation63_spill] sm:$0xff] %v10858_v52  ;;  %v10860_v43 = vand.u32 4294901760, %v8902_v24  ;;  %687 = vmatprep.subr.mxu1 %v686_v40 }
  0x44   :  { %v704_v35 = vand.u32 4294901760, %v703_v36  ;;  %16715 = vst [vmem:[#allocation61_spill] sm:$0xff] %v10851_v49  ;;  %v10863_v36 = vsub.f32 %v8908_v56, %v10849_v30  ;;  %v10868_v54 = vand.u32 4294901760, %v8901_v41  ;;  %v10870_v59 = vand.u32 4294901760, %v8899_v28  ;;  %382 = vmatprep.subr.mxu0 %v10849_v30  ;;  %693 = vmatpush2.msra.mxu1 %v692_v29 }
  0x45   :  { %v710_v42 = vand.u32 4294901760, %v709_v60  ;;  %v716_v46 = vand.u32 4294901760, %v715_v34  ;;  %16716 = vst [vmem:[#allocation62_spill] sm:$0xff] %v10856_v51  ;;  %16718 = vst [vmem:[#allocation64_spill] sm:$0xff] %v10860_v43  ;;  %v10866_v60 = vsub.f32 %v8907_v38, %v10851_v49  ;;  %v10874_v37 = vsub.f32 %v8905_v50, %v10856_v51  ;;  %384 = vmatpush2.msra.mxu0 %v10851_v49 }
  0x46   :  { %16719 = vst [vmem:[#allocation65_spill] sm:$0xff] %v10863_v36  ;;  %16721 = vst [vmem:[#allocation67_spill] sm:$0xff] %v10868_v54  ;;  %v10877_v34 = vsub.f32 %v8904_v25, %v10858_v52  ;;  %v10880_v40 = vsub.f32 %v8902_v24, %v10860_v43  ;;  %v10882_v56 = vand.u32 4294901760, %v8898_v47  ;;  %699 = vmatprep.subr.mxu1 %v698_v48  ;;  %v16165_v38 = vand.u32 4294901760, %v10863_v36  ;;  %v8896_v24 = vld [vmem:[%s16010_s1 + $0x560] sm:$0xff] }
  0x47   :  { %16720 = vst [vmem:[#allocation66_spill] sm:$0xff] %v10866_v60  ;;  %16722 = vst [vmem:[#allocation68_spill] sm:$0xff] %v10870_v59  ;;  %v16168_v55 = vand.u32 4294901760, %v10866_v60  ;;  %v10888_v29 = vsub.f32 %v8901_v41, %v10868_v54  ;;  %v10891_v50 = vsub.f32 %v8899_v28, %v10870_v59  ;;  %386 = vmatprep.subr.mxu0 %v10856_v51  ;;  %705 = vmatpush2.msra.mxu1 %v704_v35 }
  0x48   :  { %16723 = vst [vmem:[#allocation69_spill] sm:$0xff] %v10874_v37  ;;  %16724 = vst [vmem:[#allocation70_spill] sm:$0xff] %v10877_v34  ;;  %v16169_v25 = vand.u32 4294901760, %v10874_v37  ;;  %v10898_v48 = vsub.f32 %v8898_v47, %v10882_v56  ;;  %388 = vmatpush2.msra.mxu0 %v10858_v52  ;;  %711 = vmatprep.subr.mxu1 %v710_v42  ;;  %v721_v28 = vsub.f32 %v10863_v36, %v16165_v38 }
  0x49   :  { %16725 = vst [vmem:[#allocation71_spill] sm:$0xff] %v10880_v40  ;;  %16726 = vst [vmem:[#allocation72_spill] sm:$0xff] %v10882_v56  ;;  %v727_v35 = vsub.f32 %v10866_v60, %v16168_v55  ;;  %390 = vmatprep.subr.mxu0 %v10860_v43  ;;  %717 = vmatpush2.msra.mxu1 %v716_v46  ;;  %v16730_v42 = vand.u32 4294901760, %v10877_v34  ;;  %v16731_v38 = vand.u32 4294901760, %v10880_v40  ;;  %v8895_v46 = vld [vmem:[%s16010_s1 + $0x558] sm:$0xff] }
  0x4a   :  { %16727 = vst [vmem:[#allocation73_spill] sm:$0xff] %v10888_v29  ;;  %16728 = vst [vmem:[#allocation74_spill] sm:$0xff] %v10891_v50  ;;  %v733_v47 = vsub.f32 %v10874_v37, %v16169_v25  ;;  %392 = vmatpush2.msra.mxu0 %v10868_v54  ;;  %v722_v25 = vand.u32 4294901760, %v721_v28  ;;  %v8892_v37 = vld [vmem:[%s16010_s1 + $0x540] sm:$0xff]  ;;  %v8890_v28 = vld [vmem:[%s16010_s1 + $0x530] sm:$0xff]  ;;  %v16734_v60 = vand.u32 4294901760, %v10898_v48 }
  0x4b   :  { %16729 = vst [vmem:[#allocation75_spill] sm:$0xff] %v10898_v48  ;;  %v739_v49 = vsub.f32 %v10877_v34, %v16730_v42  ;;  %v745_v36 = vsub.f32 %v10880_v40, %v16731_v38  ;;  %v728_v41 = vand.u32 4294901760, %v727_v35  ;;  %v16732_v42 = vand.u32 4294901760, %v10888_v29  ;;  %v8893_v40 = vld [vmem:[%s16010_s1 + $0x548] sm:$0xff]  ;;  %394 = vmatprep.subr.mxu0 %v10870_v59  ;;  %v8887_v54 = vld [vmem:[%s16010_s1 + $0x518] sm:$0xff] }
  0x4c   :  { %v16733_v38 = vand.u32 4294901760, %v10891_v50  ;;  %v734_v35 = vand.u32 4294901760, %v733_v47  ;;  %396 = vmatpush2.msra.mxu0 %v10882_v56  ;;  %723 = vmatprep.subr.mxu1 %v722_v25  ;;  %v10953_v47 = vand.u32 4294901760, %v8896_v24  ;;  %v10962_v52 = vand.u32 4294901760, %v8892_v37 }
  0x4d   :  { %v751_v34 = vsub.f32 %v10888_v29, %v16732_v42  ;;  %v740_v42 = vand.u32 4294901760, %v739_v49  ;;  %v746_v29 = vand.u32 4294901760, %v745_v36  ;;  %v10955_v49 = vand.u32 4294901760, %v8895_v46  ;;  %v8886_v36 = vld [vmem:[%s16010_s1 + $0x510] sm:$0xff]  ;;  %729 = vmatpush2.msra.mxu1 %v728_v41 }
  0x4e   :  { %v757_v55 = vsub.f32 %v10891_v50, %v16733_v38  ;;  %v763_v38 = vsub.f32 %v10898_v48, %v16734_v60  ;;  %v8889_v50 = vld [vmem:[%s16010_s1 + $0x528] sm:$0xff]  ;;  %16735 = vst [vmem:[#allocation76_spill] sm:$0xff] %v10953_v47  ;;  %v10960_v48 = vand.u32 4294901760, %v8893_v40  ;;  %v10964_v51 = vand.u32 4294901760, %v8890_v28  ;;  %735 = vmatprep.subr.mxu1 %v734_v35  ;;  %398 = vmatprep.subr.mxu0 %v10953_v47 }
  0x4f   :  { %v752_v43 = vand.u32 4294901760, %v751_v34  ;;  %16736 = vst [vmem:[#allocation77_spill] sm:$0xff] %v10955_v49  ;;  %v10967_v34 = vsub.f32 %v8896_v24, %v10953_v47  ;;  %v10972_v25 = vand.u32 4294901760, %v8889_v50  ;;  %v10974_v56 = vand.u32 4294901760, %v8887_v54  ;;  %741 = vmatpush2.msra.mxu1 %v740_v42  ;;  %400 = vmatpush2.msra.mxu0 %v10955_v49 }
  0x50   :  { %v758_v59 = vand.u32 4294901760, %v757_v55  ;;  %v764_v60 = vand.u32 4294901760, %v763_v38  ;;  %16737 = vst [vmem:[#allocation78_spill] sm:$0xff] %v10960_v48  ;;  %v10970_v55 = vsub.f32 %v8895_v46, %v10955_v49  ;;  %v10978_v41 = vsub.f32 %v8893_v40, %v10960_v48  ;;  %747 = vmatprep.subr.mxu1 %v746_v29  ;;  %402 = vmatprep.subr.mxu0 %v10960_v48 }
  0x51   :  { %16738 = vst [vmem:[#allocation79_spill] sm:$0xff] %v10967_v34  ;;  %16740 = vst [vmem:[#allocation81_spill] sm:$0xff] %v10972_v25  ;;  %v10981_v38 = vsub.f32 %v8892_v37, %v10962_v52  ;;  %v10984_v35 = vsub.f32 %v8890_v28, %v10964_v51  ;;  %v10986_v24 = vand.u32 4294901760, %v8886_v36  ;;  %v16200_v46 = vand.u32 4294901760, %v10967_v34  ;;  %753 = vmatpush2.msra.mxu1 %v752_v43 }
  0x52   :  { %16739 = vst [vmem:[#allocation80_spill] sm:$0xff] %v10970_v55  ;;  %16741 = vst [vmem:[#allocation82_spill] sm:$0xff] %v10974_v56  ;;  %v16203_v30 = vand.u32 4294901760, %v10970_v55  ;;  %v10992_v42 = vsub.f32 %v8889_v50, %v10972_v25  ;;  %v10995_v40 = vsub.f32 %v8887_v54, %v10974_v56  ;;  %v16206_v37 = vand.u32 4294901760, %v10978_v41  ;;  %404 = vmatpush2.msra.mxu0 %v10962_v52 }
  0x53   :  { %16742 = vst [vmem:[#allocation83_spill] sm:$0xff] %v10978_v41  ;;  %16743 = vst [vmem:[#allocation84_spill] sm:$0xff] %v10981_v38  ;;  %v11002_v29 = vsub.f32 %v8886_v36, %v10986_v24  ;;  %759 = vmatprep.subr.mxu1 %v758_v59  ;;  %v769_v54 = vsub.f32 %v10967_v34, %v16200_v46  ;;  %406 = vmatprep.subr.mxu0 %v10964_v51  ;;  %v16744_v59 = vand.u32 4294901760, %v10981_v38 }
  0x54   :  { %v775_v43 = vsub.f32 %v10970_v55, %v16203_v30  ;;  %765 = vmatpush2.msra.mxu1 %v764_v60  ;;  %v781_v36 = vsub.f32 %v10978_v41, %v16206_v37  ;;  %v16745_v46 = vand.u32 4294901760, %v10984_v35  ;;  %408 = vmatpush2.msra.mxu0 %v10972_v25  ;;  %v16746_v60 = vand.u32 4294901760, %v10992_v42 }
  0x55   :  { %v787_v49 = vsub.f32 %v10981_v38, %v16744_v59  ;;  %v16211_v30 = vand.u32 4294901760, %v11002_v29  ;;  %v770_v28 = vand.u32 4294901760, %v769_v54  ;;  %v16747_v37 = vand.u32 4294901760, %v10995_v40  ;;  %410 = vmatprep.subr.mxu0 %v10974_v56 }
  0x56   :  { %v793_v34 = vsub.f32 %v10984_v35, %v16745_v46  ;;  %v776_v50 = vand.u32 4294901760, %v775_v43  ;;  %v799_v55 = vsub.f32 %v10992_v42, %v16746_v60  ;;  %v782_v59 = vand.u32 4294901760, %v781_v36  ;;  %412 = vmatpush2.msra.mxu0 %v10986_v24 }
  0x57   :  { %v805_v41 = vsub.f32 %v10995_v40, %v16747_v37  ;;  %v788_v38 = vand.u32 4294901760, %v787_v49  ;;  %v811_v46 = vsub.f32 %v11002_v29, %v16211_v30  ;;  %771 = vmatprep.subr.mxu1 %v770_v28  ;;  %825 = vmatprep.subr.mxu0 %v10239_v16 }
  0x58   :  { %v794_v54 = vand.u32 4294901760, %v793_v34  ;;  %777 = vmatpush2.msra.mxu1 %v776_v50  ;;  %v800_v43 = vand.u32 4294901760, %v799_v55 }
  0x59   :  { %783 = vmatprep.subr.mxu1 %v782_v59  ;;  %v806_v60 = vand.u32 4294901760, %v805_v41  ;;  %v812_v37 = vand.u32 4294901760, %v811_v46 }
  0x5a   :  { %789 = vmatpush2.msra.mxu1 %v788_v38 }
  0x5b   :  { %795 = vmatprep.subr.mxu1 %v794_v54 }
  0x5c   :  { %801 = vmatpush2.msra.mxu1 %v800_v43 }
  0x5d   :  { %807 = vmatprep.subr.mxu1 %v806_v60 }
  0x5e   :  { %813 = vmatpush2.msra.mxu1 %v812_v37  ;;  %v16757_v37 = vld [vmem:[#allocation2_spill] sm:$0xff] }
  0x5f   :  { %1027 = vmatprep.subr.mxu1 %v10210_v5 }
  0x74   :  { %v264_v49 = vpop.permute.xlu0 %263  ;;  %v262_v36 = vpop.permute.xlu1 %261 }
  0x75   :  { %v268_v30 = vsel %vm267_vm0, %v262_v36, %v264_v49  ;;  %v16759_v36 = vld [vmem:[#allocation3_spill] sm:$0xff] }
  0x76   :  { %v11038_v28 = vand.u32 4294901760, %v268_v30 }
  0x78   :  { %16748 = vst [vmem:[#allocation85_spill] sm:$0xff] %v11038_v28  ;;  %v11041_v34 = vsub.f32 %v268_v30, %v11038_v28  ;;  %v11043_v55 = vpop.permute.xlu0 %265 }
  0x79   :  { %16750 = vst [vmem:[#allocation87_spill] sm:$0xff] %v11043_v55  ;;  %v269_v41 = vsel %vm267_vm0, %v264_v49, %v11043_v55  ;;  %v16758_v49 = vld [vmem:[#allocation8_spill] sm:$0xff]  ;;  %v16767_v55 = vld [vmem:[#allocation7_spill] sm:$0xff] }
  0x7a   :  { %16749 = vst [vmem:[#allocation86_spill] sm:$0xff] %v11041_v34  ;;  %v11046_v38 = vand.u32 4294901760, %v269_v41  ;;  %v11049_v50 = vand.u32 4294901760, %v11041_v34 }
  0x7c   :  { %16751 = vst [vmem:[#allocation88_spill] sm:$0xff] %v11046_v38  ;;  %16752 = vst [vmem:[#allocation89_spill] sm:$0xff] %v11049_v50  ;;  %v11052_v59 = vsub.f32 %v269_v41, %v11046_v38  ;;  %815 = vmatprep.mubr.f32.mxu1 %v11046_v38  ;;  %v422_v46 = vsub.f32 %v11041_v34, %v11049_v50  ;;  %v16760_v41 = vld [vmem:[#allocation12_spill] sm:$0xff] }
  0x7d   :  { %817 = vmatmul.mubr.f32.vlgmr.msra.gmra.mxu1 %v11038_v28  ;;  %v16768_v28 = vld [vmem:[#allocation16_spill] sm:$0xff] }
  0x7e   :  { %16753 = vst [vmem:[#allocation90_spill] sm:$0xff] %v11052_v59  ;;  %1029 = vmatpush1.msra.mxu1 %v10212_v6  ;;  %v11058_v30 = vand.u32 4294901760, %v11052_v59  ;;  %v11072_v60 = vand.u32 4294901760, %v422_v46  ;;  %v16761_v46 = vld [vmem:[#allocation4_spill] sm:$0xff] }
  0x7f   :  { %1031 = vmatprep.subr.mxu1 %v10223_v10 }
  0x80   :  { %16754 = vst [vmem:[#allocation91_spill] sm:$0xff] %v11058_v30  ;;  %1033 = vmatpush1.msra.mxu1 %v10225_v11  ;;  %1157 = vmatprep.mubr.f32.mxu1 %v11058_v30  ;;  %v416_v54 = vsub.f32 %v11052_v59, %v11058_v30  ;;  %16756 = vst [vmem:[#allocation93_spill] sm:$0xff] %v11072_v60  ;;  %v16765_v30 = vld [vmem:[#allocation6_spill] sm:$0xff] }
  0x81   :  { %1035 = vmatprep.subr.mxu1 %v10227_v12 }
  0x82   :  { %1037 = vmatpush1.msra.mxu1 %v10244_v18  ;;  %v11069_v43 = vand.u32 4294901760, %v416_v54  ;;  %v16762_v54 = vld [vmem:[#allocation13_spill] sm:$0xff] }
  0x83   :  { %1039 = vmatprep.subr.mxu1 %v10246_v19 }
  0x84   :  { %16755 = vst [vmem:[#allocation92_spill] sm:$0xff] %v11069_v43  ;;  %1041 = vmatpush1.msra.mxu1 %v10258_v23  ;;  %418 = vmatprep.mubr.f32.mxu0 %v11069_v43  ;;  %v16766_v43 = vld [vmem:[#allocation15_spill] sm:$0xff] }
  0x85   :  { %1043 = vmatprep.subr.mxu1 %v10329_v57  ;;  %424 = vmatmul.mubr.f32.vlgmr.msra.gmra.mxu0 %v11072_v60  ;;  %v16764_v60 = vld [vmem:[#allocation14_spill] sm:$0xff] }
  0x86   :  { %828 = vmatpush1.msra.mxu0 %v10242_v17  ;;  %1045 = vmatpush1.msra.mxu1 %v10331_v58 }
  0x87   :  { %831 = vmatprep.subr.mxu0 %v10250_v20  ;;  %1017 = vmatprep.mubr.f32.mxu0 %v11052_v59  ;;  %v16763_v59 = vld [vmem:[#allocation5_spill] sm:$0xff] }
  0x88   :  { %1047 = vmatprep.subr.mxu1 %v10336_v61  ;;  %834 = vmatpush1.msra.mxu0 %v10253_v21 }
  0x89   :  { %1049 = vmatpush1.msra.mxu1 %v10338_v62  ;;  %837 = vmatprep.subr.mxu0 %v10256_v22 }
  0x8a   :  { %1051 = vmatprep.subr.mxu1 %v10340_v63  ;;  %840 = vmatpush1.msra.mxu0 %v10264_v26 }
  0x8b   :  { %1053 = vmatpush1.msra.mxu1 %v10348_v2  ;;  %843 = vmatprep.subr.mxu0 %v10267_v27 }
  0x8c   :  { %1055 = vmatprep.subr.mxu1 %v10350_v3  ;;  %846 = vmatpush1.msra.mxu0 %v10274_v31 }
  0x8d   :  { %1057 = vmatpush1.msra.mxu1 %v10362_v9  ;;  %849 = vmatprep.subr.mxu0 %v10343_v0 }
  0x8e   :  { %1059 = vmatprep.subr.mxu1 %v10433_v44  ;;  %852 = vmatpush1.msra.mxu0 %v10346_v1 }
  0x8f   :  { %1061 = vmatpush1.msra.mxu1 %v10435_v45  ;;  %855 = vmatprep.subr.mxu0 %v10354_v4 }
  0x90   :  { %1063 = vmatprep.subr.mxu1 %v10440_v33  ;;  %858 = vmatpush1.msra.mxu0 %v10357_v7 }
  0x91   :  { %1065 = vmatpush1.msra.mxu1 %v10442_v14  ;;  %861 = vmatprep.subr.mxu0 %v10360_v8 }
  0x92   :  { %1067 = vmatprep.subr.mxu1 %v10444_v13  ;;  %864 = vmatpush1.msra.mxu0 %v10368_v15 }
  0x93   :  { %1069 = vmatpush1.msra.mxu1 %v10452_v53  ;;  %867 = vmatprep.subr.mxu0 %v10371_v32 }
  0x94   :  { %1071 = vmatprep.subr.mxu1 %v10454_v39  ;;  %870 = vmatpush1.msra.mxu0 %v16757_v37 }
  0x95   :  { %1073 = vmatpush1.msra.mxu1 %v16758_v49  ;;  %873 = vmatprep.subr.mxu0 %v16759_v36  ;;  %v16769_v49 = vld [vmem:[#allocation9_spill] sm:$0xff]  ;;  %v16770_v36 = vld [vmem:[#allocation19_spill] sm:$0xff] }
  0x96   :  { %1075 = vmatprep.subr.mxu1 %v16760_v41  ;;  %876 = vmatpush1.msra.mxu0 %v16761_v46  ;;  %v16771_v41 = vld [vmem:[#allocation10_spill] sm:$0xff]  ;;  %v16772_v46 = vld [vmem:[#allocation20_spill] sm:$0xff] }
  0x97   :  { %1077 = vmatpush1.msra.mxu1 %v16762_v54  ;;  %879 = vmatprep.subr.mxu0 %v16763_v59  ;;  %v16773_v54 = vld [vmem:[#allocation11_spill] sm:$0xff]  ;;  %v16774_v59 = vld [vmem:[#allocation24_spill] sm:$0xff] }
  0x98   :  { %1079 = vmatprep.subr.mxu1 %v16764_v60  ;;  %882 = vmatpush1.msra.mxu0 %v16765_v30  ;;  %v16775_v60 = vld [vmem:[#allocation17_spill] sm:$0xff]  ;;  %v16776_v30 = vld [vmem:[#allocation28_spill] sm:$0xff] }
  0x99   :  { %1081 = vmatpush1.msra.mxu1 %v16766_v43  ;;  %885 = vmatprep.subr.mxu0 %v16767_v55  ;;  %v16777_v43 = vld [vmem:[#allocation18_spill] sm:$0xff]  ;;  %v16778_v55 = vld [vmem:[#allocation29_spill] sm:$0xff] }
  0x9a   :  { %1083 = vmatprep.subr.mxu1 %v16768_v28  ;;  %888 = vmatpush1.msra.mxu0 %v16769_v49  ;;  %v16779_v28 = vld [vmem:[#allocation21_spill] sm:$0xff]  ;;  %v16780_v49 = vld [vmem:[#allocation30_spill] sm:$0xff] }
  0x9b   :  { %1085 = vmatpush1.msra.mxu1 %v16770_v36  ;;  %891 = vmatprep.subr.mxu0 %v16771_v41  ;;  %v16781_v36 = vld [vmem:[#allocation22_spill] sm:$0xff]  ;;  %v16782_v41 = vld [vmem:[#allocation31_spill] sm:$0xff] }
  0x9c   :  { %1087 = vmatprep.subr.mxu1 %v16772_v46  ;;  %894 = vmatpush1.msra.mxu0 %v16773_v54  ;;  %v16783_v46 = vld [vmem:[#allocation23_spill] sm:$0xff]  ;;  %v16784_v54 = vld [vmem:[#allocation32_spill] sm:$0xff] }
  0x9d   :  { %1089 = vmatpush1.msra.mxu1 %v16774_v59  ;;  %897 = vmatprep.subr.mxu0 %v16775_v60  ;;  %v16785_v59 = vld [vmem:[#allocation25_spill] sm:$0xff]  ;;  %v16786_v60 = vld [vmem:[#allocation35_spill] sm:$0xff] }
  0x9e   :  { %1091 = vmatprep.subr.mxu1 %v16776_v30  ;;  %900 = vmatpush1.msra.mxu0 %v16777_v43  ;;  %v16787_v30 = vld [vmem:[#allocation26_spill] sm:$0xff]  ;;  %v16788_v43 = vld [vmem:[#allocation36_spill] sm:$0xff] }
  0x9f   :  { %1093 = vmatpush2.msra.mxu1 %v16778_v55  ;;  %903 = vmatprep.subr.mxu0 %v16779_v28  ;;  %v16789_v55 = vld [vmem:[#allocation27_spill] sm:$0xff]  ;;  %v16790_v28 = vld [vmem:[#allocation40_spill] sm:$0xff] }
  0xa0   :  { %1095 = vmatprep.subr.mxu1 %v16780_v49  ;;  %906 = vmatpush1.msra.mxu0 %v16781_v36  ;;  %v16791_v49 = vld [vmem:[#allocation33_spill] sm:$0xff]  ;;  %v16792_v36 = vld [vmem:[#allocation44_spill] sm:$0xff] }
  0xa1   :  { %1097 = vmatpush2.msra.mxu1 %v16782_v41  ;;  %909 = vmatprep.subr.mxu0 %v16783_v46  ;;  %v16793_v41 = vld [vmem:[#allocation34_spill] sm:$0xff]  ;;  %v16794_v46 = vld [vmem:[#allocation45_spill] sm:$0xff] }
  0xa2   :  { %1099 = vmatprep.subr.mxu1 %v16784_v54  ;;  %912 = vmatpush1.msra.mxu0 %v16785_v59  ;;  %v16795_v54 = vld [vmem:[#allocation37_spill] sm:$0xff]  ;;  %v16796_v59 = vld [vmem:[#allocation46_spill] sm:$0xff] }
  0xa3   :  { %1101 = vmatpush2.msra.mxu1 %v16786_v60  ;;  %915 = vmatprep.subr.mxu0 %v16787_v30  ;;  %v16797_v60 = vld [vmem:[#allocation38_spill] sm:$0xff]  ;;  %v16798_v30 = vld [vmem:[#allocation47_spill] sm:$0xff] }
  0xa4   :  { %1103 = vmatprep.subr.mxu1 %v16788_v43  ;;  %918 = vmatpush1.msra.mxu0 %v16789_v55  ;;  %v16799_v43 = vld [vmem:[#allocation39_spill] sm:$0xff]  ;;  %v16800_v55 = vld [vmem:[#allocation48_spill] sm:$0xff] }
  0xa5   :  { %1105 = vmatpush2.msra.mxu1 %v16790_v28  ;;  %921 = vmatprep.subr.mxu0 %v16791_v49  ;;  %v16801_v28 = vld [vmem:[#allocation41_spill] sm:$0xff]  ;;  %v16802_v49 = vld [vmem:[#allocation51_spill] sm:$0xff] }
  0xa6   :  { %1107 = vmatprep.subr.mxu1 %v16792_v36  ;;  %924 = vmatpush2.msra.mxu0 %v16793_v41  ;;  %v16803_v36 = vld [vmem:[#allocation42_spill] sm:$0xff]  ;;  %v16804_v41 = vld [vmem:[#allocation52_spill] sm:$0xff] }
  0xa7   :  { %1109 = vmatpush2.msra.mxu1 %v16794_v46  ;;  %927 = vmatprep.subr.mxu0 %v16795_v54  ;;  %v16805_v46 = vld [vmem:[#allocation43_spill] sm:$0xff]  ;;  %v16806_v54 = vld [vmem:[#allocation56_spill] sm:$0xff] }
  0xa8   :  { %1111 = vmatprep.subr.mxu1 %v16796_v59  ;;  %930 = vmatpush2.msra.mxu0 %v16797_v60  ;;  %v16807_v59 = vld [vmem:[#allocation49_spill] sm:$0xff]  ;;  %v16808_v60 = vld [vmem:[#allocation60_spill] sm:$0xff] }
  0xa9   :  { %1113 = vmatpush2.msra.mxu1 %v16798_v30  ;;  %933 = vmatprep.subr.mxu0 %v16799_v43  ;;  %v16809_v30 = vld [vmem:[#allocation50_spill] sm:$0xff]  ;;  %v16810_v43 = vld [vmem:[#allocation61_spill] sm:$0xff] }
  0xaa   :  { %1115 = vmatprep.subr.mxu1 %v16800_v55  ;;  %936 = vmatpush2.msra.mxu0 %v16801_v28  ;;  %v16811_v55 = vld [vmem:[#allocation53_spill] sm:$0xff]  ;;  %v16812_v28 = vld [vmem:[#allocation62_spill] sm:$0xff] }
  0xab   :  { %1117 = vmatpush2.msra.mxu1 %v16802_v49  ;;  %939 = vmatprep.subr.mxu0 %v16803_v36  ;;  %v16813_v49 = vld [vmem:[#allocation54_spill] sm:$0xff]  ;;  %v16814_v36 = vld [vmem:[#allocation63_spill] sm:$0xff] }
  0xac   :  { %1119 = vmatprep.subr.mxu1 %v16804_v41  ;;  %942 = vmatpush2.msra.mxu0 %v16805_v46  ;;  %v16815_v41 = vld [vmem:[#allocation55_spill] sm:$0xff]  ;;  %v16816_v46 = vld [vmem:[#allocation64_spill] sm:$0xff] }
  0xad   :  { %1121 = vmatpush2.msra.mxu1 %v16806_v54  ;;  %945 = vmatprep.subr.mxu0 %v16807_v59  ;;  %v16817_v54 = vld [vmem:[#allocation57_spill] sm:$0xff]  ;;  %v16818_v59 = vld [vmem:[#allocation67_spill] sm:$0xff] }
  0xae   :  { %1123 = vmatprep.subr.mxu1 %v16808_v60  ;;  %948 = vmatpush2.msra.mxu0 %v16809_v30  ;;  %v16819_v60 = vld [vmem:[#allocation58_spill] sm:$0xff]  ;;  %v16820_v30 = vld [vmem:[#allocation68_spill] sm:$0xff] }
  0xaf   :  { %1125 = vmatpush2.msra.mxu1 %v16810_v43  ;;  %951 = vmatprep.subr.mxu0 %v16811_v55  ;;  %v16821_v43 = vld [vmem:[#allocation59_spill] sm:$0xff]  ;;  %v16822_v55 = vld [vmem:[#allocation72_spill] sm:$0xff] }
  0xb0   :  { %1127 = vmatprep.subr.mxu1 %v16812_v28  ;;  %954 = vmatpush2.msra.mxu0 %v16813_v49  ;;  %v16823_v28 = vld [vmem:[#allocation65_spill] sm:$0xff] }
  0xb1   :  { %1129 = vmatpush2.msra.mxu1 %v16814_v36  ;;  %957 = vmatprep.subr.mxu0 %v16815_v41  ;;  %v16824_v36 = vld [vmem:[#allocation66_spill] sm:$0xff]  ;;  %v16825_v41 = vld [vmem:[#allocation77_spill] sm:$0xff] }
  0xb2   :  { %1131 = vmatprep.subr.mxu1 %v16816_v46  ;;  %960 = vmatpush2.msra.mxu0 %v16817_v54  ;;  %v16826_v46 = vld [vmem:[#allocation69_spill] sm:$0xff] }
  0xb3   :  { %1133 = vmatpush2.msra.mxu1 %v16818_v59  ;;  %963 = vmatprep.subr.mxu0 %v16819_v60  ;;  %v16827_v59 = vld [vmem:[#allocation70_spill] sm:$0xff] }
  0xb4   :  { %1135 = vmatprep.subr.mxu1 %v16820_v30  ;;  %966 = vmatpush2.msra.mxu0 %v16821_v43  ;;  %v16828_v30 = vld [vmem:[#allocation71_spill] sm:$0xff] }
  0xb5   :  { %1137 = vmatpush2.msra.mxu1 %v16822_v55  ;;  %969 = vmatprep.subr.mxu0 %v16823_v28  ;;  %v16829_v55 = vld [vmem:[#allocation73_spill] sm:$0xff] }
  0xb6   :  { %1139 = vmatprep.subr.mxu1 %v10953_v47  ;;  %972 = vmatpush2.msra.mxu0 %v16824_v36  ;;  %v16830_v47 = vld [vmem:[#allocation74_spill] sm:$0xff] }
  0xb7   :  { %1141 = vmatpush2.msra.mxu1 %v16825_v41  ;;  %975 = vmatprep.subr.mxu0 %v16826_v46  ;;  %v16831_v41 = vld [vmem:[#allocation75_spill] sm:$0xff] }
  0xb8   :  { %1143 = vmatprep.subr.mxu1 %v10960_v48  ;;  %978 = vmatpush2.msra.mxu0 %v16827_v59  ;;  %v16832_v48 = vld [vmem:[#allocation79_spill] sm:$0xff] }
  0xb9   :  { %1145 = vmatpush2.msra.mxu1 %v10962_v52  ;;  %981 = vmatprep.subr.mxu0 %v16828_v30  ;;  %v16833_v30 = vld [vmem:[#allocation80_spill] sm:$0xff] }
  0xba   :  { %1147 = vmatprep.subr.mxu1 %v10964_v51  ;;  %984 = vmatpush2.msra.mxu0 %v16829_v55 }
  0xbb   :  { %1149 = vmatpush2.msra.mxu1 %v10972_v25  ;;  %987 = vmatprep.subr.mxu0 %v16830_v47  ;;  %v16834_v25 = vld [vmem:[#allocation83_spill] sm:$0xff] }
  0xbc   :  { %1151 = vmatprep.subr.mxu1 %v10974_v56  ;;  %990 = vmatpush2.msra.mxu0 %v16831_v41  ;;  %v16835_v56 = vld [vmem:[#allocation84_spill] sm:$0xff] }
  0xbd   :  { %1153 = vmatpush2.msra.mxu1 %v10986_v24  ;;  %993 = vmatprep.subr.mxu0 %v16832_v48 }
  0xbe   :  { %1161 = vmatmul.mubr.f32.vlgmr.msra.gmra.mxu1 %v11049_v50  ;;  %1433 = vmatprep.subr.mxu1 %v10210_v5  ;;  %v16836_v5 = vand.u32 4294901760, %v10239_v16  ;;  %v16841_v16 = vand.u32 4294901760, %v10264_v26  ;;  %v16849_v26 = vand.u32 4294901760, %v10368_v15  ;;  %v16868_v15 = vld [vmem:[#allocation9_spill] sm:$0xff] }
  0xbf   :  { %996 = vmatpush2.msra.mxu0 %v16833_v30  ;;  %1435 = vmatpush1.msra.mxu1 %v10212_v6  ;;  %v16837_v6 = vand.u32 4294901760, %v10242_v17  ;;  %v16842_v17 = vand.u32 4294901760, %v10267_v27  ;;  %v16850_v27 = vand.u32 4294901760, %v10371_v32  ;;  %v16869_v32 = vand.u32 4294901760, %v16868_v15 }
  0xc0   :  { %1561 = vmatprep.mubr.f32.mxu1 %v11046_v38  ;;  %999 = vmatprep.subr.mxu0 %v16834_v25 }
  0xc1   :  { %1437 = vmatprep.subr.mxu1 %v10223_v10  ;;  %1002 = vmatpush2.msra.mxu0 %v16835_v56  ;;  %v16838_v10 = vand.u32 4294901760, %v10250_v20  ;;  %v16845_v20 = vand.u32 4294901760, %v10346_v1  ;;  %v16858_v1 = vld [vmem:[#allocation13_spill] sm:$0xff] }
  0xc2   :  { %1439 = vmatpush1.msra.mxu1 %v10225_v11  ;;  %1005 = vmatprep.subr.mxu0 %v10984_v35  ;;  %v16839_v11 = vand.u32 4294901760, %v10253_v21  ;;  %v16846_v21 = vand.u32 4294901760, %v10354_v4  ;;  %v16861_v4 = vld [vmem:[#allocation14_spill] sm:$0xff] }
  0xc3   :  { %1441 = vmatprep.subr.mxu1 %v10227_v12  ;;  %1008 = vmatpush2.msra.mxu0 %v10992_v42  ;;  %v16840_v12 = vand.u32 4294901760, %v10256_v22  ;;  %v16847_v22 = vand.u32 4294901760, %v10357_v7 }
  0xc4   :  { %1443 = vmatpush1.msra.mxu1 %v10244_v18  ;;  %1011 = vmatprep.subr.mxu0 %v10995_v40  ;;  %v16843_v18 = vand.u32 4294901760, %v10274_v31  ;;  %v16851_v31 = vand.u32 4294901760, %v16757_v37  ;;  %v16874_v37 = vld [vmem:[#allocation11_spill] sm:$0xff] }
  0xc5   :  { %1445 = vmatprep.subr.mxu1 %v10246_v19  ;;  %1014 = vmatpush2.msra.mxu0 %v11002_v29  ;;  %v16844_v19 = vand.u32 4294901760, %v10343_v0 }
  0xc6   :  { %1447 = vmatpush1.msra.mxu1 %v10258_v23  ;;  %1020 = vmatmul.mubr.f32.vlgmr.msra.gmra.mxu0 %v11041_v34  ;;  %v16848_v23 = vand.u32 4294901760, %v10360_v8  ;;  %v16864_v8 = vld [vmem:[#allocation15_spill] sm:$0xff] }
  0xc7   :  { %1170 = vmatprep.subr.mxu0 %v16836_v5  ;;  %1449 = vmatprep.subr.mxu1 %v10329_v57  ;;  %v16852_v57 = vld [vmem:[#allocation8_spill] sm:$0xff]  ;;  %v16875_v5 = vand.u32 4294901760, %v16874_v37  ;;  %v16910_v37 = vld [vmem:[#allocation38_spill] sm:$0xff] }
  0xc8   :  { %1174 = vmatpush1.msra.mxu0 %v16837_v6  ;;  %1424 = vmatprep.mubr.f32.mxu0 %v11046_v38  ;;  %v16876_v6 = vld [vmem:[#allocation24_spill] sm:$0xff] }
  0xc9   :  { %1451 = vmatpush1.msra.mxu1 %v10331_v58  ;;  %1178 = vmatprep.subr.mxu0 %v16838_v10  ;;  %v16853_v58 = vld [vmem:[#allocation3_spill] sm:$0xff]  ;;  %v16877_v10 = vld [vmem:[#allocation17_spill] sm:$0xff] }
  0xca   :  { %1453 = vmatprep.subr.mxu1 %v10336_v61  ;;  %1182 = vmatpush1.msra.mxu0 %v16839_v11  ;;  %v16854_v61 = vand.u32 4294901760, %v16853_v58  ;;  %v16878_v11 = vand.u32 4294901760, %v16877_v10  ;;  %v16892_v58 = vld [vmem:[#allocation25_spill] sm:$0xff]  ;;  %v16912_v10 = vld [vmem:[#allocation47_spill] sm:$0xff] }
  0xcb   :  { %1455 = vmatpush1.msra.mxu1 %v10338_v62  ;;  %1186 = vmatprep.subr.mxu0 %v16840_v12  ;;  %v16855_v62 = vld [vmem:[#allocation12_spill] sm:$0xff] }
  0xcc   :  { %1457 = vmatprep.subr.mxu1 %v10340_v63  ;;  %1190 = vmatpush1.msra.mxu0 %v16841_v16  ;;  %v16856_v63 = vld [vmem:[#allocation4_spill] sm:$0xff]  ;;  %v16880_v16 = vld [vmem:[#allocation18_spill] sm:$0xff] }
  0xcd   :  { %1459 = vmatpush1.msra.mxu1 %v10348_v2  ;;  %1194 = vmatprep.subr.mxu0 %v16842_v17  ;;  %v16857_v0 = vand.u32 4294901760, %v16856_v63  ;;  %v16859_v2 = vld [vmem:[#allocation5_spill] sm:$0xff]  ;;  %v16879_v12 = vld [vmem:[#allocation28_spill] sm:$0xff]  ;;  %v16881_v17 = vand.u32 4294901760, %v16880_v16  ;;  %v16895_v63 = vld [vmem:[#allocation26_spill] sm:$0xff] }
  0xce   :  { %1461 = vmatprep.subr.mxu1 %v10350_v3  ;;  %1198 = vmatpush1.msra.mxu0 %v16843_v18  ;;  %v16860_v3 = vand.u32 4294901760, %v16859_v2  ;;  %v16882_v18 = vld [vmem:[#allocation29_spill] sm:$0xff]  ;;  %v16898_v2 = vld [vmem:[#allocation27_spill] sm:$0xff] }
  0xcf   :  { %1463 = vmatpush1.msra.mxu1 %v10362_v9  ;;  %1202 = vmatprep.subr.mxu0 %v16844_v19  ;;  %v16865_v9 = vld [vmem:[#allocation7_spill] sm:$0xff]  ;;  %v16883_v19 = vld [vmem:[#allocation21_spill] sm:$0xff] }
  0xd0   :  { %1465 = vmatprep.subr.mxu1 %v10433_v44  ;;  %1206 = vmatpush1.msra.mxu0 %v16845_v20  ;;  %v16871_v44 = vld [vmem:[#allocation10_spill] sm:$0xff]  ;;  %v16884_v20 = vand.u32 4294901760, %v16883_v19  ;;  %v8947_v16 = vld [vmem:[%s16010_s1 + $0x6f8] sm:$0xff] }
  0xd1   :  { %1467 = vmatpush1.msra.mxu1 %v10435_v45  ;;  %1210 = vmatprep.subr.mxu0 %v16846_v21  ;;  %v16872_v45 = vand.u32 4294901760, %v16871_v44  ;;  %v16885_v21 = vld [vmem:[#allocation30_spill] sm:$0xff] }
  0xd2   :  { %1469 = vmatprep.subr.mxu1 %v10440_v33  ;;  %1214 = vmatpush1.msra.mxu0 %v16847_v22  ;;  %v16870_v33 = vld [vmem:[#allocation19_spill] sm:$0xff]  ;;  %v16886_v22 = vld [vmem:[#allocation22_spill] sm:$0xff] }
  0xd3   :  { %1471 = vmatpush1.msra.mxu1 %v10442_v14  ;;  %1218 = vmatprep.subr.mxu0 %v16848_v23  ;;  %v16867_v14 = vld [vmem:[#allocation16_spill] sm:$0xff]  ;;  %v16887_v23 = vand.u32 4294901760, %v16886_v22  ;;  %v16918_v22 = vld [vmem:[#allocation51_spill] sm:$0xff] }
  0xd4   :  { %1473 = vmatprep.subr.mxu1 %v10444_v13  ;;  %1222 = vmatpush1.msra.mxu0 %v16849_v26  ;;  %v16866_v13 = vand.u32 4294901760, %v16865_v9  ;;  %v16888_v26 = vld [vmem:[#allocation31_spill] sm:$0xff] }
  0xd5   :  { %1475 = vmatpush1.msra.mxu1 %v10452_v53  ;;  %1226 = vmatprep.subr.mxu0 %v16850_v27  ;;  %v16873_v53 = vld [vmem:[#allocation20_spill] sm:$0xff]  ;;  %v16889_v27 = vld [vmem:[#allocation23_spill] sm:$0xff] }
  0xd6   :  { %1477 = vmatprep.subr.mxu1 %v10454_v39  ;;  %1230 = vmatpush1.msra.mxu0 %v16851_v31  ;;  %v16862_v39 = vld [vmem:[#allocation6_spill] sm:$0xff]  ;;  %v16890_v31 = vand.u32 4294901760, %v16889_v27  ;;  %v8949_v9 = vld [vmem:[%s16010_s1 + $0x708] sm:$0xf] }
  0xd7   :  { %1479 = vmatpush1.msra.mxu1 %v16852_v57  ;;  %1234 = vmatprep.subr.mxu0 %v16854_v61  ;;  %v16863_v7 = vand.u32 4294901760, %v16862_v39  ;;  %v16891_v57 = vld [vmem:[#allocation32_spill] sm:$0xff]  ;;  %v16893_v61 = vand.u32 4294901760, %v16892_v58  ;;  %v16922_v58 = vld [vmem:[#allocation43_spill] sm:$0xff] }
  0xd8   :  { %1481 = vmatprep.subr.mxu1 %v16855_v62  ;;  %1238 = vmatpush1.msra.mxu0 %v16857_v0  ;;  %v16894_v62 = vld [vmem:[#allocation35_spill] sm:$0xff]  ;;  %v16896_v0 = vand.u32 4294901760, %v16895_v63  ;;  %v16900_v39 = vld [vmem:[#allocation40_spill] sm:$0xff]  ;;  %v8943_v63 = vld [vmem:[%s16010_s1 + $0x6d8] sm:$0xff] }
  0xd9   :  { %1483 = vmatpush1.msra.mxu1 %v16858_v1  ;;  %1242 = vmatprep.subr.mxu0 %v16860_v3  ;;  %v16897_v1 = vld [vmem:[#allocation36_spill] sm:$0xff]  ;;  %v16899_v3 = vand.u32 4294901760, %v16898_v2 }
  0xda   :  { %1485 = vmatprep.subr.mxu1 %v16861_v4  ;;  %1246 = vmatpush1.msra.mxu0 %v16863_v7  ;;  %v8950_v4 = vld [vmem:[%s16010_s1 + $0x710] sm:$0xf]  ;;  %v16901_v7 = vld [vmem:[#allocation33_spill] sm:$0xff] }
  0xdb   :  { %1487 = vmatpush1.msra.mxu1 %v16864_v8  ;;  %1250 = vmatprep.subr.mxu0 %v16866_v13  ;;  %v16902_v8 = vand.u32 4294901760, %v16901_v7  ;;  %v16903_v13 = vld [vmem:[#allocation44_spill] sm:$0xff]  ;;  %v16928_v7 = vld [vmem:[#allocation50_spill] sm:$0xff] }
  0xdc   :  { %1489 = vmatprep.subr.mxu1 %v16867_v14  ;;  %1254 = vmatpush1.msra.mxu0 %v16869_v32  ;;  %v16904_v14 = vld [vmem:[#allocation34_spill] sm:$0xff]  ;;  %v16906_v32 = vld [vmem:[#allocation45_spill] sm:$0xff] }
  0xdd   :  { %1491 = vmatpush1.msra.mxu1 %v16870_v33  ;;  %1258 = vmatprep.subr.mxu0 %v16872_v45  ;;  %v16905_v15 = vand.u32 4294901760, %v16904_v14  ;;  %v16907_v33 = vld [vmem:[#allocation37_spill] sm:$0xff]  ;;  %v280_v45 = vsel %vm275_vm1, %v8950_v4, 0  ;;  %v8941_v4 = vld [vmem:[%s16010_s1 + $0x6c8] sm:$0xff]  ;;  %v8940_v14 = vld [vmem:[%s16010_s1 + $0x6c0] sm:$0xff] }
  0xde   :  { %1493 = vmatprep.subr.mxu1 %v16873_v53  ;;  %1262 = vmatpush1.msra.mxu0 %v16875_v5  ;;  %v16908_v44 = vand.u32 4294901760, %v16907_v33  ;;  %v16909_v53 = vld [vmem:[#allocation46_spill] sm:$0xff]  ;;  %v16911_v5 = vand.u32 4294901760, %v16910_v37 }
  0xdf   :  { %1495 = vmatpush1.msra.mxu1 %v16876_v6  ;;  %1266 = vmatprep.subr.mxu0 %v16878_v11  ;;  %v277_v6 = vsel %vm275_vm1, %v8949_v9, 0  ;;  %v16913_v11 = vld [vmem:[#allocation39_spill] sm:$0xff]  ;;  %v16933_v37 = vld [vmem:[#allocation62_spill] sm:$0xff] }
  0xe0   :  { %1497 = vmatprep.subr.mxu1 %v16879_v12  ;;  %1270 = vmatpush1.msra.mxu0 %v16881_v17  ;;  %v16914_v12 = vand.u32 4294901760, %v16913_v11  ;;  %v16915_v17 = vld [vmem:[#allocation48_spill] sm:$0xff]  ;;  %v11341_v27 = vand.u32 4294901760, %v277_v6 }
  0xe1   :  { %1499 = vmatpush2.msra.mxu1 %v16882_v18  ;;  %1274 = vmatprep.subr.mxu0 %v16884_v20  ;;  %v16916_v18 = vld [vmem:[#allocation41_spill] sm:$0xff]  ;;  %v11333_v20 = vand.u32 4294901760, %v280_v45  ;;  %v8938_v11 = vld [vmem:[%s16010_s1 + $0x6b0] sm:$0xff] }
  0xe2   :  { %1501 = vmatprep.subr.mxu1 %v16885_v21  ;;  %1278 = vmatpush1.msra.mxu0 %v16887_v23  ;;  %v16917_v19 = vand.u32 4294901760, %v16916_v18  ;;  %v8946_v21 = vld [vmem:[%s16010_s1 + $0x6f0] sm:$0xff]  ;;  %v16919_v23 = vld [vmem:[#allocation42_spill] sm:$0xff] }
  0xe3   :  { %1503 = vmatpush2.msra.mxu1 %v16888_v26  ;;  %1282 = vmatprep.subr.mxu0 %v16890_v31  ;;  %v16920_v26 = vand.u32 4294901760, %v16919_v23  ;;  %v8944_v31 = vld [vmem:[%s16010_s1 + $0x6e0] sm:$0xff]  ;;  %v11366_v9 = vsub.f32 %v280_v45, %v11333_v20  ;;  %v16934_v45 = vand.u32 4294901760, %v16813_v49  ;;  %v8937_v49 = vld [vmem:[%s16010_s1 + $0x6a8] sm:$0xff] }
  0xe4   :  { %1505 = vmatprep.subr.mxu1 %v16891_v57  ;;  %1286 = vmatpush1.msra.mxu0 %v16893_v61  ;;  %v16921_v57 = vld [vmem:[#allocation52_spill] sm:$0xff]  ;;  %v16923_v61 = vand.u32 4294901760, %v16922_v58  ;;  %v16941_v58 = vand.u32 4294901760, %v16819_v60 }
  0xe5   :  { %1507 = vmatpush2.msra.mxu1 %v16894_v62  ;;  %1290 = vmatprep.subr.mxu0 %v16896_v0  ;;  %v11349_v62 = vand.u32 4294901760, %v8947_v16  ;;  %v16924_v0 = vld [vmem:[#allocation56_spill] sm:$0xff]  ;;  %v16235_v23 = vand.u32 4294901760, %v11366_v9 }
  0xe6   :  { %1509 = vmatprep.subr.mxu1 %v16897_v1  ;;  %1294 = vmatpush1.msra.mxu0 %v16899_v3  ;;  %v16925_v1 = vld [vmem:[#allocation49_spill] sm:$0xff]  ;;  %v11357_v3 = vand.u32 4294901760, %v8946_v21 }
  0xe7   :  { %1511 = vmatpush2.msra.mxu1 %v16900_v39  ;;  %1298 = vmatprep.subr.mxu0 %v16902_v8  ;;  %v16926_v2 = vand.u32 4294901760, %v16925_v1  ;;  %v16927_v39 = vld [vmem:[#allocation60_spill] sm:$0xff]  ;;  %v16929_v8 = vand.u32 4294901760, %v16928_v7  ;;  %v11432_v7 = vand.u32 4294901760, %v8937_v49 }
  0xe8   :  { %1513 = vmatprep.subr.mxu1 %v16903_v13  ;;  %1302 = vmatpush2.msra.mxu0 %v16905_v15  ;;  %v11368_v13 = vand.u32 4294901760, %v8944_v31  ;;  %v16930_v15 = vld [vmem:[#allocation61_spill] sm:$0xff]  ;;  %v11396_v18 = vsub.f32 %v8946_v21, %v11357_v3  ;;  %v16942_v1 = vld [vmem:[#allocation68_spill] sm:$0xff] }
  0xe9   :  { %1515 = vmatpush2.msra.mxu1 %v16906_v32  ;;  %1306 = vmatprep.subr.mxu0 %v16908_v44  ;;  %v16931_v32 = vld [vmem:[#allocation53_spill] sm:$0xff]  ;;  %v11377_v44 = vsub.f32 %v277_v6, %v11341_v27  ;;  %v16936_v6 = vld [vmem:[#allocation55_spill] sm:$0xff] }
  0xea   :  { %1517 = vmatprep.subr.mxu1 %v16909_v53  ;;  %1310 = vmatpush2.msra.mxu0 %v16911_v5  ;;  %v16932_v33 = vand.u32 4294901760, %v16931_v32  ;;  %v11379_v53 = vand.u32 4294901760, %v8943_v63  ;;  %v11385_v5 = vsub.f32 %v8947_v16, %v11349_v62  ;;  %v16938_v16 = vld [vmem:[#allocation64_spill] sm:$0xff]  ;;  %v8935_v21 = vld [vmem:[%s16010_s1 + $0x698] sm:$0xff] }
  0xeb   :  { %1519 = vmatpush2.msra.mxu1 %v16912_v10  ;;  %1314 = vmatprep.subr.mxu0 %v16914_v12  ;;  %v11387_v10 = vand.u32 4294901760, %v8941_v4  ;;  %v16935_v12 = vld [vmem:[#allocation63_spill] sm:$0xff] }
  0xec   :  { %1521 = vmatprep.subr.mxu1 %v16915_v17  ;;  %1318 = vmatpush2.msra.mxu0 %v16917_v19  ;;  %v16937_v17 = vand.u32 4294901760, %v16936_v6  ;;  %v11398_v19 = vand.u32 4294901760, %v8940_v14 }
  0xed   :  { %1523 = vmatpush2.msra.mxu1 %v16918_v22  ;;  %1322 = vmatprep.subr.mxu0 %v16920_v26  ;;  %v16939_v22 = vand.u32 4294901760, %v16817_v54  ;;  %v11408_v26 = vsub.f32 %v8944_v31, %v11368_v13  ;;  %v11420_v54 = vand.u32 4294901760, %v8938_v11  ;;  %v8934_v31 = vld [vmem:[%s16010_s1 + $0x690] sm:$0xff]  ;;  %v11430_v60 = vsub.f32 %v8941_v4, %v11387_v10 }
  0xee   :  { %1525 = vmatprep.subr.mxu1 %v16921_v57  ;;  %1326 = vmatpush2.msra.mxu0 %v16923_v61  ;;  %v16940_v57 = vld [vmem:[#allocation67_spill] sm:$0xff]  ;;  %v16233_v61 = vand.u32 4294901760, %v11377_v44  ;;  %v11439_v32 = vsub.f32 %v8940_v14, %v11398_v19  ;;  %v1680_v4 = vsub.f32 %v11366_v9, %v16235_v23  ;;  %v16949_v14 = vand.u32 4294901760, %v16826_v46 }
  0xef   :  { %1527 = vmatpush2.msra.mxu1 %v16924_v0  ;;  %1330 = vmatprep.subr.mxu0 %v16926_v2  ;;  %v11418_v0 = vsub.f32 %v8943_v63, %v11379_v53  ;;  %v16943_v2 = vand.u32 4294901760, %v16821_v43  ;;  %v16944_v63 = vld [vmem:[#allocation72_spill] sm:$0xff]  ;;  %v16228_v46 = vand.u32 4294901760, %v11430_v60 }
  0xf0   :  { %1529 = vmatprep.subr.mxu1 %v16927_v39  ;;  %1334 = vmatpush2.msra.mxu0 %v16929_v8  ;;  %v16232_v39 = vand.u32 4294901760, %v11385_v5  ;;  %v16945_v8 = vand.u32 4294901760, %v16823_v28  ;;  %v16946_v43 = vld [vmem:[#allocation76_spill] sm:$0xff]  ;;  %v11450_v28 = vand.u32 4294901760, %v8934_v31  ;;  %v1686_v6 = vsub.f32 %v11377_v44, %v16233_v61  ;;  %v8912_v61 = vld [vmem:[%s16010_s1 + $0x5e0] sm:$0xff] }
  0xf1   :  { %1531 = vmatpush2.msra.mxu1 %v16930_v15  ;;  %1338 = vmatprep.subr.mxu0 %v16932_v33  ;;  %v16231_v15 = vand.u32 4294901760, %v11396_v18  ;;  %v11441_v33 = vand.u32 4294901760, %v8935_v21 }
  0xf2   :  { %1533 = vmatprep.subr.mxu1 %v16933_v37  ;;  %1342 = vmatpush2.msra.mxu0 %v16934_v45  ;;  %v16947_v37 = vand.u32 4294901760, %v16824_v36  ;;  %v16230_v45 = vand.u32 4294901760, %v11408_v26  ;;  %v16229_v36 = vand.u32 4294901760, %v11418_v0 }
  0xf3   :  { %1535 = vmatpush2.msra.mxu1 %v16935_v12  ;;  %1346 = vmatprep.subr.mxu0 %v16937_v17  ;;  %v16948_v12 = vld [vmem:[#allocation77_spill] sm:$0xff]  ;;  %v11460_v17 = vsub.f32 %v8938_v11, %v11420_v54  ;;  %v1698_v11 = vsub.f32 %v11396_v18, %v16231_v15 }
  0xf4   :  { %1537 = vmatprep.subr.mxu1 %v16938_v16  ;;  %1350 = vmatpush2.msra.mxu0 %v16939_v22  ;;  %v16950_v16 = vld [vmem:[#allocation78_spill] sm:$0xff]  ;;  %v16951_v22 = vand.u32 4294901760, %v16827_v59  ;;  %v16227_v59 = vand.u32 4294901760, %v11439_v32 }
  0xf5   :  { %1539 = vmatpush2.msra.mxu1 %v16940_v57  ;;  %1354 = vmatprep.subr.mxu0 %v16941_v58  ;;  %v1692_v57 = vsub.f32 %v11385_v5, %v16232_v39  ;;  %v11470_v58 = vsub.f32 %v8937_v49, %v11432_v7  ;;  %v1681_v49 = vand.u32 4294901760, %v1680_v4  ;;  %v16957_v4 = vld [vmem:[#allocation82_spill] sm:$0xff] }
  0xf6   :  { %1541 = vmatprep.subr.mxu1 %v16942_v1  ;;  %1358 = vmatpush2.msra.mxu0 %v16943_v2  ;;  %v16952_v1 = vld [vmem:[#allocation71_spill] sm:$0xff] }
  0xf7   :  { %1543 = vmatpush2.msra.mxu1 %v16944_v63  ;;  %1362 = vmatprep.subr.mxu0 %v16945_v8  ;;  %v16953_v2 = vand.u32 4294901760, %v16952_v1  ;;  %v11480_v63 = vsub.f32 %v8935_v21, %v11441_v33  ;;  %v16954_v8 = vand.u32 4294901760, %v16829_v55  ;;  %v1687_v21 = vand.u32 4294901760, %v1686_v6 }
  0xf8   :  { %1545 = vmatprep.subr.mxu1 %v16946_v43  ;;  %1366 = vmatpush2.msra.mxu0 %v16947_v37  ;;  %v11489_v43 = vsub.f32 %v8934_v31, %v11450_v28  ;;  %v16955_v37 = vld [vmem:[#allocation81_spill] sm:$0xff]  ;;  %v16226_v55 = vand.u32 4294901760, %v11460_v17  ;;  %v1693_v31 = vand.u32 4294901760, %v1692_v57  ;;  %v16959_v6 = vand.u32 4294901760, %v16832_v48 }
  0xf9   :  { %1547 = vmatpush2.msra.mxu1 %v16948_v12  ;;  %1370 = vmatprep.subr.mxu0 %v16949_v14  ;;  %v16956_v12 = vand.u32 4294901760, %v16830_v47  ;;  %v16958_v14 = vand.u32 4294901760, %v16831_v41  ;;  %v16225_v47 = vand.u32 4294901760, %v11470_v58  ;;  %v1722_v1 = vsub.f32 %v11439_v32, %v16227_v59 }
  0xfa   :  { %1549 = vmatprep.subr.mxu1 %v16950_v16  ;;  %1374 = vmatpush2.msra.mxu0 %v16951_v22  ;;  %v1716_v16 = vsub.f32 %v11430_v60, %v16228_v46  ;;  %v1699_v22 = vand.u32 4294901760, %v1698_v11  ;;  %v16224_v41 = vand.u32 4294901760, %v11480_v63  ;;  %v1728_v11 = vsub.f32 %v11460_v17, %v16226_v55 }
  0xfb   :  { %1551 = vmatpush2.msra.mxu1 %v10962_v52  ;;  %1378 = vmatprep.subr.mxu0 %v16953_v2  ;;  %v1704_v52 = vsub.f32 %v11408_v26, %v16230_v45  ;;  %v16960_v2 = vld [vmem:[#allocation85_spill] sm:$0xff] }
  0xfc   :  { %1553 = vmatprep.subr.mxu1 %v10964_v51  ;;  %1382 = vmatpush2.msra.mxu0 %v16954_v8  ;;  %v1710_v51 = vsub.f32 %v11418_v0, %v16229_v36  ;;  %v16223_v8 = vand.u32 4294901760, %v11489_v43 }
  0xfd   :  { %1555 = vmatpush2.msra.mxu1 %v16955_v37  ;;  %1386 = vmatprep.subr.mxu0 %v16956_v12  ;;  %v1705_v57 = vand.u32 4294901760, %v1704_v52  ;;  %v16961_v37 = vld [vmem:[#allocation87_spill] sm:$0xff]  ;;  %v1734_v52 = vsub.f32 %v11470_v58, %v16225_v47 }
  0xfe   :  { %1557 = vmatprep.subr.mxu1 %v16957_v4  ;;  %1390 = vmatpush2.msra.mxu0 %v16958_v14  ;;  %v273_v12 = vsel %vm272_vm2, %v16961_v37, 0  ;;  %v1711_v48 = vand.u32 4294901760, %v1710_v51  ;;  %v16963_v4 = vand.u32 4294901760, %v16834_v25  ;;  %v16964_v14 = vand.u32 4294901760, %v16835_v56 }
  0xff   :  { %1559 = vmatpush2.msra.mxu1 %v10986_v24  ;;  %1394 = vmatprep.subr.mxu0 %v16959_v6  ;;  %v16962_v24 = vand.u32 4294901760, %v16833_v30  ;;  %v1723_v30 = vand.u32 4294901760, %v1722_v1  ;;  %v11531_v51 = vand.u32 4294901760, %v273_v12  ;;  %v16966_v25 = vand.u32 4294901760, %v10984_v35 }
 0x100   :  { %1563 = vmatmul.mubr.f32.vlgmr.msra.gmra.mxu1 %v16960_v2  ;;  %1682 = vmatprep.subr.mxu1 %v1681_v49  ;;  %v1717_v49 = vand.u32 4294901760, %v1716_v16  ;;  %v16967_v16 = vand.u32 4294901760, %v10992_v42  ;;  %v1729_v56 = vand.u32 4294901760, %v1728_v11  ;;  %v16968_v6 = vand.u32 4294901760, %v10995_v40  ;;  %v8930_v11 = vld [vmem:[%s16010_s1 + $0x670] sm:$0xff] }
 0x101   :  { %1398 = vmatpush2.msra.mxu0 %v16962_v24  ;;  %1688 = vmatpush1.msra.mxu1 %v1687_v21  ;;  %v1740_v21 = vsub.f32 %v11480_v63, %v16224_v41  ;;  %16965 = vst [vmem:[#allocation2_spill] sm:$0xff] %v11531_v51  ;;  %v16969_v1 = vand.u32 4294901760, %v11002_v29  ;;  %v16240_v29 = vmov 0.0   ;;  %v8885_v24 = vld [vmem:[%s16010_s1 + $0x508] sm:$0xff] }
 0x102   :  { %1402 = vmatprep.subr.mxu0 %v16963_v4  ;;  %1694 = vmatprep.subr.mxu1 %v1693_v31  ;;  %v1746_v31 = vsub.f32 %v11489_v43, %v16223_v8 }
 0x103   :  { %1406 = vmatpush2.msra.mxu0 %v16964_v14  ;;  %1700 = vmatpush1.msra.mxu1 %v1699_v22  ;;  %v1735_v22 = vand.u32 4294901760, %v1734_v52  ;;  %v1741_v35 = vand.u32 4294901760, %v1740_v21  ;;  %v11592_v52 = vand.u32 4294901760, %v8885_v24  ;;  %v8927_v14 = vld [vmem:[%s16010_s1 + $0x658] sm:$0xff] }
 0x104   :  { %1410 = vmatprep.subr.mxu0 %v16966_v25  ;;  %1706 = vmatprep.subr.mxu1 %v1705_v57  ;;  %v11545_v57 = vsub.f32 %v273_v12, %v11531_v51  ;;  %v1747_v42 = vand.u32 4294901760, %v1746_v31  ;;  %v8933_v12 = vld [vmem:[%s16010_s1 + $0x688] sm:$0xff]  ;;  %v8879_v21 = vld [vmem:[%s16010_s1 + $0x4d8] sm:$0xff] }
 0x105   :  { %1414 = vmatpush2.msra.mxu0 %v16967_v16  ;;  %1712 = vmatpush1.msra.mxu1 %v1711_v48  ;;  %v11578_v48 = vand.u32 4294901760, %v8933_v12  ;;  %v8924_v16 = vld [vmem:[%s16010_s1 + $0x640] sm:$0xff] }
 0x106   :  { %1418 = vmatprep.subr.mxu0 %v16968_v6  ;;  %1718 = vmatprep.subr.mxu1 %v1717_v49  ;;  %16970 = vst [vmem:[#allocation54_spill] sm:$0xff] %v11545_v57  ;;  %v11553_v40 = vand.u32 4294901760, %v11545_v57  ;;  %v8882_v49 = vld [vmem:[%s16010_s1 + $0x4f0] sm:$0xff]  ;;  %v8876_v6 = vld [vmem:[%s16010_s1 + $0x4c0] sm:$0xff] }
 0x107   :  { %1422 = vmatpush2.msra.mxu0 %v16969_v1  ;;  %1724 = vmatpush1.msra.mxu1 %v1723_v30  ;;  %v11599_v30 = vand.u32 4294901760, %v8930_v11  ;;  %v11607_v25 = vsub.f32 %v8933_v12, %v11578_v48  ;;  %v11609_v31 = vand.u32 4294901760, %v8882_v49  ;;  %v11626_v1 = vand.u32 4294901760, %v8879_v21  ;;  %v8873_v12 = vld [vmem:[%s16010_s1 + $0x4a8] sm:$0xff] }
 0x108   :  { %1426 = vmatmul.mubr.f32.vlgmr.msra.gmra.mxu0 %v16960_v2  ;;  %1590 = vmatprep.subr.mxu0 %v11333_v20  ;;  %16971 = vst [vmem:[#allocation57_spill] sm:$0xff] %v11553_v40  ;;  %v1649_v37 = vsub.f32 %v11545_v57, %v11553_v40  ;;  %v11647_v41 = vand.u32 4294901760, %v8876_v6 }
 0x109   :  { %1730 = vmatprep.subr.mxu1 %v1729_v56  ;;  %1592 = vmatpush1.msra.mxu0 %v11341_v27  ;;  %v11616_v56 = vand.u32 4294901760, %v8927_v14  ;;  %v11645_v8 = vsub.f32 %v8882_v49, %v11609_v31  ;;  %v8870_v49 = vld [vmem:[%s16010_s1 + $0x490] sm:$0xff]  ;;  %v11666_v46 = vsub.f32 %v8879_v21, %v11626_v1  ;;  %v8867_v21 = vld [vmem:[%s16010_s1 + $0x478] sm:$0xff] }
 0x10a   :  { %1736 = vmatpush1.msra.mxu1 %v1735_v22  ;;  %1594 = vmatprep.subr.mxu0 %v11349_v62  ;;  %v11585_v4 = vand.u32 4294901760, %v1649_v37  ;;  %v11624_v22 = vsub.f32 %v8885_v24, %v11592_v52  ;;  %v11636_v37 = vand.u32 4294901760, %v8924_v16  ;;  %v16234_v24 = vand.u32 4294901760, %v11607_v25 }
 0x10b   :  { %1742 = vmatprep.subr.mxu1 %v1741_v35  ;;  %1596 = vmatpush1.msra.mxu0 %v11357_v3  ;;  %v8921_v35 = vld [vmem:[%s16010_s1 + $0x628] sm:$0xff]  ;;  %16974 = vst [vmem:[#allocation65_spill] sm:$0xff] %v11645_v8  ;;  %v11655_v47 = vsub.f32 %v8927_v14, %v11616_v56  ;;  %16976 = vst [vmem:[#allocation69_spill] sm:$0xff] %v11666_v46  ;;  %v8915_v14 = vld [vmem:[%s16010_s1 + $0x5f8] sm:$0xff]  ;;  %v11695_v39 = vand.u32 4294901760, %v8870_v49 }
 0x10c   :  { %1748 = vmatpush1.msra.mxu1 %v1747_v42  ;;  %1781 = vmatprep.mubr.f32.mxu1 %v16240_v29  ;;  %16972 = vst [vmem:[#allocation58_spill] sm:$0xff] %v11585_v4  ;;  %v11634_v42 = vsub.f32 %v8930_v11, %v11599_v30  ;;  %v8918_v11 = vld [vmem:[%s16010_s1 + $0x610] sm:$0xff]  ;;  %v11657_v55 = vand.u32 4294901760, %v8921_v35  ;;  %v16236_v59 = vand.u32 4294901760, %v11624_v22  ;;  %v11706_v23 = vand.u32 4294901760, %v8915_v14 }
 0x10d   :  { %1598 = vmatprep.subr.mxu0 %v11368_v13  ;;  %1783 = vmatmul.mubr.f32.vlgmr.msra.gmra.mxu1 %v11531_v51  ;;  %16975 = vst [vmem:[#allocation66_spill] sm:$0xff] %v11655_v47  ;;  %v11679_v45 = vand.u32 4294901760, %v8918_v11 }
 0x10e   :  { %1907 = vmatprep.subr.mxu1 %v11333_v20  ;;  %1600 = vmatpush1.msra.mxu0 %v11379_v53  ;;  %16973 = vst [vmem:[#allocation59_spill] sm:$0xff] %v11634_v42  ;;  %v16239_v36 = vand.u32 4294901760, %v11634_v42 }
 0x10f   :  { %1909 = vmatpush1.msra.mxu1 %v11341_v27  ;;  %1602 = vmatprep.subr.mxu0 %v11387_v10 }
 0x110   :  { %1911 = vmatprep.subr.mxu1 %v11349_v62  ;;  %1604 = vmatpush1.msra.mxu0 %v11398_v19 }
 0x111   :  { %1913 = vmatpush1.msra.mxu1 %v11357_v3  ;;  %1606 = vmatprep.subr.mxu0 %v11420_v54 }
 0x112   :  { %1915 = vmatprep.subr.mxu1 %v11368_v13  ;;  %1608 = vmatpush1.msra.mxu0 %v11432_v7 }
 0x113   :  { %1917 = vmatpush1.msra.mxu1 %v11379_v53  ;;  %1610 = vmatprep.subr.mxu0 %v11441_v33 }
 0x114   :  { %1919 = vmatprep.subr.mxu1 %v11387_v10  ;;  %1612 = vmatpush1.msra.mxu0 %v11450_v28 }
 0x115   :  { %1645 = vmatprep.mubr.f32.mxu0 %v16240_v29  ;;  %1921 = vmatpush1.msra.mxu1 %v11398_v19 }
 0x116   :  { %1651 = vmatmul.mubr.f32.vlgmr.msra.gmra.mxu0 %v11585_v4  ;;  %1811 = vmatprep.subr.mxu0 %v11366_v9 }
 0x117   :  { %1923 = vmatprep.subr.mxu1 %v11420_v54  ;;  %1814 = vmatpush1.msra.mxu0 %v11377_v44 }
 0x118   :  { %1925 = vmatpush1.msra.mxu1 %v11432_v7  ;;  %1817 = vmatprep.subr.mxu0 %v11385_v5 }
 0x119   :  { %1927 = vmatprep.subr.mxu1 %v11441_v33  ;;  %1820 = vmatpush1.msra.mxu0 %v11396_v18 }
 0x11a   :  { %1929 = vmatpush1.msra.mxu1 %v11450_v28  ;;  %1962 = vmatprep.mubr.f32.mxu1 %v16240_v29 }
 0x11b   :  { %1823 = vmatprep.subr.mxu0 %v11408_v26  ;;  %1966 = vmatmul.mubr.f32.vlgmr.msra.gmra.mxu1 %v11553_v40  ;;  %v16982_v40 = vand.u32 4294901760, %v11645_v8 }
 0x11c   :  { %2101 = vmatprep.subr.mxu1 %v11333_v20  ;;  %1826 = vmatpush1.msra.mxu0 %v11418_v0  ;;  %v11668_v20 = vand.u32 4294901760, %v8873_v12 }
 0x11d   :  { %2103 = vmatpush1.msra.mxu1 %v11341_v27  ;;  %1829 = vmatprep.subr.mxu0 %v11430_v60  ;;  %v11677_v27 = vsub.f32 %v8924_v16, %v11636_v37  ;;  %v11693_v16 = vsub.f32 %v8876_v6, %v11647_v41  ;;  %v11713_v6 = vsub.f32 %v11624_v22, %v16236_v59 }
 0x11e   :  { %2105 = vmatprep.subr.mxu1 %v11349_v62  ;;  %1832 = vmatpush1.msra.mxu0 %v11439_v32  ;;  %v11689_v62 = vsub.f32 %v11607_v25, %v16234_v24  ;;  %v11704_v24 = vsub.f32 %v8921_v35, %v11657_v55  ;;  %v11717_v15 = vsub.f32 %v8873_v12, %v11668_v20  ;;  %v8864_v35 = vld [vmem:[%s16010_s1 + $0x460] sm:$0xff] }
 0x11f   :  { %16977 = vst [vmem:[#allocation70_spill] sm:$0xff] %v11677_v27  ;;  %2107 = vmatpush1.msra.mxu1 %v11357_v3  ;;  %1835 = vmatprep.subr.mxu0 %v11460_v17  ;;  %16978 = vst [vmem:[#allocation73_spill] sm:$0xff] %v11693_v16  ;;  %v11719_v3 = vand.u32 4294901760, %v8867_v21  ;;  %v11733_v12 = vsub.f32 %v8918_v11, %v11679_v45  ;;  %v11743_v4 = vsub.f32 %v11645_v8, %v16982_v40 }
 0x120   :  { %2109 = vmatprep.subr.mxu1 %v11368_v13  ;;  %1838 = vmatpush1.msra.mxu0 %v11470_v58  ;;  %16979 = vst [vmem:[#allocation74_spill] sm:$0xff] %v11704_v24  ;;  %16980 = vst [vmem:[#allocation75_spill] sm:$0xff] %v11717_v15  ;;  %v11735_v13 = vand.u32 4294901760, %v8912_v61  ;;  %v11747_v59 = vsub.f32 %v8870_v49, %v11695_v39  ;;  %v16984_v11 = vand.u32 4294901760, %v11366_v9  ;;  %v11761_v34 = vand.u32 4294901760, %v8864_v35  ;;  %v8909_v49 = vld [vmem:[%s16010_s1 + $0x5c8] sm:$0xff] }
 0x121   :  { %2111 = vmatpush1.msra.mxu1 %v11379_v53  ;;  %1841 = vmatprep.subr.mxu0 %v11480_v63  ;;  %v11729_v53 = vsub.f32 %v11634_v42, %v16239_v36  ;;  %16981 = vst [vmem:[#allocation79_spill] sm:$0xff] %v11733_v12  ;;  %v11759_v40 = vsub.f32 %v8915_v14, %v11706_v23  ;;  %v16987_v9 = vand.u32 4294901760, %v11377_v44  ;;  %v8858_v14 = vld [vmem:[%s16010_s1 + $0x430] sm:$0xff]  ;;  %v16999_v50 = vand.u32 4294901760, %v11717_v15 }
 0x122   :  { %2113 = vmatprep.subr.mxu1 %v11387_v10  ;;  %1844 = vmatpush1.msra.mxu0 %v11489_v43  ;;  %v2393_v10 = vand.u32 4294901760, %v11689_v62  ;;  %16983 = vst [vmem:[#allocation80_spill] sm:$0xff] %v11747_v59  ;;  %v11777_v36 = vsub.f32 %v8867_v21, %v11719_v3  ;;  %v8861_v21 = vld [vmem:[%s16010_s1 + $0x448] sm:$0xff] }
 0x123   :  { %1877 = vmatprep.mubr.f32.mxu0 %v16240_v29  ;;  %2115 = vmatpush1.msra.mxu1 %v11398_v19  ;;  %v16985_v29 = vand.u32 4294901760, %v11655_v47  ;;  %16986 = vst [vmem:[#allocation83_spill] sm:$0xff] %v11759_v40  ;;  %v2400_v44 = vand.u32 4294901760, %v11729_v53 }
 0x124   :  { %1880 = vmatmul.mubr.f32.vlgmr.msra.gmra.mxu0 %v11545_v57  ;;  %1995 = vmatprep.subr.mxu0 %v16984_v11  ;;  %v2281_v11 = vand.u32 4294901760, %v11713_v6  ;;  %16989 = vst [vmem:[#allocation84_spill] sm:$0xff] %v11777_v36  ;;  %v16990_v57 = vand.u32 4294901760, %v11385_v5  ;;  %v16993_v5 = vand.u32 4294901760, %v11396_v18 }
 0x125   :  { %v11755_v19 = vsub.f32 %v11655_v47, %v16985_v29  ;;  %2117 = vmatprep.subr.mxu1 %v11420_v54  ;;  %1999 = vmatpush1.msra.mxu0 %v16987_v9  ;;  %v16988_v29 = vand.u32 4294901760, %v11666_v46  ;;  %v16991_v54 = vand.u32 4294901760, %v11677_v27  ;;  %v8906_v9 = vld [vmem:[%s16010_s1 + $0x5b0] sm:$0xff] }
 0x126   :  { %2119 = vmatpush1.msra.mxu1 %v11432_v7  ;;  %2003 = vmatprep.subr.mxu0 %v16990_v57  ;;  %v2288_v7 = vand.u32 4294901760, %v11743_v4  ;;  %v16994_v57 = vand.u32 4294901760, %v11693_v16  ;;  %v16996_v4 = vand.u32 4294901760, %v11704_v24 }
 0x127   :  { %v11773_v62 = vsub.f32 %v11666_v46, %v16988_v29  ;;  %v11786_v6 = vsub.f32 %v11677_v27, %v16991_v54  ;;  %v11790_v29 = vsub.f32 %v8912_v61, %v11735_v13  ;;  %2121 = vmatprep.subr.mxu1 %v11441_v33  ;;  %2007 = vmatpush1.msra.mxu0 %v16993_v5  ;;  %v11805_v61 = vand.u32 4294901760, %v8909_v49 }
 0x128   :  { %v11802_v53 = vsub.f32 %v11693_v16, %v16994_v57  ;;  %2123 = vmatpush1.msra.mxu1 %v11450_v28  ;;  %v16995_v33 = vmov 0.0   ;;  %v2407_v18 = vand.u32 4294901760, %v11755_v19  ;;  %v11816_v5 = vsub.f32 %v11704_v24, %v16996_v4  ;;  %v8903_v24 = vld [vmem:[%s16010_s1 + $0x598] sm:$0xff] }
 0x129   :  { %16992 = vst [vmem:[#allocation8_spill] sm:$0xff] %v11790_v29  ;;  %2156 = vmatprep.mubr.f32.mxu1 %v16995_v33  ;;  %v11820_v54 = vsub.f32 %v8864_v35, %v11761_v34  ;;  %v16998_v28 = vand.u32 4294901760, %v11408_v26  ;;  %v2295_v19 = vand.u32 4294901760, %v11773_v62  ;;  %v11832_v4 = vsub.f32 %v11717_v15, %v16999_v50  ;;  %8990 = vmatprep.subr.mxu1 %v2393_v10  ;;  %v8855_v15 = vld [vmem:[%s16010_s1 + $0x418] sm:$0xff]  ;;  %v8900_v50 = vld [vmem:[%s16010_s1 + $0x580] sm:$0xff] }
 0x12a   :  { %2158 = vmatmul.mubr.f32.vlgmr.msra.gmra.mxu1 %v11531_v51  ;;  %v11835_v35 = vand.u32 4294901760, %v8861_v21  ;;  %v17000_v26 = vand.u32 4294901760, %v11418_v0  ;;  %v17001_v62 = vand.u32 4294901760, %v11733_v12  ;;  %v11849_v57 = vand.u32 4294901760, %v8906_v9  ;;  %2072 = vmatprep.mubr.f32.mxu0 %v16995_v33  ;;  %v8888_v33 = vld [vmem:[%s16010_s1 + $0x520] sm:$0xff] }
 0x12b   :  { %16997 = vst [vmem:[#allocation3_spill] sm:$0xff] %v11820_v54  ;;  %2011 = vmatprep.subr.mxu0 %v16998_v28  ;;  %v2414_v28 = vand.u32 4294901760, %v11786_v6  ;;  %8991 = vmatpush3.msra.mxu1 %v2281_v11  ;;  %v2302_v0 = vand.u32 4294901760, %v11802_v53  ;;  %v17002_v10 = vand.u32 4294901760, %v11747_v59  ;;  %v17004_v11 = vand.u32 4294901760, %v11430_v60 }
 0x12c   :  { %2015 = vmatpush1.msra.mxu0 %v17000_v26  ;;  %v11846_v16 = vsub.f32 %v11733_v12, %v17001_v62  ;;  %2501 = vmatprep.mubr.f32.mxu1 %v11046_v38  ;;  %v11862_v26 = vsub.f32 %v8909_v49, %v11805_v61  ;;  %v11864_v62 = vand.u32 4294901760, %v8858_v14  ;;  %v2421_v53 = vand.u32 4294901760, %v11816_v5  ;;  %v8852_v12 = vld [vmem:[%s16010_s1 + $0x400] sm:$0xff]  ;;  %v8897_v49 = vld [vmem:[%s16010_s1 + $0x568] sm:$0xff] }
 0x12d   :  { %v11859_v6 = vsub.f32 %v11747_v59, %v17002_v10  ;;  %2019 = vmatprep.subr.mxu0 %v17004_v11  ;;  %8992 = vmatprep.subr.mxu1 %v2400_v44  ;;  %v17005_v38 = vand.u32 4294901760, %v11759_v40  ;;  %v11878_v59 = vand.u32 4294901760, %v8903_v24  ;;  %v17006_v27 = vand.u32 4294901760, %v11439_v32 }
 0x12e   :  { %17003 = vst [vmem:[#allocation12_spill] sm:$0xff] %v11862_v26  ;;  %8993 = vmatpush3.msra.mxu1 %v2288_v7  ;;  %v2309_v60 = vand.u32 4294901760, %v11832_v4  ;;  %v17007_v44 = vand.u32 4294901760, %v11777_v36  ;;  %v11894_v11 = vand.u32 4294901760, %v8855_v15  ;;  %v17009_v32 = vand.u32 4294901760, %v11460_v17 }
 0x12f   :  { %v11875_v10 = vsub.f32 %v11759_v40, %v17005_v38  ;;  %2023 = vmatpush1.msra.mxu0 %v17006_v27  ;;  %v11892_v38 = vsub.f32 %v8861_v21, %v11835_v35  ;;  %8994 = vmatprep.subr.mxu1 %v2407_v18  ;;  %v2428_v27 = vand.u32 4294901760, %v11846_v16  ;;  %v17010_v7 = vand.u32 4294901760, %v11790_v29  ;;  %v8846_v18 = vld [vmem:[%s16010_s1 + $0x3d0] sm:$0xff] }
 0x130   :  { %v11889_v5 = vsub.f32 %v11777_v36, %v17007_v44  ;;  %2027 = vmatprep.subr.mxu0 %v17009_v32  ;;  %v11908_v21 = vsub.f32 %v8906_v9, %v11849_v57  ;;  %v11910_v44 = vand.u32 4294901760, %v8900_v50  ;;  %v8849_v36 = vld [vmem:[%s16010_s1 + $0x3e8] sm:$0xff]  ;;  %v17012_v17 = vand.u32 4294901760, %v11470_v58  ;;  %8995 = vmatpush3.msra.mxu1 %v2295_v19  ;;  %v8894_v9 = vld [vmem:[%s16010_s1 + $0x550] sm:$0xff] }
 0x131   :  { %17008 = vst [vmem:[#allocation4_spill] sm:$0xff] %v11892_v38  ;;  %v11905_v4 = vsub.f32 %v11790_v29, %v17010_v7  ;;  %v2316_v16 = vand.u32 4294901760, %v11859_v6  ;;  %v11920_v32 = vsub.f32 %v8858_v14, %v11864_v62  ;;  %v11922_v7 = vand.u32 4294901760, %v8852_v12  ;;  %8996 = vmatprep.subr.mxu1 %v2414_v28 }
 0x132   :  { %17011 = vst [vmem:[#allocation13_spill] sm:$0xff] %v11908_v21  ;;  %2031 = vmatpush1.msra.mxu0 %v17012_v17  ;;  %v17014_v29 = vand.u32 4294901760, %v11480_v63  ;;  %v2435_v58 = vand.u32 4294901760, %v11875_v10  ;;  %v17015_v19 = vand.u32 4294901760, %v11820_v54  ;;  %v11936_v14 = vsub.f32 %v8903_v24, %v11878_v59  ;;  %8997 = vmatpush3.msra.mxu1 %v2302_v0 }
 0x133   :  { %17013 = vst [vmem:[#allocation5_spill] sm:$0xff] %v11920_v32  ;;  %v11938_v17 = vand.u32 4294901760, %v8897_v49  ;;  %v17016_v63 = vand.u32 4294901760, %v11489_v43  ;;  %v11949_v10 = vsub.f32 %v8855_v15, %v11894_v11  ;;  %v11951_v24 = vand.u32 4294901760, %v8849_v36  ;;  %v8843_v15 = vld [vmem:[%s16010_s1 + $0x3b8] sm:$0xff]  ;;  %8998 = vmatprep.subr.mxu1 %v2421_v53 }
 0x134   :  { %2035 = vmatprep.subr.mxu0 %v17014_v29  ;;  %v11933_v6 = vsub.f32 %v11820_v54, %v17015_v19  ;;  %v2323_v29 = vand.u32 4294901760, %v11889_v5  ;;  %v8891_v19 = vld [vmem:[%s16010_s1 + $0x538] sm:$0xff]  ;;  %v2442_v43 = vand.u32 4294901760, %v11905_v4  ;;  %v11960_v5 = vsub.f32 %v8900_v50, %v11910_v44  ;;  %v17019_v54 = vld [vmem:[#allocation92_spill] sm:$0xff]  ;;  %8999 = vmatpush3.msra.mxu1 %v2309_v60 }
 0x135   :  { %2039 = vmatpush1.msra.mxu0 %v17016_v63  ;;  %v11962_v28 = vand.u32 4294901760, %v8894_v9  ;;  %v17018_v0 = vand.u32 4294901760, %v11862_v26  ;;  %v11973_v63 = vsub.f32 %v8852_v12, %v11922_v7  ;;  %v11975_v50 = vand.u32 4294901760, %v8846_v18  ;;  %v8840_v12 = vld [vmem:[%s16010_s1 + $0x3a0] sm:$0xff]  ;;  %9000 = vmatprep.subr.mxu1 %v2428_v27 }
 0x136   :  { %2074 = vmatmul.mubr.f32.vlgmr.msra.gmra.mxu0 %v11531_v51  ;;  %17017 = vst [vmem:[#allocation14_spill] sm:$0xff] %v11960_v5  ;;  %8955 = vmatprep.subr.mxu0 %v11578_v48  ;;  %v2330_v53 = vand.u32 4294901760, %v11933_v6  ;;  %v11987_v4 = vand.u32 4294901760, %v8891_v19  ;;  %v11998_v40 = vsub.f32 %v8849_v36, %v11951_v24  ;;  %v17022_v46 = vand.u32 4294901760, %v11908_v21 }
 0x137   :  { %v2448_v51 = vsub.f32 %v11862_v26, %v17018_v0  ;;  %8956 = vmatpush3.msra.mxu0 %v11592_v52  ;;  %2265 = vmatprep.mubr.f32.mxu0 %v17019_v54  ;;  %v11985_v0 = vsub.f32 %v8897_v49, %v11938_v17  ;;  %v17020_v26 = vand.u32 4294901760, %v11892_v38  ;;  %v12000_v49 = vand.u32 4294901760, %v8843_v15 }
 0x138   :  { %8957 = vmatprep.subr.mxu0 %v11599_v30  ;;  %v2455_v60 = vsub.f32 %v11908_v21, %v17022_v46  ;;  %v12008_v8 = vsub.f32 %v8894_v9, %v11962_v28  ;;  %9001 = vmatpush3.msra.mxu1 %v2316_v16  ;;  %v17023_v36 = vand.u32 4294901760, %v11920_v32  ;;  %v12020_v46 = vand.u32 4294901760, %v8840_v12 }
 0x139   :  { %v2336_v54 = vsub.f32 %v11892_v38, %v17020_v26  ;;  %17021 = vst [vmem:[#allocation6_spill] sm:$0xff] %v12000_v49  ;;  %8958 = vmatpush3.msra.mxu0 %v11609_v31  ;;  %v12010_v26 = vand.u32 4294901760, %v8888_v33  ;;  %v12018_v38 = vsub.f32 %v8846_v18, %v11975_v50  ;;  %9002 = vmatprep.subr.mxu1 %v2435_v58  ;;  %v2449_v9 = vand.u32 4294901760, %v2448_v51 }
 0x13a   :  { %8959 = vmatprep.subr.mxu0 %v11616_v56  ;;  %v2343_v27 = vsub.f32 %v11920_v32, %v17023_v36  ;;  %v17024_v47 = vand.u32 4294901760, %v11936_v14  ;;  %v12028_v42 = vsub.f32 %v8891_v19, %v11987_v4  ;;  %9003 = vmatpush3.msra.mxu1 %v2323_v29  ;;  %v17025_v36 = vand.u32 4294901760, %v11949_v10 }
 0x13b   :  { %8960 = vmatpush3.msra.mxu0 %v11626_v1  ;;  %v2337_v18 = vand.u32 4294901760, %v2336_v54  ;;  %v12036_v51 = vsub.f32 %v8843_v15, %v12000_v49  ;;  %9004 = vmatprep.subr.mxu1 %v2442_v43  ;;  %v17026_v19 = vand.u32 4294901760, %v11960_v5  ;;  %v12044_v54 = vsub.f32 %v8888_v33, %v12010_v26 }
 0x13c   :  { %v2462_v16 = vsub.f32 %v11936_v14, %v17024_v47  ;;  %8961 = vmatprep.subr.mxu0 %v11636_v37  ;;  %v2350_v58 = vsub.f32 %v11949_v10, %v17025_v36  ;;  %v2456_v47 = vand.u32 4294901760, %v2455_v60  ;;  %9005 = vmatpush3.msra.mxu1 %v2330_v53  ;;  %v2344_v36 = vand.u32 4294901760, %v2343_v27 }
 0x13d   :  { %8962 = vmatpush3.msra.mxu0 %v11647_v41  ;;  %v2469_v29 = vsub.f32 %v11960_v5, %v17026_v19  ;;  %v17027_v15 = vand.u32 4294901760, %v11973_v63  ;;  %v12052_v60 = vsub.f32 %v8840_v12, %v12020_v46  ;;  %9006 = vmatprep.subr.mxu1 %v2449_v9  ;;  %v17028_v33 = vand.u32 4294901760, %v11985_v0 }
 0x13e   :  { %8963 = vmatprep.subr.mxu0 %v11657_v55  ;;  %v2463_v19 = vand.u32 4294901760, %v2462_v16  ;;  %9007 = vmatpush3.msra.mxu1 %v2337_v18  ;;  %v2351_v27 = vand.u32 4294901760, %v2350_v58  ;;  %v17030_v16 = vand.u32 4294901760, %v12008_v8  ;;  %v17031_v58 = vand.u32 4294901760, %v12018_v38 }
 0x13f   :  { %v2357_v43 = vsub.f32 %v11973_v63, %v17027_v15  ;;  %8964 = vmatpush3.msra.mxu0 %v11668_v20  ;;  %v2476_v53 = vsub.f32 %v11985_v0, %v17028_v33  ;;  %v17029_v15 = vand.u32 4294901760, %v11998_v40  ;;  %9008 = vmatprep.subr.mxu1 %v2456_v47  ;;  %v2470_v9 = vand.u32 4294901760, %v2469_v29 }
 0x140   :  { %8965 = vmatprep.subr.mxu0 %v11679_v45  ;;  %v2483_v33 = vsub.f32 %v12008_v8, %v17030_v16  ;;  %9009 = vmatpush3.msra.mxu1 %v2344_v36  ;;  %v16284_v12 = vand.u32 4294901760, %v12052_v60  ;;  %v17032_v29 = vand.u32 4294901760, %v12028_v42 }
 0x141   :  { %v2364_v6 = vsub.f32 %v11998_v40, %v17029_v15  ;;  %8966 = vmatpush3.msra.mxu0 %v11695_v39  ;;  %v2358_v18 = vand.u32 4294901760, %v2357_v43  ;;  %v2371_v15 = vsub.f32 %v12018_v38, %v17031_v58  ;;  %9010 = vmatprep.subr.mxu1 %v2463_v19  ;;  %v2477_v47 = vand.u32 4294901760, %v2476_v53 }
 0x142   :  { %8967 = vmatprep.subr.mxu0 %v11706_v23  ;;  %v2490_v16 = vsub.f32 %v12028_v42, %v17032_v29  ;;  %9011 = vmatpush3.msra.mxu1 %v2351_v27  ;;  %v17033_v43 = vand.u32 4294901760, %v12036_v51  ;;  %v2484_v58 = vand.u32 4294901760, %v2483_v33  ;;  %v17034_v19 = vand.u32 4294901760, %v12044_v54  ;;  %v818_v27 = vpop.f32.mrf.mxu1 }
 0x143   :  { %8968 = vmatpush3.msra.mxu0 %v11719_v3  ;;  %v2365_v36 = vand.u32 4294901760, %v2364_v6  ;;  %9012 = vmatprep.subr.mxu1 %v2470_v9  ;;  %v2372_v29 = vand.u32 4294901760, %v2371_v15  ;;  %v2385_v6 = vsub.f32 %v12052_v60, %v16284_v12 }
 0x144   :  { %8969 = vmatprep.subr.mxu0 %v11735_v13  ;;  %v2378_v21 = vsub.f32 %v12036_v51, %v17033_v43  ;;  %v2497_v53 = vsub.f32 %v12044_v54, %v17034_v19  ;;  %9013 = vmatpush3.msra.mxu1 %v2358_v18  ;;  %v2491_v9 = vand.u32 4294901760, %v2490_v16  ;;  %v820_v15 = vpop.f32.mrf.mxu1 }
 0x145   :  { %8970 = vmatpush3.msra.mxu0 %v11761_v34  ;;  %9014 = vmatprep.subr.mxu1 %v2477_v47  ;;  %v425_v43 = vpop.f32.mrf.mxu0  ;;  %v2386_v12 = vand.u32 4294901760, %v2385_v6  ;;  %v17044_v6 = vld [vmem:[#allocation70_spill] sm:$0xff] }
 0x146   :  { %8971 = vmatprep.subr.mxu0 %v11805_v61  ;;  %9015 = vmatpush3.msra.mxu1 %v2365_v36  ;;  %v2379_v33 = vand.u32 4294901760, %v2378_v21  ;;  %v2498_v18 = vand.u32 4294901760, %v2497_v53  ;;  %v12093_v19 = vadd.f32 %v818_v27, %v425_v43  ;;  %v17037_v21 = vld [vmem:[#allocation91_spill] sm:$0xff]  ;;  %v17039_v36 = vld [vmem:[#allocation90_spill] sm:$0xff]  ;;  %v17041_v53 = vld [vmem:[#allocation65_spill] sm:$0xff] }
 0x147   :  { %8972 = vmatpush3.msra.mxu0 %v11835_v35  ;;  %9016 = vmatprep.subr.mxu1 %v2484_v58  ;;  %v427_v47 = vpop.f32.mrf.mxu0  ;;  %v17040_v58 = vld [vmem:[#allocation59_spill] sm:$0xff]  ;;  %v17043_v27 = vld [vmem:[#allocation69_spill] sm:$0xff] }
 0x148   :  { %8973 = vmatprep.subr.mxu0 %v11849_v57  ;;  %17035 = vst [vmem:[#allocation15_spill] sm:$0xff] %v12093_v19  ;;  %9017 = vmatpush3.msra.mxu1 %v2372_v29  ;;  %v12097_v16 = vadd.f32 %v820_v15, %v427_v47  ;;  %v17042_v29 = vld [vmem:[#allocation66_spill] sm:$0xff]  ;;  %v17047_v43 = vld [vmem:[#allocation75_spill] sm:$0xff]  ;;  %v17049_v15 = vld [vmem:[#allocation80_spill] sm:$0xff] }
 0x149   :  { %8974 = vmatpush3.msra.mxu0 %v11864_v62  ;;  %9018 = vmatprep.subr.mxu1 %v2491_v9  ;;  %v17045_v9 = vld [vmem:[#allocation73_spill] sm:$0xff]  ;;  %v17050_v47 = vld [vmem:[#allocation83_spill] sm:$0xff] }
 0x14a   :  { %8975 = vmatprep.subr.mxu0 %v11878_v59  ;;  %17036 = vst [vmem:[#allocation7_spill] sm:$0xff] %v12097_v16  ;;  %9019 = vmatpush3.msra.mxu1 %v2379_v33  ;;  %v17046_v33 = vld [vmem:[#allocation74_spill] sm:$0xff]  ;;  %v17055_v16 = vld [vmem:[#allocation4_spill] sm:$0xff]  ;;  %v17056_v19 = vld [vmem:[#allocation13_spill] sm:$0xff] }
 0x14b   :  { %8976 = vmatpush3.msra.mxu0 %v11894_v11  ;;  %9020 = vmatprep.subr.mxu1 %v2498_v18  ;;  %v17048_v18 = vld [vmem:[#allocation79_spill] sm:$0xff] }
 0x14c   :  { %8977 = vmatprep.subr.mxu0 %v11910_v44  ;;  %9021 = vmatpush3.msra.mxu1 %v2386_v12  ;;  %v17038_v12 = vld [vmem:[#allocation93_spill] sm:$0xff] }
 0x14d   :  { %8978 = vmatpush3.msra.mxu0 %v11922_v7  ;;  %2503 = vmatmul.mubr.f32.vlgmr.msra.gmra.mxu1 %v16960_v2  ;;  %v17054_v2 = vld [vmem:[#allocation12_spill] sm:$0xff] }
 0x14e   :  { %8979 = vmatprep.subr.mxu0 %v11938_v17  ;;  %9060 = vmatprep.subr.mxu1 %v11578_v48 }
 0x14f   :  { %8980 = vmatpush3.msra.mxu0 %v11951_v24  ;;  %9061 = vmatpush3.msra.mxu1 %v11592_v52 }
 0x150   :  { %2745 = vmatprep.mubr.f32.mxu1 %v17037_v21  ;;  %8981 = vmatprep.subr.mxu0 %v11962_v28  ;;  %v17051_v21 = vld [vmem:[#allocation84_spill] sm:$0xff] }
 0x151   :  { %9062 = vmatprep.subr.mxu1 %v11599_v30  ;;  %8982 = vmatpush3.msra.mxu0 %v11975_v50 }
 0x152   :  { %9063 = vmatpush3.msra.mxu1 %v11609_v31  ;;  %8983 = vmatprep.subr.mxu0 %v11987_v4 }
 0x153   :  { %9064 = vmatprep.subr.mxu1 %v11616_v56  ;;  %8984 = vmatpush3.msra.mxu0 %v12000_v49 }
 0x154   :  { %9065 = vmatpush3.msra.mxu1 %v11626_v1  ;;  %8985 = vmatprep.subr.mxu0 %v12010_v26 }
 0x155   :  { %9066 = vmatprep.subr.mxu1 %v11636_v37  ;;  %8986 = vmatpush3.msra.mxu0 %v12020_v46 }
 0x156   :  { %9067 = vmatpush3.msra.mxu1 %v11647_v41  ;;  %2271 = vmatmul.mubr.f32.vlgmr.msra.gmra.mxu0 %v17038_v12  ;;  %v17052_v12 = vld [vmem:[#allocation8_spill] sm:$0xff] }
 0x157   :  { %9025 = vmatprep.subr.mxu0 %v11607_v25  ;;  %9068 = vmatprep.subr.mxu1 %v11657_v55 }
 0x158   :  { %9026 = vmatpush3.msra.mxu0 %v11624_v22  ;;  %2638 = vmatprep.mubr.f32.mxu0 %v17039_v36  ;;  %v17053_v36 = vld [vmem:[#allocation3_spill] sm:$0xff] }
 0x159   :  { %9069 = vmatpush3.msra.mxu1 %v11668_v20  ;;  %9027 = vmatprep.subr.mxu0 %v17040_v58 }
 0x15a   :  { %9070 = vmatprep.subr.mxu1 %v11679_v45  ;;  %9028 = vmatpush3.msra.mxu0 %v17041_v53 }
 0x15b   :  { %9071 = vmatpush3.msra.mxu1 %v11695_v39  ;;  %9029 = vmatprep.subr.mxu0 %v17042_v29 }
 0x15c   :  { %9072 = vmatprep.subr.mxu1 %v11706_v23  ;;  %9030 = vmatpush3.msra.mxu0 %v17043_v27 }
 0x15d   :  { %9073 = vmatpush3.msra.mxu1 %v11719_v3  ;;  %9031 = vmatprep.subr.mxu0 %v17044_v6 }
 0x15e   :  { %9074 = vmatprep.subr.mxu1 %v11735_v13  ;;  %9032 = vmatpush3.msra.mxu0 %v17045_v9 }
 0x15f   :  { %9075 = vmatpush3.msra.mxu1 %v11761_v34  ;;  %9033 = vmatprep.subr.mxu0 %v17046_v33 }
 0x160   :  { %9076 = vmatprep.subr.mxu1 %v11805_v61  ;;  %9034 = vmatpush3.msra.mxu0 %v17047_v43 }
 0x161   :  { %9077 = vmatpush3.msra.mxu1 %v11835_v35  ;;  %9035 = vmatprep.subr.mxu0 %v17048_v18 }
 0x162   :  { %9078 = vmatprep.subr.mxu1 %v11849_v57  ;;  %9036 = vmatpush3.msra.mxu0 %v17049_v15 }
 0x163   :  { %9079 = vmatpush3.msra.mxu1 %v11864_v62  ;;  %9037 = vmatprep.subr.mxu0 %v17050_v47 }
 0x164   :  { %9080 = vmatprep.subr.mxu1 %v11878_v59  ;;  %9038 = vmatpush3.msra.mxu0 %v17051_v21 }
 0x165   :  { %9081 = vmatpush3.msra.mxu1 %v11894_v11  ;;  %9039 = vmatprep.subr.mxu0 %v17052_v12 }
 0x166   :  { %9082 = vmatprep.subr.mxu1 %v11910_v44  ;;  %9040 = vmatpush3.msra.mxu0 %v17053_v36 }
 0x167   :  { %9083 = vmatpush3.msra.mxu1 %v11922_v7  ;;  %9041 = vmatprep.subr.mxu0 %v17054_v2 }
 0x168   :  { %9084 = vmatprep.subr.mxu1 %v11938_v17  ;;  %9042 = vmatpush3.msra.mxu0 %v17055_v16 }
 0x169   :  { %9085 = vmatpush3.msra.mxu1 %v11951_v24  ;;  %9043 = vmatprep.subr.mxu0 %v17056_v19 }
 0x16a   :  { %9086 = vmatprep.subr.mxu1 %v11962_v28  ;;  %9044 = vmatpush3.msra.mxu0 %v11920_v32  ;;  %v17057_v32 = vld [vmem:[#allocation89_spill] sm:$0xff] }
 0x16b   :  { %9087 = vmatpush3.msra.mxu1 %v11975_v50  ;;  %9045 = vmatprep.subr.mxu0 %v11936_v14 }
 0x16c   :  { %9088 = vmatprep.subr.mxu1 %v11987_v4  ;;  %9046 = vmatpush3.msra.mxu0 %v11949_v10 }
 0x16d   :  { %9089 = vmatpush3.msra.mxu1 %v12000_v49  ;;  %9047 = vmatprep.subr.mxu0 %v11960_v5  ;;  %v21_v5 = vld [vmem:[%s16009_s0 + $0x8] sm:$0xff]  ;;  %v17058_v49 = vld [vmem:[#allocation88_spill] sm:$0xff] }
 0x16e   :  { %9090 = vmatprep.subr.mxu1 %v12010_v26  ;;  %9048 = vmatpush3.msra.mxu0 %v11973_v63 }
 0x16f   :  { %9091 = vmatpush3.msra.mxu1 %v12020_v46  ;;  %9049 = vmatprep.subr.mxu0 %v11985_v0 }
 0x170   :  { %2749 = vmatmul.mubr.f32.vlgmr.msra.gmra.mxu1 %v17057_v32  ;;  %9130 = vmatprep.subr.mxu1 %v11578_v48  ;;  %v20_v48 = vld [vmem:[%s16009_s0] sm:$0xff]  ;;  %v17067_v32 = vand.u32 4294901760, %v17045_v9 }
 0x171   :  { %9050 = vmatpush3.msra.mxu0 %v11998_v40  ;;  %9131 = vmatpush3.msra.mxu1 %v11592_v52  ;;  %v10158_v52 = vld [vmem:[%s16009_s0 + $0x10] sm:$0xff] }
 0x172   :  { %3019 = vmatprep.mubr.f32.mxu1 %v17058_v49  ;;  %9051 = vmatprep.subr.mxu0 %v12008_v8 }
 0x173   :  { %9132 = vmatprep.subr.mxu1 %v11599_v30  ;;  %9052 = vmatpush3.msra.mxu0 %v12018_v38  ;;  %v17059_v30 = vld [vmem:[#allocation86_spill] sm:$0xff] }
 0x174   :  { %9133 = vmatpush3.msra.mxu1 %v11609_v31  ;;  %3541 = vrot.lane.b32.xlu1 %v21_v5, %s10162_s18  ;;  %v17060_v31 = vand.u32 4294901760, %v11607_v25  ;;  %v17063_v25 = vand.u32 4294901760, %v17041_v53  ;;  %v8945_v5 = vld [vmem:[%s16010_s1 + $0x6e8] sm:$0xff] }
 0x175   :  { %9053 = vmatprep.subr.mxu0 %v12028_v42  ;;  %9134 = vmatprep.subr.mxu1 %v11616_v56  ;;  %v17061_v56 = vand.u32 4294901760, %v11624_v22  ;;  %v17064_v22 = vand.u32 4294901760, %v17042_v29  ;;  %v12251_v53 = vand.u32 4294901760, %v8945_v5  ;;  %v8939_v29 = vld [vmem:[%s16010_s1 + $0x6b8] sm:$0xff] }
 0x176   :  { %9054 = vmatpush3.msra.mxu0 %v12036_v51  ;;  %9135 = vmatpush3.msra.mxu1 %v11626_v1  ;;  %v8951_v1 = vld [vmem:[%s16010_s1 + $0x718] sm:$0xf] }
 0x177   :  { %9055 = vmatprep.subr.mxu0 %v12044_v54  ;;  %9136 = vmatprep.subr.mxu1 %v11636_v37  ;;  %v8948_v37 = vld [vmem:[%s16010_s1 + $0x700] sm:$0xff] }
 0x178   :  { %3543 = vrot.lane.b32.xlu0 %v10158_v52, %s10162_s18  ;;  %9056 = vmatpush3.msra.mxu0 %v12052_v60  ;;  %v17077_v52 = vand.u32 4294901760, %v17054_v2  ;;  %v17080_v2 = vand.u32 4294901760, %v17056_v19 }
 0x179   :  { %9137 = vmatpush3.msra.mxu1 %v11647_v41  ;;  %3539 = vrot.lane.b32.xlu1 %v20_v48, %s10162_s18  ;;  %v17062_v41 = vand.u32 4294901760, %v17040_v58 }
 0x17a   :  { %2641 = vmatmul.mubr.f32.vlgmr.msra.gmra.mxu0 %v17059_v30  ;;  %9095 = vmatprep.subr.mxu0 %v17060_v31 }
 0x17b   :  { %9138 = vmatprep.subr.mxu1 %v11657_v55  ;;  %9096 = vmatpush3.msra.mxu0 %v17061_v56  ;;  %v283_v55 = vsel %vm275_vm1, %v8951_v1, 0 }
 0x17c   :  { %2915 = vmatprep.mubr.f32.mxu0 %v17058_v49  ;;  %9139 = vmatpush3.msra.mxu1 %v11668_v20  ;;  %v17065_v20 = vand.u32 4294901760, %v17043_v27  ;;  %v17070_v49 = vand.u32 4294901760, %v17048_v18  ;;  %v17072_v27 = vand.u32 4294901760, %v17050_v47  ;;  %v17075_v18 = vld [vmem:[#allocation15_spill] sm:$0xff]  ;;  %v12279_v47 = vsub.f32 %v8945_v5, %v12251_v53 }
 0x17d   :  { %9097 = vmatprep.subr.mxu0 %v17062_v41  ;;  %9140 = vmatprep.subr.mxu1 %v11679_v45  ;;  %v17066_v45 = vand.u32 4294901760, %v17044_v6  ;;  %v17073_v6 = vand.u32 4294901760, %v17051_v21  ;;  %v12281_v21 = vand.u32 4294901760, %v8939_v29 }
 0x17e   :  { %9098 = vmatpush3.msra.mxu0 %v17063_v25  ;;  %9141 = vmatpush3.msra.mxu1 %v11695_v39  ;;  %v12226_v39 = vand.u32 4294901760, %v283_v55  ;;  %v16296_v41 = vand.u32 4294901760, %v12279_v47 }
 0x17f   :  { %9099 = vmatprep.subr.mxu0 %v17064_v22  ;;  %9142 = vmatprep.subr.mxu1 %v11706_v23  ;;  %v12231_v23 = vand.u32 4294901760, %v8948_v37  ;;  %v12309_v25 = vsub.f32 %v8939_v29, %v12281_v21  ;;  %v17092_v29 = vand.u32 4294901760, %v11998_v40  ;;  %v17095_v40 = vand.u32 4294901760, %v12028_v42 }
 0x180   :  { %9100 = vmatpush3.msra.mxu0 %v17065_v20  ;;  %9143 = vmatpush3.msra.mxu1 %v11719_v3  ;;  %v17068_v3 = vand.u32 4294901760, %v17046_v33  ;;  %v12249_v58 = vsub.f32 %v283_v55, %v12226_v39  ;;  %v8936_v33 = vld [vmem:[%s16010_s1 + $0x6a0] sm:$0xff]  ;;  %v17084_v20 = vand.u32 4294901760, %v11949_v10  ;;  %v17089_v10 = vand.u32 4294901760, %v11985_v0 }
 0x181   :  { %9101 = vmatprep.subr.mxu0 %v17066_v45  ;;  %9144 = vmatprep.subr.mxu1 %v11735_v13  ;;  %v17069_v13 = vand.u32 4294901760, %v17047_v43  ;;  %v17074_v43 = vand.u32 4294901760, %v17052_v12  ;;  %v12294_v56 = vand.u32 4294901760, %v8936_v33  ;;  %v17085_v45 = vld [vmem:[#allocation6_spill] sm:$0xff]  ;;  %v16293_v5 = vand.u32 4294901760, %v12309_v25 }
 0x182   :  { %9102 = vmatpush3.msra.mxu0 %v17067_v32  ;;  %9145 = vmatpush3.msra.mxu1 %v11761_v34  ;;  %v8942_v34 = vld [vmem:[%s16010_s1 + $0x6d0] sm:$0xff] }
 0x183   :  { %9103 = vmatprep.subr.mxu0 %v17068_v3  ;;  %9146 = vmatprep.subr.mxu1 %v11805_v61  ;;  %v17071_v61 = vand.u32 4294901760, %v17049_v15  ;;  %v17088_v3 = vand.u32 4294901760, %v11973_v63  ;;  %v17093_v63 = vand.u32 4294901760, %v12008_v8 }
 0x184   :  { %9104 = vmatpush3.msra.mxu0 %v17069_v13  ;;  %9147 = vmatpush3.msra.mxu1 %v11835_v35  ;;  %v12257_v35 = vsub.f32 %v8948_v37, %v12231_v23  ;;  %v12324_v37 = vsub.f32 %v8936_v33, %v12294_v56  ;;  %v17090_v13 = vld [vmem:[#allocation85_spill] sm:$0xff]  ;;  %v17097_v33 = vand.u32 4294901760, %v12044_v54 }
 0x185   :  { %9105 = vmatprep.subr.mxu0 %v17070_v49  ;;  %9148 = vmatprep.subr.mxu1 %v11849_v57  ;;  %v12265_v57 = vand.u32 4294901760, %v8942_v34 }
 0x186   :  { %9106 = vmatpush3.msra.mxu0 %v17071_v61  ;;  %9149 = vmatpush3.msra.mxu1 %v11864_v62  ;;  %v1162_v62 = vpop.f32.mrf.mxu1  ;;  %v1021_v9 = vpop.f32.mrf.mxu0  ;;  %v16299_v48 = vand.u32 4294901760, %v12257_v35  ;;  %v16292_v49 = vand.u32 4294901760, %v12324_v37  ;;  %v17091_v61 = vmov 0.0  }
 0x187   :  { %9107 = vmatprep.subr.mxu0 %v17072_v27  ;;  %9150 = vmatprep.subr.mxu1 %v11878_v59  ;;  %v16300_v59 = vand.u32 4294901760, %v12249_v58  ;;  %v1022_v15 = vadd.f32 %v1021_v9, %v17075_v18  ;;  %v12292_v31 = vsub.f32 %v8942_v34, %v12265_v57  ;;  %v17094_v27 = vand.u32 4294901760, %v12018_v38  ;;  %v74_v9 = vld [vmem:[%s16010_s1 + $0x168] sm:$0xff]  ;;  %v72_v18 = vld [vmem:[%s16010_s1 + $0x158] sm:$0xff] }
 0x188   :  { %9108 = vmatpush3.msra.mxu0 %v17073_v6  ;;  %9151 = vmatpush3.msra.mxu1 %v11894_v11  ;;  %v17076_v11 = vand.u32 4294901760, %v17053_v36  ;;  %v1023_v12 = vpop.f32.mrf.mxu0  ;;  %v17079_v36 = vand.u32 4294901760, %v17055_v16  ;;  %v17081_v16 = vld [vmem:[#allocation5_spill] sm:$0xff]  ;;  %v75_v6 = vld [vmem:[%s16010_s1 + $0x170] sm:$0xff]  ;;  %v17096_v38 = vand.u32 4294901760, %v12036_v51 }
 0x189   :  { %9109 = vmatprep.subr.mxu0 %v17074_v43  ;;  %9152 = vmatprep.subr.mxu1 %v11910_v44  ;;  %v17078_v44 = vld [vmem:[#allocation7_spill] sm:$0xff]  ;;  %v12296_v1 = vadd.f32 %v1162_v62, %v1022_v15  ;;  %v17082_v22 = vand.u32 4294901760, %v17081_v16  ;;  %v16294_v19 = vand.u32 4294901760, %v12292_v31  ;;  %v3166_v62 = vsub.f32 %v12324_v37, %v16292_v49  ;;  %v71_v51 = vld [vmem:[%s16010_s1 + $0x150] sm:$0xff] }
 0x18a   :  { %9110 = vmatpush3.msra.mxu0 %v17076_v11  ;;  %9153 = vmatpush3.msra.mxu1 %v11922_v7  ;;  %v1024_v30 = vadd.f32 %v1023_v12, %v17078_v44  ;;  %v1164_v7 = vpop.f32.mrf.mxu1  ;;  %v12373_v43 = vand.u32 4294901760, %v75_v6  ;;  %v17099_v15 = vand.u32 4294901760, %v12052_v60  ;;  %v12381_v11 = vand.u32 4294901760, %v74_v9  ;;  %v69_v60 = vld [vmem:[%s16010_s1 + $0x140] sm:$0xff] }
 0x18b   :  { %9111 = vmatprep.subr.mxu0 %v17077_v52  ;;  %9154 = vmatprep.subr.mxu1 %v11938_v17  ;;  %v3131_v17 = vsub.f32 %v12249_v58, %v16300_v59  ;;  %v3167_v54 = vand.u32 4294901760, %v3166_v62  ;;  %v12389_v12 = vand.u32 4294901760, %v72_v18  ;;  %v68_v52 = vld [vmem:[%s16010_s1 + $0x138] sm:$0xff] }
 0x18c   :  { %9112 = vmatpush3.msra.mxu0 %v17079_v36  ;;  %9155 = vmatpush3.msra.mxu1 %v11951_v24  ;;  %v12311_v55 = vadd.f32 %v1164_v7, %v1024_v30  ;;  %v17083_v24 = vand.u32 4294901760, %v11936_v14  ;;  %17098 = vst [vmem:[#allocation16_spill] sm:$0xff] %v12373_v43  ;;  %17100 = vst [vmem:[#allocation9_spill] sm:$0xff] %v12381_v11  ;;  %v12399_v44 = vsub.f32 %v75_v6, %v12373_v43  ;;  %v66_v36 = vld [vmem:[%s16010_s1 + $0x128] sm:$0xff]  ;;  %v56_v62 = vld [vmem:[%s16010_s1 + $0xd8] sm:$0xff] }
 0x18d   :  { %9113 = vmatprep.subr.mxu0 %v17080_v2  ;;  %9156 = vmatprep.subr.mxu1 %v11962_v28  ;;  %v3138_v28 = vsub.f32 %v12257_v35, %v16299_v48  ;;  %v3132_v14 = vand.u32 4294901760, %v3131_v17  ;;  %17101 = vst [vmem:[#allocation19_spill] sm:$0xff] %v12389_v12  ;;  %v12401_v30 = vand.u32 4294901760, %v71_v51  ;;  %v12409_v7 = vsub.f32 %v74_v9, %v12381_v11 }
 0x18e   :  { %9114 = vmatpush3.msra.mxu0 %v17082_v22  ;;  %9157 = vmatpush3.msra.mxu1 %v11975_v50  ;;  %v17086_v50 = vld [vmem:[#allocation14_spill] sm:$0xff]  ;;  %17102 = vst [vmem:[#allocation10_spill] sm:$0xff] %v12399_v44  ;;  %v12412_v2 = vand.u32 4294901760, %v69_v60  ;;  %v12414_v17 = vand.u32 4294901760, %v68_v52  ;;  %v12420_v16 = vsub.f32 %v72_v18, %v12389_v12  ;;  %v12422_v22 = vand.u32 4294901760, %v66_v36 }
 0x18f   :  { %9115 = vmatprep.subr.mxu0 %v17083_v24  ;;  %9158 = vmatprep.subr.mxu1 %v11987_v4  ;;  %v17087_v32 = vand.u32 4294901760, %v17086_v50  ;;  %v3145_v4 = vsub.f32 %v12279_v47, %v16296_v41  ;;  %v3139_v34 = vand.u32 4294901760, %v3138_v28  ;;  %17103 = vst [vmem:[#allocation20_spill] sm:$0xff] %v12401_v30  ;;  %17104 = vst [vmem:[#allocation11_spill] sm:$0xff] %v12409_v7  ;;  %v65_v24 = vld [vmem:[%s16010_s1 + $0x120] sm:$0xff]  ;;  %v63_v28 = vld [vmem:[%s16010_s1 + $0x110] sm:$0xff] }
 0x190   :  { %9116 = vmatpush3.msra.mxu0 %v17084_v20  ;;  %9159 = vmatpush3.msra.mxu1 %v17085_v45  ;;  %17105 = vst [vmem:[#allocation24_spill] sm:$0xff] %v12412_v2  ;;  %17106 = vst [vmem:[#allocation17_spill] sm:$0xff] %v12414_v17  ;;  %v17109_v20 = vld [vmem:[#allocation2_spill] sm:$0xff]  ;;  %v16290_v45 = vand.u32 4294901760, %v12399_v44  ;;  %v12434_v50 = vsub.f32 %v71_v51, %v12401_v30  ;;  %v54_v51 = vld [vmem:[%s16010_s1 + $0xc8] sm:$0xff] }
 0x191   :  { %9117 = vmatprep.subr.mxu0 %v17087_v32  ;;  %9160 = vmatprep.subr.mxu1 %v12010_v26  ;;  %v3152_v26 = vsub.f32 %v12292_v31, %v16294_v19  ;;  %v3146_v0 = vand.u32 4294901760, %v3145_v4  ;;  %17107 = vst [vmem:[#allocation28_spill] sm:$0xff] %v12420_v16  ;;  %17108 = vst [vmem:[#allocation18_spill] sm:$0xff] %v12422_v22  ;;  %v62_v32 = vld [vmem:[%s16010_s1 + $0x108] sm:$0xff]  ;;  %v60_v4 = vld [vmem:[%s16010_s1 + $0xf8] sm:$0xff] }
 0x192   :  { %9118 = vmatpush3.msra.mxu0 %v17088_v3  ;;  %9161 = vmatpush3.msra.mxu1 %v12020_v46  ;;  %v3159_v46 = vsub.f32 %v12309_v25, %v16293_v5  ;;  %17110 = vst [vmem:[#allocation29_spill] sm:$0xff] %v12434_v50  ;;  %v59_v3 = vld [vmem:[%s16010_s1 + $0xf0] sm:$0xff]  ;;  %v16295_v6 = vand.u32 4294901760, %v12434_v50  ;;  %v12545_v5 = vand.u32 4294901760, %v54_v51  ;;  %v50_v41 = vld [vmem:[%s16010_s1 + $0xa8] sm:$0xff] }
 0x193   :  { %9119 = vmatprep.subr.mxu0 %v17089_v10  ;;  %3021 = vmatmul.mubr.f32.vlgmr.msra.gmra.mxu1 %v17090_v13  ;;  %v3153_v8 = vand.u32 4294901760, %v3152_v26  ;;  %v12451_v10 = vsub.f32 %v69_v60, %v12412_v2  ;;  %v12458_v26 = vand.u32 4294901760, %v63_v28 }
 0x194   :  { %9780 = vmatprep.subr.mxu1 %v17091_v61  ;;  %9120 = vmatpush3.msra.mxu0 %v17092_v29  ;;  %v3160_v42 = vand.u32 4294901760, %v3159_v46  ;;  %v57_v29 = vld [vmem:[%s16010_s1 + $0xe0] sm:$0xff]  ;;  %v12469_v46 = vand.u32 4294901760, %v62_v32  ;;  %17128 = vst [vmem:[#allocation37_spill] sm:$0xff] %v12545_v5 }
 0x195   :  { %9781 = vmatpush3.msra.mxu1 %v3132_v14  ;;  %9121 = vmatprep.subr.mxu0 %v17093_v63  ;;  %v16289_v14 = vand.u32 4294901760, %v12409_v7  ;;  %17111 = vst [vmem:[#allocation21_spill] sm:$0xff] %v12451_v10  ;;  %17114 = vst [vmem:[#allocation31_spill] sm:$0xff] %v12458_v26  ;;  %v16291_v63 = vand.u32 4294901760, %v12420_v16 }
 0x196   :  { %9782 = vmatprep.subr.mxu1 %v17091_v61  ;;  %9122 = vmatpush3.msra.mxu0 %v17094_v27  ;;  %17116 = vst [vmem:[#allocation32_spill] sm:$0xff] %v12469_v46  ;;  %v12476_v27 = vsub.f32 %v12399_v44, %v16290_v45  ;;  %v12531_v45 = vsub.f32 %v12434_v50, %v16295_v6 }
 0x197   :  { %9783 = vmatpush3.msra.mxu1 %v3139_v34  ;;  %9123 = vmatprep.subr.mxu0 %v17095_v40  ;;  %v12456_v34 = vand.u32 4294901760, %v65_v24  ;;  %v12479_v40 = vand.u32 4294901760, %v60_v4  ;;  %v12491_v9 = vsub.f32 %v12409_v7, %v16289_v14  ;;  %v12517_v60 = vsub.f32 %v12420_v16, %v16291_v63  ;;  %v42_v7 = vld [vmem:[%s16010_s1 + $0x68] sm:$0xff] }
 0x198   :  { %9784 = vmatprep.subr.mxu1 %v17091_v61  ;;  %9124 = vmatpush3.msra.mxu0 %v17096_v38  ;;  %v12493_v38 = vand.u32 4294901760, %v57_v29  ;;  %v12688_v44 = vand.u32 4294901760, %v42_v7 }
 0x199   :  { %9785 = vmatpush3.msra.mxu1 %v3146_v0  ;;  %9125 = vmatprep.subr.mxu0 %v17097_v33  ;;  %17113 = vst [vmem:[#allocation22_spill] sm:$0xff] %v12456_v34  ;;  %v12467_v0 = vsub.f32 %v66_v36, %v12422_v22  ;;  %17117 = vst [vmem:[#allocation25_spill] sm:$0xff] %v12479_v40  ;;  %v16297_v33 = vand.u32 4294901760, %v12451_v10  ;;  %v12500_v18 = vsub.f32 %v65_v24, %v12456_v34 }
 0x19a   :  { %9786 = vmatprep.subr.mxu1 %v17091_v61  ;;  %9126 = vmatpush3.msra.mxu0 %v17099_v15  ;;  %17119 = vst [vmem:[#allocation26_spill] sm:$0xff] %v12493_v38  ;;  %v12503_v15 = vsub.f32 %v63_v28, %v12458_v26  ;;  %v12521_v36 = vsub.f32 %v62_v32, %v12469_v46  ;;  %v12523_v24 = vand.u32 4294901760, %v56_v62  ;;  %v17124_v28 = vld [vmem:[#allocation58_spill] sm:$0xff]  ;;  %v47_v32 = vld [vmem:[%s16010_s1 + $0x90] sm:$0xff]  ;;  %17150 = vst [vmem:[#allocation50_spill] sm:$0xff] %v12688_v44 }
 0x19b   :  { %9787 = vmatpush3.msra.mxu1 %v3153_v8  ;;  %2917 = vmatmul.mubr.f32.vlgmr.msra.gmra.mxu0 %v17090_v13  ;;  %v12454_v13 = vsub.f32 %v68_v52, %v12414_v17  ;;  %17115 = vst [vmem:[#allocation23_spill] sm:$0xff] %v12467_v0  ;;  %v12481_v8 = vand.u32 4294901760, %v59_v3  ;;  %17120 = vst [vmem:[#allocation36_spill] sm:$0xff] %v12500_v18  ;;  %v16301_v52 = vand.u32 4294901760, %v12467_v0 }
 0x19c   :  { %9765 = vmatprep.subr.mxu0 %v17091_v61  ;;  %9788 = vmatprep.subr.mxu1 %v17091_v61  ;;  %17121 = vst [vmem:[#allocation27_spill] sm:$0xff] %v12503_v15  ;;  %17122 = vst [vmem:[#allocation40_spill] sm:$0xff] %v12521_v36  ;;  %v12534_v63 = vsub.f32 %v60_v4, %v12479_v40  ;;  %v51_v4 = vld [vmem:[%s16010_s1 + $0xb0] sm:$0xff]  ;;  %v12579_v48 = vsub.f32 %v56_v62, %v12523_v24 }
 0x19d   :  { %9766 = vmatpush3.msra.mxu0 %v12226_v39  ;;  %9789 = vmatpush3.msra.mxu1 %v3160_v42  ;;  %17112 = vst [vmem:[#allocation30_spill] sm:$0xff] %v12454_v13  ;;  %17118 = vst [vmem:[#allocation35_spill] sm:$0xff] %v12481_v8  ;;  %v16298_v42 = vand.u32 4294901760, %v12454_v13  ;;  %v12537_v49 = vsub.f32 %v59_v3, %v12481_v8  ;;  %v12557_v3 = vsub.f32 %v12451_v10, %v16297_v33 }
 0x19e   :  { %9767 = vmatprep.subr.mxu0 %v17091_v61  ;;  %9790 = vmatprep.subr.mxu1 %v17091_v61  ;;  %17123 = vst [vmem:[#allocation33_spill] sm:$0xff] %v12523_v24  ;;  %17125 = vst [vmem:[#allocation44_spill] sm:$0xff] %v12534_v63  ;;  %v12575_v14 = vsub.f32 %v12467_v0, %v16301_v52  ;;  %v12586_v6 = vand.u32 4294901760, %v51_v4  ;;  %v48_v52 = vld [vmem:[%s16010_s1 + $0x98] sm:$0xff]  ;;  %v12601_v33 = vand.u32 4294901760, %v50_v41 }
 0x19f   :  { %9768 = vmatpush3.msra.mxu0 %v12231_v23  ;;  %9791 = vmatpush3.msra.mxu1 %v3167_v54  ;;  %v53_v54 = vld [vmem:[%s16010_s1 + $0xc0] sm:$0xff]  ;;  %17126 = vst [vmem:[#allocation34_spill] sm:$0xff] %v12537_v49  ;;  %17130 = vst [vmem:[#allocation38_spill] sm:$0xff] %v12579_v48  ;;  %v17135_v0 = vld [vmem:[#allocation57_spill] sm:$0xff] }
 0x1a0   :  { %9792 = vmatprep.mubr.msk.f32.mxu1 %vm10163_vm3, %v17091_v61  ;;  %9769 = vmatprep.subr.mxu0 %v17091_v61  ;;  %v12547_v19 = vand.u32 4294901760, %v53_v54  ;;  %17131 = vst [vmem:[#allocation47_spill] sm:$0xff] %v12586_v6  ;;  %17134 = vst [vmem:[#allocation41_spill] sm:$0xff] %v12601_v33 }
 0x1a1   :  { %9793 = vmatmul.mubr.f32.vlgmr.msra.gmra.mxu1 %v17109_v20  ;;  %9810 = vmatprep.subr.mxu1 %v17091_v61 }
 0x1a2   :  { %9770 = vmatpush3.msra.mxu0 %v12251_v53  ;;  %9811 = vmatpush3.msra.mxu1 %v12226_v39  ;;  %17129 = vst [vmem:[#allocation46_spill] sm:$0xff] %v12547_v19  ;;  %v12599_v59 = vsub.f32 %v53_v54, %v12547_v19  ;;  %v17137_v54 = vand.u32 4294901760, %v12503_v15 }
 0x1a3   :  { %9771 = vmatprep.subr.mxu0 %v17091_v61  ;;  %9812 = vmatprep.subr.mxu1 %v17091_v61 }
 0x1a4   :  { %9772 = vmatpush3.msra.mxu0 %v12265_v57  ;;  %9813 = vmatpush3.msra.mxu1 %v12231_v23  ;;  %17133 = vst [vmem:[#allocation48_spill] sm:$0xff] %v12599_v59  ;;  %v12618_v50 = vsub.f32 %v12503_v15, %v17137_v54  ;;  %v45_v54 = vld [vmem:[%s16010_s1 + $0x80] sm:$0xff]  ;;  %v44_v15 = vld [vmem:[%s16010_s1 + $0x78] sm:$0xff] }
 0x1a5   :  { %9773 = vmatprep.subr.mxu0 %v17091_v61  ;;  %9814 = vmatprep.subr.mxu1 %v17091_v61  ;;  %v12675_v19 = vand.u32 4294901760, %v44_v15 }
 0x1a6   :  { %9774 = vmatpush3.msra.mxu0 %v12281_v21  ;;  %9815 = vmatpush3.msra.mxu1 %v12251_v53 }
 0x1a7   :  { %9775 = vmatprep.subr.mxu0 %v17091_v61  ;;  %9816 = vmatprep.subr.mxu1 %v17091_v61  ;;  %17147 = vst [vmem:[#allocation49_spill] sm:$0xff] %v12675_v19 }
 0x1a8   :  { %9776 = vmatpush3.msra.mxu0 %v12294_v56  ;;  %9777 = vmatprep.mubr.msk.f32.mxu0 %vm10163_vm3, %v17091_v61 }
 0x1a9   :  { %9817 = vmatpush3.msra.mxu1 %v12265_v57  ;;  %9778 = vmatmul.mubr.f32.vlgmr.msra.gmra.mxu0 %v17124_v28  ;;  %v12543_v28 = vsub.f32 %v57_v29, %v12493_v38  ;;  %v12562_v29 = vsub.f32 %v12454_v13, %v16298_v42  ;;  %v12596_v42 = vsub.f32 %v54_v51, %v12545_v5  ;;  %v17136_v51 = vand.u32 4294901760, %v12500_v18  ;;  %v17154_v5 = vld [vmem:[#allocation54_spill] sm:$0xff] }
 0x1aa   :  { %9795 = vmatprep.subr.mxu0 %v17091_v61  ;;  %9818 = vmatprep.subr.mxu1 %v17091_v61  ;;  %v17138_v13 = vand.u32 4294901760, %v12521_v36 }
 0x1ab   :  { %17127 = vst [vmem:[#allocation45_spill] sm:$0xff] %v12543_v28  ;;  %9796 = vmatpush3.msra.mxu0 %v12249_v58  ;;  %9819 = vmatpush3.msra.mxu1 %v12281_v21  ;;  %17132 = vst [vmem:[#allocation39_spill] sm:$0xff] %v12596_v42  ;;  %v12613_v10 = vsub.f32 %v12500_v18, %v17136_v51  ;;  %v12629_v51 = vand.u32 4294901760, %v48_v52  ;;  %v12652_v18 = vand.u32 4294901760, %v47_v32 }
 0x1ac   :  { %9797 = vmatprep.subr.mxu0 %v17091_v61  ;;  %9820 = vmatprep.subr.mxu1 %v17091_v61  ;;  %v12626_v62 = vsub.f32 %v12521_v36, %v17138_v13  ;;  %v12650_v36 = vsub.f32 %v51_v4, %v12586_v6  ;;  %v12673_v6 = vand.u32 4294901760, %v45_v54 }
 0x1ad   :  { %9798 = vmatpush3.msra.mxu0 %v12257_v35  ;;  %9821 = vmatpush3.msra.mxu1 %v12294_v56  ;;  %17139 = vst [vmem:[#allocation51_spill] sm:$0xff] %v12629_v51  ;;  %17143 = vst [vmem:[#allocation52_spill] sm:$0xff] %v12652_v18 }
 0x1ae   :  { %9822 = vmatprep.mubr.msk.f32.mxu1 %vm10163_vm3, %v17091_v61  ;;  %9799 = vmatprep.subr.mxu0 %v17091_v61  ;;  %17142 = vst [vmem:[#allocation42_spill] sm:$0xff] %v12650_v36  ;;  %17146 = vst [vmem:[#allocation56_spill] sm:$0xff] %v12673_v6 }
 0x1af   :  { %9823 = vmatmul.mubr.f32.vlgmr.msra.gmra.mxu1 %v17135_v0  ;;  %9840 = vmatprep.subr.mxu1 %v17091_v61  ;;  %v17141_v0 = vand.u32 4294901760, %v12537_v49 }
 0x1b0   :  { %9800 = vmatpush3.msra.mxu0 %v12279_v47  ;;  %9841 = vmatpush3.msra.mxu1 %v12226_v39  ;;  %v17140_v39 = vand.u32 4294901760, %v12534_v63 }
 0x1b1   :  { %9801 = vmatprep.subr.mxu0 %v17091_v61  ;;  %9842 = vmatprep.subr.mxu1 %v17091_v61  ;;  %v12647_v16 = vsub.f32 %v12537_v49, %v17141_v0  ;;  %v12667_v49 = vsub.f32 %v50_v41, %v12601_v33  ;;  %v17148_v41 = vand.u32 4294901760, %v12579_v48  ;;  %v12686_v0 = vsub.f32 %v48_v52, %v12629_v51  ;;  %v36_v33 = vld [vmem:[%s16010_s1 + $0x38] sm:$0xff]  ;;  %v35_v51 = vld [vmem:[%s16010_s1 + $0x30] sm:$0xff] }
 0x1b2   :  { %v12642_v13 = vsub.f32 %v12534_v63, %v17140_v39  ;;  %9802 = vmatpush3.msra.mxu0 %v12292_v31  ;;  %9843 = vmatpush3.msra.mxu1 %v12231_v23  ;;  %v17144_v39 = vand.u32 4294901760, %v12543_v28  ;;  %v41_v23 = vld [vmem:[%s16010_s1 + $0x60] sm:$0xff]  ;;  %v17153_v52 = vand.u32 4294901760, %v12599_v59 }
 0x1b3   :  { %17145 = vst [vmem:[#allocation43_spill] sm:$0xff] %v12667_v49  ;;  %9803 = vmatprep.subr.mxu0 %v17091_v61  ;;  %9844 = vmatprep.subr.mxu1 %v17091_v61  ;;  %v12683_v4 = vsub.f32 %v12579_v48, %v17148_v41  ;;  %17149 = vst [vmem:[#allocation60_spill] sm:$0xff] %v12686_v0  ;;  %v12702_v48 = vsub.f32 %v47_v32, %v12652_v18  ;;  %v17152_v41 = vand.u32 4294901760, %v12596_v42 }
 0x1b4   :  { %v12662_v63 = vsub.f32 %v12543_v28, %v17144_v39  ;;  %9804 = vmatpush3.msra.mxu0 %v12309_v25  ;;  %9845 = vmatpush3.msra.mxu1 %v12251_v53  ;;  %v39_v53 = vld [vmem:[%s16010_s1 + $0x50] sm:$0xff]  ;;  %v38_v28 = vld [vmem:[%s16010_s1 + $0x48] sm:$0xff]  ;;  %v12719_v32 = vsub.f32 %v12599_v59, %v17153_v52  ;;  %v12734_v52 = vsub.f32 %v44_v15, %v12675_v19  ;;  %v12736_v59 = vand.u32 4294901760, %v41_v23 }
 0x1b5   :  { %9805 = vmatprep.subr.mxu0 %v17091_v61  ;;  %9846 = vmatprep.subr.mxu1 %v17091_v61  ;;  %17151 = vst [vmem:[#allocation61_spill] sm:$0xff] %v12702_v48  ;;  %v12714_v39 = vsub.f32 %v12596_v42, %v17152_v41  ;;  %v12731_v41 = vsub.f32 %v45_v54, %v12673_v6  ;;  %v12738_v18 = vand.u32 4294901760, %v39_v53  ;;  %v33_v42 = vld [vmem:[%s16010_s1 + $0x20] sm:$0xff]  ;;  %v12750_v15 = vand.u32 4294901760, %v38_v28 }
 0x1b6   :  { %9806 = vmatpush3.msra.mxu0 %v12324_v37  ;;  %9807 = vmatprep.mubr.msk.f32.mxu0 %vm10163_vm3, %v17091_v61  ;;  %17156 = vst [vmem:[#allocation62_spill] sm:$0xff] %v12734_v52  ;;  %17157 = vst [vmem:[#allocation63_spill] sm:$0xff] %v12736_v59  ;;  %v12748_v54 = vsub.f32 %v42_v7, %v12688_v44  ;;  %v17161_v19 = vand.u32 4294901760, %v12249_v58  ;;  %v17162_v6 = vand.u32 4294901760, %v12650_v36  ;;  %v32_v7 = vld [vmem:[%s16010_s1 + $0x18] sm:$0xff]  ;;  %v12777_v38 = vand.u32 4294901760, %v33_v42 }
 0x1b7   :  { %9847 = vmatpush3.msra.mxu1 %v12265_v57  ;;  %9808 = vmatmul.mubr.f32.vlgmr.msra.gmra.mxu0 %v17154_v5  ;;  %17155 = vst [vmem:[#allocation53_spill] sm:$0xff] %v12731_v41  ;;  %17158 = vst [vmem:[#allocation55_spill] sm:$0xff] %v12738_v18  ;;  %v12761_v57 = vand.u32 4294901760, %v36_v33  ;;  %v12763_v5 = vand.u32 4294901760, %v35_v51  ;;  %v12785_v58 = vsub.f32 %v41_v23, %v12736_v59  ;;  %v12808_v8 = vand.u32 4294901760, %v32_v7  ;;  %v123_v23 = vld [vmem:[%s16010_s1 + $0x2f0] sm:$0xff] }
 0x1b8   :  { %9825 = vmatprep.subr.mxu0 %v17091_v61  ;;  %9848 = vmatprep.subr.mxu1 %v17091_v61  ;;  %17159 = vst [vmem:[#allocation64_spill] sm:$0xff] %v12748_v54  ;;  %17160 = vst [vmem:[#allocation67_spill] sm:$0xff] %v12750_v15  ;;  %v12758_v24 = vsub.f32 %v12650_v36, %v17162_v6  ;;  %v17167_v36 = vand.u32 4294901760, %v12257_v35  ;;  %v29_v35 = vld [vmem:[%s16010_s1] sm:$0xff]  ;;  %v17173_v44 = vand.u32 4294901760, %v12476_v27  ;;  %v17177_v27 = vand.u32 4294901760, %v12279_v47 }
 0x1b9   :  { %9826 = vmatpush3.msra.mxu0 %v17161_v19  ;;  %9849 = vmatpush3.msra.mxu1 %v12281_v21  ;;  %17163 = vst [vmem:[#allocation68_spill] sm:$0xff] %v12761_v57  ;;  %17164 = vst [vmem:[#allocation72_spill] sm:$0xff] %v12763_v5  ;;  %v17165_v19 = vand.u32 4294901760, %v12667_v49  ;;  %v12788_v21 = vsub.f32 %v39_v53, %v12738_v18  ;;  %v12806_v53 = vsub.f32 %v38_v28, %v12750_v15 }
 0x1ba   :  { %9827 = vmatprep.subr.mxu0 %v17091_v61  ;;  %9850 = vmatprep.subr.mxu1 %v17091_v61  ;;  %17166 = vst [vmem:[#allocation76_spill] sm:$0xff] %v12777_v38  ;;  %17168 = vst [vmem:[#allocation77_spill] sm:$0xff] %v12785_v58  ;;  %v17174_v18 = vand.u32 4294901760, %v12702_v48  ;;  %v12823_v28 = vsub.f32 %v35_v51, %v12763_v5  ;;  %v17182_v51 = vand.u32 4294901760, %v12517_v60  ;;  %v17183_v47 = vand.u32 4294901760, %v12731_v41 }
 0x1bb   :  { %v12775_v6 = vsub.f32 %v12667_v49, %v17165_v19  ;;  %9828 = vmatpush3.msra.mxu0 %v17167_v36  ;;  %9851 = vmatpush3.msra.mxu1 %v12294_v56  ;;  %17169 = vst [vmem:[#allocation78_spill] sm:$0xff] %v12788_v21  ;;  %v30_v19 = vld [vmem:[%s16010_s1 + $0x8] sm:$0xff]  ;;  %v17170_v56 = vand.u32 4294901760, %v12686_v0  ;;  %17171 = vst [vmem:[#allocation71_spill] sm:$0xff] %v12806_v53  ;;  %v17185_v60 = vand.u32 4294901760, %v12292_v31  ;;  %v12871_v49 = vand.u32 4294901760, %v123_v23 }
 0x1bc   :  { %9852 = vmatprep.mubr.msk.f32.mxu1 %vm10163_vm3, %v17091_v61  ;;  %9829 = vmatprep.subr.mxu0 %v17091_v61  ;;  %17172 = vst [vmem:[#allocation81_spill] sm:$0xff] %v12808_v8  ;;  %v12817_v59 = vsub.f32 %v12702_v48, %v17174_v18  ;;  %17176 = vst [vmem:[#allocation87_spill] sm:$0xff] %v12823_v28  ;;  %v12834_v18 = vsub.f32 %v33_v42, %v12777_v38  ;;  %v12838_v48 = vand.u32 4294901760, %v29_v35 }
 0x1bd   :  { %v12802_v36 = vsub.f32 %v12686_v0, %v17170_v56  ;;  %9853 = vmatmul.mubr.f32.vlgmr.msra.gmra.mxu1 %v17109_v20  ;;  %3711 = vmatprep.subr.mxu1 %v17173_v44  ;;  %v12820_v56 = vsub.f32 %v36_v33, %v12761_v57  ;;  %v17178_v44 = vand.u32 4294901760, %v12491_v9  ;;  %v12836_v33 = vand.u32 4294901760, %v30_v19  ;;  %v122_v0 = vld [vmem:[%s16010_s1 + $0x2e8] sm:$0xff]  ;;  %17189 = vst [vmem:[#allocation59_spill] sm:$0xff] %v12871_v49 }
 0x1be   :  { %9830 = vmatpush3.msra.mxu0 %v17177_v27  ;;  %17179 = vst [vmem:[#allocation92_spill] sm:$0xff] %v12834_v18  ;;  %17181 = vst [vmem:[#allocation93_spill] sm:$0xff] %v12838_v48  ;;  %v12846_v27 = vsub.f32 %v12731_v41, %v17183_v47  ;;  %v17184_v9 = vand.u32 4294901760, %v12734_v52  ;;  %v17187_v47 = vand.u32 4294901760, %v12748_v54  ;;  %v12869_v42 = vsub.f32 %v32_v7, %v12808_v8 }
 0x1bf   :  { %17175 = vst [vmem:[#allocation82_spill] sm:$0xff] %v12820_v56  ;;  %3717 = vmatpush1.msra.mxu1 %v17178_v44  ;;  %17180 = vst [vmem:[#allocation91_spill] sm:$0xff] %v12836_v33  ;;  %9831 = vmatprep.subr.mxu0 %v17091_v61  ;;  %v17190_v31 = vand.u32 4294901760, %v12557_v3  ;;  %v17192_v7 = vand.u32 4294901760, %v12562_v29  ;;  %v12889_v3 = vsub.f32 %v29_v35, %v12838_v48  ;;  %v17196_v29 = vand.u32 4294901760, %v12575_v14 }
 0x1c0   :  { %3723 = vmatprep.subr.mxu1 %v17182_v51  ;;  %v12851_v44 = vsub.f32 %v12734_v52, %v17184_v9  ;;  %9832 = vmatpush3.msra.mxu0 %v17185_v60  ;;  %v17186_v51 = vand.u32 4294901760, %v12531_v45  ;;  %v12865_v41 = vsub.f32 %v12748_v54, %v17187_v47  ;;  %17188 = vst [vmem:[#allocation90_spill] sm:$0xff] %v12869_v42  ;;  %v17191_v9 = vand.u32 4294901760, %v12309_v25  ;;  %v120_v60 = vld [vmem:[%s16010_s1 + $0x2d8] sm:$0xff]  ;;  %v119_v25 = vld [vmem:[%s16010_s1 + $0x2d0] sm:$0xff] }
 0x1c1   :  { %9833 = vmatprep.subr.mxu0 %v17091_v61  ;;  %v12886_v52 = vsub.f32 %v30_v19, %v12836_v33  ;;  %17194 = vst [vmem:[#allocation66_spill] sm:$0xff] %v12889_v3  ;;  %v17198_v45 = vand.u32 4294901760, %v12788_v21  ;;  %v17199_v47 = vand.u32 4294901760, %v12324_v37  ;;  %9837 = vmatprep.mubr.msk.f32.mxu0 %vm10163_vm3, %v17091_v61  ;;  %v12926_v19 = vsub.f32 %v123_v23, %v12871_v49  ;;  %v117_v37 = vld [vmem:[%s16010_s1 + $0x2c0] sm:$0xff] }
 0x1c2   :  { %3729 = vmatpush1.msra.mxu1 %v17186_v51  ;;  %v16377_v51 = vand.u32 4294901760, %v12820_v56  ;;  %9834 = vmatpush3.msra.mxu0 %v17191_v9  ;;  %v17197_v9 = vand.u32 4294901760, %v12785_v58  ;;  %v17203_v23 = vand.u32 4294901760, %v12823_v28 }
 0x1c3   :  { %3735 = vmatprep.subr.mxu1 %v17190_v31  ;;  %17193 = vst [vmem:[#allocation65_spill] sm:$0xff] %v12886_v52  ;;  %v12891_v31 = vand.u32 4294901760, %v122_v0  ;;  %9835 = vmatprep.subr.mxu0 %v17091_v61  ;;  %v12912_v54 = vsub.f32 %v12788_v21, %v17198_v45  ;;  %17201 = vst [vmem:[#allocation70_spill] sm:$0xff] %v12926_v19  ;;  %v116_v45 = vld [vmem:[%s16010_s1 + $0x2b8] sm:$0xff]  ;;  %v12949_v61 = vand.u32 4294901760, %v119_v25  ;;  %v12972_v21 = vand.u32 4294901760, %v117_v37 }
 0x1c4   :  { %3741 = vmatpush1.msra.mxu1 %v17192_v7  ;;  %v12907_v7 = vsub.f32 %v12785_v58, %v17197_v9  ;;  %9836 = vmatpush3.msra.mxu0 %v17199_v47  ;;  %v17202_v47 = vand.u32 4294901760, %v12613_v10  ;;  %v12945_v14 = vsub.f32 %v12823_v28, %v17203_v23  ;;  %v12947_v9 = vand.u32 4294901760, %v120_v60  ;;  %v114_v10 = vld [vmem:[%s16010_s1 + $0x2a8] sm:$0xff] }
 0x1c5   :  { %17195 = vst [vmem:[#allocation69_spill] sm:$0xff] %v12891_v31  ;;  %3747 = vmatprep.subr.mxu1 %v17196_v29  ;;  %v17200_v29 = vand.u32 4294901760, %v12806_v53  ;;  %9838 = vmatmul.mubr.f32.vlgmr.msra.gmra.mxu0 %v17109_v20  ;;  %17205 = vst [vmem:[#allocation74_spill] sm:$0xff] %v12949_v61  ;;  %v17206_v20 = vand.u32 4294901760, %v12618_v50  ;;  %v17212_v28 = vand.u32 4294901760, %v12642_v13  ;;  %v17213_v23 = vand.u32 4294901760, %v12869_v42 }
 0x1c6   :  { %3753 = vmatpush1.msra.mxu1 %v17202_v47  ;;  %17204 = vst [vmem:[#allocation73_spill] sm:$0xff] %v12947_v9  ;;  %3562 = vmatprep.subr.mxu0 %v12373_v43  ;;  %v17207_v47 = vand.u32 4294901760, %v12834_v18  ;;  %17210 = vst [vmem:[#allocation79_spill] sm:$0xff] %v12972_v21  ;;  %v12986_v50 = vand.u32 4294901760, %v114_v10  ;;  %v17215_v13 = vand.u32 4294901760, %v12647_v16  ;;  %v1564_v16 = vpop.f32.mrf.mxu1 }
 0x1c7   :  { %v12922_v35 = vsub.f32 %v12806_v53, %v17200_v29  ;;  %v12940_v29 = vsub.f32 %v12820_v56, %v16377_v51  ;;  %3759 = vmatprep.subr.mxu1 %v17206_v20  ;;  %v12965_v56 = vsub.f32 %v122_v0, %v12891_v31  ;;  %3564 = vmatpush1.msra.mxu0 %v12381_v11  ;;  %v17209_v53 = vand.u32 4294901760, %v12626_v62  ;;  %v113_v20 = vld [vmem:[%s16010_s1 + $0x2a0] sm:$0xff]  ;;  %v17278_v11 = vld [vmem:[#allocation49_spill] sm:$0xff] }
 0x1c8   :  { %v12960_v51 = vsub.f32 %v12834_v18, %v17207_v47  ;;  %v12974_v47 = vand.u32 4294901760, %v116_v45  ;;  %3566 = vmatprep.subr.mxu0 %v12389_v12  ;;  %v12983_v62 = vsub.f32 %v12869_v42, %v17213_v23  ;;  %17214 = vst [vmem:[#allocation83_spill] sm:$0xff] %v12986_v50  ;;  %v12997_v23 = vsub.f32 %v120_v60, %v12947_v9  ;;  %v111_v42 = vld [vmem:[%s16010_s1 + $0x290] sm:$0xff]  ;;  %v1427_v58 = vpop.f32.mrf.mxu0 }
 0x1c9   :  { %17208 = vst [vmem:[#allocation75_spill] sm:$0xff] %v12965_v56  ;;  %3765 = vmatpush1.msra.mxu1 %v17209_v53  ;;  %3568 = vmatpush1.msra.mxu0 %v12401_v30  ;;  %v13000_v53 = vsub.f32 %v119_v25, %v12949_v61  ;;  %v17218_v18 = vand.u32 4294901760, %v12662_v63  ;;  %v17219_v0 = vand.u32 4294901760, %v12886_v52  ;;  %v17220_v25 = vand.u32 4294901760, %v12889_v3 }
 0x1ca   :  { %17211 = vst [vmem:[#allocation80_spill] sm:$0xff] %v12974_v47  ;;  %3771 = vmatprep.subr.mxu1 %v17212_v28  ;;  %17216 = vst [vmem:[#allocation84_spill] sm:$0xff] %v12997_v23  ;;  %3570 = vmatprep.subr.mxu0 %v12412_v2  ;;  %v17221_v63 = vand.u32 4294901760, %v12683_v4  ;;  %v17225_v30 = vand.u32 4294901760, %v12714_v39  ;;  %v17231_v4 = vand.u32 4294901760, %v12965_v56  ;;  %v17257_v2 = vld [vmem:[#allocation46_spill] sm:$0xff] }
 0x1cb   :  { %3777 = vmatpush1.msra.mxu1 %v17215_v13  ;;  %17217 = vst [vmem:[#allocation8_spill] sm:$0xff] %v13000_v53  ;;  %v13012_v60 = vsub.f32 %v12886_v52, %v17219_v0  ;;  %v13017_v28 = vsub.f32 %v12889_v3, %v17220_v25  ;;  %3572 = vmatpush1.msra.mxu0 %v12414_v17  ;;  %v13030_v52 = vand.u32 4294901760, %v113_v20  ;;  %v110_v25 = vld [vmem:[%s16010_s1 + $0x288] sm:$0xff]  ;;  %v17229_v3 = vand.u32 4294901760, %v12719_v32 }
 0x1cc   :  { %3783 = vmatprep.subr.mxu1 %v17218_v18  ;;  %v1428_v18 = vadd.f32 %v1427_v58, %v12296_v1  ;;  %v13025_v13 = vsub.f32 %v117_v37, %v12972_v21  ;;  %v13028_v0 = vsub.f32 %v116_v45, %v12974_v47  ;;  %3574 = vmatprep.subr.mxu0 %v12422_v22  ;;  %v17226_v1 = vand.u32 4294901760, %v12926_v19  ;;  %v1429_v37 = vpop.f32.mrf.mxu0  ;;  %v17243_v22 = vld [vmem:[#allocation26_spill] sm:$0xff] }
 0x1cd   :  { %3789 = vmatpush1.msra.mxu1 %v17221_v63  ;;  %17224 = vst [vmem:[#allocation4_spill] sm:$0xff] %v13030_v52  ;;  %v13045_v45 = vsub.f32 %v114_v10, %v12986_v50  ;;  %v13047_v63 = vand.u32 4294901760, %v111_v42  ;;  %3576 = vmatpush1.msra.mxu0 %v12456_v34  ;;  %v107_v10 = vld [vmem:[%s16010_s1 + $0x270] sm:$0xff]  ;;  %v17230_v32 = vand.u32 4294901760, %v12758_v24  ;;  %v13071_v39 = vsub.f32 %v12965_v56, %v17231_v4  ;;  %v104_v4 = vld [vmem:[%s16010_s1 + $0x258] sm:$0xff]  ;;  %v102_v56 = vld [vmem:[%s16010_s1 + $0x248] sm:$0xff] }
 0x1ce   :  { %17222 = vst [vmem:[#allocation3_spill] sm:$0xff] %v13025_v13  ;;  %17223 = vst [vmem:[#allocation12_spill] sm:$0xff] %v13028_v0  ;;  %3795 = vmatprep.subr.mxu1 %v17225_v30  ;;  %v13042_v58 = vsub.f32 %v12926_v19, %v17226_v1  ;;  %v1430_v30 = vadd.f32 %v1429_v37, %v12311_v55  ;;  %v108_v1 = vld [vmem:[%s16010_s1 + $0x278] sm:$0xff]  ;;  %v13061_v19 = vadd.f32 %v1564_v16, %v1428_v18  ;;  %v1566_v55 = vpop.f32.mrf.mxu1  ;;  %v105_v16 = vld [vmem:[%s16010_s1 + $0x260] sm:$0xff] }
 0x1cf   :  { %17227 = vst [vmem:[#allocation13_spill] sm:$0xff] %v13045_v45  ;;  %17228 = vst [vmem:[#allocation89_spill] sm:$0xff] %v13047_v63  ;;  %3801 = vmatpush1.msra.mxu1 %v17229_v3  ;;  %3578 = vmatprep.subr.mxu0 %v12458_v26  ;;  %v13073_v34 = vand.u32 4294901760, %v110_v25  ;;  %v17233_v24 = vand.u32 4294901760, %v12775_v6  ;;  %v13084_v37 = vsub.f32 %v113_v20, %v13030_v52  ;;  %v17235_v6 = vand.u32 4294901760, %v12802_v36 }
 0x1d0   :  { %3807 = vmatprep.subr.mxu1 %v17230_v32  ;;  %3580 = vmatpush1.msra.mxu0 %v12469_v46  ;;  %v13089_v3 = vadd.f32 %v1566_v55, %v1430_v30  ;;  %v13099_v20 = vsub.f32 %v111_v42, %v13047_v63  ;;  %v13101_v32 = vand.u32 4294901760, %v108_v1  ;;  %v13103_v18 = vand.u32 4294901760, %v107_v10  ;;  %v101_v30 = vld [vmem:[%s16010_s1 + $0x240] sm:$0xff]  ;;  %v17238_v55 = vld [vmem:[#allocation35_spill] sm:$0xff] }
 0x1d1   :  { %17232 = vst [vmem:[#allocation88_spill] sm:$0xff] %v13073_v34  ;;  %3813 = vmatpush1.msra.mxu1 %v17233_v24  ;;  %17234 = vst [vmem:[#allocation86_spill] sm:$0xff] %v13084_v37  ;;  %3582 = vmatprep.subr.mxu0 %v12479_v40  ;;  %v17239_v40 = vand.u32 4294901760, %v12817_v59  ;;  %v17241_v24 = vand.u32 4294901760, %v13000_v53  ;;  %v13122_v26 = vand.u32 4294901760, %v105_v16  ;;  %v13131_v36 = vand.u32 4294901760, %v104_v4 }
 0x1d2   :  { %3819 = vmatprep.subr.mxu1 %v17235_v6  ;;  %17236 = vst [vmem:[#allocation15_spill] sm:$0xff] %v13099_v20  ;;  %17237 = vst [vmem:[#allocation7_spill] sm:$0xff] %v13101_v32  ;;  %3584 = vmatpush1.msra.mxu0 %v17238_v55  ;;  %v17240_v6 = vand.u32 4294901760, %v12997_v23  ;;  %v17244_v55 = vand.u32 4294901760, %v12846_v27  ;;  %v17249_v27 = vand.u32 4294901760, %v13025_v13  ;;  %v13152_v17 = vand.u32 4294901760, %v101_v30 }
 0x1d3   :  { %3825 = vmatpush1.msra.mxu1 %v17239_v40  ;;  %v13120_v46 = vsub.f32 %v13000_v53, %v17241_v24  ;;  %17242 = vst [vmem:[#allocation5_spill] sm:$0xff] %v13122_v26  ;;  %3586 = vmatprep.subr.mxu0 %v17243_v22  ;;  %v13129_v40 = vsub.f32 %v110_v25, %v13073_v34  ;;  %v99_v24 = vld [vmem:[%s16010_s1 + $0x230] sm:$0xff]  ;;  %v17247_v53 = vld [vmem:[#allocation33_spill] sm:$0xff]  ;;  %v17250_v25 = vand.u32 4294901760, %v13028_v0  ;;  %v17269_v12 = vand.u32 4294901760, %v12940_v29 }
 0x1d4   :  { %v13115_v42 = vsub.f32 %v12997_v23, %v17240_v6  ;;  %3831 = vmatprep.subr.mxu1 %v17244_v55  ;;  %v13133_v6 = vand.u32 4294901760, %v102_v56  ;;  %3588 = vmatpush1.msra.mxu0 %v17247_v53  ;;  %v17248_v23 = vand.u32 4294901760, %v12851_v44  ;;  %v13144_v55 = vsub.f32 %v13025_v13, %v17249_v27  ;;  %17251 = vst [vmem:[#allocation85_spill] sm:$0xff] %v13152_v17  ;;  %v98_v53 = vld [vmem:[%s16010_s1 + $0x228] sm:$0xff]  ;;  %v17252_v44 = vld [vmem:[#allocation37_spill] sm:$0xff] }
 0x1d5   :  { %17245 = vst [vmem:[#allocation6_spill] sm:$0xff] %v13129_v40  ;;  %v13149_v59 = vsub.f32 %v13028_v0, %v17250_v25  ;;  %3590 = vmatprep.subr.mxu0 %v17252_v44  ;;  %v17254_v27 = vand.u32 4294901760, %v13045_v45  ;;  %v13167_v22 = vsub.f32 %v108_v1, %v13101_v32  ;;  %v13170_v0 = vsub.f32 %v107_v10, %v13103_v18  ;;  %v17260_v25 = vld [vmem:[#allocation47_spill] sm:$0xff] }
 0x1d6   :  { %17246 = vst [vmem:[#allocation14_spill] sm:$0xff] %v13133_v6  ;;  %3837 = vmatpush1.msra.mxu1 %v17248_v23  ;;  %v17253_v23 = vand.u32 4294901760, %v12865_v41  ;;  %3592 = vmatpush1.msra.mxu0 %v17257_v2  ;;  %v17258_v44 = vand.u32 4294901760, %v12907_v7  ;;  %v17261_v1 = vand.u32 4294901760, %v12912_v54  ;;  %v13187_v2 = vsub.f32 %v104_v4, %v13131_v36 }
 0x1d7   :  { %v13163_v13 = vsub.f32 %v13045_v45, %v17254_v27  ;;  %17255 = vst [vmem:[#allocation2_spill] sm:$0xff] %v13167_v22  ;;  %17256 = vst [vmem:[#allocation58_spill] sm:$0xff] %v13170_v0  ;;  %v13178_v27 = vsub.f32 %v105_v16, %v13122_v26  ;;  %v13180_v45 = vand.u32 4294901760, %v99_v24  ;;  %3594 = vmatprep.subr.mxu0 %v17260_v25  ;;  %v96_v16 = vld [vmem:[%s16010_s1 + $0x218] sm:$0xff]  ;;  %v17265_v41 = vand.u32 4294901760, %v12922_v35  ;;  %v17268_v25 = vld [vmem:[#allocation51_spill] sm:$0xff] }
 0x1d8   :  { %3843 = vmatprep.subr.mxu1 %v17253_v23  ;;  %17262 = vst [vmem:[#allocation54_spill] sm:$0xff] %v13187_v2  ;;  %v13190_v7 = vsub.f32 %v102_v56, %v13133_v6  ;;  %v17264_v23 = vld [vmem:[#allocation41_spill] sm:$0xff]  ;;  %v17266_v4 = vand.u32 4294901760, %v13084_v37  ;;  %v13208_v10 = vsub.f32 %v101_v30, %v13152_v17  ;;  %v95_v30 = vld [vmem:[%s16010_s1 + $0x210] sm:$0xff]  ;;  %v13232_v54 = vand.u32 4294901760, %v96_v16 }
 0x1d9   :  { %3849 = vmatpush1.msra.mxu1 %v17258_v44  ;;  %17259 = vst [vmem:[#allocation57_spill] sm:$0xff] %v13178_v27  ;;  %v13192_v44 = vand.u32 4294901760, %v98_v53  ;;  %3596 = vmatpush1.msra.mxu0 %v17264_v23  ;;  %v1784_v23 = vpop.f32.mrf.mxu1  ;;  %v13255_v43 = vand.u32 4294901760, %v95_v30 }
 0x1da   :  { %3855 = vmatprep.subr.mxu1 %v17261_v1  ;;  %17263 = vst [vmem:[#allocation94_spill] sm:$0xff] %v13190_v7  ;;  %v13205_v56 = vsub.f32 %v13084_v37, %v17266_v4  ;;  %17267 = vst [vmem:[#allocation95_spill] sm:$0xff] %v13208_v10  ;;  %3598 = vmatprep.subr.mxu0 %v17268_v25  ;;  %v1652_v37 = vpop.f32.mrf.mxu0  ;;  %v17271_v25 = vld [vmem:[#allocation52_spill] sm:$0xff]  ;;  %v93_v4 = vld [vmem:[%s16010_s1 + $0x200] sm:$0xff] }
 0x1db   :  { %3861 = vmatpush1.msra.mxu1 %v17265_v41  ;;  %v17270_v41 = vand.u32 4294901760, %v13099_v20  ;;  %3600 = vmatpush1.msra.mxu0 %v17271_v25  ;;  %v1653_v29 = vadd.f32 %v1652_v37, %v13061_v19  ;;  %v17275_v25 = vand.u32 4294901760, %v12960_v51  ;;  %v13248_v35 = vsub.f32 %v98_v53, %v13192_v44 }
 0x1dc   :  { %3867 = vmatprep.subr.mxu1 %v17269_v12  ;;  %v17272_v12 = vand.u32 4294901760, %v12945_v14  ;;  %v17276_v14 = vand.u32 4294901760, %v13129_v40  ;;  %v17281_v53 = vand.u32 4294901760, %v13012_v60  ;;  %v17286_v60 = vand.u32 4294901760, %v13017_v28 }
 0x1dd   :  { %v13217_v1 = vsub.f32 %v13099_v20, %v17270_v41  ;;  %v13230_v41 = vsub.f32 %v99_v24, %v13180_v45  ;;  %v17274_v20 = vld [vmem:[#allocation56_spill] sm:$0xff]  ;;  %v1654_v24 = vpop.f32.mrf.mxu0  ;;  %17277 = vst [vmem:[#allocation97_spill] sm:$0xff] %v13248_v35  ;;  %v13260_v37 = vadd.f32 %v1784_v23, %v1653_v29  ;;  %v13276_v23 = vand.u32 4294901760, %v93_v4  ;;  %v17285_v29 = vld [vmem:[#allocation63_spill] sm:$0xff] }
 0x1de   :  { %3873 = vmatpush1.msra.mxu1 %v17272_v12  ;;  %3602 = vmatprep.subr.mxu0 %v17274_v20  ;;  %v13243_v19 = vsub.f32 %v13129_v40, %v17276_v14  ;;  %v17279_v20 = vand.u32 4294901760, %v12983_v62  ;;  %v1655_v51 = vadd.f32 %v1654_v24, %v13089_v3  ;;  %v92_v14 = vld [vmem:[%s16010_s1 + $0x1f8] sm:$0xff]  ;;  %v17280_v12 = vld [vmem:[#allocation50_spill] sm:$0xff]  ;;  %v1786_v40 = vpop.f32.mrf.mxu1  ;;  %v3944_v62 = vand.u32 4294901760, %v13205_v56 }
 0x1df   :  { %17273 = vst [vmem:[#allocation96_spill] sm:$0xff] %v13230_v41  ;;  %3879 = vmatprep.subr.mxu1 %v17275_v25  ;;  %3604 = vmatpush1.msra.mxu0 %v17278_v11  ;;  %v17282_v3 = vand.u32 4294901760, %v13167_v22  ;;  %v17283_v24 = vand.u32 4294901760, %v13170_v0  ;;  %17284 = vst [vmem:[#allocation98_spill] sm:$0xff] %v13276_v23 }
 0x1e0   :  { %3885 = vmatpush1.msra.mxu1 %v17279_v20  ;;  %3606 = vmatprep.subr.mxu0 %v17280_v12  ;;  %v13296_v28 = vadd.f32 %v1786_v40, %v1655_v51  ;;  %v13308_v12 = vand.u32 4294901760, %v92_v14  ;;  %v17292_v40 = vand.u32 4294901760, %v13071_v39  ;;  %v3956_v51 = vand.u32 4294901760, %v13243_v19  ;;  %v87_v39 = vld [vmem:[%s16010_s1 + $0x1d0] sm:$0xff] }
 0x1e1   :  { %3891 = vmatprep.subr.mxu1 %v17281_v53  ;;  %v13269_v20 = vsub.f32 %v13167_v22, %v17282_v3  ;;  %v13274_v25 = vsub.f32 %v13170_v0, %v17283_v24  ;;  %3608 = vmatpush1.msra.mxu0 %v17285_v29  ;;  %v17287_v53 = vand.u32 4294901760, %v13178_v27  ;;  %v13288_v22 = vsub.f32 %v96_v16, %v13232_v54  ;;  %v90_v24 = vld [vmem:[%s16010_s1 + $0x1e8] sm:$0xff]  ;;  %v89_v0 = vld [vmem:[%s16010_s1 + $0x1e0] sm:$0xff] }
 0x1e2   :  { %3897 = vmatpush1.msra.mxu1 %v17286_v60  ;;  %v17289_v60 = vld [vmem:[#allocation55_spill] sm:$0xff]  ;;  %v3950_v3 = vand.u32 4294901760, %v13217_v1  ;;  %v17291_v16 = vand.u32 4294901760, %v13187_v2  ;;  %v13325_v29 = vsub.f32 %v95_v30, %v13255_v43  ;;  %v17296_v19 = vand.u32 4294901760, %v13115_v42 }
 0x1e3   :  { %v13284_v56 = vsub.f32 %v13178_v27, %v17287_v53  ;;  %17288 = vst [vmem:[#allocation99_spill] sm:$0xff] %v13288_v22  ;;  %3610 = vmatprep.subr.mxu0 %v17289_v60  ;;  %v17290_v53 = vand.u32 4294901760, %v13042_v58  ;;  %v17293_v58 = vand.u32 4294901760, %v13190_v7  ;;  %v86_v30 = vld [vmem:[%s16010_s1 + $0x1c8] sm:$0xff]  ;;  %v3968_v42 = vand.u32 4294901760, %v13274_v25 }
 0x1e4   :  { %v13305_v27 = vsub.f32 %v13187_v2, %v17291_v16  ;;  %3612 = vmatpush1.msra.mxu0 %v12750_v15  ;;  %17295 = vst [vmem:[#allocation100_spill] sm:$0xff] %v13325_v29  ;;  %v17302_v25 = vand.u32 4294901760, %v13248_v35  ;;  %v13370_v2 = vand.u32 4294901760, %v87_v39 }
 0x1e5   :  { %3903 = vmatprep.subr.mxu1 %v17290_v53  ;;  %v13317_v1 = vsub.f32 %v13190_v7, %v17293_v58  ;;  %v17294_v53 = vand.u32 4294901760, %v13208_v10  ;;  %3614 = vmatprep.subr.mxu0 %v12761_v57  ;;  %v13335_v58 = vsub.f32 %v93_v4, %v13276_v23  ;;  %v13337_v7 = vand.u32 4294901760, %v90_v24  ;;  %v84_v57 = vld [vmem:[%s16010_s1 + $0x1b8] sm:$0xff] }
 0x1e6   :  { %3909 = vmatpush2.msra.mxu1 %v17292_v40  ;;  %v3962_v40 = vand.u32 4294901760, %v13269_v20  ;;  %3616 = vmatpush1.msra.mxu0 %v12763_v5  ;;  %v3974_v20 = vand.u32 4294901760, %v13284_v56  ;;  %v17300_v4 = vand.u32 4294901760, %v13230_v41  ;;  %v13365_v56 = vsub.f32 %v13248_v35, %v17302_v25  ;;  %v80_v25 = vld [vmem:[%s16010_s1 + $0x198] sm:$0xff] }
 0x1e7   :  { %v13322_v16 = vsub.f32 %v13208_v10, %v17294_v53  ;;  %3915 = vmatprep.subr.mxu1 %v17296_v19  ;;  %17297 = vst [vmem:[#allocation101_spill] sm:$0xff] %v13335_v58  ;;  %17298 = vst [vmem:[#allocation102_spill] sm:$0xff] %v13337_v7  ;;  %v13339_v53 = vand.u32 4294901760, %v89_v0  ;;  %v17299_v10 = vand.u32 4294901760, %v13120_v46  ;;  %3618 = vmatprep.subr.mxu0 %v12777_v38  ;;  %v17301_v46 = vand.u32 4294901760, %v13144_v55 }
 0x1e8   :  { %v13352_v19 = vsub.f32 %v13230_v41, %v17300_v4  ;;  %v13368_v4 = vsub.f32 %v92_v14, %v13308_v12  ;;  %v83_v41 = vld [vmem:[%s16010_s1 + $0x1b0] sm:$0xff]  ;;  %3620 = vmatpush1.msra.mxu0 %v12808_v8  ;;  %v17303_v55 = vand.u32 4294901760, %v13149_v59  ;;  %v13381_v35 = vand.u32 4294901760, %v86_v30  ;;  %v81_v14 = vld [vmem:[%s16010_s1 + $0x1a0] sm:$0xff] }
 0x1e9   :  { %3921 = vmatpush2.msra.mxu1 %v17299_v10  ;;  %3622 = vmatprep.subr.mxu0 %v12836_v33  ;;  %v17304_v38 = vand.u32 4294901760, %v13163_v13  ;;  %v13396_v10 = vand.u32 4294901760, %v84_v57  ;;  %v1967_v33 = vpop.f32.mrf.mxu1  ;;  %v17306_v13 = vand.u32 4294901760, %v13288_v22  ;;  %v4004_v59 = vand.u32 4294901760, %v13365_v56 }
 0x1ea   :  { %3927 = vmatprep.subr.mxu1 %v17301_v46  ;;  %v3986_v46 = vand.u32 4294901760, %v13317_v1  ;;  %v13394_v1 = vsub.f32 %v89_v0, %v13339_v53  ;;  %3624 = vmatpush1.msra.mxu0 %v12838_v48  ;;  %v13408_v0 = vand.u32 4294901760, %v83_v41  ;;  %v1881_v48 = vpop.f32.mrf.mxu0  ;;  %v13429_v8 = vsub.f32 %v86_v30, %v13381_v35 }
 0x1eb   :  { %3933 = vmatpush2.msra.mxu1 %v17303_v55  ;;  %v13391_v55 = vsub.f32 %v90_v24, %v13337_v7  ;;  %17305 = vst [vmem:[#allocation103_spill] sm:$0xff] %v13396_v10  ;;  %v13406_v24 = vsub.f32 %v13288_v22, %v17306_v13  ;;  %3626 = vmatprep.subr.mxu0 %v12871_v49  ;;  %v78_v13 = vld [vmem:[%s16010_s1 + $0x188] sm:$0xff]  ;;  %v17310_v22 = vand.u32 4294901760, %v13325_v29  ;;  %v77_v49 = vld [vmem:[%s16010_s1 + $0x180] sm:$0xff] }
 0x1ec   :  { %3939 = vmatprep.subr.mxu1 %v17304_v38  ;;  %v3998_v38 = vand.u32 4294901760, %v13352_v19  ;;  %17307 = vst [vmem:[#allocation104_spill] sm:$0xff] %v13408_v0  ;;  %v13416_v19 = vand.u32 4294901760, %v81_v14  ;;  %3628 = vmatpush2.msra.mxu0 %v12891_v31  ;;  %v1882_v56 = vadd.f32 %v1881_v48, %v13260_v37  ;;  %v1883_v37 = vpop.f32.mrf.mxu0  ;;  %v13443_v30 = vsub.f32 %v84_v57, %v13396_v10  ;;  %v3542_v48 = vpop.permute.xlu1 %3541 }
 0x1ed   :  { %3945 = vmatpush2.msra.mxu1 %v3944_v62  ;;  %v13414_v62 = vsub.f32 %v87_v39, %v13370_v2  ;;  %v13431_v39 = vand.u32 4294901760, %v80_v25  ;;  %3630 = vmatprep.subr.mxu0 %v12947_v9  ;;  %v1884_v5 = vadd.f32 %v1883_v37, %v13296_v28  ;;  %v13450_v9 = vand.u32 4294901760, %v78_v13 }
 0x1ee   :  { %3951 = vmatprep.subr.mxu1 %v3950_v3  ;;  %17309 = vst [vmem:[#allocation106_spill] sm:$0xff] %v13416_v19  ;;  %v13425_v3 = vsub.f32 %v13325_v29, %v17310_v22  ;;  %3632 = vmatpush2.msra.mxu0 %v12949_v61  ;;  %v1969_v29 = vpop.f32.mrf.mxu1  ;;  %v13455_v22 = vpop.permute.xlu0 %3543  ;;  %v17314_v57 = vand.u32 4294901760, %v13368_v4  ;;  %v13462_v28 = vsub.f32 %v81_v14, %v13416_v19  ;;  %v4010_v14 = vand.u32 4294901760, %v13406_v24 }
 0x1ef   :  { %17308 = vst [vmem:[#allocation105_spill] sm:$0xff] %v13414_v62  ;;  %3957 = vmatpush2.msra.mxu1 %v3956_v51  ;;  %v17311_v51 = vand.u32 4294901760, %v13335_v58  ;;  %3634 = vmatprep.subr.mxu0 %v12972_v21  ;;  %17313 = vst [vmem:[#allocation108_spill] sm:$0xff] %v13455_v22  ;;  %v13473_v37 = vsub.f32 %v80_v25, %v13431_v39  ;;  %v17319_v25 = vand.u32 4294901760, %v13322_v16 }
 0x1f0   :  { %3963 = vmatprep.subr.mxu1 %v3962_v40  ;;  %v13448_v40 = vsub.f32 %v83_v41, %v13408_v0  ;;  %v13464_v41 = vand.u32 4294901760, %v77_v49  ;;  %3636 = vmatpush2.msra.mxu0 %v12974_v47 }
 0x1f1   :  { %v4021_v31 = vsub.f32 %v13335_v58, %v17311_v51  ;;  %3969 = vmatpush2.msra.mxu1 %v3968_v42  ;;  %v13452_v51 = vadd.f32 %v1967_v33, %v1882_v56  ;;  %v4027_v42 = vsub.f32 %v13368_v4, %v17314_v57  ;;  %v17315_v33 = vand.u32 4294901760, %v13305_v27  ;;  %17316 = vst [vmem:[#allocation109_spill] sm:$0xff] %v13473_v37 }
 0x1f2   :  { %17312 = vst [vmem:[#allocation107_spill] sm:$0xff] %v13448_v40  ;;  %3975 = vmatprep.subr.mxu1 %v3974_v20  ;;  %v3547_v20 = vsel %vm3545_vm4, %v3542_v48, %v13455_v22  ;;  %v13475_v57 = vadd.f32 %v1969_v29, %v1884_v5  ;;  %3638 = vmatprep.subr.mxu0 %v12986_v50  ;;  %v17318_v27 = vand.u32 4294901760, %v13391_v55  ;;  %v4016_v5 = vand.u32 4294901760, %v13425_v3 }
 0x1f3   :  { %3981 = vmatpush2.msra.mxu1 %v17315_v33  ;;  %v13479_v58 = vand.u32 4294901760, %v3547_v20  ;;  %3640 = vmatpush2.msra.mxu0 %v13030_v52  ;;  %v17320_v29 = vand.u32 4294901760, %v13394_v1  ;;  %v13494_v56 = vsub.f32 %v78_v13, %v13450_v9  ;;  %v17321_v22 = vand.u32 4294901760, %v13414_v62 }
 0x1f4   :  { %3987 = vmatprep.subr.mxu1 %v3986_v46  ;;  %v4033_v33 = vsub.f32 %v13391_v55, %v17318_v27  ;;  %3642 = vmatprep.subr.mxu0 %v13047_v63  ;;  %v4022_v27 = vand.u32 4294901760, %v4021_v31  ;;  %v13502_v3 = vsub.f32 %v77_v49, %v13464_v41  ;;  %v17322_v13 = vand.u32 4294901760, %v13429_v8 }
 0x1f5   :  { %17317 = vst [vmem:[#allocation110_spill] sm:$0xff] %v13479_v58  ;;  %3993 = vmatpush2.msra.mxu1 %v17319_v25  ;;  %v4039_v46 = vsub.f32 %v13394_v1, %v17320_v29  ;;  %v4045_v16 = vsub.f32 %v13414_v62, %v17321_v22  ;;  %3644 = vmatpush2.msra.mxu0 %v13073_v34  ;;  %v4028_v29 = vand.u32 4294901760, %v4027_v42  ;;  %v3540_v22 = vpop.permute.xlu1 %3539  ;;  %v17324_v49 = vand.u32 4294901760, %v13443_v30 }
 0x1f6   :  { %3999 = vmatprep.subr.mxu1 %v3998_v38  ;;  %v4051_v24 = vsub.f32 %v13429_v8, %v17322_v13  ;;  %3646 = vmatprep.subr.mxu0 %v13101_v32  ;;  %v13511_v31 = vsub.f32 %v3547_v20, %v13479_v58  ;;  %v4034_v25 = vand.u32 4294901760, %v4033_v33  ;;  %v17325_v42 = vand.u32 4294901760, %v13448_v40 }
 0x1f7   :  { %4005 = vmatpush2.msra.mxu1 %v4004_v59  ;;  %v4057_v62 = vsub.f32 %v13443_v30, %v17324_v49  ;;  %3648 = vmatpush2.msra.mxu0 %v13103_v18  ;;  %v4040_v59 = vand.u32 4294901760, %v4039_v46  ;;  %v4046_v20 = vand.u32 4294901760, %v4045_v16  ;;  %v16485_v49 = vand.u32 4294901760, %v13502_v3  ;;  %v2159_v16 = vpop.f32.mrf.mxu1 }
 0x1f8   :  { %4011 = vmatprep.subr.mxu1 %v4010_v14  ;;  %17323 = vst [vmem:[#allocation111_spill] sm:$0xff] %v13511_v31  ;;  %v4063_v13 = vsub.f32 %v13448_v40, %v17325_v42  ;;  %3650 = vmatprep.subr.mxu0 %v13122_v26  ;;  %v17326_v14 = vand.u32 4294901760, %v13462_v28  ;;  %v4052_v46 = vand.u32 4294901760, %v4051_v24  ;;  %v17327_v42 = vand.u32 4294901760, %v13473_v37 }
 0x1f9   :  { %4017 = vmatpush2.msra.mxu1 %v4016_v5  ;;  %3652 = vmatpush2.msra.mxu0 %v13131_v36  ;;  %v3546_v5 = vsel %vm3545_vm4, %v3540_v22, %v3542_v48  ;;  %v13533_v40 = vand.u32 4294901760, %v13511_v31  ;;  %v17329_v48 = vand.u32 4294901760, %v13494_v56 }
 0x1fa   :  { %4023 = vmatprep.subr.mxu1 %v4022_v27  ;;  %v4069_v33 = vsub.f32 %v13462_v28, %v17326_v14  ;;  %v4075_v38 = vsub.f32 %v13473_v37, %v17327_v42  ;;  %3654 = vmatprep.subr.mxu0 %v13133_v6  ;;  %v4058_v27 = vand.u32 4294901760, %v4057_v62  ;;  %v2075_v14 = vpop.f32.mrf.mxu0  ;;  %v13540_v42 = vand.u32 4294901760, %v3546_v5 }
 0x1fb   :  { %4029 = vmatpush2.msra.mxu1 %v4028_v29  ;;  %17328 = vst [vmem:[#allocation112_spill] sm:$0xff] %v13533_v40  ;;  %3656 = vmatpush2.msra.mxu0 %v13152_v17  ;;  %v4064_v29 = vand.u32 4294901760, %v4063_v13  ;;  %v4081_v24 = vsub.f32 %v13494_v56, %v17329_v48  ;;  %v2076_v22 = vadd.f32 %v2075_v14, %v13452_v51  ;;  %v2161_v51 = vpop.f32.mrf.mxu1 }
 0x1fc   :  { %4035 = vmatprep.subr.mxu1 %v4034_v25  ;;  %17330 = vst [vmem:[#allocation113_spill] sm:$0xff] %v13540_v42  ;;  %3658 = vmatprep.subr.mxu0 %v13180_v45  ;;  %v4070_v62 = vand.u32 4294901760, %v4069_v33  ;;  %v4087_v25 = vsub.f32 %v13502_v3, %v16485_v49  ;;  %v2077_v37 = vpop.f32.mrf.mxu0  ;;  %v17349_v49 = vld [vmem:[#allocation28_spill] sm:$0xff] }
 0x1fd   :  { %4041 = vmatpush2.msra.mxu1 %v4040_v59  ;;  %3660 = vmatpush2.msra.mxu0 %v13192_v44  ;;  %v4076_v59 = vand.u32 4294901760, %v4075_v38  ;;  %v2078_v13 = vadd.f32 %v2077_v37, %v13475_v57  ;;  %v13548_v48 = vadd.f32 %v2159_v16, %v2076_v22  ;;  %v4082_v33 = vand.u32 4294901760, %v4081_v24  ;;  %v17338_v16 = vld [vmem:[#allocation19_spill] sm:$0xff]  ;;  %v17339_v24 = vld [vmem:[#allocation20_spill] sm:$0xff] }
 0x1fe   :  { %4047 = vmatprep.subr.mxu1 %v4046_v20  ;;  %3662 = vmatprep.subr.mxu0 %v13232_v54  ;;  %v3692_v20 = vsub.f32 %v13511_v31, %v13533_v40  ;;  %v4088_v37 = vand.u32 4294901760, %v4087_v25  ;;  %v17340_v22 = vld [vmem:[#allocation24_spill] sm:$0xff]  ;;  %v17342_v25 = vld [vmem:[#allocation18_spill] sm:$0xff] }
 0x1ff   :  { %4053 = vmatpush2.msra.mxu1 %v4052_v46  ;;  %17331 = vst [vmem:[#allocation114_spill] sm:$0xff] %v13548_v48  ;;  %3664 = vmatpush2.msra.mxu0 %v13255_v43  ;;  %v13554_v14 = vadd.f32 %v2161_v51, %v2078_v13  ;;  %v13557_v46 = vsub.f32 %v3546_v5, %v13540_v42  ;;  %v17336_v5 = vld [vmem:[#allocation16_spill] sm:$0xff]  ;;  %v17344_v13 = vld [vmem:[#allocation22_spill] sm:$0xff]  ;;  %v17352_v48 = vld [vmem:[#allocation35_spill] sm:$0xff] }
 0x200   :  { %4059 = vmatprep.subr.mxu1 %v4058_v27  ;;  %3666 = vmatprep.subr.mxu0 %v13276_v23  ;;  %v13563_v57 = vand.u32 4294901760, %v3692_v20  ;;  %v17337_v27 = vld [vmem:[#allocation9_spill] sm:$0xff]  ;;  %v17345_v51 = vld [vmem:[#allocation10_spill] sm:$0xff]  ;;  %v17346_v20 = vld [vmem:[#allocation31_spill] sm:$0xff] }
 0x201   :  { %4065 = vmatpush2.msra.mxu1 %v4064_v29  ;;  %17332 = vst [vmem:[#allocation115_spill] sm:$0xff] %v13554_v14  ;;  %17333 = vst [vmem:[#allocation116_spill] sm:$0xff] %v13557_v46  ;;  %3668 = vmatpush2.msra.mxu0 %v13308_v12  ;;  %v13567_v38 = vand.u32 4294901760, %v13557_v46  ;;  %v17351_v14 = vld [vmem:[#allocation29_spill] sm:$0xff] }
 0x202   :  { %4071 = vmatprep.subr.mxu1 %v4070_v62  ;;  %4091 = vmatprep.mubr.f32.mxu1 %v13479_v58  ;;  %17334 = vst [vmem:[#allocation117_spill] sm:$0xff] %v13563_v57  ;;  %v17341_v62 = vld [vmem:[#allocation17_spill] sm:$0xff] }
 0x203   :  { %4077 = vmatpush2.msra.mxu1 %v4076_v59  ;;  %3670 = vmatprep.subr.mxu0 %v13337_v7  ;;  %17335 = vst [vmem:[#allocation118_spill] sm:$0xff] %v13567_v38  ;;  %v3698_v29 = vsub.f32 %v13557_v46, %v13567_v38 }
 0x204   :  { %4083 = vmatprep.subr.mxu1 %v4082_v33  ;;  %3672 = vmatpush2.msra.mxu0 %v13339_v53  ;;  %v17347_v33 = vld [vmem:[#allocation11_spill] sm:$0xff] }
 0x205   :  { %4089 = vmatpush2.msra.mxu1 %v4088_v37  ;;  %3674 = vmatprep.subr.mxu0 %v13370_v2  ;;  %v13588_v59 = vand.u32 4294901760, %v3698_v29  ;;  %v17348_v37 = vld [vmem:[#allocation32_spill] sm:$0xff]  ;;  %v17350_v29 = vld [vmem:[#allocation25_spill] sm:$0xff] }
 0x206   :  { %4093 = vmatmul.mubr.f32.vlgmr.msra.gmra.mxu1 %v13540_v42  ;;  %4303 = vmatprep.subr.mxu1 %v17336_v5  ;;  %v17356_v42 = vld [vmem:[#allocation33_spill] sm:$0xff] }
 0x207   :  { %3676 = vmatpush2.msra.mxu0 %v13381_v35  ;;  %3694 = vmatprep.mubr.f32.mxu0 %v13563_v57  ;;  %17343 = vst [vmem:[#allocation16_spill] sm:$0xff] %v13588_v59  ;;  %v17355_v57 = vld [vmem:[#allocation30_spill] sm:$0xff] }
 0x208   :  { %4305 = vmatpush1.msra.mxu1 %v17337_v27  ;;  %4433 = vmatprep.mubr.f32.mxu1 %v13533_v40  ;;  %v17353_v40 = vld [vmem:[#allocation21_spill] sm:$0xff] }
 0x209   :  { %3678 = vmatprep.subr.mxu0 %v13396_v10  ;;  %4307 = vmatprep.subr.mxu1 %v17338_v16 }
 0x20a   :  { %3680 = vmatpush2.msra.mxu0 %v13408_v0  ;;  %4309 = vmatpush1.msra.mxu1 %v17339_v24 }
 0x20b   :  { %3682 = vmatprep.subr.mxu0 %v13416_v19  ;;  %4311 = vmatprep.subr.mxu1 %v17340_v22 }
 0x20c   :  { %3684 = vmatpush2.msra.mxu0 %v13431_v39  ;;  %4313 = vmatpush1.msra.mxu1 %v17341_v62 }
 0x20d   :  { %3686 = vmatprep.subr.mxu0 %v13450_v9  ;;  %4315 = vmatprep.subr.mxu1 %v17342_v25 }
 0x20e   :  { %3688 = vmatpush2.msra.mxu0 %v13464_v41  ;;  %4317 = vmatpush1.msra.mxu1 %v17344_v13 }
 0x20f   :  { %3700 = vmatmul.mubr.f32.vlgmr.msra.gmra.mxu0 %v13588_v59  ;;  %4101 = vmatprep.subr.mxu0 %v17345_v51  ;;  %v17354_v59 = vld [vmem:[#allocation26_spill] sm:$0xff]  ;;  %v17366_v51 = vld [vmem:[#allocation51_spill] sm:$0xff] }
 0x210   :  { %4319 = vmatprep.subr.mxu1 %v17346_v20  ;;  %4104 = vmatpush1.msra.mxu0 %v17347_v33  ;;  %v9022_v33 = vpop.f32.mrf.mxu1  ;;  %v17361_v20 = vld [vmem:[#allocation27_spill] sm:$0xff] }
 0x211   :  { %4293 = vmatprep.mubr.f32.mxu0 %v13511_v31  ;;  %4321 = vmatpush1.msra.mxu1 %v17348_v37  ;;  %v17357_v31 = vld [vmem:[#allocation23_spill] sm:$0xff]  ;;  %v17358_v37 = vld [vmem:[#allocation37_spill] sm:$0xff] }
 0x212   :  { %4107 = vmatprep.subr.mxu0 %v17349_v49  ;;  %4323 = vmatprep.subr.mxu1 %v17350_v29  ;;  %v17359_v49 = vld [vmem:[#allocation36_spill] sm:$0xff]  ;;  %v17360_v29 = vld [vmem:[#allocation46_spill] sm:$0xff] }
 0x213   :  { %4110 = vmatpush1.msra.mxu0 %v17351_v14  ;;  %4325 = vmatpush1.msra.mxu1 %v17352_v48  ;;  %v9023_v14 = vpop.f32.mrf.mxu1  ;;  %v17362_v48 = vld [vmem:[#allocation47_spill] sm:$0xff] }
 0x214   :  { %4113 = vmatprep.subr.mxu0 %v17353_v40  ;;  %4327 = vmatprep.subr.mxu1 %v17354_v59  ;;  %v9024_v40 = vadd.f32 %v9023_v14, %v9022_v33  ;;  %v17363_v59 = vld [vmem:[#allocation40_spill] sm:$0xff]  ;;  %v17372_v33 = vld [vmem:[#allocation39_spill] sm:$0xff] }
 0x215   :  { %4116 = vmatpush1.msra.mxu0 %v17355_v57  ;;  %4329 = vmatpush1.msra.mxu1 %v17356_v42  ;;  %v17364_v57 = vld [vmem:[#allocation41_spill] sm:$0xff]  ;;  %v17365_v42 = vld [vmem:[#allocation44_spill] sm:$0xff] }
 0x216   :  { %4119 = vmatprep.subr.mxu0 %v17357_v31  ;;  %4331 = vmatprep.subr.mxu1 %v17358_v37  ;;  %v17367_v31 = vld [vmem:[#allocation34_spill] sm:$0xff]  ;;  %v17368_v37 = vld [vmem:[#allocation52_spill] sm:$0xff]  ;;  %v8987_v14 = vpop.f32.mrf.mxu0 }
 0x217   :  { %4122 = vmatpush1.msra.mxu0 %v17359_v49  ;;  %4333 = vmatpush1.msra.mxu1 %v17360_v29  ;;  %v17369_v49 = vld [vmem:[#allocation45_spill] sm:$0xff]  ;;  %v17370_v29 = vld [vmem:[#allocation56_spill] sm:$0xff] }
 0x218   :  { %4125 = vmatprep.subr.mxu0 %v17361_v20  ;;  %4335 = vmatprep.subr.mxu1 %v17362_v48  ;;  %v17371_v20 = vld [vmem:[#allocation38_spill] sm:$0xff] }
 0x219   :  { %4128 = vmatpush1.msra.mxu0 %v17363_v59  ;;  %4337 = vmatpush1.msra.mxu1 %v17364_v57  ;;  %v17373_v57 = vld [vmem:[#allocation50_spill] sm:$0xff] }
 0x21a   :  { %4131 = vmatprep.subr.mxu0 %v17365_v42  ;;  %4339 = vmatprep.subr.mxu1 %v17366_v51  ;;  %v17374_v42 = vld [vmem:[#allocation48_spill] sm:$0xff]  ;;  %v17375_v51 = vld [vmem:[#allocation63_spill] sm:$0xff]  ;;  %v17376_v59 = vld [vmem:[#allocation42_spill] sm:$0xff] }
 0x21b   :  { %4134 = vmatpush1.msra.mxu0 %v17367_v31  ;;  %4341 = vmatpush1.msra.mxu1 %v17368_v37  ;;  %v8988_v31 = vpop.f32.mrf.mxu0 }
 0x21c   :  { %4137 = vmatprep.subr.mxu0 %v17369_v49  ;;  %4343 = vmatprep.subr.mxu1 %v17370_v29  ;;  %v8989_v49 = vadd.f32 %v8988_v31, %v8987_v14  ;;  %v17377_v29 = vld [vmem:[#allocation43_spill] sm:$0xff]  ;;  %v17385_v31 = vld [vmem:[#allocation81_spill] sm:$0xff]  ;;  %v17386_v14 = vld [vmem:[#allocation64_spill] sm:$0xff] }
 0x21d   :  { %4140 = vmatpush1.msra.mxu0 %v17371_v20  ;;  %4345 = vmatpush1.msra.mxu1 %v17278_v11  ;;  %v17378_v11 = vld [vmem:[#allocation60_spill] sm:$0xff] }
 0x21e   :  { %4143 = vmatprep.subr.mxu0 %v17372_v33  ;;  %4347 = vmatprep.subr.mxu1 %v17373_v57  ;;  %v17379_v20 = vld [vmem:[#allocation68_spill] sm:$0xff]  ;;  %v13632_v33 = vadd.f32 %v9024_v40, %v8989_v49  ;;  %v17380_v57 = vld [vmem:[#allocation61_spill] sm:$0xff]  ;;  %v17390_v49 = vld [vmem:[#allocation78_spill] sm:$0xff] }
 0x21f   :  { %4146 = vmatpush1.msra.mxu0 %v17374_v42  ;;  %4349 = vmatpush1.msra.mxu1 %v17375_v51  ;;  %v17381_v42 = vld [vmem:[#allocation72_spill] sm:$0xff]  ;;  %v17382_v51 = vld [vmem:[#allocation53_spill] sm:$0xff] }
 0x220   :  { %4149 = vmatprep.subr.mxu0 %v17376_v59  ;;  %4351 = vmatprep.subr.mxu1 %v17289_v60  ;;  %v17383_v59 = vld [vmem:[#allocation76_spill] sm:$0xff]  ;;  %v17384_v60 = vld [vmem:[#allocation62_spill] sm:$0xff]  ;;  %v17389_v40 = vld [vmem:[#allocation93_spill] sm:$0xff] }
 0x221   :  { %4152 = vmatpush1.msra.mxu0 %v17377_v29  ;;  %4353 = vmatpush1.msra.mxu1 %v12750_v15  ;;  %v17387_v15 = vld [vmem:[#allocation91_spill] sm:$0xff] }
 0x222   :  { %4155 = vmatprep.subr.mxu0 %v17378_v11  ;;  %4355 = vmatprep.subr.mxu1 %v17379_v20  ;;  %v17388_v11 = vld [vmem:[#allocation77_spill] sm:$0xff] }
 0x223   :  { %4158 = vmatpush1.msra.mxu0 %v17380_v57  ;;  %4357 = vmatpush1.msra.mxu1 %v17381_v42  ;;  %v17391_v57 = vld [vmem:[#allocation59_spill] sm:$0xff] }
 0x224   :  { %4161 = vmatprep.subr.mxu0 %v17382_v51  ;;  %4359 = vmatprep.subr.mxu1 %v17383_v59  ;;  %v17392_v42 = vld [vmem:[#allocation71_spill] sm:$0xff]  ;;  %v17393_v51 = vld [vmem:[#allocation69_spill] sm:$0xff]  ;;  %v17394_v59 = vld [vmem:[#allocation82_spill] sm:$0xff] }
 0x225   :  { %4164 = vmatpush1.msra.mxu0 %v17384_v60  ;;  %4361 = vmatpush1.msra.mxu1 %v17385_v31  ;;  %v17395_v60 = vld [vmem:[#allocation73_spill] sm:$0xff]  ;;  %v17396_v31 = vld [vmem:[#allocation87_spill] sm:$0xff] }
 0x226   :  { %4167 = vmatprep.subr.mxu0 %v17386_v14  ;;  %4363 = vmatprep.subr.mxu1 %v17387_v15  ;;  %v17397_v15 = vld [vmem:[#allocation92_spill] sm:$0xff] }
 0x227   :  { %4170 = vmatpush1.msra.mxu0 %v17388_v11  ;;  %4365 = vmatpush1.msra.mxu1 %v17389_v40  ;;  %v17398_v40 = vld [vmem:[#allocation90_spill] sm:$0xff] }
 0x228   :  { %4173 = vmatprep.subr.mxu0 %v17390_v49  ;;  %4367 = vmatprep.subr.mxu1 %v17391_v57  ;;  %v17399_v57 = vld [vmem:[#allocation65_spill] sm:$0xff] }
 0x229   :  { %4176 = vmatpush1.msra.mxu0 %v17392_v42  ;;  %4369 = vmatpush2.msra.mxu1 %v17393_v51  ;;  %v17400_v51 = vld [vmem:[#allocation66_spill] sm:$0xff] }
 0x22a   :  { %4179 = vmatprep.subr.mxu0 %v17394_v59  ;;  %4371 = vmatprep.subr.mxu1 %v17395_v60  ;;  %v17401_v60 = vld [vmem:[#allocation70_spill] sm:$0xff] }
 0x22b   :  { %4182 = vmatpush1.msra.mxu0 %v17396_v31  ;;  %4373 = vmatpush2.msra.mxu1 %v12949_v61  ;;  %v17402_v61 = vld [vmem:[#allocation75_spill] sm:$0xff] }
 0x22c   :  { %4185 = vmatprep.subr.mxu0 %v17397_v15  ;;  %4375 = vmatprep.subr.mxu1 %v12972_v21  ;;  %v17403_v21 = vld [vmem:[#allocation84_spill] sm:$0xff] }
 0x22d   :  { %4188 = vmatpush1.msra.mxu0 %v17398_v40  ;;  %4377 = vmatpush2.msra.mxu1 %v12974_v47  ;;  %v17404_v47 = vld [vmem:[#allocation8_spill] sm:$0xff] }
 0x22e   :  { %4191 = vmatprep.subr.mxu0 %v17399_v57  ;;  %4379 = vmatprep.subr.mxu1 %v12986_v50  ;;  %v17405_v50 = vld [vmem:[#allocation3_spill] sm:$0xff] }
 0x22f   :  { %4194 = vmatpush1.msra.mxu0 %v17400_v51  ;;  %4381 = vmatpush2.msra.mxu1 %v13030_v52  ;;  %v17406_v52 = vld [vmem:[#allocation12_spill] sm:$0xff] }
 0x230   :  { %4197 = vmatprep.subr.mxu0 %v17401_v60  ;;  %4383 = vmatprep.subr.mxu1 %v13047_v63  ;;  %v17407_v63 = vld [vmem:[#allocation13_spill] sm:$0xff] }
 0x231   :  { %4200 = vmatpush2.msra.mxu0 %v17402_v61  ;;  %4385 = vmatpush2.msra.mxu1 %v13073_v34  ;;  %v17408_v34 = vld [vmem:[#allocation86_spill] sm:$0xff] }
 0x232   :  { %4203 = vmatprep.subr.mxu0 %v17403_v21  ;;  %4387 = vmatprep.subr.mxu1 %v13101_v32  ;;  %v9092_v32 = vpop.f32.mrf.mxu1 }
 0x233   :  { %4206 = vmatpush2.msra.mxu0 %v17404_v47  ;;  %4389 = vmatpush2.msra.mxu1 %v13103_v18  ;;  %v17409_v47 = vld [vmem:[#allocation15_spill] sm:$0xff] }
 0x234   :  { %4209 = vmatprep.subr.mxu0 %v17405_v50  ;;  %4391 = vmatprep.subr.mxu1 %v13122_v26  ;;  %v17410_v50 = vld [vmem:[#allocation6_spill] sm:$0xff] }
 0x235   :  { %4212 = vmatpush2.msra.mxu0 %v17406_v52  ;;  %4393 = vmatpush2.msra.mxu1 %v13131_v36  ;;  %v9093_v52 = vpop.f32.mrf.mxu1  ;;  %v17411_v26 = vld [vmem:[#allocation2_spill] sm:$0xff] }
 0x236   :  { %4215 = vmatprep.subr.mxu0 %v17407_v63  ;;  %4395 = vmatprep.subr.mxu1 %v13133_v6  ;;  %v9094_v63 = vadd.f32 %v9093_v52, %v9092_v32  ;;  %v17412_v6 = vld [vmem:[#allocation58_spill] sm:$0xff]  ;;  %v17417_v52 = vld [vmem:[#allocation96_spill] sm:$0xff]  ;;  %v17418_v32 = vld [vmem:[#allocation97_spill] sm:$0xff] }
 0x237   :  { %4218 = vmatpush2.msra.mxu0 %v17408_v34  ;;  %4397 = vmatpush2.msra.mxu1 %v13152_v17  ;;  %v17413_v17 = vld [vmem:[#allocation57_spill] sm:$0xff] }
 0x238   :  { %4221 = vmatprep.subr.mxu0 %v17409_v47  ;;  %4399 = vmatprep.subr.mxu1 %v13180_v45  ;;  %v17414_v47 = vld [vmem:[#allocation54_spill] sm:$0xff] }
 0x239   :  { %4224 = vmatpush2.msra.mxu0 %v17410_v50  ;;  %4401 = vmatpush2.msra.mxu1 %v13192_v44  ;;  %v17415_v50 = vld [vmem:[#allocation94_spill] sm:$0xff] }
 0x23a   :  { %4227 = vmatprep.subr.mxu0 %v17411_v26  ;;  %4403 = vmatprep.subr.mxu1 %v13232_v54  ;;  %v17416_v26 = vld [vmem:[#allocation95_spill] sm:$0xff] }
 0x23b   :  { %4230 = vmatpush2.msra.mxu0 %v17412_v6  ;;  %4405 = vmatpush2.msra.mxu1 %v13255_v43 }
 0x23c   :  { %4233 = vmatprep.subr.mxu0 %v17413_v17  ;;  %4407 = vmatprep.subr.mxu1 %v13276_v23  ;;  %v9057_v23 = vpop.f32.mrf.mxu0 }
 0x23d   :  { %4236 = vmatpush2.msra.mxu0 %v17414_v47  ;;  %4409 = vmatpush2.msra.mxu1 %v13308_v12  ;;  %v17419_v47 = vld [vmem:[#allocation99_spill] sm:$0xff] }
 0x23e   :  { %4239 = vmatprep.subr.mxu0 %v17415_v50  ;;  %4411 = vmatprep.subr.mxu1 %v13337_v7  ;;  %v17420_v50 = vld [vmem:[#allocation100_spill] sm:$0xff]  ;;  %v17421_v7 = vld [vmem:[#allocation101_spill] sm:$0xff] }
 0x23f   :  { %4242 = vmatpush2.msra.mxu0 %v17416_v26  ;;  %4413 = vmatpush2.msra.mxu1 %v13339_v53  ;;  %v9058_v26 = vpop.f32.mrf.mxu0 }
 0x240   :  { %4245 = vmatprep.subr.mxu0 %v17417_v52  ;;  %4415 = vmatprep.subr.mxu1 %v13370_v2  ;;  %v9059_v52 = vadd.f32 %v9058_v26, %v9057_v23  ;;  %v17423_v26 = vld [vmem:[#allocation107_spill] sm:$0xff]  ;;  %v17425_v23 = vld [vmem:[#allocation10_spill] sm:$0xff] }
 0x241   :  { %4248 = vmatpush2.msra.mxu0 %v17418_v32  ;;  %4417 = vmatpush2.msra.mxu1 %v13381_v35 }
 0x242   :  { %4251 = vmatprep.subr.mxu0 %v17419_v47  ;;  %4419 = vmatprep.subr.mxu1 %v13396_v10  ;;  %v2643_v10 = vadd.f32 %v9059_v52, %v13632_v33  ;;  %v17436_v52 = vld [vmem:[#allocation35_spill] sm:$0xff] }
 0x243   :  { %4254 = vmatpush2.msra.mxu0 %v17420_v50  ;;  %4421 = vmatpush2.msra.mxu1 %v13408_v0  ;;  %v17422_v0 = vld [vmem:[#allocation105_spill] sm:$0xff] }
 0x244   :  { %4257 = vmatprep.subr.mxu0 %v17421_v7  ;;  %4423 = vmatprep.subr.mxu1 %v13416_v19  ;;  %v13711_v19 = vadd.f32 %v9094_v63, %v2643_v10  ;;  %v17424_v63 = vld [vmem:[#allocation109_spill] sm:$0xff]  ;;  %v17426_v10 = vand.u32 4294901760, %v17425_v23 }
 0x245   :  { %4260 = vmatpush2.msra.mxu0 %v13368_v4  ;;  %4425 = vmatpush2.msra.mxu1 %v13431_v39  ;;  %v17437_v23 = vld [vmem:[#allocation21_spill] sm:$0xff] }
 0x246   :  { %4263 = vmatprep.subr.mxu0 %v13391_v55  ;;  %4427 = vmatprep.subr.mxu1 %v13450_v9 }
 0x247   :  { %4266 = vmatpush2.msra.mxu0 %v13394_v1  ;;  %4429 = vmatpush2.msra.mxu1 %v13464_v41 }
 0x248   :  { %4269 = vmatprep.subr.mxu0 %v17422_v0  ;;  %4437 = vmatmul.mubr.f32.vlgmr.msra.gmra.mxu1 %v13567_v38 }
 0x249   :  { %4709 = vmatprep.subr.mxu1 %v17336_v5  ;;  %4272 = vmatpush2.msra.mxu0 %v13429_v8  ;;  %v17427_v5 = vld [vmem:[#allocation31_spill] sm:$0xff] }
 0x24a   :  { %4711 = vmatpush1.msra.mxu1 %v17337_v27  ;;  %4837 = vmatprep.mubr.f32.mxu1 %v13479_v58  ;;  %v17428_v27 = vld [vmem:[#allocation11_spill] sm:$0xff] }
 0x24b   :  { %4275 = vmatprep.subr.mxu0 %v13443_v30  ;;  %4713 = vmatprep.subr.mxu1 %v17338_v16  ;;  %v17429_v16 = vand.u32 4294901760, %v17428_v27  ;;  %v17440_v27 = vld [vmem:[#allocation30_spill] sm:$0xff] }
 0x24c   :  { %4278 = vmatpush2.msra.mxu0 %v17423_v26  ;;  %4715 = vmatpush1.msra.mxu1 %v17339_v24  ;;  %v17430_v24 = vld [vmem:[#allocation32_spill] sm:$0xff] }
 0x24d   :  { %4281 = vmatprep.subr.mxu0 %v13462_v28  ;;  %4717 = vmatprep.subr.mxu1 %v17340_v22  ;;  %v17431_v22 = vld [vmem:[#allocation28_spill] sm:$0xff] }
 0x24e   :  { %4284 = vmatpush2.msra.mxu0 %v17424_v63  ;;  %4719 = vmatpush1.msra.mxu1 %v17341_v62  ;;  %v17432_v62 = vand.u32 4294901760, %v17431_v22 }
 0x24f   :  { %4287 = vmatprep.subr.mxu0 %v13494_v56  ;;  %4721 = vmatprep.subr.mxu1 %v17342_v25  ;;  %v17433_v25 = vld [vmem:[#allocation25_spill] sm:$0xff] }
 0x250   :  { %4290 = vmatpush2.msra.mxu0 %v13502_v3  ;;  %4723 = vmatpush1.msra.mxu1 %v17344_v13  ;;  %v17434_v13 = vld [vmem:[#allocation29_spill] sm:$0xff] }
 0x251   :  { %4296 = vmatmul.mubr.f32.vlgmr.msra.gmra.mxu0 %v13557_v46  ;;  %4446 = vmatprep.subr.mxu0 %v17426_v10  ;;  %v17435_v33 = vand.u32 4294901760, %v17434_v13  ;;  %v17438_v10 = vand.u32 4294901760, %v17437_v23  ;;  %v17442_v46 = vld [vmem:[#allocation33_spill] sm:$0xff] }
 0x252   :  { %4725 = vmatprep.subr.mxu1 %v17427_v5  ;;  %4450 = vmatpush1.msra.mxu0 %v17429_v16  ;;  %v17439_v5 = vld [vmem:[#allocation26_spill] sm:$0xff]  ;;  %v17441_v16 = vand.u32 4294901760, %v17440_v27 }
 0x253   :  { %4700 = vmatprep.mubr.f32.mxu0 %v13479_v58  ;;  %4727 = vmatpush1.msra.mxu1 %v17430_v24  ;;  %v17443_v24 = vld [vmem:[#allocation23_spill] sm:$0xff] }
 0x254   :  { %4454 = vmatprep.subr.mxu0 %v17432_v62  ;;  %4729 = vmatprep.subr.mxu1 %v17433_v25  ;;  %v17444_v22 = vand.u32 4294901760, %v17443_v24  ;;  %v17445_v62 = vld [vmem:[#allocation37_spill] sm:$0xff]  ;;  %v17446_v25 = vld [vmem:[#allocation36_spill] sm:$0xff] }
 0x255   :  { %4458 = vmatpush1.msra.mxu0 %v17435_v33  ;;  %4731 = vmatpush1.msra.mxu1 %v17436_v52  ;;  %v17447_v13 = vand.u32 4294901760, %v17446_v25  ;;  %v17448_v33 = vld [vmem:[#allocation46_spill] sm:$0xff]  ;;  %v17449_v52 = vld [vmem:[#allocation27_spill] sm:$0xff] }
 0x256   :  { %4462 = vmatprep.subr.mxu0 %v17438_v10  ;;  %4733 = vmatprep.subr.mxu1 %v17439_v5  ;;  %v17450_v23 = vand.u32 4294901760, %v17449_v52  ;;  %v9162_v10 = vpop.f32.mrf.mxu1  ;;  %v17451_v5 = vld [vmem:[#allocation40_spill] sm:$0xff]  ;;  %v17457_v25 = vld [vmem:[#allocation34_spill] sm:$0xff]  ;;  %v17459_v52 = vld [vmem:[#allocation45_spill] sm:$0xff] }
 0x257   :  { %4466 = vmatpush1.msra.mxu0 %v17441_v16  ;;  %4735 = vmatpush1.msra.mxu1 %v17442_v46  ;;  %v17452_v27 = vand.u32 4294901760, %v17451_v5  ;;  %v17453_v46 = vld [vmem:[#allocation41_spill] sm:$0xff]  ;;  %v17454_v16 = vld [vmem:[#allocation44_spill] sm:$0xff]  ;;  %v17462_v5 = vld [vmem:[#allocation38_spill] sm:$0xff] }
 0x258   :  { %4470 = vmatprep.subr.mxu0 %v17444_v22  ;;  %4737 = vmatprep.subr.mxu1 %v17445_v62  ;;  %v17455_v24 = vand.u32 4294901760, %v17454_v16  ;;  %v17456_v22 = vld [vmem:[#allocation51_spill] sm:$0xff]  ;;  %v9163_v62 = vpop.f32.mrf.mxu1 }
 0x259   :  { %4474 = vmatpush1.msra.mxu0 %v17447_v13  ;;  %4739 = vmatpush1.msra.mxu1 %v17448_v33  ;;  %v17458_v13 = vand.u32 4294901760, %v17457_v25  ;;  %v9164_v33 = vadd.f32 %v9163_v62, %v9162_v10  ;;  %v17465_v16 = vld [vmem:[#allocation39_spill] sm:$0xff]  ;;  %v17468_v25 = vld [vmem:[#allocation48_spill] sm:$0xff]  ;;  %v17471_v10 = vld [vmem:[#allocation42_spill] sm:$0xff] }
 0x25a   :  { %4478 = vmatprep.subr.mxu0 %v17450_v23  ;;  %4741 = vmatprep.subr.mxu1 %v17362_v48  ;;  %v17460_v48 = vand.u32 4294901760, %v17459_v52  ;;  %v17461_v23 = vld [vmem:[#allocation56_spill] sm:$0xff]  ;;  %v17472_v62 = vand.u32 4294901760, %v17471_v10  ;;  %v17473_v52 = vld [vmem:[#allocation55_spill] sm:$0xff] }
 0x25b   :  { %4482 = vmatpush1.msra.mxu0 %v17452_v27  ;;  %4743 = vmatpush1.msra.mxu1 %v17453_v46  ;;  %v17463_v27 = vand.u32 4294901760, %v17462_v5  ;;  %v17464_v46 = vld [vmem:[#allocation49_spill] sm:$0xff]  ;;  %v17475_v5 = vld [vmem:[#allocation67_spill] sm:$0xff] }
 0x25c   :  { %4486 = vmatprep.subr.mxu0 %v17455_v24  ;;  %4745 = vmatprep.subr.mxu1 %v17456_v22  ;;  %v17466_v24 = vand.u32 4294901760, %v17465_v16  ;;  %v17467_v22 = vld [vmem:[#allocation50_spill] sm:$0xff] }
 0x25d   :  { %4490 = vmatpush1.msra.mxu0 %v17458_v13  ;;  %4747 = vmatpush1.msra.mxu1 %v17368_v37  ;;  %v17469_v13 = vand.u32 4294901760, %v17468_v25  ;;  %v17470_v37 = vld [vmem:[#allocation63_spill] sm:$0xff]  ;;  %v17480_v25 = vld [vmem:[#allocation72_spill] sm:$0xff] }
 0x25e   :  { %4494 = vmatprep.subr.mxu0 %v17460_v48  ;;  %4749 = vmatprep.subr.mxu1 %v17461_v23  ;;  %v9127_v48 = vpop.f32.mrf.mxu0  ;;  %v17474_v23 = vand.u32 4294901760, %v17377_v29  ;;  %v17484_v29 = vld [vmem:[#allocation62_spill] sm:$0xff] }
 0x25f   :  { %4498 = vmatpush1.msra.mxu0 %v17463_v27  ;;  %4751 = vmatpush1.msra.mxu1 %v17464_v46  ;;  %v17476_v27 = vld [vmem:[#allocation60_spill] sm:$0xff] }
 0x260   :  { %4502 = vmatprep.subr.mxu0 %v17466_v24  ;;  %4753 = vmatprep.subr.mxu1 %v17467_v22  ;;  %v17477_v46 = vand.u32 4294901760, %v17476_v27  ;;  %v9128_v16 = vpop.f32.mrf.mxu0  ;;  %v17478_v24 = vld [vmem:[#allocation61_spill] sm:$0xff]  ;;  %v17488_v27 = vld [vmem:[#allocation91_spill] sm:$0xff] }
 0x261   :  { %4506 = vmatpush1.msra.mxu0 %v17469_v13  ;;  %4755 = vmatpush1.msra.mxu1 %v17470_v37  ;;  %v17479_v22 = vand.u32 4294901760, %v17478_v24  ;;  %v9129_v13 = vadd.f32 %v9128_v16, %v9127_v48  ;;  %v17481_v37 = vld [vmem:[#allocation53_spill] sm:$0xff]  ;;  %v17489_v48 = vand.u32 4294901760, %v17388_v11  ;;  %v17497_v11 = vand.u32 4294901760, %v17396_v31 }
 0x262   :  { %4510 = vmatprep.subr.mxu0 %v17472_v62  ;;  %4757 = vmatprep.subr.mxu1 %v17473_v52  ;;  %v17482_v10 = vand.u32 4294901760, %v17481_v37  ;;  %v17483_v62 = vld [vmem:[#allocation76_spill] sm:$0xff]  ;;  %v17485_v52 = vand.u32 4294901760, %v17484_v29  ;;  %v17490_v16 = vld [vmem:[#allocation93_spill] sm:$0xff]  ;;  %v17505_v31 = vand.u32 4294901760, %v17400_v51  ;;  %v17509_v51 = vand.u32 4294901760, %v17402_v61 }
 0x263   :  { %4514 = vmatpush1.msra.mxu0 %v17474_v23  ;;  %4759 = vmatpush1.msra.mxu1 %v17475_v5  ;;  %v17486_v23 = vld [vmem:[#allocation81_spill] sm:$0xff]  ;;  %v2919_v5 = vadd.f32 %v9129_v13, %v13711_v19  ;;  %v17493_v19 = vand.u32 4294901760, %v17392_v42  ;;  %v17495_v13 = vand.u32 4294901760, %v17394_v59  ;;  %v17501_v42 = vand.u32 4294901760, %v17398_v40  ;;  %v17502_v29 = vld [vmem:[#allocation80_spill] sm:$0xff] }
 0x264   :  { %4518 = vmatprep.subr.mxu0 %v17477_v46  ;;  %4761 = vmatprep.subr.mxu1 %v17379_v20  ;;  %v17487_v20 = vand.u32 4294901760, %v17386_v14  ;;  %v3204_v46 = vpop.f32.mrf.mxu1  ;;  %v17494_v14 = vld [vmem:[#allocation69_spill] sm:$0xff]  ;;  %v17503_v59 = vand.u32 4294901760, %v17399_v57  ;;  %v17507_v40 = vand.u32 4294901760, %v17401_v60 }
 0x265   :  { %4522 = vmatpush1.msra.mxu0 %v17479_v22  ;;  %4763 = vmatpush1.msra.mxu1 %v17480_v25  ;;  %v3023_v24 = vadd.f32 %v9164_v33, %v2919_v5  ;;  %v17491_v22 = vand.u32 4294901760, %v17390_v49  ;;  %v17492_v25 = vld [vmem:[#allocation59_spill] sm:$0xff]  ;;  %v17498_v33 = vld [vmem:[#allocation74_spill] sm:$0xff]  ;;  %v17499_v49 = vand.u32 4294901760, %v17397_v15  ;;  %v17506_v5 = vld [vmem:[#allocation4_spill] sm:$0xff] }
 0x266   :  { %4526 = vmatprep.subr.mxu0 %v17482_v10  ;;  %4765 = vmatprep.subr.mxu1 %v17483_v62  ;;  %v9794_v37 = vpop.f32.mrf.mxu1  ;;  %v17496_v10 = vld [vmem:[#allocation73_spill] sm:$0xff]  ;;  %v17500_v62 = vld [vmem:[#allocation79_spill] sm:$0xff] }
 0x267   :  { %4530 = vmatpush1.msra.mxu0 %v17485_v52  ;;  %4767 = vmatpush1.msra.mxu1 %v17486_v23  ;;  %v17504_v52 = vld [vmem:[#allocation83_spill] sm:$0xff]  ;;  %v17513_v37 = vld [vmem:[#allocation8_spill] sm:$0xff] }
 0x268   :  { %4534 = vmatprep.subr.mxu0 %v17487_v20  ;;  %4769 = vmatprep.subr.mxu1 %v17488_v27  ;;  %v141_v20 = vld [vmem:[%s16010_s1 + $0x380] sm:$0xf]  ;;  %v17508_v27 = vld [vmem:[#allocation89_spill] sm:$0xff] }
 0x269   :  { %4538 = vmatpush1.msra.mxu0 %v17489_v48  ;;  %4771 = vmatpush1.msra.mxu1 %v17490_v16  ;;  %v3103_v23 = vpop.f32.mrf.mxu0  ;;  %v140_v48 = vld [vmem:[%s16010_s1 + $0x378] sm:$0xf]  ;;  %v17510_v16 = vld [vmem:[#allocation88_spill] sm:$0xff]  ;;  %v3556_v60 = vsel %vm275_vm1, %v141_v20, 0  ;;  %v17525_v20 = vld [vmem:[#allocation15_spill] sm:$0xff] }
 0x26a   :  { %4542 = vmatprep.subr.mxu0 %v17491_v22  ;;  %4773 = vmatprep.subr.mxu1 %v17492_v25  ;;  %v3104_v15 = vadd.f32 %v3103_v23, %v3023_v24  ;;  %v17511_v22 = vand.u32 4294901760, %v17403_v21  ;;  %v17512_v25 = vld [vmem:[#allocation7_spill] sm:$0xff]  ;;  %v135_v23 = vld [vmem:[%s16010_s1 + $0x350] sm:$0xff] }
 0x26b   :  { %4546 = vmatpush1.msra.mxu0 %v17493_v19  ;;  %4775 = vmatpush2.msra.mxu1 %v17494_v14  ;;  %v9779_v57 = vpop.f32.mrf.mxu0  ;;  %v17514_v19 = vand.u32 4294901760, %v17513_v37  ;;  %v3553_v14 = vsel %vm275_vm1, %v140_v48, 0  ;;  %v138_v21 = vld [vmem:[%s16010_s1 + $0x368] sm:$0xff] }
 0x26c   :  { %4550 = vmatprep.subr.mxu0 %v17495_v13  ;;  %4777 = vmatprep.subr.mxu1 %v17496_v10  ;;  %v3205_v24 = vadd.f32 %v3204_v46, %v3104_v15  ;;  %v17515_v13 = vld [vmem:[#allocation3_spill] sm:$0xff]  ;;  %v17517_v10 = vld [vmem:[#allocation5_spill] sm:$0xff]  ;;  %v17527_v57 = vld [vmem:[#allocation6_spill] sm:$0xff] }
 0x26d   :  { %4554 = vmatpush1.msra.mxu0 %v17497_v11  ;;  %4779 = vmatpush2.msra.mxu1 %v17498_v33  ;;  %v17516_v61 = vand.u32 4294901760, %v17515_v13  ;;  %v17518_v11 = vld [vmem:[#allocation12_spill] sm:$0xff]  ;;  %v134_v15 = vld [vmem:[%s16010_s1 + $0x348] sm:$0xff]  ;;  %v17528_v48 = vand.u32 4294901760, %v17527_v57 }
 0x26e   :  { %4558 = vmatprep.subr.mxu0 %v17499_v49  ;;  %4781 = vmatprep.subr.mxu1 %v17500_v62  ;;  %v17519_v33 = vand.u32 4294901760, %v17518_v11  ;;  %v13857_v49 = vand.u32 4294901760, %v3556_v60  ;;  %v17520_v62 = vld [vmem:[#allocation13_spill] sm:$0xff] }
 0x26f   :  { %4562 = vmatpush1.msra.mxu0 %v17501_v42  ;;  %4783 = vmatpush2.msra.mxu1 %v17502_v29  ;;  %v3367_v46 = vpop.f32.mrf.mxu1  ;;  %v17521_v42 = vand.u32 4294901760, %v17520_v62  ;;  %v17522_v29 = vld [vmem:[#allocation14_spill] sm:$0xff] }
 0x270   :  { %4566 = vmatprep.subr.mxu0 %v17503_v59  ;;  %4785 = vmatprep.subr.mxu1 %v17504_v52  ;;  %v13865_v52 = vand.u32 4294901760, %v3553_v14 }
 0x271   :  { %4570 = vmatpush1.msra.mxu0 %v17505_v31  ;;  %4787 = vmatpush2.msra.mxu1 %v17506_v5  ;;  %v9824_v59 = vpop.f32.mrf.mxu1  ;;  %v17524_v31 = vld [vmem:[#allocation85_spill] sm:$0xff]  ;;  %v13873_v5 = vand.u32 4294901760, %v138_v21 }
 0x272   :  { %4574 = vmatprep.subr.mxu0 %v17507_v40  ;;  %4789 = vmatprep.subr.mxu1 %v17508_v27  ;;  %v17526_v40 = vand.u32 4294901760, %v17525_v20  ;;  %v13901_v37 = vsub.f32 %v3553_v14, %v13865_v52  ;;  %v17532_v14 = vand.u32 4294901760, %v17413_v17  ;;  %v17538_v20 = vld [vmem:[#allocation102_spill] sm:$0xff] }
 0x273   :  { %4578 = vmatpush2.msra.mxu0 %v17509_v51  ;;  %4791 = vmatpush2.msra.mxu1 %v17510_v16  ;;  %v13890_v51 = vsub.f32 %v3556_v60, %v13857_v49  ;;  %v13892_v16 = vand.u32 4294901760, %v135_v23  ;;  %v17531_v60 = vand.u32 4294901760, %v17412_v6  ;;  %v13912_v13 = vsub.f32 %v138_v21, %v13873_v5  ;;  %v17534_v21 = vld [vmem:[#allocation54_spill] sm:$0xff] }
 0x274   :  { %4582 = vmatprep.subr.mxu0 %v17511_v22  ;;  %4793 = vmatprep.subr.mxu1 %v17512_v25  ;;  %v17529_v22 = vld [vmem:[#allocation2_spill] sm:$0xff]  ;;  %v17535_v62 = vand.u32 4294901760, %v17534_v21 }
 0x275   :  { %4586 = vmatpush2.msra.mxu0 %v17514_v19  ;;  %4795 = vmatpush2.msra.mxu1 %v13103_v18  ;;  %v137_v18 = vld [vmem:[%s16010_s1 + $0x360] sm:$0xff]  ;;  %v17530_v25 = vand.u32 4294901760, %v17529_v22  ;;  %v13903_v19 = vand.u32 4294901760, %v134_v15  ;;  %v16523_v17 = vand.u32 4294901760, %v13890_v51  ;;  %v16521_v22 = vand.u32 4294901760, %v13912_v13 }
 0x276   :  { %4590 = vmatprep.subr.mxu0 %v17516_v61  ;;  %4797 = vmatprep.subr.mxu1 %v17517_v10  ;;  %v13881_v27 = vand.u32 4294901760, %v137_v18  ;;  %v17533_v10 = vld [vmem:[#allocation98_spill] sm:$0xff] }
 0x277   :  { %4594 = vmatpush2.msra.mxu0 %v17519_v33  ;;  %4799 = vmatpush2.msra.mxu1 %v13131_v36  ;;  %v17523_v36 = vand.u32 4294901760, %v17408_v34  ;;  %v132_v34 = vld [vmem:[%s16010_s1 + $0x338] sm:$0xff]  ;;  %v3288_v11 = vpop.f32.mrf.mxu0 }
 0x278   :  { %4598 = vmatprep.subr.mxu0 %v17521_v42  ;;  %4801 = vmatprep.subr.mxu1 %v17522_v29  ;;  %v13914_v61 = vand.u32 4294901760, %v132_v34  ;;  %v13923_v6 = vsub.f32 %v137_v18, %v13881_v27  ;;  %v3289_v42 = vadd.f32 %v3288_v11, %v3205_v24  ;;  %v13935_v29 = vsub.f32 %v135_v23, %v13892_v16  ;;  %v125_v18 = vld [vmem:[%s16010_s1 + $0x300] sm:$0xff]  ;;  %v17539_v23 = vld [vmem:[#allocation95_spill] sm:$0xff] }
 0x279   :  { %4602 = vmatpush2.msra.mxu0 %v17523_v36  ;;  %4803 = vmatpush2.msra.mxu1 %v17524_v31  ;;  %v17536_v36 = vld [vmem:[#allocation94_spill] sm:$0xff]  ;;  %v13947_v24 = vsub.f32 %v134_v15, %v13903_v19 }
 0x27a   :  { %4606 = vmatprep.subr.mxu0 %v17526_v40  ;;  %4805 = vmatprep.subr.mxu1 %v13180_v45  ;;  %v131_v45 = vld [vmem:[%s16010_s1 + $0x330] sm:$0xff]  ;;  %v17537_v31 = vand.u32 4294901760, %v17536_v36  ;;  %v9809_v40 = vpop.f32.mrf.mxu0  ;;  %v16520_v15 = vand.u32 4294901760, %v13923_v6 }
 0x27b   :  { %4610 = vmatpush2.msra.mxu0 %v17528_v48  ;;  %4807 = vmatpush2.msra.mxu1 %v13192_v44  ;;  %v129_v44 = vld [vmem:[%s16010_s1 + $0x320] sm:$0xff]  ;;  %v13925_v33 = vand.u32 4294901760, %v131_v45  ;;  %v17540_v48 = vand.u32 4294901760, %v17539_v23 }
 0x27c   :  { %4614 = vmatprep.subr.mxu0 %v17530_v25  ;;  %4809 = vmatprep.subr.mxu1 %v13232_v54  ;;  %v128_v54 = vld [vmem:[%s16010_s1 + $0x318] sm:$0xff]  ;;  %v13937_v59 = vand.u32 4294901760, %v129_v44  ;;  %v13956_v25 = vsub.f32 %v132_v34, %v13914_v61  ;;  %v16519_v34 = vand.u32 4294901760, %v13935_v29 }
 0x27d   :  { %4618 = vmatpush2.msra.mxu0 %v17531_v60  ;;  %4811 = vmatpush2.msra.mxu1 %v13255_v43  ;;  %v126_v43 = vld [vmem:[%s16010_s1 + $0x308] sm:$0xff]  ;;  %v13949_v57 = vand.u32 4294901760, %v128_v54  ;;  %v3368_v60 = vadd.f32 %v3367_v46, %v3289_v42  ;;  %v13965_v21 = vsub.f32 %v131_v45, %v13925_v33  ;;  %v4956_v46 = vsub.f32 %v13890_v51, %v16523_v17  ;;  %v3533_v36 = vpop.f32.mrf.mxu1 }
 0x27e   :  { %4622 = vmatprep.subr.mxu0 %v17532_v14  ;;  %4813 = vmatprep.subr.mxu1 %v17533_v10  ;;  %v13958_v14 = vand.u32 4294901760, %v126_v43  ;;  %v17541_v10 = vld [vmem:[#allocation96_spill] sm:$0xff]  ;;  %v17544_v42 = vand.u32 4294901760, %v17419_v47  ;;  %v17545_v45 = vld [vmem:[#allocation103_spill] sm:$0xff]  ;;  %v4968_v47 = vsub.f32 %v13912_v13, %v16521_v22  ;;  %v16517_v40 = vand.u32 4294901760, %v13956_v25 }
 0x27f   :  { %4626 = vmatpush2.msra.mxu0 %v17535_v62  ;;  %4815 = vmatpush2.msra.mxu1 %v13308_v12  ;;  %v16522_v12 = vand.u32 4294901760, %v13901_v37  ;;  %v17542_v11 = vand.u32 4294901760, %v17541_v10  ;;  %v13967_v62 = vand.u32 4294901760, %v125_v18  ;;  %v17549_v10 = vld [vmem:[#allocation106_spill] sm:$0xff] }
 0x280   :  { %4630 = vmatprep.subr.mxu0 %v17537_v31  ;;  %4817 = vmatprep.subr.mxu1 %v17538_v20  ;;  %v13987_v31 = vsub.f32 %v128_v54, %v13949_v57  ;;  %v17546_v20 = vand.u32 4294901760, %v17420_v50  ;;  %v13997_v23 = vsub.f32 %v126_v43, %v13958_v14  ;;  %v9854_v54 = vpop.f32.mrf.mxu1  ;;  %v4974_v50 = vsub.f32 %v13923_v6, %v16520_v15  ;;  %v55_v15 = vld [vmem:[%s16010_s1 + $0xd0] sm:$0xff] }
 0x281   :  { %4634 = vmatpush2.msra.mxu0 %v17540_v48  ;;  %4819 = vmatpush2.msra.mxu1 %v13339_v53  ;;  %v17543_v53 = vand.u32 4294901760, %v17418_v32  ;;  %v4962_v32 = vsub.f32 %v13901_v37, %v16522_v12  ;;  %v17548_v48 = vand.u32 4294901760, %v17421_v7  ;;  %v4957_v43 = vand.u32 4294901760, %v4956_v46 }
 0x282   :  { %4638 = vmatprep.subr.mxu0 %v17542_v11  ;;  %4821 = vmatprep.subr.mxu1 %v13370_v2  ;;  %v13977_v2 = vsub.f32 %v129_v44, %v13937_v59  ;;  %v17547_v44 = vld [vmem:[#allocation104_spill] sm:$0xff]  ;;  %v16512_v11 = vand.u32 4294901760, %v13965_v21  ;;  %v4980_v7 = vsub.f32 %v13935_v29, %v16519_v34  ;;  %v4969_v46 = vand.u32 4294901760, %v4968_v47 }
 0x283   :  { %4642 = vmatpush2.msra.mxu0 %v17543_v53  ;;  %4823 = vmatpush2.msra.mxu1 %v13381_v35  ;;  %v16518_v35 = vand.u32 4294901760, %v13947_v24  ;;  %v14007_v53 = vsub.f32 %v125_v18, %v13967_v62  ;;  %v16515_v18 = vand.u32 4294901760, %v13987_v31 }
 0x284   :  { %4646 = vmatprep.subr.mxu0 %v17544_v42  ;;  %4825 = vmatprep.subr.mxu1 %v17545_v45  ;;  %v17550_v42 = vand.u32 4294901760, %v13368_v4  ;;  %v16516_v45 = vand.u32 4294901760, %v13977_v2 }
 0x285   :  { %4650 = vmatpush2.msra.mxu0 %v17546_v20  ;;  %4827 = vmatpush2.msra.mxu1 %v17547_v44  ;;  %v17551_v20 = vand.u32 4294901760, %v13391_v55  ;;  %v4963_v44 = vand.u32 4294901760, %v4962_v32  ;;  %v4986_v4 = vsub.f32 %v13947_v24, %v16518_v35  ;;  %v4992_v55 = vsub.f32 %v13956_v25, %v16517_v40  ;;  %v17554_v32 = vld [vmem:[#allocation113_spill] sm:$0xff] }
 0x286   :  { %4654 = vmatprep.subr.mxu0 %v17548_v48  ;;  %4829 = vmatprep.subr.mxu1 %v17549_v10  ;;  %v16514_v48 = vand.u32 4294901760, %v13997_v23  ;;  %v4975_v10 = vand.u32 4294901760, %v4974_v50  ;;  %v16513_v54 = vand.u32 4294901760, %v14007_v53  ;;  %v17557_v50 = vand.u32 4294901760, %v13443_v30 }
 0x287   :  { %4658 = vmatpush2.msra.mxu0 %v17550_v42  ;;  %4831 = vmatpush2.msra.mxu1 %v13431_v39  ;;  %v17552_v39 = vand.u32 4294901760, %v13394_v1  ;;  %v4998_v1 = vsub.f32 %v13965_v21, %v16512_v11  ;;  %v17556_v42 = vand.u32 4294901760, %v13429_v8  ;;  %v5010_v11 = vsub.f32 %v13987_v31, %v16515_v18 }
 0x288   :  { %4662 = vmatprep.subr.mxu0 %v17551_v20  ;;  %4833 = vmatprep.subr.mxu1 %v13450_v9  ;;  %v17553_v9 = vand.u32 4294901760, %v17422_v0  ;;  %v4981_v20 = vand.u32 4294901760, %v4980_v7  ;;  %v5004_v0 = vsub.f32 %v13977_v2, %v16516_v45  ;;  %v4993_v8 = vand.u32 4294901760, %v4992_v55 }
 0x289   :  { %4666 = vmatpush2.msra.mxu0 %v17552_v39  ;;  %4835 = vmatpush2.msra.mxu1 %v13464_v41  ;;  %v17555_v41 = vld [vmem:[#allocation108_spill] sm:$0xff]  ;;  %v4987_v39 = vand.u32 4294901760, %v4986_v4  ;;  %v17560_v30 = vand.u32 4294901760, %v13462_v28  ;;  %v4999_v4 = vand.u32 4294901760, %v4998_v1  ;;  %v17564_v28 = vand.u32 4294901760, %v13502_v3 }
 0x28a   :  { %4670 = vmatprep.subr.mxu0 %v17553_v9  ;;  %4839 = vmatmul.mubr.f32.vlgmr.msra.gmra.mxu1 %v17554_v32  ;;  %v3550_v47 = vsel %vm272_vm2, %v17555_v41, 0  ;;  %v3456_v9 = vpop.f32.mrf.mxu0  ;;  %v5016_v41 = vsub.f32 %v13997_v23, %v16514_v48  ;;  %v5005_v55 = vand.u32 4294901760, %v5004_v0  ;;  %v17567_v3 = vmov 0.0  }
 0x28b   :  { %4958 = vmatprep.subr.mxu1 %v4957_v43  ;;  %4674 = vmatpush2.msra.mxu0 %v17556_v42  ;;  %v17558_v43 = vand.u32 4294901760, %v17423_v26  ;;  %v3457_v7 = vadd.f32 %v3456_v9, %v3368_v60  ;;  %v17561_v26 = vand.u32 4294901760, %v17424_v63 }
 0x28c   :  { %4964 = vmatpush1.msra.mxu1 %v4963_v44  ;;  %4678 = vmatprep.subr.mxu0 %v17557_v50  ;;  %v14054_v44 = vand.u32 4294901760, %v3550_v47  ;;  %v9839_v42 = vpop.f32.mrf.mxu0  ;;  %v17563_v50 = vand.u32 4294901760, %v13494_v56  ;;  %v5017_v1 = vand.u32 4294901760, %v5016_v41 }
 0x28d   :  { %4970 = vmatprep.subr.mxu1 %v4969_v46  ;;  %4682 = vmatpush2.msra.mxu0 %v17558_v43  ;;  %v5022_v46 = vsub.f32 %v14007_v53, %v16513_v54  ;;  %v14063_v60 = vadd.f32 %v3533_v36, %v3457_v7  ;;  %v73_v43 = vld [vmem:[%s16010_s1 + $0x160] sm:$0xff]  ;;  %v118_v7 = vld [vmem:[%s16010_s1 + $0x2c8] sm:$0xff]  ;;  %v115_v42 = vld [vmem:[%s16010_s1 + $0x2b0] sm:$0xff] }
 0x28e   :  { %17559 = vst [vmem:[#allocation9_spill] sm:$0xff] %v14054_v44  ;;  %4976 = vmatpush1.msra.mxu1 %v4975_v10  ;;  %4686 = vmatprep.subr.mxu0 %v17560_v30  ;;  %v5011_v10 = vand.u32 4294901760, %v5010_v11  ;;  %v14070_v9 = vsub.f32 %v3550_v47, %v14054_v44  ;;  %v124_v11 = vld [vmem:[%s16010_s1 + $0x2f8] sm:$0xff]  ;;  %v70_v30 = vld [vmem:[%s16010_s1 + $0x148] sm:$0xff] }
 0x28f   :  { %4982 = vmatprep.subr.mxu1 %v4981_v20  ;;  %4690 = vmatpush2.msra.mxu0 %v17561_v26  ;;  %17562 = vst [vmem:[#allocation19_spill] sm:$0xff] %v14063_v60  ;;  %v5023_v63 = vand.u32 4294901760, %v5022_v46  ;;  %v76_v47 = vld [vmem:[%s16010_s1 + $0x178] sm:$0xff]  ;;  %v121_v20 = vld [vmem:[%s16010_s1 + $0x2e0] sm:$0xff]  ;;  %v14140_v26 = vand.u32 4294901760, %v118_v7  ;;  %v14272_v60 = vand.u32 4294901760, %v55_v15 }
 0x290   :  { %4988 = vmatpush1.msra.mxu1 %v4987_v39  ;;  %4694 = vmatprep.subr.mxu0 %v17563_v50  ;;  %17565 = vst [vmem:[#allocation20_spill] sm:$0xff] %v14070_v9  ;;  %v14077_v56 = vand.u32 4294901760, %v14070_v9  ;;  %v14109_v39 = vand.u32 4294901760, %v124_v11  ;;  %v14123_v41 = vand.u32 4294901760, %v121_v20 }
 0x291   :  { %4994 = vmatprep.subr.mxu1 %v4993_v8  ;;  %4698 = vmatpush2.msra.mxu0 %v17564_v28  ;;  %v14116_v8 = vand.u32 4294901760, %v76_v47  ;;  %v112_v28 = vld [vmem:[%s16010_s1 + $0x298] sm:$0xff]  ;;  %v14179_v48 = vsub.f32 %v118_v7, %v14140_v26  ;;  %v106_v7 = vld [vmem:[%s16010_s1 + $0x268] sm:$0xff] }
 0x292   :  { %5000 = vmatpush1.msra.mxu1 %v4999_v4  ;;  %4702 = vmatmul.mubr.f32.vlgmr.msra.gmra.mxu0 %v17554_v32  ;;  %17566 = vst [vmem:[#allocation24_spill] sm:$0xff] %v14077_v56  ;;  %v4925_v36 = vsub.f32 %v14070_v9, %v14077_v56  ;;  %v14130_v4 = vand.u32 4294901760, %v73_v43  ;;  %v14138_v46 = vsub.f32 %v124_v11, %v14109_v39  ;;  %v14181_v18 = vand.u32 4294901760, %v112_v28 }
 0x293   :  { %4866 = vmatprep.subr.mxu0 %v13857_v49  ;;  %5006 = vmatprep.subr.mxu1 %v5005_v55  ;;  %v67_v55 = vld [vmem:[%s16010_s1 + $0x130] sm:$0xff]  ;;  %v14148_v50 = vsub.f32 %v76_v47, %v14116_v8  ;;  %17571 = vst [vmem:[#allocation47_spill] sm:$0xff] %v14179_v48  ;;  %v14230_v17 = vand.u32 4294901760, %v106_v7 }
 0x294   :  { %4868 = vmatpush1.msra.mxu0 %v13865_v52  ;;  %5012 = vmatpush1.msra.mxu1 %v5011_v10  ;;  %v14107_v0 = vand.u32 4294901760, %v4925_v36  ;;  %v14150_v10 = vand.u32 4294901760, %v70_v30  ;;  %v64_v36 = vld [vmem:[%s16010_s1 + $0x118] sm:$0xff]  ;;  %v14168_v11 = vsub.f32 %v73_v43, %v14130_v4  ;;  %v14170_v47 = vand.u32 4294901760, %v67_v55  ;;  %v61_v43 = vld [vmem:[%s16010_s1 + $0x100] sm:$0xff] }
 0x295   :  { %4870 = vmatprep.subr.mxu0 %v13873_v5  ;;  %5018 = vmatprep.subr.mxu1 %v5017_v1  ;;  %v14158_v1 = vsub.f32 %v121_v20, %v14123_v41  ;;  %v109_v20 = vld [vmem:[%s16010_s1 + $0x280] sm:$0xff]  ;;  %v16524_v54 = vand.u32 4294901760, %v14138_v46  ;;  %v16525_v45 = vand.u32 4294901760, %v14148_v50 }
 0x296   :  { %4872 = vmatpush1.msra.mxu0 %v13881_v27  ;;  %5024 = vmatpush1.msra.mxu1 %v5023_v63  ;;  %17568 = vst [vmem:[#allocation17_spill] sm:$0xff] %v14107_v0  ;;  %v14160_v63 = vand.u32 4294901760, %v115_v42  ;;  %17570 = vst [vmem:[#allocation22_spill] sm:$0xff] %v14168_v11  ;;  %v14190_v40 = vsub.f32 %v70_v30, %v14150_v10  ;;  %v58_v30 = vld [vmem:[%s16010_s1 + $0xe8] sm:$0xff]  ;;  %v14212_v22 = vsub.f32 %v67_v55, %v14170_v47 }
 0x297   :  { %5057 = vmatprep.mubr.f32.mxu1 %v17567_v3  ;;  %4874 = vmatprep.subr.mxu0 %v13892_v16  ;;  %17569 = vst [vmem:[#allocation18_spill] sm:$0xff] %v14158_v1  ;;  %v16527_v35 = vand.u32 4294901760, %v14158_v1  ;;  %v14224_v12 = vsub.f32 %v14138_v46, %v16524_v54  ;;  %v14228_v55 = vsub.f32 %v112_v28, %v14181_v18 }
 0x298   :  { %5059 = vmatmul.mubr.f32.vlgmr.msra.gmra.mxu1 %v14054_v44  ;;  %5183 = vmatprep.subr.mxu1 %v13857_v49  ;;  %17572 = vst [vmem:[#allocation52_spill] sm:$0xff] %v14190_v40  ;;  %v14201_v34 = vsub.f32 %v115_v42, %v14160_v63  ;;  %17574 = vst [vmem:[#allocation68_spill] sm:$0xff] %v14212_v22  ;;  %v103_v42 = vld [vmem:[%s16010_s1 + $0x250] sm:$0xff] }
 0x299   :  { %4876 = vmatpush1.msra.mxu0 %v13903_v19  ;;  %5185 = vmatpush1.msra.mxu1 %v13865_v52  ;;  %17575 = vst [vmem:[#allocation64_spill] sm:$0xff] %v14228_v55  ;;  %v14259_v54 = vand.u32 4294901760, %v103_v42 }
 0x29a   :  { %4878 = vmatprep.subr.mxu0 %v13914_v61  ;;  %5187 = vmatprep.subr.mxu1 %v13873_v5  ;;  %17573 = vst [vmem:[#allocation43_spill] sm:$0xff] %v14201_v34 }
 0x29b   :  { %4880 = vmatpush1.msra.mxu0 %v13925_v33  ;;  %5189 = vmatpush1.msra.mxu1 %v13881_v27 }
 0x29c   :  { %4882 = vmatprep.subr.mxu0 %v13937_v59  ;;  %5191 = vmatprep.subr.mxu1 %v13892_v16 }
 0x29d   :  { %4884 = vmatpush1.msra.mxu0 %v13949_v57  ;;  %5193 = vmatpush1.msra.mxu1 %v13903_v19 }
 0x29e   :  { %4886 = vmatprep.subr.mxu0 %v13958_v14  ;;  %5195 = vmatprep.subr.mxu1 %v13914_v61 }
 0x29f   :  { %4888 = vmatpush1.msra.mxu0 %v13967_v62  ;;  %4921 = vmatprep.mubr.f32.mxu0 %v17567_v3 }
 0x2a0   :  { %5197 = vmatpush1.msra.mxu1 %v13925_v33  ;;  %4927 = vmatmul.mubr.f32.vlgmr.msra.gmra.mxu0 %v14107_v0  ;;  %v17580_v0 = vand.u32 4294901760, %v14179_v48 }
 0x2a1   :  { %5087 = vmatprep.subr.mxu0 %v13890_v51  ;;  %5199 = vmatprep.subr.mxu1 %v13937_v59 }
 0x2a2   :  { %5090 = vmatpush1.msra.mxu0 %v13901_v37  ;;  %5201 = vmatpush1.msra.mxu1 %v13949_v57  ;;  %v14280_v38 = vsub.f32 %v14179_v48, %v17580_v0  ;;  %v52_v0 = vld [vmem:[%s16010_s1 + $0xb8] sm:$0xff] }
 0x2a3   :  { %5093 = vmatprep.subr.mxu0 %v13912_v13  ;;  %5203 = vmatprep.subr.mxu1 %v13958_v14 }
 0x2a4   :  { %5096 = vmatpush1.msra.mxu0 %v13923_v6  ;;  %5205 = vmatpush1.msra.mxu1 %v13967_v62 }
 0x2a5   :  { %5238 = vmatprep.mubr.f32.mxu1 %v17567_v3  ;;  %5099 = vmatprep.subr.mxu0 %v13935_v29 }
 0x2a6   :  { %5242 = vmatmul.mubr.f32.vlgmr.msra.gmra.mxu1 %v14077_v56  ;;  %5377 = vmatprep.subr.mxu1 %v13857_v49  ;;  %v14192_v49 = vand.u32 4294901760, %v64_v36  ;;  %v14284_v56 = vsub.f32 %v106_v7, %v14230_v17  ;;  %v100_v7 = vld [vmem:[%s16010_s1 + $0x238] sm:$0xff] }
 0x2a7   :  { %5102 = vmatpush1.msra.mxu0 %v13947_v24  ;;  %5379 = vmatpush1.msra.mxu1 %v13865_v52  ;;  %v14203_v52 = vand.u32 4294901760, %v109_v20 }
 0x2a8   :  { %5105 = vmatprep.subr.mxu0 %v13956_v25  ;;  %5381 = vmatprep.subr.mxu1 %v13873_v5  ;;  %v14214_v5 = vand.u32 4294901760, %v61_v43  ;;  %v14244_v28 = vsub.f32 %v64_v36, %v14192_v49  ;;  %v17578_v36 = vand.u32 4294901760, %v14168_v11  ;;  %17581 = vst [vmem:[#allocation82_spill] sm:$0xff] %v14284_v56 }
 0x2a9   :  { %5108 = vmatpush1.msra.mxu0 %v13965_v21  ;;  %5383 = vmatpush1.msra.mxu1 %v13881_v27  ;;  %v14246_v27 = vand.u32 4294901760, %v58_v30 }
 0x2aa   :  { %5111 = vmatprep.subr.mxu0 %v13977_v2  ;;  %5385 = vmatprep.subr.mxu1 %v13892_v16  ;;  %v14240_v16 = vsub.f32 %v14148_v50, %v16525_v45  ;;  %17576 = vst [vmem:[#allocation77_spill] sm:$0xff] %v14244_v28  ;;  %v14257_v45 = vsub.f32 %v109_v20, %v14203_v52  ;;  %v5669_v20 = vand.u32 4294901760, %v14224_v12 }
 0x2ab   :  { %5114 = vmatpush1.msra.mxu0 %v13987_v31  ;;  %5387 = vmatpush1.msra.mxu1 %v13903_v19  ;;  %v14253_v19 = vsub.f32 %v14158_v1, %v16527_v35  ;;  %v14270_v35 = vsub.f32 %v61_v43, %v14214_v5  ;;  %v17582_v43 = vand.u32 4294901760, %v13890_v51  ;;  %v14297_v48 = vsub.f32 %v58_v30, %v14246_v27 }
 0x2ac   :  { %5117 = vmatprep.subr.mxu0 %v13997_v23  ;;  %5389 = vmatprep.subr.mxu1 %v13914_v61  ;;  %17577 = vst [vmem:[#allocation78_spill] sm:$0xff] %v14257_v45  ;;  %v14266_v61 = vsub.f32 %v14168_v11, %v17578_v36  ;;  %v16533_v36 = vand.u32 4294901760, %v14228_v55  ;;  %v17585_v51 = vand.u32 4294901760, %v13901_v37  ;;  %v14313_v30 = vsub.f32 %v103_v42, %v14259_v54 }
 0x2ad   :  { %5120 = vmatpush1.msra.mxu0 %v14007_v53  ;;  %5153 = vmatprep.mubr.f32.mxu0 %v17567_v3  ;;  %17579 = vst [vmem:[#allocation71_spill] sm:$0xff] %v14270_v35  ;;  %17584 = vst [vmem:[#allocation87_spill] sm:$0xff] %v14297_v48  ;;  %v17588_v37 = vand.u32 4294901760, %v13912_v13  ;;  %v14329_v42 = vsub.f32 %v55_v15, %v14272_v60  ;;  %v17591_v13 = vand.u32 4294901760, %v13923_v6  ;;  %v14344_v15 = vand.u32 4294901760, %v100_v7 }
 0x2ae   :  { %5391 = vmatpush1.msra.mxu1 %v13925_v33  ;;  %5156 = vmatmul.mubr.f32.vlgmr.msra.gmra.mxu0 %v14070_v9  ;;  %v5557_v33 = vand.u32 4294901760, %v14240_v16  ;;  %v17583_v9 = vand.u32 4294901760, %v14190_v40  ;;  %v17586_v16 = vand.u32 4294901760, %v14201_v34  ;;  %17587 = vst [vmem:[#allocation92_spill] sm:$0xff] %v14313_v30  ;;  %v17592_v6 = vand.u32 4294901760, %v13935_v29 }
 0x2af   :  { %5271 = vmatprep.subr.mxu0 %v17582_v43  ;;  %5393 = vmatprep.subr.mxu1 %v13937_v59  ;;  %v5676_v59 = vand.u32 4294901760, %v14253_v19  ;;  %v17589_v19 = vand.u32 4294901760, %v14212_v22  ;;  %17590 = vst [vmem:[#allocation90_spill] sm:$0xff] %v14329_v42  ;;  %v97_v43 = vld [vmem:[%s16010_s1 + $0x220] sm:$0xff] }
 0x2b0   :  { %v14293_v12 = vsub.f32 %v14190_v40, %v17583_v9  ;;  %5275 = vmatpush1.msra.mxu0 %v17585_v51  ;;  %5395 = vmatpush1.msra.mxu1 %v13949_v57  ;;  %v14309_v9 = vsub.f32 %v14201_v34, %v17586_v16  ;;  %v5564_v57 = vand.u32 4294901760, %v14266_v61  ;;  %v14341_v61 = vsub.f32 %v14228_v55, %v16533_v36  ;;  %v94_v16 = vld [vmem:[%s16010_s1 + $0x208] sm:$0xff]  ;;  %v17612_v34 = vld [vmem:[#allocation117_spill] sm:$0xff] }
 0x2b1   :  { %5279 = vmatprep.subr.mxu0 %v17588_v37  ;;  %5397 = vmatprep.subr.mxu1 %v13958_v14  ;;  %v14325_v51 = vsub.f32 %v14212_v22, %v17589_v19  ;;  %v5683_v14 = vand.u32 4294901760, %v14280_v38  ;;  %v49_v19 = vld [vmem:[%s16010_s1 + $0xa0] sm:$0xff]  ;;  %v14359_v37 = vand.u32 4294901760, %v52_v0  ;;  %v46_v36 = vld [vmem:[%s16010_s1 + $0x88] sm:$0xff]  ;;  %v17595_v55 = vand.u32 4294901760, %v13947_v24 }
 0x2b2   :  { %5283 = vmatpush1.msra.mxu0 %v17591_v13  ;;  %5399 = vmatpush1.msra.mxu1 %v13967_v62  ;;  %v5571_v38 = vand.u32 4294901760, %v14293_v12  ;;  %v17593_v62 = vand.u32 4294901760, %v14244_v28  ;;  %v5690_v29 = vand.u32 4294901760, %v14309_v9  ;;  %v17594_v12 = vand.u32 4294901760, %v14257_v45 }
 0x2b3   :  { %5432 = vmatprep.mubr.f32.mxu1 %v17567_v3  ;;  %5287 = vmatprep.subr.mxu0 %v17592_v6  ;;  %v17596_v9 = vand.u32 4294901760, %v14270_v35  ;;  %v17597_v24 = vand.u32 4294901760, %v13956_v25  ;;  %v17600_v25 = vand.u32 4294901760, %v13965_v21  ;;  %v17603_v21 = vand.u32 4294901760, %v13977_v2 }
 0x2b4   :  { %v14356_v13 = vsub.f32 %v14244_v28, %v17593_v62  ;;  %5434 = vmatmul.mubr.f32.vlgmr.msra.gmra.mxu1 %v14054_v44  ;;  %9242 = vmatprep.subr.mxu1 %v5669_v20  ;;  %v14369_v6 = vsub.f32 %v14257_v45, %v17594_v12  ;;  %v14372_v28 = vand.u32 4294901760, %v97_v43  ;;  %v5578_v20 = vand.u32 4294901760, %v14325_v51  ;;  %v91_v45 = vld [vmem:[%s16010_s1 + $0x1f0] sm:$0xff] }
 0x2b5   :  { %5291 = vmatpush1.msra.mxu0 %v17595_v55  ;;  %9243 = vmatpush3.msra.mxu1 %v5557_v33  ;;  %v14383_v22 = vsub.f32 %v14270_v35, %v17596_v9  ;;  %v14386_v62 = vand.u32 4294901760, %v49_v19  ;;  %v5697_v55 = vand.u32 4294901760, %v14341_v61  ;;  %v17598_v33 = vand.u32 4294901760, %v14284_v56  ;;  %v43_v35 = vld [vmem:[%s16010_s1 + $0x70] sm:$0xff] }
 0x2b6   :  { %5777 = vmatprep.mubr.f32.mxu1 %v13479_v58  ;;  %5295 = vmatprep.subr.mxu0 %v17597_v24  ;;  %v14401_v9 = vsub.f32 %v100_v7, %v14344_v15  ;;  %v14403_v12 = vand.u32 4294901760, %v94_v16  ;;  %v5585_v61 = vand.u32 4294901760, %v14356_v13  ;;  %v17601_v24 = vand.u32 4294901760, %v14297_v48 }
 0x2b7   :  { %v14398_v51 = vsub.f32 %v14284_v56, %v17598_v33  ;;  %9244 = vmatprep.subr.mxu1 %v5676_v59  ;;  %5299 = vmatpush1.msra.mxu0 %v17600_v25  ;;  %v14417_v7 = vsub.f32 %v52_v0, %v14359_v37  ;;  %v14419_v58 = vand.u32 4294901760, %v46_v36  ;;  %v88_v56 = vld [vmem:[%s16010_s1 + $0x1d8] sm:$0xff]  ;;  %v5704_v59 = vand.u32 4294901760, %v14369_v6 }
 0x2b8   :  { %17599 = vst [vmem:[#allocation65_spill] sm:$0xff] %v14401_v9  ;;  %v14414_v33 = vsub.f32 %v14297_v48, %v17601_v24  ;;  %9245 = vmatpush3.msra.mxu1 %v5564_v57  ;;  %5303 = vmatprep.subr.mxu0 %v17603_v21  ;;  %v17604_v13 = vand.u32 4294901760, %v14313_v30  ;;  %v14433_v0 = vsub.f32 %v97_v43, %v14372_v28  ;;  %v14435_v24 = vand.u32 4294901760, %v91_v45  ;;  %v40_v48 = vld [vmem:[%s16010_s1 + $0x58] sm:$0xff] }
 0x2b9   :  { %17602 = vst [vmem:[#allocation66_spill] sm:$0xff] %v14417_v7  ;;  %9246 = vmatprep.subr.mxu1 %v5683_v14  ;;  %v17606_v2 = vand.u32 4294901760, %v13987_v31  ;;  %v5592_v57 = vand.u32 4294901760, %v14383_v22  ;;  %v17607_v6 = vand.u32 4294901760, %v14329_v42  ;;  %v14449_v43 = vsub.f32 %v49_v19, %v14386_v62  ;;  %v37_v19 = vld [vmem:[%s16010_s1 + $0x40] sm:$0xff]  ;;  %5348 = vmatprep.mubr.f32.mxu0 %v17567_v3  ;;  %v31_v3 = vld [vmem:[%s16010_s1 + $0x10] sm:$0xff] }
 0x2ba   :  { %v14430_v25 = vsub.f32 %v14313_v30, %v17604_v13  ;;  %17605 = vst [vmem:[#allocation70_spill] sm:$0xff] %v14433_v0  ;;  %v14451_v13 = vand.u32 4294901760, %v43_v35  ;;  %v85_v30 = vld [vmem:[%s16010_s1 + $0x1c0] sm:$0xff]  ;;  %9247 = vmatpush3.msra.mxu1 %v5571_v38  ;;  %v17609_v31 = vand.u32 4294901760, %v13997_v23  ;;  %v5711_v22 = vand.u32 4294901760, %v14398_v51 }
 0x2bb   :  { %5307 = vmatpush1.msra.mxu0 %v17606_v2  ;;  %v14446_v21 = vsub.f32 %v14329_v42, %v17607_v6  ;;  %17608 = vst [vmem:[#allocation75_spill] sm:$0xff] %v14449_v43  ;;  %v16561_v14 = vand.u32 4294901760, %v14401_v9  ;;  %v14461_v2 = vsub.f32 %v94_v16, %v14403_v12  ;;  %v14463_v6 = vand.u32 4294901760, %v88_v56  ;;  %9248 = vmatprep.subr.mxu1 %v5690_v29  ;;  %v82_v16 = vld [vmem:[%s16010_s1 + $0x1a8] sm:$0xff] }
 0x2bc   :  { %5311 = vmatprep.subr.mxu0 %v17609_v31  ;;  %v17610_v42 = vand.u32 4294901760, %v14007_v53  ;;  %v5599_v23 = vand.u32 4294901760, %v14414_v33  ;;  %v14473_v51 = vsub.f32 %v46_v36, %v14419_v58  ;;  %v14475_v31 = vand.u32 4294901760, %v40_v48  ;;  %9249 = vmatpush3.msra.mxu1 %v5578_v20  ;;  %v34_v36 = vld [vmem:[%s16010_s1 + $0x28] sm:$0xff] }
 0x2bd   :  { %v5718_v29 = vand.u32 4294901760, %v14430_v25  ;;  %v14486_v33 = vand.u32 4294901760, %v85_v30  ;;  %v5606_v38 = vand.u32 4294901760, %v14446_v21  ;;  %v14496_v25 = vsub.f32 %v43_v35, %v14451_v13  ;;  %9250 = vmatprep.subr.mxu1 %v5697_v55 }
 0x2be   :  { %5315 = vmatpush1.msra.mxu0 %v17610_v42  ;;  %17611 = vst [vmem:[#allocation84_spill] sm:$0xff] %v14473_v51  ;;  %v14484_v42 = vsub.f32 %v91_v45, %v14435_v24  ;;  %v14498_v53 = vand.u32 4294901760, %v37_v19  ;;  %v79_v45 = vld [vmem:[%s16010_s1 + $0x190] sm:$0xff]  ;;  %v14509_v20 = vsub.f32 %v88_v56, %v14463_v6  ;;  %v14511_v35 = vand.u32 4294901760, %v82_v16  ;;  %9251 = vmatpush3.msra.mxu1 %v5585_v61 }
 0x2bf   :  { %5350 = vmatmul.mubr.f32.vlgmr.msra.gmra.mxu0 %v14054_v44  ;;  %9207 = vmatprep.subr.mxu0 %v14109_v39  ;;  %v5724_v44 = vsub.f32 %v14401_v9, %v16561_v14  ;;  %v17613_v55 = vand.u32 4294901760, %v14417_v7  ;;  %v14522_v21 = vsub.f32 %v40_v48, %v14475_v31  ;;  %v14524_v56 = vand.u32 4294901760, %v34_v36 }
 0x2c0   :  { %9208 = vmatpush3.msra.mxu0 %v14116_v8  ;;  %5541 = vmatprep.mubr.f32.mxu0 %v17612_v34  ;;  %v17614_v9 = vand.u32 4294901760, %v14433_v0  ;;  %v14532_v61 = vsub.f32 %v85_v30, %v14486_v33  ;;  %v17615_v48 = vand.u32 4294901760, %v14449_v43  ;;  %v17616_v34 = vand.u32 4294901760, %v14461_v2 }
 0x2c1   :  { %v5612_v40 = vsub.f32 %v14417_v7, %v17613_v55  ;;  %9209 = vmatprep.subr.mxu0 %v14123_v41  ;;  %9252 = vmatprep.subr.mxu1 %v5704_v59  ;;  %v14534_v55 = vand.u32 4294901760, %v79_v45  ;;  %v14542_v7 = vsub.f32 %v37_v19, %v14498_v53  ;;  %v5725_v30 = vand.u32 4294901760, %v5724_v44 }
 0x2c2   :  { %v5731_v11 = vsub.f32 %v14433_v0, %v17614_v9  ;;  %9210 = vmatpush3.msra.mxu0 %v14130_v4  ;;  %9253 = vmatpush3.msra.mxu1 %v5592_v57  ;;  %v5619_v14 = vsub.f32 %v14449_v43, %v17615_v48  ;;  %v14544_v9 = vand.u32 4294901760, %v31_v3  ;;  %v5738_v0 = vsub.f32 %v14461_v2, %v17616_v34 }
 0x2c3   :  { %9211 = vmatprep.subr.mxu0 %v14140_v26  ;;  %9254 = vmatprep.subr.mxu1 %v5711_v22  ;;  %v14552_v1 = vsub.f32 %v82_v16, %v14511_v35  ;;  %v5613_v19 = vand.u32 4294901760, %v5612_v40  ;;  %v17617_v48 = vand.u32 4294901760, %v14473_v51  ;;  %v14560_v44 = vsub.f32 %v34_v36, %v14524_v56 }
 0x2c4   :  { %9212 = vmatpush3.msra.mxu0 %v14150_v10  ;;  %9255 = vmatpush3.msra.mxu1 %v5599_v23  ;;  %v5732_v34 = vand.u32 4294901760, %v5731_v11  ;;  %v17618_v16 = vand.u32 4294901760, %v14484_v42  ;;  %v14568_v40 = vsub.f32 %v79_v45, %v14534_v55  ;;  %v17619_v36 = vand.u32 4294901760, %v14496_v25 }
 0x2c5   :  { %v5626_v59 = vsub.f32 %v14473_v51, %v17617_v48  ;;  %9213 = vmatprep.subr.mxu0 %v14160_v63  ;;  %9256 = vmatprep.subr.mxu1 %v5718_v29  ;;  %v5620_v48 = vand.u32 4294901760, %v5619_v14  ;;  %v14576_v11 = vsub.f32 %v31_v3, %v14544_v9  ;;  %v17620_v45 = vand.u32 4294901760, %v14509_v20 }
 0x2c6   :  { %v5745_v57 = vsub.f32 %v14484_v42, %v17618_v16  ;;  %9214 = vmatpush3.msra.mxu0 %v14170_v47  ;;  %9257 = vmatpush3.msra.mxu1 %v5606_v38  ;;  %v5633_v22 = vsub.f32 %v14496_v25, %v17619_v36  ;;  %v5739_v16 = vand.u32 4294901760, %v5738_v0  ;;  %v17621_v36 = vand.u32 4294901760, %v14522_v21 }
 0x2c7   :  { %9215 = vmatprep.subr.mxu0 %v14181_v18  ;;  %9258 = vmatprep.subr.mxu1 %v5725_v30  ;;  %v5752_v23 = vsub.f32 %v14509_v20, %v17620_v45  ;;  %v5627_v14 = vand.u32 4294901760, %v5626_v59  ;;  %v17622_v30 = vand.u32 4294901760, %v14532_v61  ;;  %v17626_v3 = vand.u32 4294901760, %v14568_v40 }
 0x2c8   :  { %9216 = vmatpush3.msra.mxu0 %v14192_v49  ;;  %9259 = vmatpush3.msra.mxu1 %v5613_v19  ;;  %v5640_v29 = vsub.f32 %v14522_v21, %v17621_v36  ;;  %v5746_v0 = vand.u32 4294901760, %v5745_v57  ;;  %v5634_v59 = vand.u32 4294901760, %v5633_v22  ;;  %v17623_v19 = vand.u32 4294901760, %v14542_v7 }
 0x2c9   :  { %9217 = vmatprep.subr.mxu0 %v14203_v52  ;;  %9260 = vmatprep.subr.mxu1 %v5732_v34  ;;  %v5759_v45 = vsub.f32 %v14532_v61, %v17622_v30  ;;  %v5753_v57 = vand.u32 4294901760, %v5752_v23  ;;  %v17624_v34 = vand.u32 4294901760, %v14552_v1  ;;  %v17625_v22 = vand.u32 4294901760, %v14560_v44 }
 0x2ca   :  { %9218 = vmatpush3.msra.mxu0 %v14214_v5  ;;  %9261 = vmatpush3.msra.mxu1 %v5620_v48  ;;  %v5647_v36 = vsub.f32 %v14542_v7, %v17623_v19  ;;  %v5641_v38 = vand.u32 4294901760, %v5640_v29  ;;  %v5773_v23 = vsub.f32 %v14568_v40, %v17626_v3 }
 0x2cb   :  { %9219 = vmatprep.subr.mxu0 %v14230_v17  ;;  %9262 = vmatprep.subr.mxu1 %v5739_v16  ;;  %v5766_v30 = vsub.f32 %v14552_v1, %v17624_v34  ;;  %v5654_v48 = vsub.f32 %v14560_v44, %v17625_v22  ;;  %v5760_v19 = vand.u32 4294901760, %v5759_v45  ;;  %v17627_v34 = vand.u32 4294901760, %v14576_v11  ;;  %v17633_v22 = vld [vmem:[#allocation47_spill] sm:$0xff] }
 0x2cc   :  { %9220 = vmatpush3.msra.mxu0 %v14246_v27  ;;  %9263 = vmatpush3.msra.mxu1 %v5627_v14  ;;  %v5648_v16 = vand.u32 4294901760, %v5647_v36  ;;  %v5774_v3 = vand.u32 4294901760, %v5773_v23  ;;  %v17630_v36 = vld [vmem:[#allocation111_spill] sm:$0xff]  ;;  %v17636_v23 = vld [vmem:[#allocation68_spill] sm:$0xff] }
 0x2cd   :  { %9221 = vmatprep.subr.mxu0 %v14259_v54  ;;  %9264 = vmatprep.subr.mxu1 %v5746_v0  ;;  %v5661_v29 = vsub.f32 %v14576_v11, %v17627_v34  ;;  %v5767_v14 = vand.u32 4294901760, %v5766_v30  ;;  %v5655_v0 = vand.u32 4294901760, %v5654_v48  ;;  %v17632_v30 = vld [vmem:[#allocation22_spill] sm:$0xff]  ;;  %v17634_v48 = vld [vmem:[#allocation52_spill] sm:$0xff]  ;;  %v17638_v34 = vld [vmem:[#allocation77_spill] sm:$0xff] }
 0x2ce   :  { %9222 = vmatpush3.msra.mxu0 %v14272_v60  ;;  %9265 = vmatpush3.msra.mxu1 %v5634_v59  ;;  %v17629_v59 = vld [vmem:[#allocation16_spill] sm:$0xff] }
 0x2cf   :  { %9223 = vmatprep.subr.mxu0 %v14344_v15  ;;  %9266 = vmatprep.subr.mxu1 %v5753_v57  ;;  %v5662_v45 = vand.u32 4294901760, %v5661_v29  ;;  %v17631_v57 = vld [vmem:[#allocation18_spill] sm:$0xff] }
 0x2d0   :  { %9224 = vmatpush3.msra.mxu0 %v14359_v37  ;;  %9267 = vmatpush3.msra.mxu1 %v5641_v38  ;;  %v17628_v38 = vld [vmem:[#allocation112_spill] sm:$0xff]  ;;  %v17639_v29 = vld [vmem:[#allocation78_spill] sm:$0xff] }
 0x2d1   :  { %9225 = vmatprep.subr.mxu0 %v14372_v28  ;;  %9268 = vmatprep.subr.mxu1 %v5760_v19  ;;  %v17635_v19 = vld [vmem:[#allocation43_spill] sm:$0xff] }
 0x2d2   :  { %9226 = vmatpush3.msra.mxu0 %v14386_v62  ;;  %9269 = vmatpush3.msra.mxu1 %v5648_v16  ;;  %v17637_v16 = vld [vmem:[#allocation64_spill] sm:$0xff] }
 0x2d3   :  { %9227 = vmatprep.subr.mxu0 %v14403_v12  ;;  %9270 = vmatprep.subr.mxu1 %v5767_v14  ;;  %v17640_v14 = vld [vmem:[#allocation71_spill] sm:$0xff] }
 0x2d4   :  { %9228 = vmatpush3.msra.mxu0 %v14419_v58  ;;  %9271 = vmatpush3.msra.mxu1 %v5655_v0  ;;  %v17641_v0 = vld [vmem:[#allocation82_spill] sm:$0xff] }
 0x2d5   :  { %9229 = vmatprep.subr.mxu0 %v14435_v24  ;;  %9272 = vmatprep.subr.mxu1 %v5774_v3  ;;  %v17642_v3 = vld [vmem:[#allocation87_spill] sm:$0xff] }
 0x2d6   :  { %9230 = vmatpush3.msra.mxu0 %v14451_v13  ;;  %9273 = vmatpush3.msra.mxu1 %v5662_v45  ;;  %v17643_v45 = vld [vmem:[#allocation92_spill] sm:$0xff] }
 0x2d7   :  { %9231 = vmatprep.subr.mxu0 %v14463_v6  ;;  %5779 = vmatmul.mubr.f32.vlgmr.msra.gmra.mxu1 %v17554_v32  ;;  %v17647_v32 = vld [vmem:[#allocation70_spill] sm:$0xff] }
 0x2d8   :  { %9312 = vmatprep.subr.mxu1 %v14109_v39  ;;  %9232 = vmatpush3.msra.mxu0 %v14475_v31 }
 0x2d9   :  { %9313 = vmatpush3.msra.mxu1 %v14116_v8  ;;  %6021 = vmatprep.mubr.f32.mxu1 %v17628_v38  ;;  %v17644_v38 = vld [vmem:[#allocation90_spill] sm:$0xff] }
 0x2da   :  { %9233 = vmatprep.subr.mxu0 %v14486_v33  ;;  %9314 = vmatprep.subr.mxu1 %v14123_v41 }
 0x2db   :  { %9234 = vmatpush3.msra.mxu0 %v14498_v53  ;;  %9315 = vmatpush3.msra.mxu1 %v14130_v4 }
 0x2dc   :  { %9235 = vmatprep.subr.mxu0 %v14511_v35  ;;  %9316 = vmatprep.subr.mxu1 %v14140_v26 }
 0x2dd   :  { %9236 = vmatpush3.msra.mxu0 %v14524_v56  ;;  %9317 = vmatpush3.msra.mxu1 %v14150_v10 }
 0x2de   :  { %9237 = vmatprep.subr.mxu0 %v14534_v55  ;;  %9318 = vmatprep.subr.mxu1 %v14160_v63 }
 0x2df   :  { %9238 = vmatpush3.msra.mxu0 %v14544_v9  ;;  %9319 = vmatpush3.msra.mxu1 %v14170_v47 }
 0x2e0   :  { %5547 = vmatmul.mubr.f32.vlgmr.msra.gmra.mxu0 %v17629_v59  ;;  %9277 = vmatprep.subr.mxu0 %v14138_v46  ;;  %v17645_v59 = vld [vmem:[#allocation65_spill] sm:$0xff] }
 0x2e1   :  { %9320 = vmatprep.subr.mxu1 %v14181_v18  ;;  %9278 = vmatpush3.msra.mxu0 %v14148_v50 }
 0x2e2   :  { %5914 = vmatprep.mubr.f32.mxu0 %v17630_v36  ;;  %9321 = vmatpush3.msra.mxu1 %v14192_v49  ;;  %v17646_v36 = vld [vmem:[#allocation66_spill] sm:$0xff] }
 0x2e3   :  { %9279 = vmatprep.subr.mxu0 %v17631_v57  ;;  %9322 = vmatprep.subr.mxu1 %v14203_v52 }
 0x2e4   :  { %9280 = vmatpush3.msra.mxu0 %v17632_v30  ;;  %9323 = vmatpush3.msra.mxu1 %v14214_v5 }
 0x2e5   :  { %9281 = vmatprep.subr.mxu0 %v17633_v22  ;;  %9324 = vmatprep.subr.mxu1 %v14230_v17 }
 0x2e6   :  { %9282 = vmatpush3.msra.mxu0 %v17634_v48  ;;  %9325 = vmatpush3.msra.mxu1 %v14246_v27 }
 0x2e7   :  { %9283 = vmatprep.subr.mxu0 %v17635_v19  ;;  %9326 = vmatprep.subr.mxu1 %v14259_v54 }
 0x2e8   :  { %9284 = vmatpush3.msra.mxu0 %v17636_v23  ;;  %9327 = vmatpush3.msra.mxu1 %v14272_v60 }
 0x2e9   :  { %9285 = vmatprep.subr.mxu0 %v17637_v16  ;;  %9328 = vmatprep.subr.mxu1 %v14344_v15 }
 0x2ea   :  { %9286 = vmatpush3.msra.mxu0 %v17638_v34  ;;  %9329 = vmatpush3.msra.mxu1 %v14359_v37 }
 0x2eb   :  { %9287 = vmatprep.subr.mxu0 %v17639_v29  ;;  %9330 = vmatprep.subr.mxu1 %v14372_v28 }
 0x2ec   :  { %9288 = vmatpush3.msra.mxu0 %v17640_v14  ;;  %9331 = vmatpush3.msra.mxu1 %v14386_v62 }
 0x2ed   :  { %9289 = vmatprep.subr.mxu0 %v17641_v0  ;;  %9332 = vmatprep.subr.mxu1 %v14403_v12 }
 0x2ee   :  { %9290 = vmatpush3.msra.mxu0 %v17642_v3  ;;  %9333 = vmatpush3.msra.mxu1 %v14419_v58 }
 0x2ef   :  { %9291 = vmatprep.subr.mxu0 %v17643_v45  ;;  %9334 = vmatprep.subr.mxu1 %v14435_v24 }
 0x2f0   :  { %9292 = vmatpush3.msra.mxu0 %v17644_v38  ;;  %9335 = vmatpush3.msra.mxu1 %v14451_v13 }
 0x2f1   :  { %9293 = vmatprep.subr.mxu0 %v17645_v59  ;;  %9336 = vmatprep.subr.mxu1 %v14463_v6 }
 0x2f2   :  { %9294 = vmatpush3.msra.mxu0 %v17646_v36  ;;  %9337 = vmatpush3.msra.mxu1 %v14475_v31 }
 0x2f3   :  { %9295 = vmatprep.subr.mxu0 %v17647_v32  ;;  %9338 = vmatprep.subr.mxu1 %v14486_v33 }
 0x2f4   :  { %9296 = vmatpush3.msra.mxu0 %v14449_v43  ;;  %9339 = vmatpush3.msra.mxu1 %v14498_v53  ;;  %v17648_v43 = vld [vmem:[#allocation118_spill] sm:$0xff] }
 0x2f5   :  { %9297 = vmatprep.subr.mxu0 %v14461_v2  ;;  %9340 = vmatprep.subr.mxu1 %v14511_v35 }
 0x2f6   :  { %9298 = vmatpush3.msra.mxu0 %v14473_v51  ;;  %9341 = vmatpush3.msra.mxu1 %v14524_v56  ;;  %v17649_v51 = vld [vmem:[#allocation110_spill] sm:$0xff] }
 0x2f7   :  { %9299 = vmatprep.subr.mxu0 %v14484_v42  ;;  %9342 = vmatprep.subr.mxu1 %v14534_v55 }
 0x2f8   :  { %9300 = vmatpush3.msra.mxu0 %v14496_v25  ;;  %9343 = vmatpush3.msra.mxu1 %v14544_v9 }
 0x2f9   :  { %9301 = vmatprep.subr.mxu0 %v14509_v20  ;;  %6025 = vmatmul.mubr.f32.vlgmr.msra.gmra.mxu1 %v17648_v43  ;;  %v17661_v43 = vand.u32 4294901760, %v17639_v29 }
 0x2fa   :  { %9382 = vmatprep.subr.mxu1 %v14109_v39  ;;  %9302 = vmatpush3.msra.mxu0 %v14522_v21  ;;  %v17650_v39 = vld [vmem:[#allocation116_spill] sm:$0xff] }
 0x2fb   :  { %9383 = vmatpush3.msra.mxu1 %v14116_v8  ;;  %6295 = vmatprep.mubr.f32.mxu1 %v17649_v51  ;;  %v17651_v8 = vand.u32 4294901760, %v14138_v46  ;;  %v17654_v46 = vand.u32 4294901760, %v17632_v30  ;;  %v17663_v30 = vand.u32 4294901760, %v17641_v0  ;;  %v17668_v0 = vand.u32 4294901760, %v17646_v36 }
 0x2fc   :  { %9303 = vmatprep.subr.mxu0 %v14532_v61  ;;  %9384 = vmatprep.subr.mxu1 %v14123_v41  ;;  %v17652_v41 = vand.u32 4294901760, %v14148_v50  ;;  %v17655_v50 = vand.u32 4294901760, %v17633_v22 }
 0x2fd   :  { %9304 = vmatpush3.msra.mxu0 %v14542_v7  ;;  %9385 = vmatpush3.msra.mxu1 %v14130_v4  ;;  %v142_v4 = vld [vmem:[%s16010_s1 + $0x388] sm:$0xf] }
 0x2fe   :  { %9305 = vmatprep.subr.mxu0 %v14552_v1  ;;  %9386 = vmatprep.subr.mxu1 %v14140_v26  ;;  %v17653_v26 = vand.u32 4294901760, %v17631_v57  ;;  %v17662_v57 = vand.u32 4294901760, %v17640_v14 }
 0x2ff   :  { %9306 = vmatpush3.msra.mxu0 %v14560_v44  ;;  %9387 = vmatpush3.msra.mxu1 %v14150_v10  ;;  %v17656_v10 = vand.u32 4294901760, %v17634_v48  ;;  %v17664_v48 = vand.u32 4294901760, %v17642_v3  ;;  %v17669_v3 = vand.u32 4294901760, %v17647_v32 }
 0x300   :  { %9307 = vmatprep.subr.mxu0 %v14568_v40  ;;  %9388 = vmatprep.subr.mxu1 %v14160_v63  ;;  %v139_v63 = vld [vmem:[%s16010_s1 + $0x370] sm:$0xff] }
 0x301   :  { %9308 = vmatpush3.msra.mxu0 %v14576_v11  ;;  %9389 = vmatpush3.msra.mxu1 %v14170_v47  ;;  %v17657_v47 = vand.u32 4294901760, %v17635_v19  ;;  %v17665_v19 = vand.u32 4294901760, %v17643_v45 }
 0x302   :  { %5917 = vmatmul.mubr.f32.vlgmr.msra.gmra.mxu0 %v17650_v39  ;;  %9347 = vmatprep.subr.mxu0 %v17651_v8  ;;  %v17673_v39 = vld [vmem:[#allocation84_spill] sm:$0xff] }
 0x303   :  { %9390 = vmatprep.subr.mxu1 %v14181_v18  ;;  %9348 = vmatpush3.msra.mxu0 %v17652_v41  ;;  %v3559_v18 = vsel %vm275_vm1, %v142_v4, 0  ;;  %v17674_v8 = vand.u32 4294901760, %v17673_v39  ;;  %v17676_v4 = vand.u32 4294901760, %v14496_v25  ;;  %v17681_v25 = vand.u32 4294901760, %v14532_v61 }
 0x304   :  { %6191 = vmatprep.mubr.f32.mxu0 %v17649_v51  ;;  %9391 = vmatpush3.msra.mxu1 %v14192_v49  ;;  %v14738_v49 = vand.u32 4294901760, %v3559_v18 }
 0x305   :  { %9349 = vmatprep.subr.mxu0 %v17653_v26  ;;  %9392 = vmatprep.subr.mxu1 %v14203_v52  ;;  %v17658_v52 = vand.u32 4294901760, %v17636_v23  ;;  %v17677_v26 = vand.u32 4294901760, %v14509_v20 }
 0x306   :  { %9350 = vmatpush3.msra.mxu0 %v17654_v46  ;;  %9393 = vmatpush3.msra.mxu1 %v14214_v5  ;;  %v17659_v5 = vand.u32 4294901760, %v17637_v16  ;;  %v14761_v51 = vsub.f32 %v3559_v18, %v14738_v49  ;;  %v17679_v18 = vmov 0.0  }
 0x307   :  { %9351 = vmatprep.subr.mxu0 %v17655_v50  ;;  %9394 = vmatprep.subr.mxu1 %v14230_v17  ;;  %v136_v17 = vld [vmem:[%s16010_s1 + $0x358] sm:$0xff]  ;;  %v17680_v50 = vand.u32 4294901760, %v14522_v21 }
 0x308   :  { %9352 = vmatpush3.msra.mxu0 %v17656_v10  ;;  %9395 = vmatpush3.msra.mxu1 %v14246_v27  ;;  %v14749_v27 = vand.u32 4294901760, %v139_v63  ;;  %v17682_v10 = vand.u32 4294901760, %v14542_v7 }
 0x309   :  { %9353 = vmatprep.subr.mxu0 %v17657_v47  ;;  %9396 = vmatprep.subr.mxu1 %v14259_v54  ;;  %v17660_v54 = vand.u32 4294901760, %v17638_v34  ;;  %v17666_v34 = vand.u32 4294901760, %v17644_v38  ;;  %v17670_v38 = vld [vmem:[#allocation75_spill] sm:$0xff]  ;;  %v17684_v47 = vand.u32 4294901760, %v14560_v44  ;;  %v17687_v44 = vld [vmem:[#allocation9_spill] sm:$0xff] }
 0x30a   :  { %9354 = vmatpush3.msra.mxu0 %v17658_v52  ;;  %9397 = vmatpush3.msra.mxu1 %v14272_v60  ;;  %v133_v60 = vld [vmem:[%s16010_s1 + $0x340] sm:$0xff]  ;;  %v17685_v52 = vand.u32 4294901760, %v14568_v40  ;;  %v6866_v40 = vld [vmem:[%s16011_s2 + $0xf8] sm:$0xff] }
 0x30b   :  { %9355 = vmatprep.subr.mxu0 %v17659_v5  ;;  %9398 = vmatprep.subr.mxu1 %v14344_v15  ;;  %v14763_v15 = vand.u32 4294901760, %v136_v17  ;;  %v14777_v22 = vand.u32 4294901760, %v133_v60  ;;  %v6850_v5 = vld [vmem:[%s16011_s2 + $0x78] sm:$0xff] }
 0x30c   :  { %9356 = vmatpush3.msra.mxu0 %v17660_v54  ;;  %9399 = vmatpush3.msra.mxu1 %v14359_v37  ;;  %v130_v37 = vld [vmem:[%s16010_s1 + $0x328] sm:$0xff]  ;;  %v6865_v54 = vld [vmem:[%s16011_s2 + $0xf0] sm:$0xff] }
 0x30d   :  { %9357 = vmatprep.subr.mxu0 %v17661_v43  ;;  %9400 = vmatprep.subr.mxu1 %v14372_v28  ;;  %v14775_v28 = vsub.f32 %v139_v63, %v14749_v27  ;;  %v14790_v23 = vsub.f32 %v136_v17, %v14763_v15  ;;  %v14792_v16 = vand.u32 4294901760, %v130_v37  ;;  %v17683_v63 = vand.u32 4294901760, %v14552_v1  ;;  %v6864_v43 = vld [vmem:[%s16011_s2 + $0xe8] sm:$0xff] }
 0x30e   :  { %9358 = vmatpush3.msra.mxu0 %v17662_v57  ;;  %9401 = vmatpush3.msra.mxu1 %v14386_v62  ;;  %v127_v62 = vld [vmem:[%s16010_s1 + $0x310] sm:$0xff]  ;;  %v17686_v1 = vand.u32 4294901760, %v14576_v11  ;;  %v14901_v11 = vand.u32 4294901760, %v6866_v40  ;;  %v17688_v57 = vld [vmem:[#allocation17_spill] sm:$0xff] }
 0x30f   :  { %9359 = vmatprep.subr.mxu0 %v17663_v30  ;;  %9402 = vmatprep.subr.mxu1 %v14403_v12  ;;  %v6406_v12 = vand.u32 4294901760, %v14761_v51  ;;  %v6413_v29 = vand.u32 4294901760, %v14775_v28  ;;  %v14804_v14 = vand.u32 4294901760, %v127_v62  ;;  %v14817_v45 = vsub.f32 %v130_v37, %v14792_v16 }
 0x310   :  { %9360 = vmatpush3.msra.mxu0 %v17664_v48  ;;  %9403 = vmatpush3.msra.mxu1 %v14419_v58  ;;  %v17667_v58 = vand.u32 4294901760, %v17645_v59  ;;  %v17671_v59 = vand.u32 4294901760, %v17670_v38  ;;  %v14922_v37 = vand.u32 4294901760, %v6850_v5  ;;  %v14924_v30 = vand.u32 4294901760, %v6865_v54  ;;  %v6848_v48 = vld [vmem:[%s16011_s2 + $0x68] sm:$0xff]  ;;  %v6862_v38 = vld [vmem:[%s16011_s2 + $0xd8] sm:$0xff] }
 0x311   :  { %9361 = vmatprep.subr.mxu0 %v17665_v19  ;;  %9404 = vmatprep.subr.mxu1 %v14435_v24  ;;  %v14802_v24 = vsub.f32 %v133_v60, %v14777_v22  ;;  %v6414_v32 = vsub.f32 %v14775_v28, %v6413_v29  ;;  %v14830_v36 = vsub.f32 %v127_v62, %v14804_v14  ;;  %v16584_v41 = vand.u32 4294901760, %v14817_v45  ;;  %v6849_v60 = vld [vmem:[%s16011_s2 + $0x70] sm:$0xff]  ;;  %v6863_v62 = vld [vmem:[%s16011_s2 + $0xe0] sm:$0xff] }
 0x312   :  { %9362 = vmatpush3.msra.mxu0 %v17666_v34  ;;  %9405 = vmatpush3.msra.mxu1 %v14451_v13  ;;  %v6407_v13 = vsub.f32 %v14761_v51, %v6406_v12  ;;  %v14935_v19 = vsub.f32 %v6866_v40, %v14901_v11  ;;  %v14937_v34 = vand.u32 4294901760, %v6849_v60 }
 0x313   :  { %9363 = vmatprep.subr.mxu0 %v17667_v58  ;;  %9406 = vmatprep.subr.mxu1 %v14463_v6  ;;  %v6420_v6 = vand.u32 4294901760, %v14790_v23  ;;  %v16581_v46 = vand.u32 4294901760, %v14830_v36  ;;  %v14941_v58 = vand.u32 4294901760, %v6864_v43 }
 0x314   :  { %9364 = vmatpush3.msra.mxu0 %v17668_v0  ;;  %9407 = vmatpush3.msra.mxu1 %v14475_v31  ;;  %v17672_v31 = vand.u32 4294901760, %v14461_v2  ;;  %v6408_v2 = vand.u32 4294901760, %v6407_v13  ;;  %17689 = vst [vmem:[#allocation86_spill] sm:$0xff] %v14935_v19  ;;  %v6847_v0 = vld [vmem:[%s16011_s2 + $0x60] sm:$0xff]  ;;  %v14950_v13 = vand.u32 4294901760, %v6863_v62  ;;  %v16580_v39 = vand.u32 4294901760, %v14935_v19 }
 0x315   :  { %9365 = vmatprep.subr.mxu0 %v17669_v3  ;;  %9408 = vmatprep.subr.mxu1 %v14486_v33  ;;  %v6427_v33 = vand.u32 4294901760, %v14802_v24  ;;  %v6442_v61 = vsub.f32 %v14830_v36, %v16581_v46  ;;  %v14948_v3 = vand.u32 4294901760, %v6848_v48 }
 0x316   :  { %9366 = vmatpush3.msra.mxu0 %v17671_v59  ;;  %9409 = vmatpush3.msra.mxu1 %v14498_v53  ;;  %v17675_v53 = vand.u32 4294901760, %v14484_v42  ;;  %v6415_v42 = vand.u32 4294901760, %v6414_v32  ;;  %v14958_v59 = vsub.f32 %v6850_v5, %v14922_v37  ;;  %v6846_v32 = vld [vmem:[%s16011_s2 + $0x58] sm:$0xff] }
 0x317   :  { %9367 = vmatprep.subr.mxu0 %v17672_v31  ;;  %9410 = vmatprep.subr.mxu1 %v14511_v35  ;;  %v6421_v35 = vsub.f32 %v14790_v23, %v6420_v6  ;;  %v6443_v17 = vand.u32 4294901760, %v6442_v61  ;;  %v14961_v31 = vsub.f32 %v6865_v54, %v14924_v30 }
 0x318   :  { %9368 = vmatpush3.msra.mxu0 %v17674_v8  ;;  %9411 = vmatpush3.msra.mxu1 %v14524_v56  ;;  %v17678_v56 = vld [vmem:[#allocation113_spill] sm:$0xff]  ;;  %v14971_v8 = vsub.f32 %v6849_v60, %v14937_v34  ;;  %v6843_v60 = vld [vmem:[%s16011_s2 + $0x40] sm:$0xff] }
 0x319   :  { %9369 = vmatprep.subr.mxu0 %v17675_v53  ;;  %9412 = vmatprep.subr.mxu1 %v14534_v55  ;;  %v6428_v55 = vsub.f32 %v14802_v24, %v6427_v33  ;;  %v6422_v20 = vand.u32 4294901760, %v6421_v35  ;;  %v14973_v53 = vand.u32 4294901760, %v6847_v0  ;;  %v17691_v35 = vld [vmem:[#allocation24_spill] sm:$0xff] }
 0x31a   :  { %9370 = vmatpush3.msra.mxu0 %v17676_v4  ;;  %9413 = vmatpush3.msra.mxu1 %v14544_v9  ;;  %v6435_v9 = vsub.f32 %v14817_v45, %v16584_v41  ;;  %17690 = vst [vmem:[#allocation58_spill] sm:$0xff] %v14971_v8  ;;  %v14981_v4 = vsub.f32 %v6864_v43, %v14941_v58  ;;  %v6841_v41 = vld [vmem:[%s16011_s2 + $0x30] sm:$0xff] }
 0x31b   :  { %9371 = vmatprep.subr.mxu0 %v17677_v26  ;;  %6297 = vmatmul.mubr.f32.vlgmr.msra.gmra.mxu1 %v17678_v56  ;;  %v6429_v21 = vand.u32 4294901760, %v6428_v55  ;;  %v14983_v26 = vand.u32 4294901760, %v6862_v38  ;;  %v14994_v55 = vsub.f32 %v6863_v62, %v14950_v13  ;;  %v15019_v61 = vsub.f32 %v6847_v0, %v14973_v53 }
 0x31c   :  { %9870 = vmatprep.subr.mxu1 %v17679_v18  ;;  %9372 = vmatpush3.msra.mxu0 %v17680_v50  ;;  %v6436_v7 = vand.u32 4294901760, %v6435_v9  ;;  %17692 = vst [vmem:[#allocation57_spill] sm:$0xff] %v14981_v4  ;;  %v14996_v50 = vand.u32 4294901760, %v6846_v32 }
 0x31d   :  { %9871 = vmatpush3.msra.mxu1 %v6408_v2  ;;  %9373 = vmatprep.subr.mxu0 %v17681_v25  ;;  %v6861_v2 = vld [vmem:[%s16011_s2 + $0xd0] sm:$0xff]  ;;  %17694 = vst [vmem:[#allocation99_spill] sm:$0xff] %v14994_v55  ;;  %v6860_v25 = vld [vmem:[%s16011_s2 + $0xc8] sm:$0xff]  ;;  %17695 = vst [vmem:[#allocation100_spill] sm:$0xff] %v15019_v61  ;;  %v16582_v40 = vand.u32 4294901760, %v14994_v55 }
 0x31e   :  { %9872 = vmatprep.subr.mxu1 %v17679_v18  ;;  %9374 = vmatpush3.msra.mxu0 %v17682_v10  ;;  %v15005_v9 = vand.u32 4294901760, %v6861_v2  ;;  %v6844_v10 = vld [vmem:[%s16011_s2 + $0x48] sm:$0xff]  ;;  %v15039_v5 = vsub.f32 %v6846_v32, %v14996_v50 }
 0x31f   :  { %9873 = vmatpush3.msra.mxu1 %v6415_v42  ;;  %9375 = vmatprep.subr.mxu0 %v17683_v63  ;;  %v14991_v42 = vsub.f32 %v6848_v48, %v14948_v3  ;;  %v15015_v63 = vsub.f32 %v14935_v19, %v16580_v39  ;;  %v15041_v54 = vand.u32 4294901760, %v6844_v10 }
 0x320   :  { %9874 = vmatprep.subr.mxu1 %v17679_v18  ;;  %9376 = vmatpush3.msra.mxu0 %v17684_v47  ;;  %17697 = vst [vmem:[#allocation105_spill] sm:$0xff] %v15039_v5 }
 0x321   :  { %9875 = vmatpush3.msra.mxu1 %v6422_v20  ;;  %9377 = vmatprep.subr.mxu0 %v17685_v52  ;;  %17693 = vst [vmem:[#allocation97_spill] sm:$0xff] %v14991_v42  ;;  %v16578_v20 = vand.u32 4294901760, %v14958_v59  ;;  %v6859_v52 = vld [vmem:[%s16011_s2 + $0xc0] sm:$0xff]  ;;  %v7112_v62 = vand.u32 4294901760, %v15015_v63 }
 0x322   :  { %9876 = vmatprep.subr.mxu1 %v17679_v18  ;;  %9378 = vmatpush3.msra.mxu0 %v17686_v1  ;;  %v15032_v1 = vand.u32 4294901760, %v6860_v25  ;;  %v15061_v48 = vand.u32 4294901760, %v6859_v52 }
 0x323   :  { %9877 = vmatpush3.msra.mxu1 %v6429_v21  ;;  %6193 = vmatmul.mubr.f32.vlgmr.msra.gmra.mxu0 %v17678_v56  ;;  %v6845_v56 = vld [vmem:[%s16011_s2 + $0x50] sm:$0xff]  ;;  %v16576_v21 = vand.u32 4294901760, %v14971_v8 }
 0x324   :  { %9855 = vmatprep.subr.mxu0 %v17679_v18  ;;  %9878 = vmatprep.subr.mxu1 %v17679_v18  ;;  %v15021_v47 = vand.u32 4294901760, %v6845_v56  ;;  %v15115_v46 = vsub.f32 %v6859_v52, %v15061_v48  ;;  %v6857_v52 = vld [vmem:[%s16011_s2 + $0xb0] sm:$0xff] }
 0x325   :  { %9856 = vmatpush3.msra.mxu0 %v14738_v49  ;;  %9879 = vmatpush3.msra.mxu1 %v6436_v7  ;;  %v15030_v7 = vsub.f32 %v6862_v38, %v14983_v26  ;;  %v15070_v0 = vsub.f32 %v14971_v8, %v16576_v21  ;;  %v16583_v38 = vand.u32 4294901760, %v15019_v61  ;;  %v15087_v21 = vand.u32 4294901760, %v6843_v60 }
 0x326   :  { %9857 = vmatprep.subr.mxu0 %v17679_v18  ;;  %9880 = vmatprep.subr.mxu1 %v17679_v18  ;;  %v15074_v32 = vsub.f32 %v6845_v56, %v15021_v47  ;;  %v6858_v56 = vld [vmem:[%s16011_s2 + $0xb8] sm:$0xff]  ;;  %17703 = vst [vmem:[#allocation11_spill] sm:$0xff] %v15115_v46 }
 0x327   :  { %9858 = vmatpush3.msra.mxu0 %v14749_v27  ;;  %9881 = vmatpush3.msra.mxu1 %v6443_v17  ;;  %17696 = vst [vmem:[#allocation101_spill] sm:$0xff] %v15030_v7  ;;  %v16579_v17 = vand.u32 4294901760, %v14991_v42  ;;  %v16586_v63 = vand.u32 4294901760, %v15030_v7 }
 0x328   :  { %9882 = vmatprep.mubr.msk.f32.mxu1 %vm10163_vm3, %v17679_v18  ;;  %9859 = vmatprep.subr.mxu0 %v17679_v18  ;;  %17699 = vst [vmem:[#allocation109_spill] sm:$0xff] %v15074_v32 }
 0x329   :  { %9883 = vmatmul.mubr.f32.vlgmr.msra.gmra.mxu1 %v17687_v44  ;;  %9900 = vmatprep.subr.mxu1 %v17679_v18 }
 0x32a   :  { %9860 = vmatpush3.msra.mxu0 %v14763_v15  ;;  %9901 = vmatpush3.msra.mxu1 %v14738_v49 }
 0x32b   :  { %9861 = vmatprep.subr.mxu0 %v17679_v18  ;;  %9902 = vmatprep.subr.mxu1 %v17679_v18 }
 0x32c   :  { %9862 = vmatpush3.msra.mxu0 %v14777_v22  ;;  %9903 = vmatpush3.msra.mxu1 %v14749_v27 }
 0x32d   :  { %9863 = vmatprep.subr.mxu0 %v17679_v18  ;;  %9904 = vmatprep.subr.mxu1 %v17679_v18 }
 0x32e   :  { %9864 = vmatpush3.msra.mxu0 %v14792_v16  ;;  %9905 = vmatpush3.msra.mxu1 %v14763_v15 }
 0x32f   :  { %9865 = vmatprep.subr.mxu0 %v17679_v18  ;;  %9906 = vmatprep.subr.mxu1 %v17679_v18 }
 0x330   :  { %9866 = vmatpush3.msra.mxu0 %v14804_v14  ;;  %9867 = vmatprep.mubr.msk.f32.mxu0 %vm10163_vm3, %v17679_v18 }
 0x331   :  { %9907 = vmatpush3.msra.mxu1 %v14777_v22  ;;  %9868 = vmatmul.mubr.f32.vlgmr.msra.gmra.mxu0 %v17688_v57  ;;  %v15059_v57 = vsub.f32 %v6861_v2, %v15005_v9  ;;  %v17700_v2 = vld [vmem:[#allocation20_spill] sm:$0xff] }
 0x332   :  { %9885 = vmatprep.subr.mxu0 %v17679_v18  ;;  %9908 = vmatprep.subr.mxu1 %v17679_v18 }
 0x333   :  { %9886 = vmatpush3.msra.mxu0 %v14761_v51  ;;  %9909 = vmatpush3.msra.mxu1 %v14792_v16  ;;  %17698 = vst [vmem:[#allocation107_spill] sm:$0xff] %v15059_v57  ;;  %v16587_v39 = vand.u32 4294901760, %v15059_v57  ;;  %v7007_v51 = vand.u32 4294901760, %v15070_v0  ;;  %v6840_v0 = vld [vmem:[%s16011_s2 + $0x28] sm:$0xff] }
 0x334   :  { %9887 = vmatprep.subr.mxu0 %v17679_v18  ;;  %9910 = vmatprep.subr.mxu1 %v17679_v18 }
 0x335   :  { %9888 = vmatpush3.msra.mxu0 %v14775_v28  ;;  %9911 = vmatpush3.msra.mxu1 %v14804_v14 }
 0x336   :  { %9912 = vmatprep.mubr.msk.f32.mxu1 %vm10163_vm3, %v17679_v18  ;;  %9889 = vmatprep.subr.mxu0 %v17679_v18 }
 0x337   :  { %9913 = vmatmul.mubr.f32.vlgmr.msra.gmra.mxu1 %v17691_v35  ;;  %9930 = vmatprep.subr.mxu1 %v17679_v18 }
 0x338   :  { %9890 = vmatpush3.msra.mxu0 %v14790_v23  ;;  %9931 = vmatpush3.msra.mxu1 %v14738_v49  ;;  %v16575_v49 = vand.u32 4294901760, %v14961_v31 }
 0x339   :  { %9891 = vmatprep.subr.mxu0 %v17679_v18  ;;  %9932 = vmatprep.subr.mxu1 %v17679_v18 }
 0x33a   :  { %9892 = vmatpush3.msra.mxu0 %v14802_v24  ;;  %9933 = vmatpush3.msra.mxu1 %v14749_v27  ;;  %v16577_v27 = vand.u32 4294901760, %v14981_v4  ;;  %v15056_v43 = vsub.f32 %v14961_v31, %v16575_v49  ;;  %v15085_v49 = vsub.f32 %v6860_v25, %v15032_v1  ;;  %v15102_v25 = vsub.f32 %v14994_v55, %v16582_v40  ;;  %v6842_v40 = vld [vmem:[%s16011_s2 + $0x38] sm:$0xff] }
 0x33b   :  { %9893 = vmatprep.subr.mxu0 %v17679_v18  ;;  %9934 = vmatprep.subr.mxu1 %v17679_v18 }
 0x33c   :  { %9894 = vmatpush3.msra.mxu0 %v14817_v45  ;;  %9935 = vmatpush3.msra.mxu1 %v14763_v15  ;;  %v15051_v15 = vsub.f32 %v14958_v59, %v16578_v20  ;;  %v15081_v35 = vsub.f32 %v14981_v4, %v16577_v27  ;;  %17701 = vst [vmem:[#allocation10_spill] sm:$0xff] %v15085_v49 }
 0x33d   :  { %9895 = vmatprep.subr.mxu0 %v17679_v18  ;;  %9936 = vmatprep.subr.mxu1 %v17679_v18  ;;  %v15106_v27 = vsub.f32 %v6844_v10, %v15041_v54  ;;  %v15129_v10 = vand.u32 4294901760, %v6858_v56 }
 0x33e   :  { %9896 = vmatpush3.msra.mxu0 %v14830_v36  ;;  %9897 = vmatprep.mubr.msk.f32.mxu0 %vm10163_vm3, %v17679_v18  ;;  %v7000_v20 = vand.u32 4294901760, %v15051_v15  ;;  %v7126_v15 = vand.u32 4294901760, %v15081_v35  ;;  %v6856_v35 = vld [vmem:[%s16011_s2 + $0xa8] sm:$0xff] }
 0x33f   :  { %9937 = vmatpush3.msra.mxu1 %v14777_v22  ;;  %9898 = vmatmul.mubr.f32.vlgmr.msra.gmra.mxu0 %v17700_v2  ;;  %v15097_v22 = vsub.f32 %v14991_v42, %v16579_v17  ;;  %v16585_v2 = vand.u32 4294901760, %v15039_v5  ;;  %17702 = vst [vmem:[#allocation31_spill] sm:$0xff] %v15106_v27  ;;  %v7119_v17 = vand.u32 4294901760, %v15056_v43  ;;  %v15141_v43 = vsub.f32 %v15030_v7, %v16586_v63  ;;  %v6855_v63 = vld [vmem:[%s16011_s2 + $0xa0] sm:$0xff]  ;;  %v6838_v7 = vld [vmem:[%s16011_s2 + $0x18] sm:$0xff] }
 0x340   :  { %9915 = vmatprep.subr.mxu0 %v17679_v18  ;;  %9938 = vmatprep.subr.mxu1 %v17679_v18 }
 0x341   :  { %9916 = vmatpush3.msra.mxu0 %v6406_v12  ;;  %9939 = vmatpush3.msra.mxu1 %v14792_v16  ;;  %v15126_v12 = vsub.f32 %v15019_v61, %v16583_v38  ;;  %v16590_v16 = vand.u32 4294901760, %v15074_v32  ;;  %v15145_v38 = vsub.f32 %v6843_v60, %v15087_v21  ;;  %v7014_v28 = vand.u32 4294901760, %v15097_v22 }
 0x342   :  { %9917 = vmatprep.subr.mxu0 %v17679_v18  ;;  %9940 = vmatprep.subr.mxu1 %v17679_v18  ;;  %v15160_v60 = vand.u32 4294901760, %v6842_v40  ;;  %v7133_v22 = vand.u32 4294901760, %v15102_v25  ;;  %v15190_v25 = vsub.f32 %v6858_v56, %v15129_v10  ;;  %v6854_v56 = vld [vmem:[%s16011_s2 + $0x98] sm:$0xff] }
 0x343   :  { %9918 = vmatpush3.msra.mxu0 %v6413_v29  ;;  %9941 = vmatpush3.msra.mxu1 %v14804_v14  ;;  %17704 = vst [vmem:[#allocation32_spill] sm:$0xff] %v15145_v38  ;;  %v15157_v29 = vsub.f32 %v15039_v5, %v16585_v2  ;;  %v15172_v2 = vsub.f32 %v15059_v57, %v16587_v39  ;;  %v15175_v14 = vand.u32 4294901760, %v6857_v52  ;;  %v7021_v23 = vand.u32 4294901760, %v15126_v12  ;;  %v6839_v5 = vld [vmem:[%s16011_s2 + $0x20] sm:$0xff] }
 0x344   :  { %9942 = vmatprep.mubr.msk.f32.mxu1 %vm10163_vm3, %v17679_v18  ;;  %9919 = vmatprep.subr.mxu0 %v17679_v18  ;;  %17705 = vst [vmem:[#allocation28_spill] sm:$0xff] %v15190_v25  ;;  %v15192_v39 = vand.u32 4294901760, %v6841_v41  ;;  %v7140_v12 = vand.u32 4294901760, %v15141_v43  ;;  %v17706_v57 = vand.u32 4294901760, %v15085_v49  ;;  %v15221_v43 = vand.u32 4294901760, %v6840_v0 }
 0x345   :  { %9943 = vmatmul.mubr.f32.vlgmr.msra.gmra.mxu1 %v17687_v44  ;;  %9920 = vmatpush3.msra.mxu0 %v6420_v6  ;;  %v15187_v6 = vsub.f32 %v15074_v32, %v16590_v16  ;;  %v15206_v32 = vand.u32 4294901760, %v6856_v35  ;;  %v7028_v24 = vand.u32 4294901760, %v15157_v29  ;;  %v17710_v29 = vand.u32 4294901760, %v15115_v46 }
 0x346   :  { %9921 = vmatprep.subr.mxu0 %v17679_v18  ;;  %9927 = vmatprep.mubr.msk.f32.mxu0 %vm10163_vm3, %v17679_v18  ;;  %v15203_v16 = vsub.f32 %v15085_v49, %v17706_v57  ;;  %v15219_v57 = vsub.f32 %v6842_v40, %v15160_v60  ;;  %v17709_v49 = vand.u32 4294901760, %v14817_v45  ;;  %v15235_v40 = vsub.f32 %v6857_v52, %v15175_v14  ;;  %v6853_v52 = vld [vmem:[%s16011_s2 + $0x90] sm:$0xff] }
 0x347   :  { %9922 = vmatpush3.msra.mxu0 %v6427_v33  ;;  %9494 = vmatprep.subr.mxu1 %v7112_v62  ;;  %v17707_v33 = vand.u32 4294901760, %v15106_v27  ;;  %v7035_v45 = vand.u32 4294901760, %v15187_v6 }
 0x348   :  { %9923 = vmatprep.subr.mxu0 %v17679_v18  ;;  %9495 = vmatpush3.msra.mxu1 %v7000_v20  ;;  %17708 = vst [vmem:[#allocation25_spill] sm:$0xff] %v15219_v57  ;;  %v7147_v20 = vand.u32 4294901760, %v15172_v2  ;;  %17711 = vst [vmem:[#allocation29_spill] sm:$0xff] %v15235_v40  ;;  %v15248_v2 = vand.u32 4294901760, %v6839_v5  ;;  %v17717_v55 = vand.u32 4294901760, %v15235_v40 }
 0x349   :  { %v15216_v62 = vsub.f32 %v15106_v27, %v17707_v33  ;;  %9924 = vmatpush3.msra.mxu0 %v17709_v49  ;;  %9496 = vmatprep.subr.mxu1 %v7119_v17  ;;  %v15232_v33 = vsub.f32 %v15115_v46, %v17710_v29  ;;  %v15237_v27 = vand.u32 4294901760, %v6855_v63  ;;  %v15246_v17 = vsub.f32 %v6841_v41, %v15192_v39  ;;  %v6837_v46 = vld [vmem:[%s16011_s2 + $0x10] sm:$0xff] }
 0x34a   :  { %9925 = vmatprep.subr.mxu0 %v17679_v18  ;;  %9497 = vmatpush3.msra.mxu1 %v7007_v51  ;;  %v17712_v29 = vand.u32 4294901760, %v14830_v36  ;;  %v7154_v18 = vand.u32 4294901760, %v15203_v16  ;;  %v17713_v51 = vand.u32 4294901760, %v15145_v38  ;;  %v15262_v41 = vsub.f32 %v6856_v35, %v15206_v32  ;;  %v6852_v35 = vld [vmem:[%s16011_s2 + $0x88] sm:$0xff] }
 0x34b   :  { %9498 = vmatprep.subr.mxu1 %v7126_v15  ;;  %v15264_v49 = vand.u32 4294901760, %v6854_v56  ;;  %v7042_v36 = vand.u32 4294901760, %v15216_v62  ;;  %v15273_v15 = vsub.f32 %v6840_v0, %v15221_v43  ;;  %v15286_v62 = vand.u32 4294901760, %v6853_v52  ;;  %v6836_v0 = vld [vmem:[%s16011_s2 + $0x8] sm:$0xff] }
 0x34c   :  { %9926 = vmatpush3.msra.mxu0 %v17712_v29  ;;  %v15259_v6 = vsub.f32 %v15145_v38, %v17713_v51  ;;  %9499 = vmatpush3.msra.mxu1 %v7014_v28  ;;  %v15275_v29 = vand.u32 4294901760, %v6838_v7  ;;  %v7161_v51 = vand.u32 4294901760, %v15232_v33  ;;  %v15284_v28 = vsub.f32 %v6855_v63, %v15237_v27  ;;  %v6851_v38 = vld [vmem:[%s16011_s2 + $0x80] sm:$0xff] }
 0x34d   :  { %9928 = vmatmul.mubr.f32.vlgmr.msra.gmra.mxu0 %v17687_v44  ;;  %9500 = vmatprep.subr.mxu1 %v7133_v22  ;;  %v17714_v22 = vand.u32 4294901760, %v15190_v25  ;;  %v15297_v44 = vsub.f32 %v6839_v5, %v15248_v2  ;;  %v15299_v63 = vand.u32 4294901760, %v6837_v46  ;;  %v15310_v33 = vand.u32 4294901760, %v6852_v35  ;;  %v6835_v5 = vld [vmem:[%s16011_s2] sm:$0xff] }
 0x34e   :  { %9459 = vmatprep.subr.mxu0 %v14901_v11  ;;  %9501 = vmatpush3.msra.mxu1 %v7021_v23  ;;  %v7049_v23 = vand.u32 4294901760, %v15259_v6  ;;  %v15321_v61 = vsub.f32 %v6838_v7, %v15275_v29  ;;  %v15331_v4 = vsub.f32 %v6853_v52, %v15286_v62  ;;  %v17719_v7 = vand.u32 4294901760, %v15246_v17 }
 0x34f   :  { %9460 = vmatpush3.msra.mxu0 %v14922_v37  ;;  %v7167_v16 = vsub.f32 %v15190_v25, %v17714_v22  ;;  %9502 = vmatprep.subr.mxu1 %v7140_v12  ;;  %v15308_v22 = vsub.f32 %v6854_v56, %v15264_v49  ;;  %v17715_v12 = vand.u32 4294901760, %v15219_v57  ;;  %v15323_v56 = vand.u32 4294901760, %v6836_v0 }
 0x350   :  { %9461 = vmatprep.subr.mxu0 %v14924_v30  ;;  %9503 = vmatpush3.msra.mxu1 %v7028_v24  ;;  %17716 = vst [vmem:[#allocation35_spill] sm:$0xff] %v15321_v61  ;;  %v7174_v24 = vsub.f32 %v15235_v40, %v17717_v55  ;;  %17718 = vst [vmem:[#allocation21_spill] sm:$0xff] %v15331_v4  ;;  %v15343_v55 = vand.u32 4294901760, %v6835_v5  ;;  %v17721_v42 = vand.u32 4294901760, %v15262_v41 }
 0x351   :  { %9462 = vmatpush3.msra.mxu0 %v14937_v34  ;;  %v7055_v25 = vsub.f32 %v15219_v57, %v17715_v12  ;;  %9504 = vmatprep.subr.mxu1 %v7147_v20  ;;  %v15333_v12 = vand.u32 4294901760, %v6851_v38  ;;  %v7062_v20 = vsub.f32 %v15246_v17, %v17719_v7  ;;  %v15341_v57 = vsub.f32 %v6837_v46, %v15299_v63 }
 0x352   :  { %9463 = vmatprep.subr.mxu0 %v14941_v58  ;;  %9505 = vmatpush3.msra.mxu1 %v7035_v45  ;;  %v7168_v52 = vand.u32 4294901760, %v7167_v16  ;;  %v7181_v45 = vsub.f32 %v15262_v41, %v17721_v42  ;;  %v15351_v8 = vsub.f32 %v6852_v35, %v15310_v33  ;;  %v17723_v7 = vand.u32 4294901760, %v15273_v15 }
 0x353   :  { %9464 = vmatpush3.msra.mxu0 %v14948_v3  ;;  %17720 = vst [vmem:[#allocation26_spill] sm:$0xff] %v15341_v57  ;;  %9506 = vmatprep.subr.mxu1 %v7154_v18  ;;  %v7056_v46 = vand.u32 4294901760, %v7055_v25  ;;  %v15359_v16 = vsub.f32 %v6836_v0, %v15323_v56  ;;  %v7175_v42 = vand.u32 4294901760, %v7174_v24  ;;  %v17725_v35 = vand.u32 4294901760, %v15284_v28 }
 0x354   :  { %9465 = vmatprep.subr.mxu0 %v14950_v13  ;;  %17722 = vst [vmem:[#allocation30_spill] sm:$0xff] %v15351_v8  ;;  %9507 = vmatpush3.msra.mxu1 %v7042_v36  ;;  %v7069_v18 = vsub.f32 %v15273_v15, %v17723_v7  ;;  %v15367_v25 = vsub.f32 %v6851_v38, %v15333_v12  ;;  %v7063_v7 = vand.u32 4294901760, %v7062_v20  ;;  %v17727_v0 = vand.u32 4294901760, %v15297_v44 }
 0x355   :  { %9466 = vmatpush3.msra.mxu0 %v14973_v53  ;;  %17724 = vst [vmem:[#allocation33_spill] sm:$0xff] %v15359_v16  ;;  %9508 = vmatprep.subr.mxu1 %v7161_v51  ;;  %v7188_v36 = vsub.f32 %v15284_v28, %v17725_v35  ;;  %v15375_v24 = vsub.f32 %v6835_v5, %v15343_v55  ;;  %v7182_v35 = vand.u32 4294901760, %v7181_v45  ;;  %v17729_v38 = vand.u32 4294901760, %v15308_v22 }
 0x356   :  { %9467 = vmatprep.subr.mxu0 %v14983_v26  ;;  %17726 = vst [vmem:[#allocation23_spill] sm:$0xff] %v15367_v25  ;;  %9509 = vmatpush3.msra.mxu1 %v7049_v23  ;;  %v7076_v51 = vsub.f32 %v15297_v44, %v17727_v0  ;;  %v7070_v20 = vand.u32 4294901760, %v7069_v18  ;;  %v17730_v0 = vand.u32 4294901760, %v15321_v61  ;;  %v17731_v45 = vand.u32 4294901760, %v15331_v4 }
 0x357   :  { %9468 = vmatpush3.msra.mxu0 %v14996_v50  ;;  %17728 = vst [vmem:[#allocation37_spill] sm:$0xff] %v15375_v24  ;;  %9510 = vmatprep.subr.mxu1 %v7168_v52  ;;  %v7195_v23 = vsub.f32 %v15308_v22, %v17729_v38  ;;  %v7189_v52 = vand.u32 4294901760, %v7188_v36  ;;  %v17732_v18 = vand.u32 4294901760, %v15341_v57  ;;  %v16626_v5 = vand.u32 4294901760, %v15375_v24 }
 0x358   :  { %9469 = vmatprep.subr.mxu0 %v15005_v9  ;;  %9511 = vmatpush3.msra.mxu1 %v7056_v46  ;;  %v7083_v6 = vsub.f32 %v15321_v61, %v17730_v0  ;;  %v7202_v38 = vsub.f32 %v15331_v4, %v17731_v45  ;;  %v7077_v46 = vand.u32 4294901760, %v7076_v51  ;;  %v17733_v36 = vand.u32 4294901760, %v15351_v8  ;;  %v3701_v4 = vpop.f32.mrf.mxu0 }
 0x359   :  { %9470 = vmatpush3.msra.mxu0 %v15021_v47  ;;  %9512 = vmatprep.subr.mxu1 %v7175_v42  ;;  %v7090_v0 = vsub.f32 %v15341_v57, %v17732_v18  ;;  %v7196_v42 = vand.u32 4294901760, %v7195_v23  ;;  %v17734_v51 = vand.u32 4294901760, %v15359_v16  ;;  %v17735_v18 = vand.u32 4294901760, %v15367_v25 }
 0x35a   :  { %9471 = vmatprep.subr.mxu0 %v15032_v1  ;;  %9513 = vmatpush3.msra.mxu1 %v7063_v7  ;;  %v7209_v45 = vsub.f32 %v15351_v8, %v17733_v36  ;;  %v7084_v7 = vand.u32 4294901760, %v7083_v6  ;;  %v7104_v6 = vsub.f32 %v15375_v24, %v16626_v5  ;;  %v17737_v5 = vld [vmem:[#allocation115_spill] sm:$0xff] }
 0x35b   :  { %9472 = vmatpush3.msra.mxu0 %v15041_v54  ;;  %9514 = vmatprep.subr.mxu1 %v7182_v35  ;;  %v7097_v40 = vsub.f32 %v15359_v16, %v17734_v51  ;;  %v7203_v35 = vand.u32 4294901760, %v7202_v38  ;;  %v7216_v23 = vsub.f32 %v15367_v25, %v17735_v18  ;;  %v7091_v36 = vand.u32 4294901760, %v7090_v0  ;;  %v3703_v51 = vpop.f32.mrf.mxu0  ;;  %v17736_v16 = vld [vmem:[#allocation114_spill] sm:$0xff] }
 0x35c   :  { %9473 = vmatprep.subr.mxu0 %v15061_v48  ;;  %9515 = vmatpush3.msra.mxu1 %v7070_v20  ;;  %v7210_v20 = vand.u32 4294901760, %v7209_v45  ;;  %v3702_v18 = vadd.f32 %v3701_v4, %v17736_v16  ;;  %v3704_v24 = vadd.f32 %v3703_v51, %v17737_v5 }
 0x35d   :  { %9474 = vmatpush3.msra.mxu0 %v15087_v21  ;;  %9516 = vmatprep.subr.mxu1 %v7189_v52  ;;  %v4094_v52 = vpop.f32.mrf.mxu1  ;;  %v7098_v38 = vand.u32 4294901760, %v7097_v40  ;;  %v4297_v0 = vpop.f32.mrf.mxu0 }
 0x35e   :  { %9475 = vmatprep.subr.mxu0 %v15129_v10  ;;  %9517 = vmatpush3.msra.mxu1 %v7077_v46  ;;  %v7217_v46 = vand.u32 4294901760, %v7216_v23  ;;  %v4095_v40 = vadd.f32 %v4094_v52, %v3702_v18 }
 0x35f   :  { %9476 = vmatpush3.msra.mxu0 %v15160_v60  ;;  %9518 = vmatprep.subr.mxu1 %v7196_v42  ;;  %v7105_v42 = vand.u32 4294901760, %v7104_v6  ;;  %v4096_v45 = vpop.f32.mrf.mxu1  ;;  %v4299_v16 = vpop.f32.mrf.mxu0 }
 0x360   :  { %9477 = vmatprep.subr.mxu0 %v15175_v14  ;;  %9519 = vmatpush3.msra.mxu1 %v7084_v7  ;;  %v4298_v7 = vadd.f32 %v4297_v0, %v4095_v40 }
 0x361   :  { %9478 = vmatpush3.msra.mxu0 %v15192_v39  ;;  %9520 = vmatprep.subr.mxu1 %v7203_v35  ;;  %v4438_v4 = vpop.f32.mrf.mxu1  ;;  %v4097_v35 = vadd.f32 %v4096_v45, %v3704_v24  ;;  %v4703_v5 = vpop.f32.mrf.mxu0 }
 0x362   :  { %9479 = vmatprep.subr.mxu0 %v15206_v32  ;;  %9521 = vmatpush3.msra.mxu1 %v7091_v36  ;;  %v4439_v6 = vadd.f32 %v4438_v4, %v4298_v7 }
 0x363   :  { %9480 = vmatpush3.msra.mxu0 %v15221_v43  ;;  %9522 = vmatprep.subr.mxu1 %v7210_v20  ;;  %v4300_v23 = vadd.f32 %v4299_v16, %v4097_v35  ;;  %v4440_v36 = vpop.f32.mrf.mxu1  ;;  %v4705_v52 = vpop.f32.mrf.mxu0  ;;  %v6814_v35 = vlaneseq }
 0x364   :  { %9481 = vmatprep.subr.mxu0 %v15237_v27  ;;  %9523 = vmatpush3.msra.mxu1 %v7098_v38  ;;  %v4704_v24 = vadd.f32 %v4703_v5, %v4439_v6 }
 0x365   :  { %9482 = vmatpush3.msra.mxu0 %v15248_v2  ;;  %9524 = vmatprep.subr.mxu1 %v7217_v46  ;;  %v4840_v20 = vpop.f32.mrf.mxu1  ;;  %v4441_v51 = vadd.f32 %v4440_v36, %v4300_v23  ;;  %v4928_v38 = vpop.f32.mrf.mxu0  ;;  %v15431_v57 = vshrl.u32 %v6814_v35, 7 }
 0x366   :  { %9483 = vmatprep.subr.mxu0 %v15264_v49  ;;  %9525 = vmatpush3.msra.mxu1 %v7105_v42  ;;  %v4841_v0 = vadd.f32 %v4840_v20, %v4704_v24  ;;  %v15437_v20 = vld [vmem:[%s16012_s4] ss:$4 sm:$0x7] }
 0x367   :  { %9484 = vmatpush3.msra.mxu0 %v15275_v29  ;;  %9564 = vmatprep.subr.mxu1 %v14901_v11  ;;  %v4706_v18 = vadd.f32 %v4705_v52, %v4441_v51  ;;  %v4842_v46 = vpop.f32.mrf.mxu1  ;;  %v4930_v45 = vpop.f32.mrf.mxu0  ;;  %17738 = vst [vmem:[#allocation36_spill] sm:$0xff] %v15431_v57  ;;  %v6816_v52 = vsub.s32 0, %v15431_v57  ;;  %17739 = vst [vmem:[#allocation46_spill] sm:$0xff] %v15437_v20 }
 0x368   :  { %9485 = vmatprep.subr.mxu0 %v15286_v62  ;;  %v4929_v40 = vadd.f32 %v4928_v38, %v4841_v0  ;;  %v6820_v38 = vsub.s32 1, %v15431_v57  ;;  %v17759_v57 = vld [vmem:[#allocation30_spill] sm:$0xff] }
 0x369   :  { %9486 = vmatpush3.msra.mxu0 %v15299_v63  ;;  %v5060_v42 = vpop.f32.mrf.mxu1  ;;  %v4843_v16 = vadd.f32 %v4842_v46, %v4706_v18 }
 0x36a   :  { %9487 = vmatprep.subr.mxu0 %v15310_v33  ;;  %v5061_v8 = vadd.f32 %v5060_v42, %v4929_v40  ;;  %v6817_v42 = vrot.slane %v15437_v20, %v6816_v52 }
 0x36b   :  { %9488 = vmatpush3.msra.mxu0 %v15323_v56  ;;  %v4931_v7 = vadd.f32 %v4930_v45, %v4843_v16  ;;  %v5062_v25 = vpop.f32.mrf.mxu1  ;;  %v6821_v16 = vrot.slane %v15437_v20, %v6820_v38  ;;  %v17758_v20 = vld [vmem:[#allocation26_spill] sm:$0xff] }
 0x36c   :  { %9489 = vmatprep.subr.mxu0 %v15333_v12 }
 0x36d   :  { %9490 = vmatpush3.msra.mxu0 %v15343_v55  ;;  %v5243_v61 = vpop.f32.mrf.mxu1  ;;  %v5063_v36 = vadd.f32 %v5062_v25, %v4931_v7 }
 0x36e   :  { %9529 = vmatprep.subr.mxu0 %v14935_v19  ;;  %v5157_v4 = vpop.f32.mrf.mxu0 }
 0x36f   :  { %v5158_v23 = vadd.f32 %v5157_v4, %v5061_v8  ;;  %v5245_v51 = vpop.f32.mrf.mxu1 }
 0x370   :  { %v5159_v5 = vpop.f32.mrf.mxu0 }
 0x371   :  { %v5160_v6 = vadd.f32 %v5159_v5, %v5063_v36  ;;  %v5244_v24 = vadd.f32 %v5243_v61, %v5158_v23 }
 0x373   :  { %v5246_v45 = vadd.f32 %v5245_v51, %v5160_v6 }
 0x374   :  { %v5435_v18 = vpop.f32.mrf.mxu1 }
 0x376   :  { %v5437_v35 = vpop.f32.mrf.mxu1 }
 0x37f   :  { %v5351_v46 = vpop.f32.mrf.mxu0 }
 0x380   :  { %v5352_v0 = vadd.f32 %v5351_v46, %v5244_v24 }
 0x381   :  { %v5353_v8 = vpop.f32.mrf.mxu0 }
 0x382   :  { %v5436_v25 = vadd.f32 %v5435_v18, %v5352_v0  ;;  %v5354_v40 = vadd.f32 %v5353_v8, %v5246_v45  ;;  %v17741_v45 = vld [vmem:[#allocation57_spill] sm:$0xff] }
 0x383   :  { %v17742_v8 = vld [vmem:[#allocation97_spill] sm:$0xff] }
 0x384   :  { %v6829_v4 = vadd.f32 %v6817_v42, %v5436_v25  ;;  %v5438_v7 = vadd.f32 %v5437_v35, %v5354_v40  ;;  %v17740_v42 = vld [vmem:[#allocation58_spill] sm:$0xff]  ;;  %v17743_v25 = vld [vmem:[#allocation99_spill] sm:$0xff]  ;;  %v17744_v40 = vld [vmem:[#allocation100_spill] sm:$0xff] }
 0x385   :  { %v17746_v35 = vld [vmem:[#allocation105_spill] sm:$0xff] }
 0x386   :  { %v6832_v5 = vmax.f32 %v6829_v4, 0.0  ;;  %v6830_v36 = vadd.f32 %v6821_v16, %v5438_v7  ;;  %v17745_v16 = vld [vmem:[#allocation101_spill] sm:$0xff]  ;;  %v17747_v4 = vld [vmem:[#allocation107_spill] sm:$0xff] }
 0x387   :  { %v17748_v7 = vld [vmem:[#allocation109_spill] sm:$0xff] }
 0x388   :  { %v15442_v19 = vand.u32 4294901760, %v6832_v5  ;;  %v6833_v61 = vmax.f32 %v6830_v36, 0.0  ;;  %v17750_v36 = vld [vmem:[#allocation31_spill] sm:$0xff] }
 0x38a   :  { %v15445_v23 = vsub.f32 %v6832_v5, %v15442_v19  ;;  %v15447_v24 = vand.u32 4294901760, %v6833_v61  ;;  %v17749_v5 = vld [vmem:[#allocation10_spill] sm:$0xff] }
 0x38c   :  { %v6980_v6 = vsub.f32 %v6833_v61, %v15447_v24  ;;  %7220 = vmatprep.mubr.f32.mxu1 %v15447_v24  ;;  %v6987_v52 = vand.u32 4294901760, %v15445_v23  ;;  %v17751_v61 = vld [vmem:[#allocation11_spill] sm:$0xff] }
 0x38d   :  { %7222 = vmatmul.mubr.f32.vlgmr.msra.gmra.mxu1 %v15442_v19 }
 0x38e   :  { %9565 = vmatpush3.msra.mxu1 %v14922_v37  ;;  %v6981_v51 = vand.u32 4294901760, %v6980_v6  ;;  %v6988_v38 = vsub.f32 %v15445_v23, %v6987_v52 }
 0x38f   :  { %9566 = vmatprep.subr.mxu1 %v14924_v30 }
 0x390   :  { %9567 = vmatpush3.msra.mxu1 %v14937_v34  ;;  %7464 = vmatprep.mubr.f32.mxu1 %v6981_v51  ;;  %v6982_v18 = vsub.f32 %v6980_v6, %v6981_v51  ;;  %v6989_v0 = vand.u32 4294901760, %v6988_v38  ;;  %v17753_v51 = vld [vmem:[#allocation28_spill] sm:$0xff]  ;;  %v17754_v38 = vld [vmem:[#allocation25_spill] sm:$0xff] }
 0x391   :  { %9568 = vmatprep.subr.mxu1 %v14941_v58 }
 0x392   :  { %9569 = vmatpush3.msra.mxu1 %v14948_v3  ;;  %v6983_v46 = vand.u32 4294901760, %v6982_v18  ;;  %v17755_v18 = vld [vmem:[#allocation29_spill] sm:$0xff] }
 0x393   :  { %9570 = vmatprep.subr.mxu1 %v14950_v13 }
 0x394   :  { %9571 = vmatpush3.msra.mxu1 %v14973_v53  ;;  %6984 = vmatprep.mubr.f32.mxu0 %v6983_v46  ;;  %v17756_v46 = vld [vmem:[#allocation35_spill] sm:$0xff] }
 0x395   :  { %9572 = vmatprep.subr.mxu1 %v14983_v26  ;;  %6990 = vmatmul.mubr.f32.vlgmr.msra.gmra.mxu0 %v6989_v0  ;;  %v17757_v0 = vld [vmem:[#allocation21_spill] sm:$0xff] }
 0x396   :  { %9530 = vmatpush3.msra.mxu0 %v14958_v59  ;;  %9573 = vmatpush3.msra.mxu1 %v14996_v50 }
 0x397   :  { %9531 = vmatprep.subr.mxu0 %v14961_v31  ;;  %7357 = vmatprep.mubr.f32.mxu0 %v6980_v6  ;;  %v17752_v6 = vld [vmem:[#allocation32_spill] sm:$0xff] }
 0x398   :  { %9574 = vmatprep.subr.mxu1 %v15005_v9  ;;  %9532 = vmatpush3.msra.mxu0 %v17740_v42 }
 0x399   :  { %9575 = vmatpush3.msra.mxu1 %v15021_v47  ;;  %9533 = vmatprep.subr.mxu0 %v17741_v45 }
 0x39a   :  { %9576 = vmatprep.subr.mxu1 %v15032_v1  ;;  %9534 = vmatpush3.msra.mxu0 %v17742_v8 }
 0x39b   :  { %9577 = vmatpush3.msra.mxu1 %v15041_v54  ;;  %9535 = vmatprep.subr.mxu0 %v17743_v25 }
 0x39c   :  { %9578 = vmatprep.subr.mxu1 %v15061_v48  ;;  %9536 = vmatpush3.msra.mxu0 %v17744_v40 }
 0x39d   :  { %9579 = vmatpush3.msra.mxu1 %v15087_v21  ;;  %9537 = vmatprep.subr.mxu0 %v17745_v16 }
 0x39e   :  { %9580 = vmatprep.subr.mxu1 %v15129_v10  ;;  %9538 = vmatpush3.msra.mxu0 %v17746_v35 }
 0x39f   :  { %9581 = vmatpush3.msra.mxu1 %v15160_v60  ;;  %9539 = vmatprep.subr.mxu0 %v17747_v4 }
 0x3a0   :  { %9582 = vmatprep.subr.mxu1 %v15175_v14  ;;  %9540 = vmatpush3.msra.mxu0 %v17748_v7 }
 0x3a1   :  { %9583 = vmatpush3.msra.mxu1 %v15192_v39  ;;  %9541 = vmatprep.subr.mxu0 %v17749_v5 }
 0x3a2   :  { %9584 = vmatprep.subr.mxu1 %v15206_v32  ;;  %9542 = vmatpush3.msra.mxu0 %v17750_v36 }
 0x3a3   :  { %9585 = vmatpush3.msra.mxu1 %v15221_v43  ;;  %9543 = vmatprep.subr.mxu0 %v17751_v61 }
 0x3a4   :  { %9586 = vmatprep.subr.mxu1 %v15237_v27  ;;  %9544 = vmatpush3.msra.mxu0 %v17752_v6 }
 0x3a5   :  { %9587 = vmatpush3.msra.mxu1 %v15248_v2  ;;  %9545 = vmatprep.subr.mxu0 %v17753_v51 }
 0x3a6   :  { %9588 = vmatprep.subr.mxu1 %v15264_v49  ;;  %9546 = vmatpush3.msra.mxu0 %v17754_v38 }
 0x3a7   :  { %9589 = vmatpush3.msra.mxu1 %v15275_v29  ;;  %9547 = vmatprep.subr.mxu0 %v17755_v18 }
 0x3a8   :  { %9590 = vmatprep.subr.mxu1 %v15286_v62  ;;  %9548 = vmatpush3.msra.mxu0 %v15246_v17 }
 0x3a9   :  { %9591 = vmatpush3.msra.mxu1 %v15299_v63  ;;  %9549 = vmatprep.subr.mxu0 %v15262_v41 }
 0x3aa   :  { %9592 = vmatprep.subr.mxu1 %v15310_v33  ;;  %9550 = vmatpush3.msra.mxu0 %v15273_v15 }
 0x3ab   :  { %9593 = vmatpush3.msra.mxu1 %v15323_v56  ;;  %9551 = vmatprep.subr.mxu0 %v15284_v28 }
 0x3ac   :  { %9594 = vmatprep.subr.mxu1 %v15333_v12  ;;  %9552 = vmatpush3.msra.mxu0 %v15297_v44 }
 0x3ad   :  { %9595 = vmatpush3.msra.mxu1 %v15343_v55  ;;  %9553 = vmatprep.subr.mxu0 %v15308_v22 }
 0x3ae   :  { %7468 = vmatmul.mubr.f32.vlgmr.msra.gmra.mxu1 %v6987_v52  ;;  %9634 = vmatprep.subr.mxu1 %v14901_v11  ;;  %v17760_v52 = vld [vmem:[#allocation33_spill] sm:$0xff]  ;;  %v17761_v11 = vld [vmem:[#allocation23_spill] sm:$0xff] }
 0x3af   :  { %9554 = vmatpush3.msra.mxu0 %v17756_v46  ;;  %9635 = vmatpush3.msra.mxu1 %v14922_v37  ;;  %v17762_v37 = vld [vmem:[#allocation37_spill] sm:$0xff] }
 0x3b0   :  { %7738 = vmatprep.mubr.f32.mxu1 %v15447_v24  ;;  %9555 = vmatprep.subr.mxu0 %v17757_v0 }
 0x3b1   :  { %9636 = vmatprep.subr.mxu1 %v14924_v30  ;;  %9556 = vmatpush3.msra.mxu0 %v17758_v20  ;;  %v17763_v30 = vld [vmem:[#allocation86_spill] sm:$0xff] }
 0x3b2   :  { %9637 = vmatpush3.msra.mxu1 %v14937_v34  ;;  %9557 = vmatprep.subr.mxu0 %v17759_v57  ;;  %v17764_v34 = vand.u32 4294901760, %v17763_v30  ;;  %v17782_v30 = vand.u32 4294901760, %v17755_v18 }
 0x3b3   :  { %9638 = vmatprep.subr.mxu1 %v14941_v58  ;;  %9558 = vmatpush3.msra.mxu0 %v17760_v52  ;;  %v17765_v58 = vand.u32 4294901760, %v14958_v59  ;;  %v17768_v59 = vand.u32 4294901760, %v17741_v45  ;;  %v17775_v45 = vand.u32 4294901760, %v17748_v7 }
 0x3b4   :  { %9639 = vmatpush3.msra.mxu1 %v14948_v3  ;;  %9559 = vmatprep.subr.mxu0 %v17761_v11  ;;  %v6872_v3 = vld [vmem:[%s16011_s2 + $0x128] sm:$0xf] }
 0x3b5   :  { %9640 = vmatprep.subr.mxu1 %v14950_v13  ;;  %9560 = vmatpush3.msra.mxu0 %v17762_v37  ;;  %v17766_v13 = vand.u32 4294901760, %v14961_v31  ;;  %v17770_v31 = vand.u32 4294901760, %v17743_v25  ;;  %v6868_v25 = vld [vmem:[%s16011_s2 + $0x108] sm:$0xff] }
 0x3b6   :  { %9641 = vmatpush3.msra.mxu1 %v14973_v53  ;;  %7360 = vmatmul.mubr.f32.vlgmr.msra.gmra.mxu0 %v15445_v23  ;;  %v17767_v53 = vand.u32 4294901760, %v17740_v42  ;;  %v17769_v23 = vand.u32 4294901760, %v17742_v8  ;;  %v17774_v42 = vand.u32 4294901760, %v17747_v4 }
 0x3b7   :  { %9599 = vmatprep.subr.mxu0 %v17764_v34  ;;  %9642 = vmatprep.subr.mxu1 %v14983_v26  ;;  %v6881_v26 = vsel %vm275_vm1, %v6872_v3, 0  ;;  %v17788_v3 = vand.u32 4294901760, %v15308_v22  ;;  %v17792_v22 = vand.u32 4294901760, %v17758_v20 }
 0x3b8   :  { %9600 = vmatpush3.msra.mxu0 %v17765_v58  ;;  %7634 = vmatprep.mubr.f32.mxu0 %v15447_v24  ;;  %v17773_v24 = vand.u32 4294901760, %v17746_v35  ;;  %v6867_v35 = vld [vmem:[%s16011_s2 + $0x100] sm:$0xff] }
 0x3b9   :  { %9643 = vmatpush3.msra.mxu1 %v14996_v50  ;;  %9601 = vmatprep.subr.mxu0 %v17766_v13  ;;  %v6871_v50 = vld [vmem:[%s16011_s2 + $0x120] sm:$0xff]  ;;  %v17790_v13 = vand.u32 4294901760, %v17757_v0 }
 0x3ba   :  { %9644 = vmatprep.subr.mxu1 %v15005_v9  ;;  %9602 = vmatpush3.msra.mxu0 %v17767_v53  ;;  %v17771_v9 = vand.u32 4294901760, %v17744_v40  ;;  %v17791_v53 = vmov 0.0  }
 0x3bb   :  { %9645 = vmatpush3.msra.mxu1 %v15021_v47  ;;  %9603 = vmatprep.subr.mxu0 %v17768_v59  ;;  %v15561_v47 = vand.u32 4294901760, %v6881_v26  ;;  %v17793_v59 = vand.u32 4294901760, %v17759_v57 }
 0x3bc   :  { %9646 = vmatprep.subr.mxu1 %v15032_v1  ;;  %9604 = vmatpush3.msra.mxu0 %v17769_v23  ;;  %v17772_v1 = vand.u32 4294901760, %v17745_v16  ;;  %v17795_v23 = vand.u32 4294901760, %v17761_v11 }
 0x3bd   :  { %9647 = vmatpush3.msra.mxu1 %v15041_v54  ;;  %9605 = vmatprep.subr.mxu0 %v17770_v31  ;;  %v6870_v54 = vld [vmem:[%s16011_s2 + $0x118] sm:$0xff]  ;;  %v17796_v31 = vand.u32 4294901760, %v17762_v37  ;;  %v9239_v37 = vpop.f32.mrf.mxu0 }
 0x3be   :  { %9648 = vmatprep.subr.mxu1 %v15061_v48  ;;  %9606 = vmatpush3.msra.mxu0 %v17771_v9  ;;  %v15572_v48 = vand.u32 4294901760, %v6871_v50  ;;  %v15586_v8 = vand.u32 4294901760, %v6870_v54 }
 0x3bf   :  { %9649 = vmatpush3.msra.mxu1 %v15087_v21  ;;  %9607 = vmatprep.subr.mxu0 %v17772_v1  ;;  %v6869_v21 = vld [vmem:[%s16011_s2 + $0x110] sm:$0xff]  ;;  %v9240_v1 = vpop.f32.mrf.mxu0 }
 0x3c0   :  { %9650 = vmatprep.subr.mxu1 %v15129_v10  ;;  %9608 = vmatpush3.msra.mxu0 %v17773_v24  ;;  %v15584_v10 = vsub.f32 %v6881_v26, %v15561_v47  ;;  %v15598_v40 = vsub.f32 %v6871_v50, %v15572_v48  ;;  %v15600_v16 = vand.u32 4294901760, %v6869_v21  ;;  %v15613_v7 = vsub.f32 %v6870_v54, %v15586_v8 }
 0x3c1   :  { %9651 = vmatpush3.msra.mxu1 %v15160_v60  ;;  %9609 = vmatprep.subr.mxu0 %v17774_v42  ;;  %v17776_v60 = vand.u32 4294901760, %v17749_v5  ;;  %v15615_v5 = vand.u32 4294901760, %v6868_v25  ;;  %v17794_v26 = vand.u32 4294901760, %v17760_v52  ;;  %v9274_v52 = vpop.f32.mrf.mxu1 }
 0x3c2   :  { %9652 = vmatprep.subr.mxu1 %v15175_v14  ;;  %9610 = vmatpush3.msra.mxu0 %v17775_v45  ;;  %v17777_v14 = vand.u32 4294901760, %v17750_v36  ;;  %v7849_v4 = vand.u32 4294901760, %v15584_v10  ;;  %v17781_v36 = vand.u32 4294901760, %v17754_v38  ;;  %v9309_v24 = vpop.f32.mrf.mxu0 }
 0x3c3   :  { %9653 = vmatpush3.msra.mxu1 %v15192_v39  ;;  %9611 = vmatprep.subr.mxu0 %v17776_v60  ;;  %v17778_v39 = vand.u32 4294901760, %v17751_v61  ;;  %v15625_v61 = vsub.f32 %v6869_v21, %v15600_v16  ;;  %v15640_v38 = vsub.f32 %v6868_v25, %v15615_v5  ;;  %v9275_v11 = vpop.f32.mrf.mxu1  ;;  %v9241_v60 = vadd.f32 %v9240_v1, %v9239_v37 }
 0x3c4   :  { %9654 = vmatprep.subr.mxu1 %v15206_v32  ;;  %9612 = vmatpush3.msra.mxu0 %v17777_v14  ;;  %v17779_v32 = vand.u32 4294901760, %v17752_v6  ;;  %v15627_v6 = vand.u32 4294901760, %v6867_v35  ;;  %v9310_v21 = vpop.f32.mrf.mxu0 }
 0x3c5   :  { %9655 = vmatpush3.msra.mxu1 %v15221_v43  ;;  %9613 = vmatprep.subr.mxu0 %v17778_v39  ;;  %v17780_v43 = vand.u32 4294901760, %v17753_v51  ;;  %v7863_v51 = vand.u32 4294901760, %v15613_v7  ;;  %v7870_v18 = vand.u32 4294901760, %v15625_v61  ;;  %v7877_v58 = vand.u32 4294901760, %v15640_v38  ;;  %v17797_v39 = vld [vmem:[#allocation19_spill] sm:$0xff] }
 0x3c6   :  { %9656 = vmatprep.subr.mxu1 %v15237_v27  ;;  %9614 = vmatpush3.msra.mxu0 %v17779_v32  ;;  %v7856_v27 = vand.u32 4294901760, %v15598_v40  ;;  %v15653_v34 = vsub.f32 %v6867_v35, %v15627_v6  ;;  %v5549_v35 = vadd.f32 %v9241_v60, %v17797_v39 }
 0x3c7   :  { %9657 = vmatpush3.msra.mxu1 %v15248_v2  ;;  %9615 = vmatprep.subr.mxu0 %v17780_v43  ;;  %v17783_v2 = vand.u32 4294901760, %v15246_v17  ;;  %v9276_v43 = vadd.f32 %v9275_v11, %v9274_v52 }
 0x3c8   :  { %9658 = vmatprep.subr.mxu1 %v15264_v49  ;;  %9616 = vmatpush3.msra.mxu0 %v17781_v36  ;;  %v7850_v49 = vsub.f32 %v15584_v10, %v7849_v4  ;;  %v7857_v17 = vsub.f32 %v15598_v40, %v7856_v27  ;;  %v9311_v36 = vadd.f32 %v9310_v21, %v9309_v24 }
 0x3c9   :  { %9659 = vmatpush3.msra.mxu1 %v15275_v29  ;;  %9617 = vmatprep.subr.mxu0 %v17782_v30  ;;  %v17784_v29 = vand.u32 4294901760, %v15262_v41  ;;  %v17787_v41 = vand.u32 4294901760, %v15297_v44  ;;  %v7871_v44 = vsub.f32 %v15625_v61, %v7870_v18 }
 0x3ca   :  { %9660 = vmatprep.subr.mxu1 %v15286_v62  ;;  %9618 = vmatpush3.msra.mxu0 %v17783_v2  ;;  %v17785_v62 = vand.u32 4294901760, %v15273_v15  ;;  %v7851_v15 = vand.u32 4294901760, %v7850_v49  ;;  %v5781_v2 = vadd.f32 %v9276_v43, %v5549_v35 }
 0x3cb   :  { %9661 = vmatpush3.msra.mxu1 %v15299_v63  ;;  %9619 = vmatprep.subr.mxu0 %v17784_v29  ;;  %v17786_v63 = vand.u32 4294901760, %v15284_v28  ;;  %v17789_v28 = vand.u32 4294901760, %v17756_v46  ;;  %v7878_v46 = vsub.f32 %v15640_v38, %v7877_v58  ;;  %v7872_v0 = vand.u32 4294901760, %v7871_v44 }
 0x3cc   :  { %9662 = vmatprep.subr.mxu1 %v15310_v33  ;;  %9620 = vmatpush3.msra.mxu0 %v17785_v62  ;;  %v7864_v33 = vsub.f32 %v15613_v7, %v7863_v51  ;;  %v5919_v29 = vadd.f32 %v9311_v36, %v5781_v2  ;;  %v8258_v36 = vld [vmem:[%s16013_s3 + $0x8] sm:$0xff] }
 0x3cd   :  { %9663 = vmatpush3.msra.mxu1 %v15323_v56  ;;  %9621 = vmatprep.subr.mxu0 %v17786_v63  ;;  %v7858_v56 = vand.u32 4294901760, %v7857_v17  ;;  %v7879_v57 = vand.u32 4294901760, %v7878_v46 }
 0x3ce   :  { %9664 = vmatprep.subr.mxu1 %v15333_v12  ;;  %9622 = vmatpush3.msra.mxu0 %v17787_v41  ;;  %v7884_v12 = vand.u32 4294901760, %v15653_v34 }
 0x3cf   :  { %9665 = vmatpush3.msra.mxu1 %v15343_v55  ;;  %9623 = vmatprep.subr.mxu0 %v17788_v3  ;;  %v7865_v55 = vand.u32 4294901760, %v7864_v33 }
 0x3d0   :  { %7740 = vmatmul.mubr.f32.vlgmr.msra.gmra.mxu1 %v15442_v19  ;;  %9624 = vmatpush3.msra.mxu0 %v17789_v28  ;;  %v7885_v20 = vsub.f32 %v15653_v34, %v7884_v12 }
 0x3d1   :  { %9625 = vmatprep.subr.mxu0 %v17790_v13  ;;  %9960 = vmatprep.subr.mxu1 %v17791_v53 }
 0x3d2   :  { %9626 = vmatpush3.msra.mxu0 %v17792_v22  ;;  %9961 = vmatpush3.msra.mxu1 %v7851_v15  ;;  %v7886_v50 = vand.u32 4294901760, %v7885_v20 }
 0x3d3   :  { %9627 = vmatprep.subr.mxu0 %v17793_v59  ;;  %9962 = vmatprep.subr.mxu1 %v17791_v53 }
 0x3d4   :  { %9628 = vmatpush3.msra.mxu0 %v17794_v26  ;;  %9963 = vmatpush3.msra.mxu1 %v7858_v56  ;;  %v17798_v26 = vld [vmem:[#allocation36_spill] sm:$0xff] }
 0x3d5   :  { %9629 = vmatprep.subr.mxu0 %v17795_v23  ;;  %9964 = vmatprep.subr.mxu1 %v17791_v53 }
 0x3d6   :  { %9630 = vmatpush3.msra.mxu0 %v17796_v31  ;;  %9965 = vmatpush3.msra.mxu1 %v7865_v55 }
 0x3d7   :  { %7636 = vmatmul.mubr.f32.vlgmr.msra.gmra.mxu0 %v15442_v19  ;;  %9966 = vmatprep.subr.mxu1 %v17791_v53  ;;  %v9344_v19 = vpop.f32.mrf.mxu1 }
 0x3d8   :  { %9967 = vmatpush3.msra.mxu1 %v7872_v0  ;;  %9945 = vmatprep.subr.mxu0 %v17791_v53  ;;  %v6824_v0 = vsub.s32 2, %v17798_v26 }
 0x3d9   :  { %9968 = vmatprep.subr.mxu1 %v17791_v53  ;;  %9946 = vmatpush3.msra.mxu0 %v15561_v47  ;;  %v9345_v9 = vpop.f32.mrf.mxu1 }
 0x3da   :  { %9969 = vmatpush3.msra.mxu1 %v7879_v57  ;;  %9947 = vmatprep.subr.mxu0 %v17791_v53  ;;  %v9346_v62 = vadd.f32 %v9345_v9, %v9344_v19  ;;  %v17799_v57 = vld [vmem:[#allocation46_spill] sm:$0xff] }
 0x3db   :  { %9970 = vmatprep.subr.mxu1 %v17791_v53  ;;  %9948 = vmatpush3.msra.mxu0 %v15572_v48  ;;  %v9414_v54 = vpop.f32.mrf.mxu1  ;;  %v6825_v52 = vrot.slane %v17799_v57, %v6824_v0 }
 0x3dc   :  { %9971 = vmatpush3.msra.mxu1 %v7886_v50  ;;  %9949 = vmatprep.subr.mxu0 %v17791_v53  ;;  %v6027_v41 = vadd.f32 %v9346_v62, %v5919_v29  ;;  %v15863_v29 = vand.u32 4294901760, %v8258_v36 }
 0x3dd   :  { %9972 = vmatprep.mubr.msk.f32.mxu1 %vm10163_vm3, %v17791_v53  ;;  %9990 = vmatprep.subr.mxu1 %v17791_v53  ;;  %v9415_v42 = vpop.f32.mrf.mxu1 }
 0x3de   :  { %9950 = vmatpush3.msra.mxu0 %v15586_v8  ;;  %9957 = vmatprep.mubr.msk.f32.mxu0 %vm10163_vm3, %v17791_v53  ;;  %v9416_v3 = vadd.f32 %v9415_v42, %v9414_v54 }
 0x3df   :  { %9951 = vmatprep.subr.mxu0 %v17791_v53 }
 0x3e0   :  { %9952 = vmatpush3.msra.mxu0 %v15600_v16 }
 0x3e1   :  { %9953 = vmatprep.subr.mxu0 %v17791_v53 }
 0x3e2   :  { %9954 = vmatpush3.msra.mxu0 %v15615_v5 }
 0x3e3   :  { %9955 = vmatprep.subr.mxu0 %v17791_v53  ;;  %v9379_v25 = vpop.f32.mrf.mxu0 }
 0x3e4   :  { %9956 = vmatpush3.msra.mxu0 %v15627_v6 }
 0x3e5   :  { %9975 = vmatprep.subr.mxu0 %v17791_v53  ;;  %v9380_v32 = vpop.f32.mrf.mxu0 }
 0x3e6   :  { %v9381_v17 = vadd.f32 %v9380_v32, %v9379_v25  ;;  %v8259_v25 = vld [vmem:[%s16013_s3 + $0x10] sm:$0xff] }
 0x3e7   :  { %v15850_v32 = vand.u32 4294901760, %v8259_v25 }
 0x3e8   :  { %v6195_v33 = vadd.f32 %v9381_v17, %v6027_v41  ;;  %v8257_v17 = vld [vmem:[%s16013_s3] sm:$0xff] }
 0x3e9   :  { %v6480_v45 = vpop.f32.mrf.mxu1 }
 0x3ea   :  { %v6299_v28 = vadd.f32 %v9416_v3, %v6195_v33  ;;  %v15883_v3 = vand.u32 4294901760, %v8257_v17 }
 0x3eb   :  { %v9884_v14 = vpop.f32.mrf.mxu1 }
 0x3f1   :  { %v6379_v30 = vpop.f32.mrf.mxu0 }
 0x3f2   :  { %v6380_v44 = vadd.f32 %v6379_v30, %v6299_v28 }
 0x3f3   :  { %v9869_v49 = vpop.f32.mrf.mxu0 }
 0x3f4   :  { %v6481_v22 = vadd.f32 %v6480_v45, %v6380_v44  ;;  %v15861_v49 = vsub.f32 %v8259_v25, %v15850_v32 }
 0x3f6   :  { %v8410_v41 = vand.u32 4294901760, %v15861_v49 }
 0x3f7   :  { %v6643_v63 = vpop.f32.mrf.mxu1 }
 0x3f9   :  { %v9914_v15 = vpop.f32.mrf.mxu1 }
 0x3fa   :  { %v15879_v15 = vsub.f32 %v8258_v36, %v15863_v29 }
 0x3fc   :  { %v8417_v44 = vand.u32 4294901760, %v15879_v15 }
 0x3ff   :  { %v6564_v56 = vpop.f32.mrf.mxu0 }
 0x400   :  { %v6565_v46 = vadd.f32 %v6564_v56, %v6481_v22  ;;  %v8411_v56 = vsub.f32 %v15861_v49, %v8410_v41 }
 0x401   :  { %v9899_v13 = vpop.f32.mrf.mxu0 }
 0x402   :  { %v6644_v20 = vadd.f32 %v6643_v63, %v6565_v46  ;;  %v15892_v13 = vsub.f32 %v8257_v17, %v15883_v3  ;;  %v8412_v22 = vand.u32 4294901760, %v8411_v56 }
 0x404   :  { %v8424_v46 = vand.u32 4294901760, %v15892_v13 }
 0x405   :  { %v6809_v55 = vpop.f32.mrf.mxu1 }
 0x406   :  { %v8425_v26 = vsub.f32 %v15892_v13, %v8424_v46 }
 0x407   :  { %v9944_v59 = vpop.f32.mrf.mxu1 }
 0x408   :  { %v8426_v0 = vand.u32 4294901760, %v8425_v26 }
 0x40d   :  { %v6732_v23 = vpop.f32.mrf.mxu0 }
 0x40e   :  { %v6733_v31 = vadd.f32 %v6732_v23, %v6644_v20 }
 0x40f   :  { %v9929_v50 = vpop.f32.mrf.mxu0 }
 0x410   :  { %v6810_v11 = vadd.f32 %v6809_v55, %v6733_v31  ;;  %v8418_v55 = vsub.f32 %v15879_v15, %v8417_v44 }
 0x412   :  { %v6831_v19 = vadd.f32 %v6825_v52, %v6810_v11  ;;  %v8419_v59 = vand.u32 4294901760, %v8418_v55 }
 0x414   :  { %v6834_v37 = vmax.f32 %v6831_v19, 0.0 }
 0x416   :  { %v6878_v9 = vsel %vm272_vm2, %v6834_v37, 0 }
 0x417   :  { %v7816_v1 = vand.u32 4294901760, %v6878_v9 }
 0x419   :  { %9973 = vmatmul.mubr.f32.vlgmr.msra.gmra.mxu1 %v7816_v1  ;;  %v7817_v54 = vsub.f32 %v6878_v9, %v7816_v1 }
 0x41a   :  { %9991 = vmatpush3.msra.mxu1 %v15561_v47  ;;  %10002 = vmatprep.mubr.msk.f32.mxu1 %vm10163_vm3, %v17791_v53 }
 0x41b   :  { %9992 = vmatprep.subr.mxu1 %v17791_v53  ;;  %v7818_v24 = vand.u32 4294901760, %v7817_v54 }
 0x41c   :  { %9993 = vmatpush3.msra.mxu1 %v15572_v48 }
 0x41d   :  { %9994 = vmatprep.subr.mxu1 %v17791_v53  ;;  %v7819_v42 = vsub.f32 %v7817_v54, %v7818_v24 }
 0x41e   :  { %9995 = vmatpush3.msra.mxu1 %v15586_v8 }
 0x41f   :  { %9996 = vmatprep.subr.mxu1 %v17791_v53  ;;  %v7820_v21 = vand.u32 4294901760, %v7819_v42 }
 0x420   :  { %9997 = vmatpush3.msra.mxu1 %v15600_v16 }
 0x421   :  { %9998 = vmatprep.subr.mxu1 %v17791_v53  ;;  %9958 = vmatmul.mubr.f32.vlgmr.msra.gmra.mxu0 %v7820_v21 }
 0x422   :  { %9976 = vmatpush3.msra.mxu0 %v15584_v10  ;;  %9999 = vmatpush3.msra.mxu1 %v15615_v5  ;;  %v8263_v10 = vld [vmem:[%s16013_s3 + $0x30] sm:$0xff] }
 0x423   :  { %9977 = vmatprep.subr.mxu0 %v17791_v53  ;;  %10000 = vmatprep.subr.mxu1 %v17791_v53 }
 0x424   :  { %9978 = vmatpush3.msra.mxu0 %v15598_v40  ;;  %10001 = vmatpush3.msra.mxu1 %v15627_v6  ;;  %v15799_v40 = vand.u32 4294901760, %v8263_v10 }
 0x425   :  { %9979 = vmatprep.subr.mxu0 %v17791_v53  ;;  %10003 = vmatmul.mubr.f32.vlgmr.msra.gmra.mxu1 %v7818_v24  ;;  %v8952_v24 = vld [vmem:[%s16012_s4 + $0x1] ss:$0 sm:$0xff] }
 0x426   :  { %10020 = vmatprep.subr.mxu1 %v17791_v53  ;;  %9980 = vmatpush3.msra.mxu0 %v15613_v7  ;;  %v15808_v7 = vsub.f32 %v8263_v10, %v15799_v40 }
 0x427   :  { %10021 = vmatpush3.msra.mxu1 %v15561_v47  ;;  %9981 = vmatprep.subr.mxu0 %v17791_v53  ;;  %v8264_v47 = vld [vmem:[%s16013_s3 + $0x38] sm:$0xff] }
 0x428   :  { %10022 = vmatprep.subr.mxu1 %v17791_v53  ;;  %9982 = vmatpush3.msra.mxu0 %v15625_v61 }
 0x429   :  { %10023 = vmatpush3.msra.mxu1 %v15572_v48  ;;  %9983 = vmatprep.subr.mxu0 %v17791_v53  ;;  %v15791_v48 = vand.u32 4294901760, %v8264_v47 }
 0x42a   :  { %10024 = vmatprep.subr.mxu1 %v17791_v53  ;;  %9984 = vmatpush3.msra.mxu0 %v15640_v38 }
 0x42b   :  { %10025 = vmatpush3.msra.mxu1 %v15586_v8  ;;  %9985 = vmatprep.subr.mxu0 %v17791_v53  ;;  %v15797_v8 = vsub.f32 %v8264_v47, %v15791_v48 }
 0x42c   :  { %10026 = vmatprep.subr.mxu1 %v17791_v53  ;;  %9986 = vmatpush3.msra.mxu0 %v15653_v34 }
 0x42d   :  { %9987 = vmatprep.mubr.msk.f32.mxu0 %vm10163_vm3, %v17791_v53  ;;  %10027 = vmatpush3.msra.mxu1 %v15600_v16  ;;  %v8262_v16 = vld [vmem:[%s16013_s3 + $0x28] sm:$0xff] }
 0x42e   :  { %9988 = vmatmul.mubr.f32.vlgmr.msra.gmra.mxu0 %v7817_v54  ;;  %10005 = vmatprep.subr.mxu0 %v17791_v53 }
 0x42f   :  { %10028 = vmatprep.subr.mxu1 %v17791_v53  ;;  %10006 = vmatpush3.msra.mxu0 %v7849_v4  ;;  %v8375_v4 = vand.u32 4294901760, %v15797_v8 }
 0x430   :  { %10029 = vmatpush3.msra.mxu1 %v15615_v5  ;;  %10007 = vmatprep.subr.mxu0 %v17791_v53  ;;  %v15810_v5 = vand.u32 4294901760, %v8262_v16 }
 0x431   :  { %10030 = vmatprep.subr.mxu1 %v17791_v53  ;;  %10008 = vmatpush3.msra.mxu0 %v7856_v27  ;;  %v8261_v27 = vld [vmem:[%s16013_s3 + $0x20] sm:$0xff]  ;;  %v8376_v61 = vsub.f32 %v15797_v8, %v8375_v4 }
 0x432   :  { %10031 = vmatpush3.msra.mxu1 %v15627_v6  ;;  %10032 = vmatprep.mubr.msk.f32.mxu1 %vm10163_vm3, %v17791_v53  ;;  %v8382_v6 = vand.u32 4294901760, %v15808_v7  ;;  %v15825_v38 = vand.u32 4294901760, %v8261_v27 }
 0x433   :  { %10009 = vmatprep.subr.mxu0 %v17791_v53  ;;  %10033 = vmatmul.mubr.f32.vlgmr.msra.gmra.mxu1 %v7816_v1  ;;  %v8377_v34 = vand.u32 4294901760, %v8376_v61 }
 0x434   :  { %10010 = vmatpush3.msra.mxu0 %v7863_v51  ;;  %10017 = vmatprep.mubr.msk.f32.mxu0 %vm10163_vm3, %v17791_v53  ;;  %v15822_v51 = vsub.f32 %v8262_v16, %v15810_v5  ;;  %v15838_v60 = vsub.f32 %v8261_v27, %v15825_v38 }
 0x435   :  { %10011 = vmatprep.subr.mxu0 %v17791_v53  ;;  %10054 = vmatprep.subr.mxu1 %v17791_v53 }
 0x436   :  { %10012 = vmatpush3.msra.mxu0 %v7870_v18  ;;  %10070 = vmatprep.mubr.msk.f32.mxu1 %vm10163_vm3, %v17791_v53  ;;  %v8260_v18 = vld [vmem:[%s16013_s3 + $0x18] sm:$0xff]  ;;  %v8396_v43 = vand.u32 4294901760, %v15838_v60 }
 0x437   :  { %10013 = vmatprep.subr.mxu0 %v17791_v53  ;;  %v15835_v45 = vand.u32 4294901760, %v8260_v18  ;;  %10055 = vmatpush3.msra.mxu1 %v8377_v34 }
 0x438   :  { %10014 = vmatpush3.msra.mxu0 %v7877_v58  ;;  %v8383_v58 = vsub.f32 %v15808_v7, %v8382_v6  ;;  %10056 = vmatprep.subr.mxu1 %v17791_v53  ;;  %v8397_v62 = vsub.f32 %v15838_v60, %v8396_v43 }
 0x439   :  { %10015 = vmatprep.subr.mxu0 %v17791_v53  ;;  %v15848_v35 = vsub.f32 %v8260_v18, %v15835_v45 }
 0x43a   :  { %10016 = vmatpush3.msra.mxu0 %v7884_v12  ;;  %v8389_v12 = vand.u32 4294901760, %v15822_v51  ;;  %v8384_v14 = vand.u32 4294901760, %v8383_v58  ;;  %v8398_v33 = vand.u32 4294901760, %v8397_v62 }
 0x43b   :  { %10018 = vmatmul.mubr.f32.vlgmr.msra.gmra.mxu0 %v7816_v1  ;;  %10035 = vmatprep.subr.mxu0 %v17791_v53  ;;  %v8403_v2 = vand.u32 4294901760, %v15848_v35 }
 0x43c   :  { %10051 = vmatprep.mubr.msk.f32.mxu0 %vm10163_vm3, %v17791_v53  ;;  %10036 = vmatpush3.msra.mxu0 %v15791_v48  ;;  %v8390_v39 = vsub.f32 %v15822_v51, %v8389_v12 }
 0x43d   :  { %10037 = vmatprep.subr.mxu0 %v17791_v53  ;;  %10057 = vmatpush3.msra.mxu1 %v8384_v14  ;;  %v8404_v63 = vsub.f32 %v15848_v35, %v8403_v2 }
 0x43e   :  { %10038 = vmatpush3.msra.mxu0 %v15799_v40  ;;  %v8391_v30 = vand.u32 4294901760, %v8390_v39  ;;  %10058 = vmatprep.subr.mxu1 %v17791_v53 }
 0x43f   :  { %10039 = vmatprep.subr.mxu0 %v17791_v53  ;;  %v8405_v28 = vand.u32 4294901760, %v8404_v63 }
 0x440   :  { %10040 = vmatpush3.msra.mxu0 %v15810_v5  ;;  %10059 = vmatpush3.msra.mxu1 %v8391_v30 }
 0x441   :  { %10041 = vmatprep.subr.mxu0 %v17791_v53  ;;  %10060 = vmatprep.subr.mxu1 %v17791_v53 }
 0x442   :  { %10042 = vmatpush3.msra.mxu0 %v15825_v38  ;;  %10061 = vmatpush3.msra.mxu1 %v8398_v33 }
 0x443   :  { %10043 = vmatprep.subr.mxu0 %v17791_v53  ;;  %10062 = vmatprep.subr.mxu1 %v17791_v53 }
 0x444   :  { %10044 = vmatpush3.msra.mxu0 %v15835_v45  ;;  %10063 = vmatpush3.msra.mxu1 %v8405_v28 }
 0x445   :  { %10045 = vmatprep.subr.mxu0 %v17791_v53  ;;  %10064 = vmatprep.subr.mxu1 %v17791_v53 }
 0x446   :  { %10046 = vmatpush3.msra.mxu0 %v15850_v32  ;;  %10065 = vmatpush3.msra.mxu1 %v8412_v22 }
 0x447   :  { %10047 = vmatprep.subr.mxu0 %v17791_v53  ;;  %10066 = vmatprep.subr.mxu1 %v17791_v53 }
 0x448   :  { %10048 = vmatpush3.msra.mxu0 %v15863_v29  ;;  %10067 = vmatpush3.msra.mxu1 %v8419_v59 }
 0x449   :  { %10049 = vmatprep.subr.mxu0 %v17791_v53  ;;  %10068 = vmatprep.subr.mxu1 %v17791_v53 }
 0x44a   :  { %10050 = vmatpush3.msra.mxu0 %v15883_v3  ;;  %10069 = vmatpush3.msra.mxu1 %v8426_v0 }
 0x44b   :  { %10073 = vmatprep.subr.mxu0 %v17791_v53  ;;  %10092 = vmatprep.subr.mxu1 %v17791_v53 }
 0x44d   :  { %v9526_v20 = vpop.f32.mrf.mxu1 }
 0x44f   :  { %v9527_v23 = vpop.f32.mrf.mxu1 }
 0x450   :  { %v9528_v16 = vadd.f32 %v9527_v23, %v9526_v20 }
 0x455   :  { %v9491_v57 = vpop.f32.mrf.mxu0 }
 0x457   :  { %v9492_v50 = vpop.f32.mrf.mxu0 }
 0x458   :  { %v9493_v54 = vadd.f32 %v9492_v50, %v9491_v57 }
 0x45a   :  { %v6992_v47 = vadd.f32 %v9493_v54, %v8952_v24 }
 0x45c   :  { %v7224_v18 = vadd.f32 %v9528_v16, %v6992_v47  ;;  %v10159_v47 = vld [vmem:[%s16009_s0] sm:$0xff] }
 0x45d   :  { %10156 = vlog2.f32 %v10159_v47 }
 0x46e   :  { %v9596_v31 = vpop.f32.mrf.mxu1 }
 0x470   :  { %v9597_v52 = vpop.f32.mrf.mxu1 }
 0x471   :  { %v9598_v14 = vadd.f32 %v9597_v52, %v9596_v31 }
 0x476   :  { %v9561_v19 = vpop.f32.mrf.mxu0 }
 0x478   :  { %v9562_v9 = vpop.f32.mrf.mxu0 }
 0x479   :  { %v9563_v27 = vadd.f32 %v9562_v9, %v9561_v19 }
 0x47b   :  { %v7362_v58 = vadd.f32 %v9563_v27, %v7224_v18 }
 0x47d   :  { %v7470_v30 = vadd.f32 %v9598_v14, %v7362_v58 }
 0x490   :  { %v9666_v11 = vpop.f32.mrf.mxu1 }
 0x492   :  { %v9667_v37 = vpop.f32.mrf.mxu1 }
 0x493   :  { %v9668_v17 = vadd.f32 %v9667_v37, %v9666_v11 }
 0x497   :  { %v9631_v42 = vpop.f32.mrf.mxu0 }
 0x499   :  { %v9632_v10 = vpop.f32.mrf.mxu0 }
 0x49a   :  { %v9633_v39 = vadd.f32 %v9632_v10, %v9631_v42  ;;  %v10157_v10 = vpop.eup %10156 }
 0x49b   :  { %v8824_v16 = vmul.f32 0.6931472, %v10157_v10 }
 0x49c   :  { %v7638_v62 = vadd.f32 %v9633_v39, %v7470_v30 }
 0x49d   :  { %v8825_v27 = vmax.f32 %v8824_v16, -1e+38 }
 0x49e   :  { %v7742_v63 = vadd.f32 %v9668_v17, %v7638_v62 }
 0x4d9   :  { %v7923_v1 = vpop.f32.mrf.mxu1 }
 0x4db   :  { %v9974_v21 = vpop.f32.mrf.mxu1 }
 0x4e1   :  { %v7822_v61 = vpop.f32.mrf.mxu0 }
 0x4e2   :  { %v7823_v28 = vadd.f32 %v7822_v61, %v7742_v63 }
 0x4e3   :  { %v9959_v34 = vpop.f32.mrf.mxu0 }
 0x4e4   :  { %v7924_v55 = vadd.f32 %v7923_v1, %v7823_v28 }
 0x4e5   :  { %v8086_v25 = vpop.f32.mrf.mxu1 }
 0x4e7   :  { %v10004_v36 = vpop.f32.mrf.mxu1 }
 0x4ee   :  { %v8007_v33 = vpop.f32.mrf.mxu0 }
 0x4ef   :  { %v8008_v26 = vadd.f32 %v8007_v33, %v7924_v55 }
 0x4f0   :  { %v9989_v56 = vpop.f32.mrf.mxu0 }
 0x4f1   :  { %v8087_v0 = vadd.f32 %v8086_v25, %v8008_v26 }
 0x4f3   :  { %v8252_v22 = vpop.f32.mrf.mxu1 }
 0x4f5   :  { %v10034_v59 = vpop.f32.mrf.mxu1 }
 0x4fb   :  { %v8175_v20 = vpop.f32.mrf.mxu0 }
 0x4fc   :  { %v8176_v23 = vadd.f32 %v8175_v20, %v8087_v0 }
 0x4fd   :  { %v10019_v57 = vpop.f32.mrf.mxu0 }
 0x4fe   :  { %v8253_v50 = vadd.f32 %v8252_v22, %v8176_v23 }
 0x500   :  { %v8256_v31 = vmax.f32 %v8253_v50, 0.0 }
 0x502   :  { %v8271_v52 = vsel %vm8269_vm5, %v8256_v31, 0 }
 0x503   :  { %v15912_v19 = vand.u32 4294901760, %v8271_v52 }
 0x505   :  { %v8347_v11 = vsub.f32 %v8271_v52, %v15912_v19  ;;  %10071 = vmatmul.mubr.f32.vlgmr.msra.gmra.mxu1 %v15912_v19 }
 0x506   :  { %10093 = vmatpush3.msra.mxu1 %v15791_v48  ;;  %10108 = vmatprep.mubr.msk.f32.mxu1 %vm10163_vm3, %v17791_v53 }
 0x507   :  { %10094 = vmatprep.subr.mxu1 %v17791_v53  ;;  %v8348_v37 = vand.u32 4294901760, %v8347_v11 }
 0x508   :  { %10095 = vmatpush3.msra.mxu1 %v15799_v40 }
 0x509   :  { %10096 = vmatprep.subr.mxu1 %v17791_v53  ;;  %v8349_v9 = vsub.f32 %v8347_v11, %v8348_v37 }
 0x50a   :  { %10097 = vmatpush3.msra.mxu1 %v15810_v5 }
 0x50b   :  { %10098 = vmatprep.subr.mxu1 %v17791_v53  ;;  %v8350_v1 = vand.u32 4294901760, %v8349_v9 }
 0x50c   :  { %10099 = vmatpush3.msra.mxu1 %v15825_v38 }
 0x50d   :  { %10100 = vmatprep.subr.mxu1 %v17791_v53  ;;  %10052 = vmatmul.mubr.f32.vlgmr.msra.gmra.mxu0 %v8350_v1 }
 0x50e   :  { %10074 = vmatpush3.msra.mxu0 %v15797_v8  ;;  %10101 = vmatpush3.msra.mxu1 %v15835_v45 }
 0x50f   :  { %10075 = vmatprep.subr.mxu0 %v17791_v53  ;;  %10102 = vmatprep.subr.mxu1 %v17791_v53 }
 0x510   :  { %10076 = vmatpush3.msra.mxu0 %v15808_v7  ;;  %10103 = vmatpush3.msra.mxu1 %v15850_v32 }
 0x511   :  { %10077 = vmatprep.subr.mxu0 %v17791_v53  ;;  %10104 = vmatprep.subr.mxu1 %v17791_v53 }
 0x512   :  { %10078 = vmatpush3.msra.mxu0 %v15822_v51  ;;  %10105 = vmatpush3.msra.mxu1 %v15863_v29 }
 0x513   :  { %10079 = vmatprep.subr.mxu0 %v17791_v53  ;;  %10106 = vmatprep.subr.mxu1 %v17791_v53 }
 0x514   :  { %10080 = vmatpush3.msra.mxu0 %v15838_v60  ;;  %10107 = vmatpush3.msra.mxu1 %v15883_v3 }
 0x515   :  { %10081 = vmatprep.subr.mxu0 %v17791_v53  ;;  %10109 = vmatmul.mubr.f32.vlgmr.msra.gmra.mxu1 %v8348_v37 }
 0x516   :  { %10130 = vmatprep.subr.mxu1 %v17791_v53  ;;  %10082 = vmatpush3.msra.mxu0 %v15848_v35 }
 0x517   :  { %10131 = vmatpush3.msra.mxu1 %v15791_v48  ;;  %10083 = vmatprep.subr.mxu0 %v17791_v53 }
 0x518   :  { %10132 = vmatprep.subr.mxu1 %v17791_v53  ;;  %10084 = vmatpush3.msra.mxu0 %v15861_v49 }
 0x519   :  { %10133 = vmatpush3.msra.mxu1 %v15799_v40  ;;  %10085 = vmatprep.subr.mxu0 %v17791_v53 }
 0x51a   :  { %10134 = vmatprep.subr.mxu1 %v17791_v53  ;;  %10086 = vmatpush3.msra.mxu0 %v15879_v15 }
 0x51b   :  { %10135 = vmatpush3.msra.mxu1 %v15810_v5  ;;  %10087 = vmatprep.subr.mxu0 %v17791_v53 }
 0x51c   :  { %10136 = vmatprep.subr.mxu1 %v17791_v53  ;;  %10088 = vmatpush3.msra.mxu0 %v15892_v13  ;;  %v10164_v13 = vmov 64  }
 0x51d   :  { %10089 = vmatprep.mubr.msk.f32.mxu0 %vm10163_vm3, %v17791_v53  ;;  %10137 = vmatpush3.msra.mxu1 %v15825_v38  ;;  %v8953_v38 = vld [vmem:[%s16012_s4 + $0x2] ss:$0 sm:$0xff] }
 0x51e   :  { %10090 = vmatmul.mubr.f32.vlgmr.msra.gmra.mxu0 %v8347_v11  ;;  %10111 = vmatprep.subr.mxu0 %v17791_v53 }
 0x51f   :  { %10138 = vmatprep.subr.mxu1 %v17791_v53  ;;  %10112 = vmatpush3.msra.mxu0 %v8375_v4 }
 0x520   :  { %10139 = vmatpush3.msra.mxu1 %v15835_v45  ;;  %10113 = vmatprep.subr.mxu0 %v17791_v53 }
 0x521   :  { %10140 = vmatprep.subr.mxu1 %v17791_v53  ;;  %10114 = vmatpush3.msra.mxu0 %v8382_v6 }
 0x522   :  { %10141 = vmatpush3.msra.mxu1 %v15850_v32  ;;  %10115 = vmatprep.subr.mxu0 %v17791_v53 }
 0x523   :  { %10142 = vmatprep.subr.mxu1 %v17791_v53  ;;  %10116 = vmatpush3.msra.mxu0 %v8389_v12 }
 0x524   :  { %10143 = vmatpush3.msra.mxu1 %v15863_v29  ;;  %10117 = vmatprep.subr.mxu0 %v17791_v53 }
 0x525   :  { %10144 = vmatprep.subr.mxu1 %v17791_v53  ;;  %10118 = vmatpush3.msra.mxu0 %v8396_v43 }
 0x526   :  { %10145 = vmatpush3.msra.mxu1 %v15883_v3  ;;  %10146 = vmatprep.mubr.msk.f32.mxu1 %vm10163_vm3, %v17791_v53 }
 0x527   :  { %10119 = vmatprep.subr.mxu0 %v17791_v53  ;;  %10147 = vmatmul.mubr.f32.vlgmr.msra.gmra.mxu1 %v15912_v19 }
 0x528   :  { %10120 = vmatpush3.msra.mxu0 %v8403_v2  ;;  %10127 = vmatprep.mubr.msk.f32.mxu0 %vm10163_vm3, %v17791_v53 }
 0x529   :  { %10121 = vmatprep.subr.mxu0 %v17791_v53  ;;  %10154 = vset.pattern.permute.xlu1 %v10164_v13 }
 0x52a   :  { %10122 = vmatpush3.msra.mxu0 %v8410_v41  ;;  %v8954_v41 = vld [vmem:[%s16012_s4 + $0x3] ss:$0 sm:$0xff]  ;;  %10155 = vset.pattern.permute.xlu0 %v10164_v13 }
 0x52b   :  { %10123 = vmatprep.subr.mxu0 %v17791_v53 }
 0x52c   :  { %10124 = vmatpush3.msra.mxu0 %v8417_v44 }
 0x52d   :  { %10125 = vmatprep.subr.mxu0 %v17791_v53 }
 0x52e   :  { %10126 = vmatpush3.msra.mxu0 %v8424_v46 }
 0x52f   :  { %10128 = vmatmul.mubr.f32.vlgmr.msra.gmra.mxu0 %v15912_v19 }
 0x5c5   :  { %v8463_v48 = vpop.f32.mrf.mxu1 }
 0x5c7   :  { %v10072_v8 = vpop.f32.mrf.mxu1 }
 0x5cd   :  { %v8352_v40 = vpop.f32.mrf.mxu0 }
 0x5ce   :  { %v8353_v12 = vadd.f32 %v8953_v38, %v8352_v40 }
 0x5cf   :  { %v10053_v4 = vpop.f32.mrf.mxu0 }
 0x5d0   :  { %v8464_v53 = vadd.f32 %v8463_v48, %v8353_v12 }
 0x5d5   :  { %v8632_v7 = vpop.f32.mrf.mxu1 }
 0x5d7   :  { %v10110_v5 = vpop.f32.mrf.mxu1 }
 0x5de   :  { %v8551_v6 = vpop.f32.mrf.mxu0 }
 0x5df   :  { %v8552_v35 = vadd.f32 %v8551_v6, %v8464_v53 }
 0x5e0   :  { %v10091_v51 = vpop.f32.mrf.mxu0 }
 0x5e1   :  { %v8633_v32 = vadd.f32 %v8632_v7, %v8552_v35 }
 0x5e7   :  { %v8806_v45 = vpop.f32.mrf.mxu1 }
 0x5e9   :  { %v10148_v60 = vpop.f32.mrf.mxu1 }
 0x5ef   :  { %v8727_v43 = vpop.f32.mrf.mxu0 }
 0x5f0   :  { %v8728_v2 = vadd.f32 %v8727_v43, %v8633_v32 }
 0x5f1   :  { %v10129_v49 = vpop.f32.mrf.mxu0 }
 0x5f2   :  { %v8807_v29 = vadd.f32 %v8806_v45, %v8728_v2 }
 0x5f4   :  { %v8810_v15 = vmax.f32 %v8807_v29, 0.0 }
 0x5f6   :  { %v8815_v3 = vmul.f32 %v8954_v41, %v8810_v15 }
 0x5f8   :  { %v8816_v44 = vsel %vm8269_vm5, %v8815_v3, 0.0 }
 0x5f9   :  { %8817 = vadd.xlane.f32.xlu0 %v8816_v44 }
 0x682   :  { %v8818_v46 = vpop.xlane.xlu0 %8817 }
 0x683   :  { %v8819_v54 = vadd.f32 %v8954_v41, %v8818_v46 }
 0x685   :  { %v8820_v24 = vmax.f32 %v8819_v54, 0.0 }
 0x687   :  { %v8821_v42 = vmul.f32 0.0, %v8820_v24 }
 0x689   :  { %v8822_v21 = vadd.f32 1.0, %v8821_v42 }
 0x68b   :  { %8828 = vperm.xlu1 %10154, %v8822_v21  }
 0x706   :  { %v8829_v61 = vpop.permute.xlu1 %8828 }
 0x707   :  { %v8831_v18 = vadd.f32 %v8829_v61, %v8825_v27 }
 0x709   :  { %8833 = vst.msk [vmem:[%s16014_s5] sm:$0xff] %vm8832_vm6, %v8831_v18 }

</bundles_post_ra>
